<compile_context>
chip_gen: v7x
topology: tpu7x:2x2x1
jax: 0.10.0
libtpu: 0.0.40
codegen_flags: <defaults>
</compile_context>

<pallas_src>
import functools
import math

import jax
import jax.numpy as jnp
from jax.experimental import pallas as pl
from jax.experimental.pallas import tpu as pltpu

_INV_SQRT2 = 1.0 / math.sqrt(2.0)
_VMEM_LIMIT = 48 * 1024 * 1024  # fits every generation (v7x physical = 64 MiB)


def _fit_tile(dim, target):
    """Largest tile <= target that evenly divides dim (falls back to full dim)."""
    if dim <= target:
        return dim
    for cand in range(target, 0, -1):
        if dim % cand == 0:
            return cand
    return dim


def _gelu(x):
    # exact-erf GELU (matches torch.nn.GELU() default), computed in f32
    return 0.5 * x * (1.0 + jax.lax.erf(x * _INV_SQRT2))


# ------------- tiled matmul with fused epilogue (bias / GELU / residual / LN) -------------

def _dense_kernel(*refs, has_bias, has_res, has_ln, activation, eps, multi_k):
    it = iter(refs)
    x_ref = next(it)
    w_ref = next(it)
    b_ref = next(it) if has_bias else None
    r_ref = next(it) if has_res else None
    g_ref = next(it) if has_ln else None
    gb_ref = next(it) if has_ln else None
    o_ref = next(it)
    acc_ref = next(it) if multi_k else None

    def _epilogue(y):                         # y: f32 (tm, tn)
        if has_bias:
            y = y + b_ref[...]
        if activation == "gelu":
            y = _gelu(y)
        if has_ln:                            # LayerNorm over the (fully resident) features
            mu = jnp.mean(y, axis=-1, keepdims=True)
            var = jnp.mean(jnp.square(y - mu), axis=-1, keepdims=True)
            y = (y - mu) * jax.lax.rsqrt(var + eps)
            y = y * g_ref[...] + gb_ref[...]
        if has_res:
            y = y + r_ref[...]
        o_ref[...] = y.astype(o_ref.dtype)

    if not multi_k:
        # Single K tile: no accumulator scratch, no phase gating.
        _epilogue(jnp.dot(x_ref[...], w_ref[...],
                          preferred_element_type=jnp.float32))
    else:
        @pl.when(pl.program_id(2) == 0)
        def _():
            acc_ref[...] = jnp.zeros_like(acc_ref)

        acc_ref[...] += jnp.dot(x_ref[...], w_ref[...],
                                preferred_element_type=jnp.float32)

        @pl.when(pl.program_id(2) == pl.num_programs(2) - 1)
        def _():
            _epilogue(acc_ref[...])


def dense(x, w, b=None, *, activation=None, residual=None, out_ln=None,
          ln_eps=1e-6, tm=256, tn=256, tk=512, out_dtype=jnp.float32):
    """y = epilogue(x @ w [+ b]); bf16 operands into the MXU, f32 accumulation."""
    M, K = x.shape
    Kw, N = w.shape
    assert K == Kw
    tm = _fit_tile(M, tm)
    tn = _fit_tile(N, tn)
    tk = _fit_tile(K, tk)
    gm, gn, gk = M // tm, N // tn, K // tk
    multi_k = gk > 1

    args = [x.astype(jnp.bfloat16), w.astype(jnp.bfloat16)]
    in_specs = [pl.BlockSpec((tm, tk), lambda i, j, k: (i, k)),
                pl.BlockSpec((tk, tn), lambda i, j, k: (k, j))]
    if b is not None:
        args.append(b.reshape(1, N).astype(jnp.float32))
        in_specs.append(pl.BlockSpec((1, tn), lambda i, j, k: (0, j)))
    if residual is not None:
        args.append(residual.astype(jnp.float32))
        in_specs.append(pl.BlockSpec((tm, tn), lambda i, j, k: (i, j)))
    if out_ln is not None:
        assert gn == 1, "fused output LayerNorm needs the whole feature dim in one tile"
        g, gb = out_ln
        args += [g.reshape(1, N).astype(jnp.float32),
                 gb.reshape(1, N).astype(jnp.float32)]
        in_specs += [pl.BlockSpec((1, tn), lambda i, j, k: (0, j)),
                     pl.BlockSpec((1, tn), lambda i, j, k: (0, j))]

    kernel = functools.partial(
        _dense_kernel, has_bias=b is not None, has_res=residual is not None,
        has_ln=out_ln is not None, activation=activation, eps=ln_eps,
        multi_k=multi_k)

    return pl.pallas_call(
        kernel,
        out_shape=jax.ShapeDtypeStruct((M, N), out_dtype),
        grid=(gm, gn, gk),
        in_specs=in_specs,
        out_specs=pl.BlockSpec((tm, tn), lambda i, j, k: (i, j)),
        scratch_shapes=[pltpu.VMEM((tm, tn), jnp.float32)] if multi_k else [],
        compiler_params=pltpu.CompilerParams(
            dimension_semantics=("parallel", "parallel", "arbitrary"),
            vmem_limit_bytes=_VMEM_LIMIT),
    )(*args)


# ------------------- LayerNorm fused into the following matmul (LN -> dense) -------------------

def _ln_dense_kernel(x_ref, g_ref, b_ref, w_ref, bias_ref, o_ref, xn_ref, *,
                     eps, activation):
    # Normalize the (tm, K) row block once per row tile (j == 0), stash it in VMEM
    # as bf16 and reuse it across all N tiles: the LN output never touches HBM.
    @pl.when(pl.program_id(1) == 0)
    def _():
        x = x_ref[...].astype(jnp.float32)
        mu = jnp.mean(x, axis=-1, keepdims=True)
        var = jnp.mean(jnp.square(x - mu), axis=-1, keepdims=True)
        xn = (x - mu) * jax.lax.rsqrt(var + eps) * g_ref[...] + b_ref[...]
        xn_ref[...] = xn.astype(xn_ref.dtype)

    y = jnp.dot(xn_ref[...], w_ref[...], preferred_element_type=jnp.float32)
    y = y + bias_ref[...]
    if activation == "gelu":
        y = _gelu(y)
    o_ref[...] = y.astype(o_ref.dtype)


def ln_dense(x, g, b, w, bias, *, activation=None, eps=1e-6, tm=256, tn=256,
             out_dtype=jnp.float32):
    """LayerNorm(x) @ w + bias (optionally GELU), LN fused into the matmul."""
    M, K = x.shape
    Kw, N = w.shape
    assert K == Kw
    tm = _fit_tile(M, tm)
    tn = _fit_tile(N, tn)
    gm, gn = M // tm, N // tn

    return pl.pallas_call(
        functools.partial(_ln_dense_kernel, eps=eps, activation=activation),
        out_shape=jax.ShapeDtypeStruct((M, N), out_dtype),
        grid=(gm, gn),
        in_specs=[pl.BlockSpec((tm, K), lambda i, j: (i, 0)),
                  pl.BlockSpec((1, K), lambda i, j: (0, 0)),
                  pl.BlockSpec((1, K), lambda i, j: (0, 0)),
                  pl.BlockSpec((K, tn), lambda i, j: (0, j)),
                  pl.BlockSpec((1, tn), lambda i, j: (0, j))],
        out_specs=pl.BlockSpec((tm, tn), lambda i, j: (i, j)),
        scratch_shapes=[pltpu.VMEM((tm, K), jnp.bfloat16)],
        compiler_params=pltpu.CompilerParams(
            dimension_semantics=("parallel", "arbitrary"),
            vmem_limit_bytes=_VMEM_LIMIT),
    )(x.astype(jnp.float32),
      g.reshape(1, K).astype(jnp.float32),
      b.reshape(1, K).astype(jnp.float32),
      w.astype(jnp.bfloat16),
      bias.reshape(1, N).astype(jnp.float32))


# ---------------------------- flash attention off the qkv slab ----------------------------

def _flash_attn_kernel(q_ref, k_ref, v_ref, o_ref, m_ref, l_ref, acc_ref, *, scale):
    kv = pl.program_id(3)

    @pl.when(kv == 0)
    def _():
        m_ref[...] = jnp.full_like(m_ref, -jnp.inf)
        l_ref[...] = jnp.zeros_like(l_ref)
        acc_ref[...] = jnp.zeros_like(acc_ref)

    q = q_ref[...]                                    # (tq, hd)  bf16
    k = k_ref[...]                                    # (tkv, hd) bf16
    v = v_ref[...]                                    # (tkv, hd) bf16

    # s = (q @ k^T) * scale — contract on head_dim directly, no in-kernel transpose.
    s = jax.lax.dot_general(q, k, (((1,), (1,)), ((), ())),
                            preferred_element_type=jnp.float32) * scale

    m_prev = m_ref[...]
    m_new = jnp.maximum(m_prev, jnp.max(s, axis=-1, keepdims=True))
    alpha = jnp.exp(m_prev - m_new)                   # f32 softmax math
    p = jnp.exp(s - m_new)
    l_ref[...] = alpha * l_ref[...] + jnp.sum(p, axis=-1, keepdims=True)
    acc_ref[...] = alpha * acc_ref[...] + jnp.dot(
        p.astype(jnp.bfloat16), v, preferred_element_type=jnp.float32)
    m_ref[...] = m_new

    @pl.when(kv == pl.num_programs(3) - 1)
    def _():
        o_ref[...] = (acc_ref[...] *
                      pl.reciprocal(l_ref[...], approx=True)).astype(o_ref.dtype)


def attention(qkv, *, batch, seq, num_heads, head_dim, tq=128, tkv=128,
              out_dtype=jnp.float32):
    """MHSA straight off the [B*N, 3*D] qkv slab (q | k | v, each (head, dim)-major).

    Per-(batch, head, q-tile, kv-tile) grid; q/k/v/output windows are selected by
    BlockSpec index maps, so no reshape/transpose of the qkv tensor ever hits HBM.
    head_dim should be a multiple of 128 so every block is lane-dense.
    """
    D = num_heads * head_dim
    assert qkv.shape == (batch * seq, 3 * D)
    tq = _fit_tile(seq, tq)
    tkv = _fit_tile(seq, tkv)
    gq, gkv = seq // tq, seq // tkv
    scale = head_dim ** -0.5

    qkv_bf = qkv if qkv.dtype == jnp.bfloat16 else qkv.astype(jnp.bfloat16)

    q_spec = pl.BlockSpec((tq, head_dim), lambda b, h, qi, ki: (b * gq + qi, h))
    k_spec = pl.BlockSpec((tkv, head_dim),
                          lambda b, h, qi, ki: (b * gkv + ki, num_heads + h))
    v_spec = pl.BlockSpec((tkv, head_dim),
                          lambda b, h, qi, ki: (b * gkv + ki, 2 * num_heads + h))
    o_spec = pl.BlockSpec((tq, head_dim), lambda b, h, qi, ki: (b * gq + qi, h))

    return pl.pallas_call(
        functools.partial(_flash_attn_kernel, scale=scale),
        out_shape=jax.ShapeDtypeStruct((batch * seq, D), out_dtype),
        grid=(batch, num_heads, gq, gkv),
        in_specs=[q_spec, k_spec, v_spec],
        out_specs=o_spec,
        scratch_shapes=[pltpu.VMEM((tq, 1), jnp.float32),
                        pltpu.VMEM((tq, 1), jnp.float32),
                        pltpu.VMEM((tq, head_dim), jnp.float32)],
        compiler_params=pltpu.CompilerParams(
            dimension_semantics=("parallel", "parallel", "parallel", "arbitrary"),
            vmem_limit_bytes=_VMEM_LIMIT),
    )(qkv_bf, qkv_bf, qkv_bf)


# ----------------- neck 3x3 conv (pad 1, no bias) + fused LayerNorm2d -----------------

def _conv3x3_ln_kernel(x_ref, w_ref, g_ref, b_ref, o_ref, *, hp, wp, eps):
    # x_ref: (1, hp+2, wp+2, Cin) zero-padded NHWC tile (bf16)
    # w_ref: (9, Cin, Cout) bf16; g/b: (1, Cout) f32; o_ref: (hp*wp, Cout) f32
    x = x_ref[...]
    cout = w_ref.shape[-1]
    for i in range(hp):                       # unrolled: hp is small & static
        acc = jnp.zeros((wp, cout), jnp.float32)
        for kh in range(3):
            for kw in range(3):
                patch = x[0, i + kh, kw:kw + wp, :]          # (wp, Cin)
                acc = acc + jnp.dot(patch, w_ref[kh * 3 + kw],
                                    preferred_element_type=jnp.float32)
        # fused LayerNorm2d over channels (channels-last here)
        mu = jnp.mean(acc, axis=-1, keepdims=True)
        var = jnp.mean(jnp.square(acc - mu), axis=-1, keepdims=True)
        y = (acc - mu) * jax.lax.rsqrt(var + eps) * g_ref[...] + b_ref[...]
        o_ref[i * wp:(i + 1) * wp, :] = y.astype(o_ref.dtype)


def conv3x3_ln(x_nhwc, w_oihw, g, b, *, eps=1e-6):
    """3x3 / stride 1 / pad 1 / no-bias conv + LayerNorm2d: NHWC in, [B*H*W, C] out.

    The 9 taps are accumulated as shifted matmuls inside the kernel (no im2col
    blow-up in HBM); one padded image per batch element stays resident in VMEM.
    """
    # TODO(synk): at real SAM scale (64x64 spatial) tile the spatial dims with a
    # 1-pixel halo instead of keeping the whole padded image per batch in VMEM.
    B, Hp, Wp, Cin = x_nhwc.shape
    Cout = w_oihw.shape[0]
    xpad = jnp.pad(x_nhwc, ((0, 0), (1, 1), (1, 1), (0, 0))).astype(jnp.bfloat16)
    w = w_oihw.transpose(2, 3, 1, 0).reshape(9, Cin, Cout).astype(jnp.bfloat16)

    return pl.pallas_call(
        functools.partial(_conv3x3_ln_kernel, hp=Hp, wp=Wp, eps=eps),
        out_shape=jax.ShapeDtypeStruct((B * Hp * Wp, Cout), jnp.float32),
        grid=(B,),
        in_specs=[pl.BlockSpec((1, Hp + 2, Wp + 2, Cin), lambda i: (i, 0, 0, 0)),
                  pl.BlockSpec((9, Cin, Cout), lambda i: (0, 0, 0)),
                  pl.BlockSpec((1, Cout), lambda i: (0, 0)),
                  pl.BlockSpec((1, Cout), lambda i: (0, 0))],
        out_specs=pl.BlockSpec((Hp * Wp, Cout), lambda i: (i, 0)),
        compiler_params=pltpu.CompilerParams(
            dimension_semantics=("parallel",),
            vmem_limit_bytes=_VMEM_LIMIT),
    )(xpad, w, g.reshape(1, Cout).astype(jnp.float32),
      b.reshape(1, Cout).astype(jnp.float32))


# --------------------------- Parameters (synthetic) -------------------------

def init_params(key, *, in_chans=3, patch=4, embed_dim=256, depth=2,
                mlp_ratio=4, out_chans=128, hp=4, wp=4):
    keys = jax.random.split(key, 64)
    kit = iter(keys)

    def nrm(shape, s=0.02):
        return jax.random.normal(next(kit), shape, jnp.float32) * s

    hidden = embed_dim * mlp_ratio
    params = {
        # PyTorch Conv2d weight layout OIHW
        "patch_w": nrm((embed_dim, in_chans, patch, patch)),
        "patch_b": nrm((embed_dim,)),
        "pos_embed": nrm((1, hp, wp, embed_dim)),
        "blocks": [],
        "neck_conv1_w": nrm((out_chans, embed_dim, 1, 1)),
        "neck_ln1_g": jnp.ones((out_chans,), jnp.float32),
        "neck_ln1_b": jnp.zeros((out_chans,), jnp.float32),
        "neck_conv2_w": nrm((out_chans, out_chans, 3, 3)),
        "neck_ln2_g": jnp.ones((out_chans,), jnp.float32),
        "neck_ln2_b": jnp.zeros((out_chans,), jnp.float32),
    }
    for _ in range(depth):
        params["blocks"].append(dict(
            ln1_g=jnp.ones((embed_dim,), jnp.float32),
            ln1_b=jnp.zeros((embed_dim,), jnp.float32),
            qkv_w=nrm((embed_dim, 3 * embed_dim)), qkv_b=nrm((3 * embed_dim,)),
            proj_w=nrm((embed_dim, embed_dim)), proj_b=nrm((embed_dim,)),
            ln2_g=jnp.ones((embed_dim,), jnp.float32),
            ln2_b=jnp.zeros((embed_dim,), jnp.float32),
            fc1_w=nrm((embed_dim, hidden)), fc1_b=nrm((hidden,)),
            fc2_w=nrm((hidden, embed_dim)), fc2_b=nrm((embed_dim,)),
        ))
    return params


# ------------------------------- Forward pass -------------------------------

def sam_encoder_forward(x, params, *, patch=4, num_heads=2):
    B, C, H, W = x.shape
    Hp, Wp = H // patch, W // patch
    D = params["patch_w"].shape[0]
    N = Hp * Wp
    hd = D // num_heads
    # TODO(synk): for real vit_h head_dim=80 — pad heads to a lane multiple (128)
    # before the attention kernel to keep blocks lane-dense.

    # --- patch embed: Conv2d(k=stride=patch) == matmul over flattened patches;
    #     the abs pos-embed add is fused into the matmul epilogue as a residual ---
    xp = x.reshape(B, C, Hp, patch, Wp, patch)
    xp = xp.transpose(0, 2, 4, 1, 3, 5).reshape(B * N, C * patch * patch)   # (c, ki, kj)
    w_pe = params["patch_w"].reshape(D, C * patch * patch).T                # [C*p*p, D]
    pos = jnp.tile(params["pos_embed"].reshape(N, D), (B, 1))               # [B*N, D]
    t = dense(xp, w_pe, params["patch_b"], residual=pos)                    # [B*N, D] f32

    # --- transformer blocks (global attention, no rel-pos) ---
    for blk in params["blocks"]:
        # LN1 fused into the qkv projection; heads sliced straight off the qkv slab.
        # qkv emitted bf16: it only feeds the attention matmuls (no wrapper cast).
        qkv = ln_dense(t, blk["ln1_g"], blk["ln1_b"], blk["qkv_w"], blk["qkv_b"],
                       out_dtype=jnp.bfloat16)
        o = attention(qkv, batch=B, seq=N, num_heads=num_heads, head_dim=hd,
                      out_dtype=jnp.bfloat16)
        # output projection with the residual add fused into the epilogue (f32 stream)
        t = dense(o, blk["proj_w"], blk["proj_b"], residual=t)

        # LN2 + fc1 + exact-erf GELU fused (bf16 out: only feeds fc2's MXU);
        # fc2 with fused residual add back onto the f32 stream.
        h = ln_dense(t, blk["ln2_g"], blk["ln2_b"], blk["fc1_w"], blk["fc1_b"],
                     activation="gelu", out_dtype=jnp.bfloat16)
        t = dense(h, blk["fc2_w"], blk["fc2_b"], residual=t)

    # --- neck: 1x1 conv (no bias) + LN2d fused; 3x3 conv (pad 1, no bias) + LN2d fused ---
    out_chans = params["neck_conv1_w"].shape[0]
    w1 = params["neck_conv1_w"].reshape(out_chans, D).T                     # [D, out]
    y = dense(t, w1, None, out_ln=(params["neck_ln1_g"], params["neck_ln1_b"]),
              out_dtype=jnp.bfloat16)                                       # feeds conv MXU
    y = y.reshape(B, Hp, Wp, out_chans)
    z = conv3x3_ln(y, params["neck_conv2_w"],
                   params["neck_ln2_g"], params["neck_ln2_b"])
    z = z.reshape(B, Hp, Wp, out_chans).transpose(0, 3, 1, 2)               # back to NCHW
    return z


# ---------------------------------- main ------------------------------------

if __name__ == "__main__":
    key = jax.random.PRNGKey(0)
    kx, kp = jax.random.split(key)

    B, in_chans, H, W = 2, 3, 16, 16
    patch, embed_dim, depth, num_heads = 4, 256, 2, 2      # head_dim = 128 (lane-dense)
    out_chans = 128

    x = jax.random.normal(kx, (B, in_chans, H, W), jnp.float32)   # NCHW like PyTorch
    params = init_params(kp, in_chans=in_chans, patch=patch, embed_dim=embed_dim,
                         depth=depth, mlp_ratio=4, out_chans=out_chans,
                         hp=H // patch, wp=W // patch)

    fwd = jax.jit(functools.partial(sam_encoder_forward, patch=patch,
                                    num_heads=num_heads))
    out = fwd(x, params)
    jax.block_until_ready(out)

    assert out.shape == (B, out_chans, H // patch, W // patch), out.shape
    assert out.dtype == jnp.float32
    assert bool(jnp.all(jnp.isfinite(out)))
    print("KERNEL_OK")
</pallas_src>

<mosaic_0001>
module attributes {stable_mosaic.version = 11 : i64} {
  func.func @_flash_attn_kernel(%arg0: i32, %arg1: i32, %arg2: i32, %arg3: i32, %arg4: memref<16x128xbf16, #tpu.memory_space<vmem>>, %arg5: memref<16x128xbf16, #tpu.memory_space<vmem>>, %arg6: memref<16x128xbf16, #tpu.memory_space<vmem>>, %arg7: memref<16x128xbf16, #tpu.memory_space<vmem>>, %arg8: memref<16x1xf32, #tpu.memory_space<vmem>>, %arg9: memref<16x1xf32, #tpu.memory_space<vmem>>, %arg10: memref<16x128xf32, #tpu.memory_space<vmem>>) attributes {dimension_semantics = [#tpu.dimension_semantics<parallel>, #tpu.dimension_semantics<parallel>, #tpu.dimension_semantics<parallel>, #tpu.dimension_semantics<arbitrary>], iteration_bounds = array<i64: 2, 2, 1, 1>, scalar_prefetch = 0 : i64, scratch_operands = 3 : i64, tpu.core_type = #tpu.core_type<tc>, window_params = [{transform_indices = @transform_0, window_bounds = array<i64: 16, 128>}, {transform_indices = @transform_1, window_bounds = array<i64: 16, 128>}, {transform_indices = @transform_2, window_bounds = array<i64: 16, 128>}, {transform_indices = @transform_3, window_bounds = array<i64: 16, 128>}]} {
    %c0_i32 = arith.constant 0 : i32
    %0 = arith.cmpi eq, %arg3, %c0_i32 : i32
    %1 = arith.extui %0 : i1 to i32
    %c0_i32_0 = arith.constant 0 : i32
    %2 = arith.cmpi ne, %1, %c0_i32_0 : i32
    scf.if %2 {
      %cst_24 = arith.constant 0xFF800000 : f32
      %35 = vector.broadcast %cst_24 : f32 to vector<16x1xf32>
      %c0_25 = arith.constant 0 : index
      %c0_26 = arith.constant 0 : index
      %36 = vector.load %arg8[%c0_25, %c0_26] : memref<16x1xf32, #tpu.memory_space<vmem>>, vector<16x1xf32>
      tpu.vector_store %arg8[%c0_25, %c0_26], %35 {strides = array<i32>} : memref<16x1xf32, #tpu.memory_space<vmem>>, vector<16x1xf32>,
      %cst_27 = arith.constant 0.000000e+00 : f32
      %37 = vector.broadcast %cst_27 : f32 to vector<16x1xf32>
      %c0_28 = arith.constant 0 : index
      %c0_29 = arith.constant 0 : index
      %38 = vector.load %arg9[%c0_28, %c0_29] : memref<16x1xf32, #tpu.memory_space<vmem>>, vector<16x1xf32>
      tpu.vector_store %arg9[%c0_28, %c0_29], %37 {strides = array<i32>} : memref<16x1xf32, #tpu.memory_space<vmem>>, vector<16x1xf32>,
      %cst_30 = arith.constant 0.000000e+00 : f32
      %39 = vector.broadcast %cst_30 : f32 to vector<16x128xf32>
      %c0_31 = arith.constant 0 : index
      %c0_32 = arith.constant 0 : index
      %40 = vector.load %arg10[%c0_31, %c0_32] : memref<16x128xf32, #tpu.memory_space<vmem>>, vector<16x128xf32>
      tpu.vector_store %arg10[%c0_31, %c0_32], %39 {strides = array<i32>} : memref<16x128xf32, #tpu.memory_space<vmem>>, vector<16x128xf32>,
    } else {
    }
    %c0 = arith.constant 0 : index
    %c0_1 = arith.constant 0 : index
    %3 = vector.load %arg4[%c0, %c0_1] : memref<16x128xbf16, #tpu.memory_space<vmem>>, vector<16x128xbf16>
    %c0_2 = arith.constant 0 : index
    %c0_3 = arith.constant 0 : index
    %4 = vector.load %arg5[%c0_2, %c0_3] : memref<16x128xbf16, #tpu.memory_space<vmem>>, vector<16x128xbf16>
    %c0_4 = arith.constant 0 : index
    %c0_5 = arith.constant 0 : index
    %5 = vector.load %arg6[%c0_4, %c0_5] : memref<16x128xbf16, #tpu.memory_space<vmem>>, vector<16x128xbf16>
    %cst = arith.constant dense<0.000000e+00> : vector<16x16xf32>
    %6 = tpu.matmul %3, %4, %cst {dimension_numbers = #tpu.dot_dimension_numbers<[1], [1], [0], [0], [0, 0, 1, 0], [], []>} : vector<16x128xbf16>, vector<16x128xbf16>, vector<16x16xf32> -> vector<16x16xf32>
    %cst_6 = arith.constant 0.0883883461 : f32
    %7 = vector.broadcast %cst_6 : f32 to vector<16x16xf32>
    %8 = arith.mulf %6, %7 : vector<16x16xf32>
    %c0_7 = arith.constant 0 : index
    %c0_8 = arith.constant 0 : index
    %9 = vector.load %arg8[%c0_7, %c0_8] : memref<16x1xf32, #tpu.memory_space<vmem>>, vector<16x1xf32>
    %cst_9 = arith.constant dense<0xFF800000> : vector<16xf32>
    %10 = vector.multi_reduction <maximumf>, %8, %cst_9 [1] : vector<16x16xf32> to vector<16xf32>
    %11 = vector.shape_cast %10 : vector<16xf32> to vector<16x1xf32>
    %12 = arith.maximumf %9, %11 : vector<16x1xf32>
    %13 = arith.subf %9, %12 : vector<16x1xf32>
    %14 = math.exp %13 : vector<16x1xf32>
    %15 = vector.broadcast %12 : vector<16x1xf32> to vector<16x16xf32>
    %16 = arith.subf %8, %15 : vector<16x16xf32>
    %17 = math.exp %16 : vector<16x16xf32>
    %c0_10 = arith.constant 0 : index
    %c0_11 = arith.constant 0 : index
    %18 = vector.load %arg9[%c0_10, %c0_11] : memref<16x1xf32, #tpu.memory_space<vmem>>, vector<16x1xf32>
    %19 = arith.mulf %14, %18 : vector<16x1xf32>
    %cst_12 = arith.constant dense<0.000000e+00> : vector<16xf32>
    %20 = vector.multi_reduction <add>, %17, %cst_12 [1] : vector<16x16xf32> to vector<16xf32>
    %21 = vector.shape_cast %20 : vector<16xf32> to vector<16x1xf32>
    %22 = arith.addf %19, %21 : vector<16x1xf32>
    %c0_13 = arith.constant 0 : index
    %c0_14 = arith.constant 0 : index
    %23 = vector.load %arg9[%c0_13, %c0_14] : memref<16x1xf32, #tpu.memory_space<vmem>>, vector<16x1xf32>
    tpu.vector_store %arg9[%c0_13, %c0_14], %22 {strides = array<i32>} : memref<16x1xf32, #tpu.memory_space<vmem>>, vector<16x1xf32>,
    %c0_15 = arith.constant 0 : index
    %c0_16 = arith.constant 0 : index
    %24 = vector.load %arg10[%c0_15, %c0_16] : memref<16x128xf32, #tpu.memory_space<vmem>>, vector<16x128xf32>
    %25 = vector.broadcast %14 : vector<16x1xf32> to vector<16x128xf32>
    %26 = arith.mulf %25, %24 : vector<16x128xf32>
    %27 = arith.truncf %17 : vector<16x16xf32> to vector<16x16xbf16>
    %cst_17 = arith.constant dense<0.000000e+00> : vector<16x128xf32>
    %28 = tpu.matmul %27, %5, %cst_17 {dimension_numbers = #tpu.dot_dimension_numbers<[1], [0], [0], [1], [0, 0, 1, 1], [], []>} : vector<16x16xbf16>, vector<16x128xbf16>, vector<16x128xf32> -> vector<16x128xf32>
    %29 = arith.addf %26, %28 : vector<16x128xf32>
    %c0_18 = arith.constant 0 : index
    %c0_19 = arith.constant 0 : index
    %30 = vector.load %arg10[%c0_18, %c0_19] : memref<16x128xf32, #tpu.memory_space<vmem>>, vector<16x128xf32>
    tpu.vector_store %arg10[%c0_18, %c0_19], %29 {strides = array<i32>} : memref<16x128xf32, #tpu.memory_space<vmem>>, vector<16x128xf32>,
    %c0_20 = arith.constant 0 : index
    %c0_21 = arith.constant 0 : index
    %31 = vector.load %arg8[%c0_20, %c0_21] : memref<16x1xf32, #tpu.memory_space<vmem>>, vector<16x1xf32>
    tpu.vector_store %arg8[%c0_20, %c0_21], %12 {strides = array<i32>} : memref<16x1xf32, #tpu.memory_space<vmem>>, vector<16x1xf32>,
    %c0_i32_22 = arith.constant 0 : i32
    %32 = arith.cmpi eq, %arg3, %c0_i32_22 : i32
    %33 = arith.extui %32 : i1 to i32
    %c0_i32_23 = arith.constant 0 : i32
    %34 = arith.cmpi ne, %33, %c0_i32_23 : i32
    scf.if %34 {
      %c0_24 = arith.constant 0 : index
      %c0_25 = arith.constant 0 : index
      %35 = vector.load %arg10[%c0_24, %c0_25] : memref<16x128xf32, #tpu.memory_space<vmem>>, vector<16x128xf32>
      %c0_26 = arith.constant 0 : index
      %c0_27 = arith.constant 0 : index
      %36 = vector.load %arg9[%c0_26, %c0_27] : memref<16x1xf32, #tpu.memory_space<vmem>>, vector<16x1xf32>
      %37 = tpu.reciprocal %36 {approx = true} : vector<16x1xf32> -> vector<16x1xf32>
      %38 = vector.broadcast %37 : vector<16x1xf32> to vector<16x128xf32>
      %39 = arith.mulf %35, %38 : vector<16x128xf32>
      %40 = arith.truncf %39 : vector<16x128xf32> to vector<16x128xbf16>
      %c0_28 = arith.constant 0 : index
      %c0_29 = arith.constant 0 : index
      %41 = vector.load %arg7[%c0_28, %c0_29] : memref<16x128xbf16, #tpu.memory_space<vmem>>, vector<16x128xbf16>
      tpu.vector_store %arg7[%c0_28, %c0_29], %40 {strides = array<i32>} : memref<16x128xbf16, #tpu.memory_space<vmem>>, vector<16x128xbf16>,
    } else {
    }
    return
  }
  func.func @transform_0(%arg0: i32, %arg1: i32, %arg2: i32, %arg3: i32) -> (i32, i32) {
    %c1_i32 = arith.constant 1 : i32
    %0 = arith.muli %arg0, %c1_i32 : i32
    %1 = arith.addi %0, %arg2 : i32
    %c0_i32 = arith.constant 0 : i32
    return %1, %arg1 : i32, i32
  }
  func.func @transform_1(%arg0: i32, %arg1: i32, %arg2: i32, %arg3: i32) -> (i32, i32) {
    %c1_i32 = arith.constant 1 : i32
    %0 = arith.muli %arg0, %c1_i32 : i32
    %1 = arith.addi %0, %arg3 : i32
    %c2_i32 = arith.constant 2 : i32
    %2 = arith.addi %c2_i32, %arg1 : i32
    %c0_i32 = arith.constant 0 : i32
    return %1, %2 : i32, i32
  }
  func.func @transform_2(%arg0: i32, %arg1: i32, %arg2: i32, %arg3: i32) -> (i32, i32) {
    %c1_i32 = arith.constant 1 : i32
    %0 = arith.muli %arg0, %c1_i32 : i32
    %1 = arith.addi %0, %arg3 : i32
    %c4_i32 = arith.constant 4 : i32
    %2 = arith.addi %c4_i32, %arg1 : i32
    %c0_i32 = arith.constant 0 : i32
    return %1, %2 : i32, i32
  }
  func.func @transform_3(%arg0: i32, %arg1: i32, %arg2: i32, %arg3: i32) -> (i32, i32) {
    %c1_i32 = arith.constant 1 : i32
    %0 = arith.muli %arg0, %c1_i32 : i32
    %1 = arith.addi %0, %arg2 : i32
    %c0_i32 = arith.constant 0 : i32
    return %1, %arg1 : i32, i32
  }
}

module attributes {stable_mosaic.version = 11 : i64} {
  func.func @_dense_kernel(%arg0: i32, %arg1: i32, %arg2: i32, %arg3: memref<32x48xbf16, #tpu.memory_space<vmem>>, %arg4: memref<48x256xbf16, #tpu.memory_space<vmem>>, %arg5: memref<1x256xf32, #tpu.memory_space<vmem>>, %arg6: memref<32x256xf32, #tpu.memory_space<vmem>>, %arg7: memref<32x256xf32, #tpu.memory_space<vmem>>) attributes {dimension_semantics = [#tpu.dimension_semantics<parallel>, #tpu.dimension_semantics<parallel>, #tpu.dimension_semantics<arbitrary>], iteration_bounds = array<i64: 1, 1, 1>, scalar_prefetch = 0 : i64, scratch_operands = 0 : i64, tpu.core_type = #tpu.core_type<tc>, window_params = [{transform_indices = @transform_0, window_bounds = array<i64: 32, 48>}, {transform_indices = @transform_1, window_bounds = array<i64: 48, 256>}, {transform_indices = @transform_2, window_bounds = array<i64: 1, 256>}, {transform_indices = @transform_3, window_bounds = array<i64: 32, 256>}, {transform_indices = @transform_4, window_bounds = array<i64: 32, 256>}]} {
    %c0 = arith.constant 0 : index
    %c0_0 = arith.constant 0 : index
    %0 = vector.load %arg3[%c0, %c0_0] : memref<32x48xbf16, #tpu.memory_space<vmem>>, vector<32x48xbf16>
    %c0_1 = arith.constant 0 : index
    %c0_2 = arith.constant 0 : index
    %1 = vector.load %arg4[%c0_1, %c0_2] : memref<48x256xbf16, #tpu.memory_space<vmem>>, vector<48x256xbf16>
    %cst = arith.constant dense<0.000000e+00> : vector<32x256xf32>
    %2 = tpu.matmul %0, %1, %cst {dimension_numbers = #tpu.dot_dimension_numbers<[1], [0], [0], [1], [0, 0, 1, 1], [], []>} : vector<32x48xbf16>, vector<48x256xbf16>, vector<32x256xf32> -> vector<32x256xf32>
    %c0_3 = arith.constant 0 : index
    %c0_4 = arith.constant 0 : index
    %3 = vector.load %arg5[%c0_3, %c0_4] : memref<1x256xf32, #tpu.memory_space<vmem>>, vector<1x256xf32>
    %4 = vector.broadcast %3 : vector<1x256xf32> to vector<32x256xf32>
    %5 = arith.addf %2, %4 : vector<32x256xf32>
    %c0_5 = arith.constant 0 : index
    %c0_6 = arith.constant 0 : index
    %6 = vector.load %arg6[%c0_5, %c0_6] : memref<32x256xf32, #tpu.memory_space<vmem>>, vector<32x256xf32>
    %7 = arith.addf %5, %6 : vector<32x256xf32>
    %c0_7 = arith.constant 0 : index
    %c0_8 = arith.constant 0 : index
    %8 = vector.load %arg7[%c0_7, %c0_8] : memref<32x256xf32, #tpu.memory_space<vmem>>, vector<32x256xf32>
    tpu.vector_store %arg7[%c0_7, %c0_8], %7 {strides = array<i32>} : memref<32x256xf32, #tpu.memory_space<vmem>>, vector<32x256xf32>,
    return
  }
  func.func @transform_0(%arg0: i32, %arg1: i32, %arg2: i32) -> (i32, i32) {
    %c0_i32 = arith.constant 0 : i32
    return %arg0, %arg2 : i32, i32
  }
  func.func @transform_1(%arg0: i32, %arg1: i32, %arg2: i32) -> (i32, i32) {
    %c0_i32 = arith.constant 0 : i32
    return %arg2, %arg1 : i32, i32
  }
  func.func @transform_2(%arg0: i32, %arg1: i32, %arg2: i32) -> (i32, i32) {
    %c0_i32 = arith.constant 0 : i32
    %c0_i32_0 = arith.constant 0 : i32
    return %c0_i32, %arg1 : i32, i32
  }
  func.func @transform_3(%arg0: i32, %arg1: i32, %arg2: i32) -> (i32, i32) {
    %c0_i32 = arith.constant 0 : i32
    return %arg0, %arg1 : i32, i32
  }
  func.func @transform_4(%arg0: i32, %arg1: i32, %arg2: i32) -> (i32, i32) {
    %c0_i32 = arith.constant 0 : i32
    return %arg0, %arg1 : i32, i32
  }
}

module attributes {stable_mosaic.version = 11 : i64} {
  func.func @_ln_dense_kernel(%arg0: i32, %arg1: i32, %arg2: memref<32x256xf32, #tpu.memory_space<vmem>>, %arg3: memref<1x256xf32, #tpu.memory_space<vmem>>, %arg4: memref<1x256xf32, #tpu.memory_space<vmem>>, %arg5: memref<256x256xbf16, #tpu.memory_space<vmem>>, %arg6: memref<1x256xf32, #tpu.memory_space<vmem>>, %arg7: memref<32x256xbf16, #tpu.memory_space<vmem>>, %arg8: memref<32x256xbf16, #tpu.memory_space<vmem>>) attributes {dimension_semantics = [#tpu.dimension_semantics<parallel>, #tpu.dimension_semantics<arbitrary>], iteration_bounds = array<i64: 1, 3>, scalar_prefetch = 0 : i64, scratch_operands = 1 : i64, tpu.core_type = #tpu.core_type<tc>, window_params = [{transform_indices = @transform_0, window_bounds = array<i64: 32, 256>}, {pipeline_mode = #tpu.pipeline_mode<synchronous>, transform_indices = @transform_1, window_bounds = array<i64: 1, 256>}, {pipeline_mode = #tpu.pipeline_mode<synchronous>, transform_indices = @transform_2, window_bounds = array<i64: 1, 256>}, {transform_indices = @transform_3, window_bounds = array<i64: 256, 256>}, {transform_indices = @transform_4, window_bounds = array<i64: 1, 256>}, {transform_indices = @transform_5, window_bounds = array<i64: 32, 256>}]} {
    %c0_i32 = arith.constant 0 : i32
    %0 = arith.cmpi eq, %arg1, %c0_i32 : i32
    %1 = arith.extui %0 : i1 to i32
    %c0_i32_0 = arith.constant 0 : i32
    %2 = arith.cmpi ne, %1, %c0_i32_0 : i32
    scf.if %2 {
      %c0_8 = arith.constant 0 : index
      %c0_9 = arith.constant 0 : index
      %11 = vector.load %arg2[%c0_8, %c0_9] : memref<32x256xf32, #tpu.memory_space<vmem>>, vector<32x256xf32>
      %cst_10 = arith.constant dense<0.000000e+00> : vector<32xf32>
      %12 = vector.multi_reduction <add>, %11, %cst_10 [1] : vector<32x256xf32> to vector<32xf32>
      %13 = vector.shape_cast %12 : vector<32xf32> to vector<32x1xf32>
      %cst_11 = arith.constant 2.560000e+02 : f32
      %14 = vector.broadcast %cst_11 : f32 to vector<32x1xf32>
      %15 = arith.divf %13, %14 : vector<32x1xf32>
      %16 = vector.broadcast %15 : vector<32x1xf32> to vector<32x256xf32>
      %17 = arith.subf %11, %16 : vector<32x256xf32>
      %18 = arith.mulf %17, %17 : vector<32x256xf32>
      %cst_12 = arith.constant dense<0.000000e+00> : vector<32xf32>
      %19 = vector.multi_reduction <add>, %18, %cst_12 [1] : vector<32x256xf32> to vector<32xf32>
      %20 = vector.shape_cast %19 : vector<32xf32> to vector<32x1xf32>
      %cst_13 = arith.constant 2.560000e+02 : f32
      %21 = vector.broadcast %cst_13 : f32 to vector<32x1xf32>
      %22 = arith.divf %20, %21 : vector<32x1xf32>
      %23 = vector.broadcast %15 : vector<32x1xf32> to vector<32x256xf32>
      %24 = arith.subf %11, %23 : vector<32x256xf32>
      %cst_14 = arith.constant 9.99999997E-7 : f32
      %25 = vector.broadcast %cst_14 : f32 to vector<32x1xf32>
      %26 = arith.addf %22, %25 : vector<32x1xf32>
      %27 = math.rsqrt %26 : vector<32x1xf32>
      %28 = vector.broadcast %27 : vector<32x1xf32> to vector<32x256xf32>
      %29 = arith.mulf %24, %28 : vector<32x256xf32>
      %c0_15 = arith.constant 0 : index
      %c0_16 = arith.constant 0 : index
      %30 = vector.load %arg3[%c0_15, %c0_16] : memref<1x256xf32, #tpu.memory_space<vmem>>, vector<1x256xf32>
      %31 = vector.broadcast %30 : vector<1x256xf32> to vector<32x256xf32>
      %32 = arith.mulf %29, %31 : vector<32x256xf32>
      %c0_17 = arith.constant 0 : index
      %c0_18 = arith.constant 0 : index
      %33 = vector.load %arg4[%c0_17, %c0_18] : memref<1x256xf32, #tpu.memory_space<vmem>>, vector<1x256xf32>
      %34 = vector.broadcast %33 : vector<1x256xf32> to vector<32x256xf32>
      %35 = arith.addf %32, %34 : vector<32x256xf32>
      %36 = arith.truncf %35 : vector<32x256xf32> to vector<32x256xbf16>
      %c0_19 = arith.constant 0 : index
      %c0_20 = arith.constant 0 : index
      %37 = vector.load %arg8[%c0_19, %c0_20] : memref<32x256xbf16, #tpu.memory_space<vmem>>, vector<32x256xbf16>
      tpu.vector_store %arg8[%c0_19, %c0_20], %36 {strides = array<i32>} : memref<32x256xbf16, #tpu.memory_space<vmem>>, vector<32x256xbf16>,
    } else {
    }
    %c0 = arith.constant 0 : index
    %c0_1 = arith.constant 0 : index
    %3 = vector.load %arg8[%c0, %c0_1] : memref<32x256xbf16, #tpu.memory_space<vmem>>, vector<32x256xbf16>
    %c0_2 = arith.constant 0 : index
    %c0_3 = arith.constant 0 : index
    %4 = vector.load %arg5[%c0_2, %c0_3] : memref<256x256xbf16, #tpu.memory_space<vmem>>, vector<256x256xbf16>
    %cst = arith.constant dense<0.000000e+00> : vector<32x256xf32>
    %5 = tpu.matmul %3, %4, %cst {dimension_numbers = #tpu.dot_dimension_numbers<[1], [0], [0], [1], [0, 0, 1, 1], [], []>} : vector<32x256xbf16>, vector<256x256xbf16>, vector<32x256xf32> -> vector<32x256xf32>
    %c0_4 = arith.constant 0 : index
    %c0_5 = arith.constant 0 : index
    %6 = vector.load %arg6[%c0_4, %c0_5] : memref<1x256xf32, #tpu.memory_space<vmem>>, vector<1x256xf32>
    %7 = vector.broadcast %6 : vector<1x256xf32> to vector<32x256xf32>
    %8 = arith.addf %5, %7 : vector<32x256xf32>
    %9 = arith.truncf %8 : vector<32x256xf32> to vector<32x256xbf16>
    %c0_6 = arith.constant 0 : index
    %c0_7 = arith.constant 0 : index
    %10 = vector.load %arg7[%c0_6, %c0_7] : memref<32x256xbf16, #tpu.memory_space<vmem>>, vector<32x256xbf16>
    tpu.vector_store %arg7[%c0_6, %c0_7], %9 {strides = array<i32>} : memref<32x256xbf16, #tpu.memory_space<vmem>>, vector<32x256xbf16>,
    return
  }
  func.func @transform_0(%arg0: i32, %arg1: i32) -> (i32, i32) {
    %c0_i32 = arith.constant 0 : i32
    %c0_i32_0 = arith.constant 0 : i32
    return %arg0, %c0_i32 : i32, i32
  }
  func.func @transform_1(%arg0: i32, %arg1: i32) -> (i32, i32) {
    %c0_i32 = arith.constant 0 : i32
    %c0_i32_0 = arith.constant 0 : i32
    %c0_i32_1 = arith.constant 0 : i32
    return %c0_i32, %c0_i32_0 : i32, i32
  }
  func.func @transform_2(%arg0: i32, %arg1: i32) -> (i32, i32) {
    %c0_i32 = arith.constant 0 : i32
    %c0_i32_0 = arith.constant 0 : i32
    %c0_i32_1 = arith.constant 0 : i32
    return %c0_i32, %c0_i32_0 : i32, i32
  }
  func.func @transform_3(%arg0: i32, %arg1: i32) -> (i32, i32) {
    %c0_i32 = arith.constant 0 : i32
    %c0_i32_0 = arith.constant 0 : i32
    return %c0_i32, %arg1 : i32, i32
  }
  func.func @transform_4(%arg0: i32, %arg1: i32) -> (i32, i32) {
    %c0_i32 = arith.constant 0 : i32
    %c0_i32_0 = arith.constant 0 : i32
    return %c0_i32, %arg1 : i32, i32
  }
  func.func @transform_5(%arg0: i32, %arg1: i32) -> (i32, i32) {
    %c0_i32 = arith.constant 0 : i32
    return %arg0, %arg1 : i32, i32
  }
}

module attributes {stable_mosaic.version = 11 : i64} {
  func.func @_dense_kernel(%arg0: i32, %arg1: i32, %arg2: i32, %arg3: memref<32x256xbf16, #tpu.memory_space<vmem>>, %arg4: memref<256x256xbf16, #tpu.memory_space<vmem>>, %arg5: memref<1x256xf32, #tpu.memory_space<vmem>>, %arg6: memref<32x256xf32, #tpu.memory_space<vmem>>, %arg7: memref<32x256xf32, #tpu.memory_space<vmem>>) attributes {dimension_semantics = [#tpu.dimension_semantics<parallel>, #tpu.dimension_semantics<parallel>, #tpu.dimension_semantics<arbitrary>], iteration_bounds = array<i64: 1, 1, 1>, scalar_prefetch = 0 : i64, scratch_operands = 0 : i64, tpu.core_type = #tpu.core_type<tc>, window_params = [{transform_indices = @transform_0, window_bounds = array<i64: 32, 256>}, {transform_indices = @transform_1, window_bounds = array<i64: 256, 256>}, {transform_indices = @transform_2, window_bounds = array<i64: 1, 256>}, {transform_indices = @transform_3, window_bounds = array<i64: 32, 256>}, {transform_indices = @transform_4, window_bounds = array<i64: 32, 256>}]} {
    %c0 = arith.constant 0 : index
    %c0_0 = arith.constant 0 : index
    %0 = vector.load %arg3[%c0, %c0_0] : memref<32x256xbf16, #tpu.memory_space<vmem>>, vector<32x256xbf16>
    %c0_1 = arith.constant 0 : index
    %c0_2 = arith.constant 0 : index
    %1 = vector.load %arg4[%c0_1, %c0_2] : memref<256x256xbf16, #tpu.memory_space<vmem>>, vector<256x256xbf16>
    %cst = arith.constant dense<0.000000e+00> : vector<32x256xf32>
    %2 = tpu.matmul %0, %1, %cst {dimension_numbers = #tpu.dot_dimension_numbers<[1], [0], [0], [1], [0, 0, 1, 1], [], []>} : vector<32x256xbf16>, vector<256x256xbf16>, vector<32x256xf32> -> vector<32x256xf32>
    %c0_3 = arith.constant 0 : index
    %c0_4 = arith.constant 0 : index
    %3 = vector.load %arg5[%c0_3, %c0_4] : memref<1x256xf32, #tpu.memory_space<vmem>>, vector<1x256xf32>
    %4 = vector.broadcast %3 : vector<1x256xf32> to vector<32x256xf32>
    %5 = arith.addf %2, %4 : vector<32x256xf32>
    %c0_5 = arith.constant 0 : index
    %c0_6 = arith.constant 0 : index
    %6 = vector.load %arg6[%c0_5, %c0_6] : memref<32x256xf32, #tpu.memory_space<vmem>>, vector<32x256xf32>
    %7 = arith.addf %5, %6 : vector<32x256xf32>
    %c0_7 = arith.constant 0 : index
    %c0_8 = arith.constant 0 : index
    %8 = vector.load %arg7[%c0_7, %c0_8] : memref<32x256xf32, #tpu.memory_space<vmem>>, vector<32x256xf32>
    tpu.vector_store %arg7[%c0_7, %c0_8], %7 {strides = array<i32>} : memref<32x256xf32, #tpu.memory_space<vmem>>, vector<32x256xf32>,
    return
  }
  func.func @transform_0(%arg0: i32, %arg1: i32, %arg2: i32) -> (i32, i32) {
    %c0_i32 = arith.constant 0 : i32
    return %arg0, %arg2 : i32, i32
  }
  func.func @transform_1(%arg0: i32, %arg1: i32, %arg2: i32) -> (i32, i32) {
    %c0_i32 = arith.constant 0 : i32
    return %arg2, %arg1 : i32, i32
  }
  func.func @transform_2(%arg0: i32, %arg1: i32, %arg2: i32) -> (i32, i32) {
    %c0_i32 = arith.constant 0 : i32
    %c0_i32_0 = arith.constant 0 : i32
    return %c0_i32, %arg1 : i32, i32
  }
  func.func @transform_3(%arg0: i32, %arg1: i32, %arg2: i32) -> (i32, i32) {
    %c0_i32 = arith.constant 0 : i32
    return %arg0, %arg1 : i32, i32
  }
  func.func @transform_4(%arg0: i32, %arg1: i32, %arg2: i32) -> (i32, i32) {
    %c0_i32 = arith.constant 0 : i32
    return %arg0, %arg1 : i32, i32
  }
}

module attributes {stable_mosaic.version = 11 : i64} {
  func.func @_ln_dense_kernel(%arg0: i32, %arg1: i32, %arg2: memref<32x256xf32, #tpu.memory_space<vmem>>, %arg3: memref<1x256xf32, #tpu.memory_space<vmem>>, %arg4: memref<1x256xf32, #tpu.memory_space<vmem>>, %arg5: memref<256x256xbf16, #tpu.memory_space<vmem>>, %arg6: memref<1x256xf32, #tpu.memory_space<vmem>>, %arg7: memref<32x256xbf16, #tpu.memory_space<vmem>>, %arg8: memref<32x256xbf16, #tpu.memory_space<vmem>>) attributes {dimension_semantics = [#tpu.dimension_semantics<parallel>, #tpu.dimension_semantics<arbitrary>], iteration_bounds = array<i64: 1, 4>, scalar_prefetch = 0 : i64, scratch_operands = 1 : i64, tpu.core_type = #tpu.core_type<tc>, window_params = [{transform_indices = @transform_0, window_bounds = array<i64: 32, 256>}, {pipeline_mode = #tpu.pipeline_mode<synchronous>, transform_indices = @transform_1, window_bounds = array<i64: 1, 256>}, {pipeline_mode = #tpu.pipeline_mode<synchronous>, transform_indices = @transform_2, window_bounds = array<i64: 1, 256>}, {transform_indices = @transform_3, window_bounds = array<i64: 256, 256>}, {transform_indices = @transform_4, window_bounds = array<i64: 1, 256>}, {transform_indices = @transform_5, window_bounds = array<i64: 32, 256>}]} {
    %c0_i32 = arith.constant 0 : i32
    %0 = arith.cmpi eq, %arg1, %c0_i32 : i32
    %1 = arith.extui %0 : i1 to i32
    %c0_i32_0 = arith.constant 0 : i32
    %2 = arith.cmpi ne, %1, %c0_i32_0 : i32
    scf.if %2 {
      %c0_11 = arith.constant 0 : index
      %c0_12 = arith.constant 0 : index
      %19 = vector.load %arg2[%c0_11, %c0_12] : memref<32x256xf32, #tpu.memory_space<vmem>>, vector<32x256xf32>
      %cst_13 = arith.constant dense<0.000000e+00> : vector<32xf32>
      %20 = vector.multi_reduction <add>, %19, %cst_13 [1] : vector<32x256xf32> to vector<32xf32>
      %21 = vector.shape_cast %20 : vector<32xf32> to vector<32x1xf32>
      %cst_14 = arith.constant 2.560000e+02 : f32
      %22 = vector.broadcast %cst_14 : f32 to vector<32x1xf32>
      %23 = arith.divf %21, %22 : vector<32x1xf32>
      %24 = vector.broadcast %23 : vector<32x1xf32> to vector<32x256xf32>
      %25 = arith.subf %19, %24 : vector<32x256xf32>
      %26 = arith.mulf %25, %25 : vector<32x256xf32>
      %cst_15 = arith.constant dense<0.000000e+00> : vector<32xf32>
      %27 = vector.multi_reduction <add>, %26, %cst_15 [1] : vector<32x256xf32> to vector<32xf32>
      %28 = vector.shape_cast %27 : vector<32xf32> to vector<32x1xf32>
      %cst_16 = arith.constant 2.560000e+02 : f32
      %29 = vector.broadcast %cst_16 : f32 to vector<32x1xf32>
      %30 = arith.divf %28, %29 : vector<32x1xf32>
      %31 = vector.broadcast %23 : vector<32x1xf32> to vector<32x256xf32>
      %32 = arith.subf %19, %31 : vector<32x256xf32>
      %cst_17 = arith.constant 9.99999997E-7 : f32
      %33 = vector.broadcast %cst_17 : f32 to vector<32x1xf32>
      %34 = arith.addf %30, %33 : vector<32x1xf32>
      %35 = math.rsqrt %34 : vector<32x1xf32>
      %36 = vector.broadcast %35 : vector<32x1xf32> to vector<32x256xf32>
      %37 = arith.mulf %32, %36 : vector<32x256xf32>
      %c0_18 = arith.constant 0 : index
      %c0_19 = arith.constant 0 : index
      %38 = vector.load %arg3[%c0_18, %c0_19] : memref<1x256xf32, #tpu.memory_space<vmem>>, vector<1x256xf32>
      %39 = vector.broadcast %38 : vector<1x256xf32> to vector<32x256xf32>
      %40 = arith.mulf %37, %39 : vector<32x256xf32>
      %c0_20 = arith.constant 0 : index
      %c0_21 = arith.constant 0 : index
      %41 = vector.load %arg4[%c0_20, %c0_21] : memref<1x256xf32, #tpu.memory_space<vmem>>, vector<1x256xf32>
      %42 = vector.broadcast %41 : vector<1x256xf32> to vector<32x256xf32>
      %43 = arith.addf %40, %42 : vector<32x256xf32>
      %44 = arith.truncf %43 : vector<32x256xf32> to vector<32x256xbf16>
      %c0_22 = arith.constant 0 : index
      %c0_23 = arith.constant 0 : index
      %45 = vector.load %arg8[%c0_22, %c0_23] : memref<32x256xbf16, #tpu.memory_space<vmem>>, vector<32x256xbf16>
      tpu.vector_store %arg8[%c0_22, %c0_23], %44 {strides = array<i32>} : memref<32x256xbf16, #tpu.memory_space<vmem>>, vector<32x256xbf16>,
    } else {
    }
    %c0 = arith.constant 0 : index
    %c0_1 = arith.constant 0 : index
    %3 = vector.load %arg8[%c0, %c0_1] : memref<32x256xbf16, #tpu.memory_space<vmem>>, vector<32x256xbf16>
    %c0_2 = arith.constant 0 : index
    %c0_3 = arith.constant 0 : index
    %4 = vector.load %arg5[%c0_2, %c0_3] : memref<256x256xbf16, #tpu.memory_space<vmem>>, vector<256x256xbf16>
    %cst = arith.constant dense<0.000000e+00> : vector<32x256xf32>
    %5 = tpu.matmul %3, %4, %cst {dimension_numbers = #tpu.dot_dimension_numbers<[1], [0], [0], [1], [0, 0, 1, 1], [], []>} : vector<32x256xbf16>, vector<256x256xbf16>, vector<32x256xf32> -> vector<32x256xf32>
    %c0_4 = arith.constant 0 : index
    %c0_5 = arith.constant 0 : index
    %6 = vector.load %arg6[%c0_4, %c0_5] : memref<1x256xf32, #tpu.memory_space<vmem>>, vector<1x256xf32>
    %7 = vector.broadcast %6 : vector<1x256xf32> to vector<32x256xf32>
    %8 = arith.addf %5, %7 : vector<32x256xf32>
    %cst_6 = arith.constant 5.000000e-01 : f32
    %9 = vector.broadcast %cst_6 : f32 to vector<32x256xf32>
    %10 = arith.mulf %9, %8 : vector<32x256xf32>
    %cst_7 = arith.constant 0.707106769 : f32
    %11 = vector.broadcast %cst_7 : f32 to vector<32x256xf32>
    %12 = arith.mulf %8, %11 : vector<32x256xf32>
    %13 = math.erf %12 : vector<32x256xf32>
    %cst_8 = arith.constant 1.000000e+00 : f32
    %14 = vector.broadcast %cst_8 : f32 to vector<32x256xf32>
    %15 = arith.addf %14, %13 : vector<32x256xf32>
    %16 = arith.mulf %10, %15 : vector<32x256xf32>
    %17 = arith.truncf %16 : vector<32x256xf32> to vector<32x256xbf16>
    %c0_9 = arith.constant 0 : index
    %c0_10 = arith.constant 0 : index
    %18 = vector.load %arg7[%c0_9, %c0_10] : memref<32x256xbf16, #tpu.memory_space<vmem>>, vector<32x256xbf16>
    tpu.vector_store %arg7[%c0_9, %c0_10], %17 {strides = array<i32>} : memref<32x256xbf16, #tpu.memory_space<vmem>>, vector<32x256xbf16>,
    return
  }
  func.func @transform_0(%arg0: i32, %arg1: i32) -> (i32, i32) {
    %c0_i32 = arith.constant 0 : i32
    %c0_i32_0 = arith.constant 0 : i32
    return %arg0, %c0_i32 : i32, i32
  }
  func.func @transform_1(%arg0: i32, %arg1: i32) -> (i32, i32) {
    %c0_i32 = arith.constant 0 : i32
    %c0_i32_0 = arith.constant 0 : i32
    %c0_i32_1 = arith.constant 0 : i32
    return %c0_i32, %c0_i32_0 : i32, i32
  }
  func.func @transform_2(%arg0: i32, %arg1: i32) -> (i32, i32) {
    %c0_i32 = arith.constant 0 : i32
    %c0_i32_0 = arith.constant 0 : i32
    %c0_i32_1 = arith.constant 0 : i32
    return %c0_i32, %c0_i32_0 : i32, i32
  }
  func.func @transform_3(%arg0: i32, %arg1: i32) -> (i32, i32) {
    %c0_i32 = arith.constant 0 : i32
    %c0_i32_0 = arith.constant 0 : i32
    return %c0_i32, %arg1 : i32, i32
  }
  func.func @transform_4(%arg0: i32, %arg1: i32) -> (i32, i32) {
    %c0_i32 = arith.constant 0 : i32
    %c0_i32_0 = arith.constant 0 : i32
    return %c0_i32, %arg1 : i32, i32
  }
  func.func @transform_5(%arg0: i32, %arg1: i32) -> (i32, i32) {
    %c0_i32 = arith.constant 0 : i32
    return %arg0, %arg1 : i32, i32
  }
}

module attributes {stable_mosaic.version = 11 : i64} {
  func.func @_dense_kernel(%arg0: i32, %arg1: i32, %arg2: i32, %arg3: memref<32x512xbf16, #tpu.memory_space<vmem>>, %arg4: memref<512x256xbf16, #tpu.memory_space<vmem>>, %arg5: memref<1x256xf32, #tpu.memory_space<vmem>>, %arg6: memref<32x256xf32, #tpu.memory_space<vmem>>, %arg7: memref<32x256xf32, #tpu.memory_space<vmem>>, %arg8: memref<32x256xf32, #tpu.memory_space<vmem>>) attributes {dimension_semantics = [#tpu.dimension_semantics<parallel>, #tpu.dimension_semantics<parallel>, #tpu.dimension_semantics<arbitrary>], iteration_bounds = array<i64: 1, 1, 2>, scalar_prefetch = 0 : i64, scratch_operands = 1 : i64, tpu.core_type = #tpu.core_type<tc>, window_params = [{transform_indices = @transform_0, window_bounds = array<i64: 32, 512>}, {transform_indices = @transform_1, window_bounds = array<i64: 512, 256>}, {transform_indices = @transform_2, window_bounds = array<i64: 1, 256>}, {transform_indices = @transform_3, window_bounds = array<i64: 32, 256>}, {transform_indices = @transform_4, window_bounds = array<i64: 32, 256>}]} {
    %c0_i32 = arith.constant 0 : i32
    %0 = arith.cmpi eq, %arg2, %c0_i32 : i32
    %1 = arith.extui %0 : i1 to i32
    %c0_i32_0 = arith.constant 0 : i32
    %2 = arith.cmpi ne, %1, %c0_i32_0 : i32
    scf.if %2 {
      %cst_9 = arith.constant 0.000000e+00 : f32
      %12 = vector.broadcast %cst_9 : f32 to vector<32x256xf32>
      %c0_10 = arith.constant 0 : index
      %c0_11 = arith.constant 0 : index
      %13 = vector.load %arg8[%c0_10, %c0_11] : memref<32x256xf32, #tpu.memory_space<vmem>>, vector<32x256xf32>
      tpu.vector_store %arg8[%c0_10, %c0_11], %12 {strides = array<i32>} : memref<32x256xf32, #tpu.memory_space<vmem>>, vector<32x256xf32>,
    } else {
    }
    %c0 = arith.constant 0 : index
    %c0_1 = arith.constant 0 : index
    %3 = vector.load %arg8[%c0, %c0_1] : memref<32x256xf32, #tpu.memory_space<vmem>>, vector<32x256xf32>
    %c0_2 = arith.constant 0 : index
    %c0_3 = arith.constant 0 : index
    %4 = vector.load %arg3[%c0_2, %c0_3] : memref<32x512xbf16, #tpu.memory_space<vmem>>, vector<32x512xbf16>
    %c0_4 = arith.constant 0 : index
    %c0_5 = arith.constant 0 : index
    %5 = vector.load %arg4[%c0_4, %c0_5] : memref<512x256xbf16, #tpu.memory_space<vmem>>, vector<512x256xbf16>
    %cst = arith.constant dense<0.000000e+00> : vector<32x256xf32>
    %6 = tpu.matmul %4, %5, %cst {dimension_numbers = #tpu.dot_dimension_numbers<[1], [0], [0], [1], [0, 0, 1, 1], [], []>} : vector<32x512xbf16>, vector<512x256xbf16>, vector<32x256xf32> -> vector<32x256xf32>
    %7 = arith.addf %3, %6 : vector<32x256xf32>
    %c0_6 = arith.constant 0 : index
    %c0_7 = arith.constant 0 : index
    %8 = vector.load %arg8[%c0_6, %c0_7] : memref<32x256xf32, #tpu.memory_space<vmem>>, vector<32x256xf32>
    tpu.vector_store %arg8[%c0_6, %c0_7], %7 {strides = array<i32>} : memref<32x256xf32, #tpu.memory_space<vmem>>, vector<32x256xf32>,
    %c1_i32 = arith.constant 1 : i32
    %9 = arith.cmpi eq, %arg2, %c1_i32 : i32
    %10 = arith.extui %9 : i1 to i32
    %c0_i32_8 = arith.constant 0 : i32
    %11 = arith.cmpi ne, %10, %c0_i32_8 : i32
    scf.if %11 {
      %c0_9 = arith.constant 0 : index
      %c0_10 = arith.constant 0 : index
      %12 = vector.load %arg8[%c0_9, %c0_10] : memref<32x256xf32, #tpu.memory_space<vmem>>, vector<32x256xf32>
      %c0_11 = arith.constant 0 : index
      %c0_12 = arith.constant 0 : index
      %13 = vector.load %arg5[%c0_11, %c0_12] : memref<1x256xf32, #tpu.memory_space<vmem>>, vector<1x256xf32>
      %14 = vector.broadcast %13 : vector<1x256xf32> to vector<32x256xf32>
      %15 = arith.addf %12, %14 : vector<32x256xf32>
      %c0_13 = arith.constant 0 : index
      %c0_14 = arith.constant 0 : index
      %16 = vector.load %arg6[%c0_13, %c0_14] : memref<32x256xf32, #tpu.memory_space<vmem>>, vector<32x256xf32>
      %17 = arith.addf %15, %16 : vector<32x256xf32>
      %c0_15 = arith.constant 0 : index
      %c0_16 = arith.constant 0 : index
      %18 = vector.load %arg7[%c0_15, %c0_16] : memref<32x256xf32, #tpu.memory_space<vmem>>, vector<32x256xf32>
      tpu.vector_store %arg7[%c0_15, %c0_16], %17 {strides = array<i32>} : memref<32x256xf32, #tpu.memory_space<vmem>>, vector<32x256xf32>,
    } else {
    }
    return
  }
  func.func @transform_0(%arg0: i32, %arg1: i32, %arg2: i32) -> (i32, i32) {
    %c0_i32 = arith.constant 0 : i32
    return %arg0, %arg2 : i32, i32
  }
  func.func @transform_1(%arg0: i32, %arg1: i32, %arg2: i32) -> (i32, i32) {
    %c0_i32 = arith.constant 0 : i32
    return %arg2, %arg1 : i32, i32
  }
  func.func @transform_2(%arg0: i32, %arg1: i32, %arg2: i32) -> (i32, i32) {
    %c0_i32 = arith.constant 0 : i32
    %c0_i32_0 = arith.constant 0 : i32
    return %c0_i32, %arg1 : i32, i32
  }
  func.func @transform_3(%arg0: i32, %arg1: i32, %arg2: i32) -> (i32, i32) {
    %c0_i32 = arith.constant 0 : i32
    return %arg0, %arg1 : i32, i32
  }
  func.func @transform_4(%arg0: i32, %arg1: i32, %arg2: i32) -> (i32, i32) {
    %c0_i32 = arith.constant 0 : i32
    return %arg0, %arg1 : i32, i32
  }
}

module attributes {stable_mosaic.version = 11 : i64} {
  func.func @_dense_kernel(%arg0: i32, %arg1: i32, %arg2: i32, %arg3: memref<32x256xbf16, #tpu.memory_space<vmem>>, %arg4: memref<256x128xbf16, #tpu.memory_space<vmem>>, %arg5: memref<1x128xf32, #tpu.memory_space<vmem>>, %arg6: memref<1x128xf32, #tpu.memory_space<vmem>>, %arg7: memref<32x128xbf16, #tpu.memory_space<vmem>>) attributes {dimension_semantics = [#tpu.dimension_semantics<parallel>, #tpu.dimension_semantics<parallel>, #tpu.dimension_semantics<arbitrary>], iteration_bounds = array<i64: 1, 1, 1>, scalar_prefetch = 0 : i64, scratch_operands = 0 : i64, tpu.core_type = #tpu.core_type<tc>, window_params = [{transform_indices = @transform_0, window_bounds = array<i64: 32, 256>}, {transform_indices = @transform_1, window_bounds = array<i64: 256, 128>}, {transform_indices = @transform_2, window_bounds = array<i64: 1, 128>}, {transform_indices = @transform_3, window_bounds = array<i64: 1, 128>}, {transform_indices = @transform_4, window_bounds = array<i64: 32, 128>}]} {
    %c0 = arith.constant 0 : index
    %c0_0 = arith.constant 0 : index
    %0 = vector.load %arg3[%c0, %c0_0] : memref<32x256xbf16, #tpu.memory_space<vmem>>, vector<32x256xbf16>
    %c0_1 = arith.constant 0 : index
    %c0_2 = arith.constant 0 : index
    %1 = vector.load %arg4[%c0_1, %c0_2] : memref<256x128xbf16, #tpu.memory_space<vmem>>, vector<256x128xbf16>
    %cst = arith.constant dense<0.000000e+00> : vector<32x128xf32>
    %2 = tpu.matmul %0, %1, %cst {dimension_numbers = #tpu.dot_dimension_numbers<[1], [0], [0], [1], [0, 0, 1, 1], [], []>} : vector<32x256xbf16>, vector<256x128xbf16>, vector<32x128xf32> -> vector<32x128xf32>
    %cst_3 = arith.constant dense<0.000000e+00> : vector<32xf32>
    %3 = vector.multi_reduction <add>, %2, %cst_3 [1] : vector<32x128xf32> to vector<32xf32>
    %4 = vector.shape_cast %3 : vector<32xf32> to vector<32x1xf32>
    %cst_4 = arith.constant 1.280000e+02 : f32
    %5 = vector.broadcast %cst_4 : f32 to vector<32x1xf32>
    %6 = arith.divf %4, %5 : vector<32x1xf32>
    %7 = vector.broadcast %6 : vector<32x1xf32> to vector<32x128xf32>
    %8 = arith.subf %2, %7 : vector<32x128xf32>
    %9 = arith.mulf %8, %8 : vector<32x128xf32>
    %cst_5 = arith.constant dense<0.000000e+00> : vector<32xf32>
    %10 = vector.multi_reduction <add>, %9, %cst_5 [1] : vector<32x128xf32> to vector<32xf32>
    %11 = vector.shape_cast %10 : vector<32xf32> to vector<32x1xf32>
    %cst_6 = arith.constant 1.280000e+02 : f32
    %12 = vector.broadcast %cst_6 : f32 to vector<32x1xf32>
    %13 = arith.divf %11, %12 : vector<32x1xf32>
    %14 = vector.broadcast %6 : vector<32x1xf32> to vector<32x128xf32>
    %15 = arith.subf %2, %14 : vector<32x128xf32>
    %cst_7 = arith.constant 9.99999997E-7 : f32
    %16 = vector.broadcast %cst_7 : f32 to vector<32x1xf32>
    %17 = arith.addf %13, %16 : vector<32x1xf32>
    %18 = math.rsqrt %17 : vector<32x1xf32>
    %19 = vector.broadcast %18 : vector<32x1xf32> to vector<32x128xf32>
    %20 = arith.mulf %15, %19 : vector<32x128xf32>
    %c0_8 = arith.constant 0 : index
    %c0_9 = arith.constant 0 : index
    %21 = vector.load %arg5[%c0_8, %c0_9] : memref<1x128xf32, #tpu.memory_space<vmem>>, vector<1x128xf32>
    %22 = vector.broadcast %21 : vector<1x128xf32> to vector<32x128xf32>
    %23 = arith.mulf %20, %22 : vector<32x128xf32>
    %c0_10 = arith.constant 0 : index
    %c0_11 = arith.constant 0 : index
    %24 = vector.load %arg6[%c0_10, %c0_11] : memref<1x128xf32, #tpu.memory_space<vmem>>, vector<1x128xf32>
    %25 = vector.broadcast %24 : vector<1x128xf32> to vector<32x128xf32>
    %26 = arith.addf %23, %25 : vector<32x128xf32>
    %27 = arith.truncf %26 : vector<32x128xf32> to vector<32x128xbf16>
    %c0_12 = arith.constant 0 : index
    %c0_13 = arith.constant 0 : index
    %28 = vector.load %arg7[%c0_12, %c0_13] : memref<32x128xbf16, #tpu.memory_space<vmem>>, vector<32x128xbf16>
    tpu.vector_store %arg7[%c0_12, %c0_13], %27 {strides = array<i32>} : memref<32x128xbf16, #tpu.memory_space<vmem>>, vector<32x128xbf16>,
    return
  }
  func.func @transform_0(%arg0: i32, %arg1: i32, %arg2: i32) -> (i32, i32) {
    %c0_i32 = arith.constant 0 : i32
    return %arg0, %arg2 : i32, i32
  }
  func.func @transform_1(%arg0: i32, %arg1: i32, %arg2: i32) -> (i32, i32) {
    %c0_i32 = arith.constant 0 : i32
    return %arg2, %arg1 : i32, i32
  }
  func.func @transform_2(%arg0: i32, %arg1: i32, %arg2: i32) -> (i32, i32) {
    %c0_i32 = arith.constant 0 : i32
    %c0_i32_0 = arith.constant 0 : i32
    return %c0_i32, %arg1 : i32, i32
  }
  func.func @transform_3(%arg0: i32, %arg1: i32, %arg2: i32) -> (i32, i32) {
    %c0_i32 = arith.constant 0 : i32
    %c0_i32_0 = arith.constant 0 : i32
    return %c0_i32, %arg1 : i32, i32
  }
  func.func @transform_4(%arg0: i32, %arg1: i32, %arg2: i32) -> (i32, i32) {
    %c0_i32 = arith.constant 0 : i32
    return %arg0, %arg1 : i32, i32
  }
}

module attributes {stable_mosaic.version = 11 : i64} {
  func.func @_conv3x3_ln_kernel(%arg0: i32, %arg1: memref<1x6x6x128xbf16, #tpu.memory_space<vmem>>, %arg2: memref<9x128x128xbf16, #tpu.memory_space<vmem>>, %arg3: memref<1x128xf32, #tpu.memory_space<vmem>>, %arg4: memref<1x128xf32, #tpu.memory_space<vmem>>, %arg5: memref<16x128xf32, #tpu.memory_space<vmem>>) attributes {dimension_semantics = [#tpu.dimension_semantics<parallel>], iteration_bounds = array<i64: 2>, scalar_prefetch = 0 : i64, scratch_operands = 0 : i64, tpu.core_type = #tpu.core_type<tc>, window_params = [{transform_indices = @transform_0, window_bounds = array<i64: 1, 6, 6, 128>}, {pipeline_mode = #tpu.pipeline_mode<synchronous>, transform_indices = @transform_1, window_bounds = array<i64: 9, 128, 128>}, {pipeline_mode = #tpu.pipeline_mode<synchronous>, transform_indices = @transform_2, window_bounds = array<i64: 1, 128>}, {pipeline_mode = #tpu.pipeline_mode<synchronous>, transform_indices = @transform_3, window_bounds = array<i64: 1, 128>}, {transform_indices = @transform_4, window_bounds = array<i64: 16, 128>}]} {
    %c0 = arith.constant 0 : index
    %c0_0 = arith.constant 0 : index
    %c0_1 = arith.constant 0 : index
    %c0_2 = arith.constant 0 : index
    %0 = vector.load %arg1[%c0, %c0_0, %c0_1, %c0_2] : memref<1x6x6x128xbf16, #tpu.memory_space<vmem>>, vector<1x6x6x128xbf16>
    %cst = arith.constant 0.000000e+00 : f32
    %1 = vector.broadcast %cst : f32 to vector<4x128xf32>
    %2 = vector.extract_strided_slice %0 {offsets = [0, 0, 0, 0], sizes = [1, 1, 4, 128], strides = [1, 1, 1, 1]} : vector<1x6x6x128xbf16> to vector<1x1x4x128xbf16>
    %3 = vector.shape_cast %2 : vector<1x1x4x128xbf16> to vector<4x128xbf16>
    %c0_3 = arith.constant 0 : index
    %c0_4 = arith.constant 0 : index
    %c0_5 = arith.constant 0 : index
    %4 = vector.load %arg2[%c0_3, %c0_4, %c0_5] : memref<9x128x128xbf16, #tpu.memory_space<vmem>>, vector<1x128x128xbf16>
    %5 = vector.shape_cast %4 : vector<1x128x128xbf16> to vector<128x128xbf16>
    %cst_6 = arith.constant dense<0.000000e+00> : vector<4x128xf32>
    %6 = tpu.matmul %3, %5, %cst_6 {dimension_numbers = #tpu.dot_dimension_numbers<[1], [0], [0], [1], [0, 0, 1, 1], [], []>} : vector<4x128xbf16>, vector<128x128xbf16>, vector<4x128xf32> -> vector<4x128xf32>
    %7 = arith.addf %1, %6 : vector<4x128xf32>
    %8 = vector.extract_strided_slice %0 {offsets = [0, 0, 1, 0], sizes = [1, 1, 4, 128], strides = [1, 1, 1, 1]} : vector<1x6x6x128xbf16> to vector<1x1x4x128xbf16>
    %9 = vector.shape_cast %8 : vector<1x1x4x128xbf16> to vector<4x128xbf16>
    %c1 = arith.constant 1 : index
    %c0_7 = arith.constant 0 : index
    %c0_8 = arith.constant 0 : index
    %10 = vector.load %arg2[%c1, %c0_7, %c0_8] : memref<9x128x128xbf16, #tpu.memory_space<vmem>>, vector<1x128x128xbf16>
    %11 = vector.shape_cast %10 : vector<1x128x128xbf16> to vector<128x128xbf16>
    %cst_9 = arith.constant dense<0.000000e+00> : vector<4x128xf32>
    %12 = tpu.matmul %9, %11, %cst_9 {dimension_numbers = #tpu.dot_dimension_numbers<[1], [0], [0], [1], [0, 0, 1, 1], [], []>} : vector<4x128xbf16>, vector<128x128xbf16>, vector<4x128xf32> -> vector<4x128xf32>
    %13 = arith.addf %7, %12 : vector<4x128xf32>
    %14 = vector.extract_strided_slice %0 {offsets = [0, 0, 2, 0], sizes = [1, 1, 4, 128], strides = [1, 1, 1, 1]} : vector<1x6x6x128xbf16> to vector<1x1x4x128xbf16>
    %15 = vector.shape_cast %14 : vector<1x1x4x128xbf16> to vector<4x128xbf16>
    %c2 = arith.constant 2 : index
    %c0_10 = arith.constant 0 : index
    %c0_11 = arith.constant 0 : index
    %16 = vector.load %arg2[%c2, %c0_10, %c0_11] : memref<9x128x128xbf16, #tpu.memory_space<vmem>>, vector<1x128x128xbf16>
    %17 = vector.shape_cast %16 : vector<1x128x128xbf16> to vector<128x128xbf16>
    %cst_12 = arith.constant dense<0.000000e+00> : vector<4x128xf32>
    %18 = tpu.matmul %15, %17, %cst_12 {dimension_numbers = #tpu.dot_dimension_numbers<[1], [0], [0], [1], [0, 0, 1, 1], [], []>} : vector<4x128xbf16>, vector<128x128xbf16>, vector<4x128xf32> -> vector<4x128xf32>
    %19 = arith.addf %13, %18 : vector<4x128xf32>
    %20 = vector.extract_strided_slice %0 {offsets = [0, 1, 0, 0], sizes = [1, 1, 4, 128], strides = [1, 1, 1, 1]} : vector<1x6x6x128xbf16> to vector<1x1x4x128xbf16>
    %21 = vector.shape_cast %20 : vector<1x1x4x128xbf16> to vector<4x128xbf16>
    %c3 = arith.constant 3 : index
    %c0_13 = arith.constant 0 : index
    %c0_14 = arith.constant 0 : index
    %22 = vector.load %arg2[%c3, %c0_13, %c0_14] : memref<9x128x128xbf16, #tpu.memory_space<vmem>>, vector<1x128x128xbf16>
    %23 = vector.shape_cast %22 : vector<1x128x128xbf16> to vector<128x128xbf16>
    %cst_15 = arith.constant dense<0.000000e+00> : vector<4x128xf32>
    %24 = tpu.matmul %21, %23, %cst_15 {dimension_numbers = #tpu.dot_dimension_numbers<[1], [0], [0], [1], [0, 0, 1, 1], [], []>} : vector<4x128xbf16>, vector<128x128xbf16>, vector<4x128xf32> -> vector<4x128xf32>
    %25 = arith.addf %19, %24 : vector<4x128xf32>
    %26 = vector.extract_strided_slice %0 {offsets = [0, 1, 1, 0], sizes = [1, 1, 4, 128], strides = [1, 1, 1, 1]} : vector<1x6x6x128xbf16> to vector<1x1x4x128xbf16>
    %27 = vector.shape_cast %26 : vector<1x1x4x128xbf16> to vector<4x128xbf16>
    %c4 = arith.constant 4 : index
    %c0_16 = arith.constant 0 : index
    %c0_17 = arith.constant 0 : index
    %28 = vector.load %arg2[%c4, %c0_16, %c0_17] : memref<9x128x128xbf16, #tpu.memory_space<vmem>>, vector<1x128x128xbf16>
    %29 = vector.shape_cast %28 : vector<1x128x128xbf16> to vector<128x128xbf16>
    %cst_18 = arith.constant dense<0.000000e+00> : vector<4x128xf32>
    %30 = tpu.matmul %27, %29, %cst_18 {dimension_numbers = #tpu.dot_dimension_numbers<[1], [0], [0], [1], [0, 0, 1, 1], [], []>} : vector<4x128xbf16>, vector<128x128xbf16>, vector<4x128xf32> -> vector<4x128xf32>
    %31 = arith.addf %25, %30 : vector<4x128xf32>
    %32 = vector.extract_strided_slice %0 {offsets = [0, 1, 2, 0], sizes = [1, 1, 4, 128], strides = [1, 1, 1, 1]} : vector<1x6x6x128xbf16> to vector<1x1x4x128xbf16>
    %33 = vector.shape_cast %32 : vector<1x1x4x128xbf16> to vector<4x128xbf16>
    %c5 = arith.constant 5 : index
    %c0_19 = arith.constant 0 : index
    %c0_20 = arith.constant 0 : index
    %34 = vector.load %arg2[%c5, %c0_19, %c0_20] : memref<9x128x128xbf16, #tpu.memory_space<vmem>>, vector<1x128x128xbf16>
    %35 = vector.shape_cast %34 : vector<1x128x128xbf16> to vector<128x128xbf16>
    %cst_21 = arith.constant dense<0.000000e+00> : vector<4x128xf32>
    %36 = tpu.matmul %33, %35, %cst_21 {dimension_numbers = #tpu.dot_dimension_numbers<[1], [0], [0], [1], [0, 0, 1, 1], [], []>} : vector<4x128xbf16>, vector<128x128xbf16>, vector<4x128xf32> -> vector<4x128xf32>
    %37 = arith.addf %31, %36 : vector<4x128xf32>
    %38 = vector.extract_strided_slice %0 {offsets = [0, 2, 0, 0], sizes = [1, 1, 4, 128], strides = [1, 1, 1, 1]} : vector<1x6x6x128xbf16> to vector<1x1x4x128xbf16>
    %39 = vector.shape_cast %38 : vector<1x1x4x128xbf16> to vector<4x128xbf16>
    %c6 = arith.constant 6 : index
    %c0_22 = arith.constant 0 : index
    %c0_23 = arith.constant 0 : index
    %40 = vector.load %arg2[%c6, %c0_22, %c0_23] : memref<9x128x128xbf16, #tpu.memory_space<vmem>>, vector<1x128x128xbf16>
    %41 = vector.shape_cast %40 : vector<1x128x128xbf16> to vector<128x128xbf16>
    %cst_24 = arith.constant dense<0.000000e+00> : vector<4x128xf32>
    %42 = tpu.matmul %39, %41, %cst_24 {dimension_numbers = #tpu.dot_dimension_numbers<[1], [0], [0], [1], [0, 0, 1, 1], [], []>} : vector<4x128xbf16>, vector<128x128xbf16>, vector<4x128xf32> -> vector<4x128xf32>
    %43 = arith.addf %37, %42 : vector<4x128xf32>
    %44 = vector.extract_strided_slice %0 {offsets = [0, 2, 1, 0], sizes = [1, 1, 4, 128], strides = [1, 1, 1, 1]} : vector<1x6x6x128xbf16> to vector<1x1x4x128xbf16>
    %45 = vector.shape_cast %44 : vector<1x1x4x128xbf16> to vector<4x128xbf16>
    %c7 = arith.constant 7 : index
    %c0_25 = arith.constant 0 : index
    %c0_26 = arith.constant 0 : index
    %46 = vector.load %arg2[%c7, %c0_25, %c0_26] : memref<9x128x128xbf16, #tpu.memory_space<vmem>>, vector<1x128x128xbf16>
    %47 = vector.shape_cast %46 : vector<1x128x128xbf16> to vector<128x128xbf16>
    %cst_27 = arith.constant dense<0.000000e+00> : vector<4x128xf32>
    %48 = tpu.matmul %45, %47, %cst_27 {dimension_numbers = #tpu.dot_dimension_numbers<[1], [0], [0], [1], [0, 0, 1, 1], [], []>} : vector<4x128xbf16>, vector<128x128xbf16>, vector<4x128xf32> -> vector<4x128xf32>
    %49 = arith.addf %43, %48 : vector<4x128xf32>
    %50 = vector.extract_strided_slice %0 {offsets = [0, 2, 2, 0], sizes = [1, 1, 4, 128], strides = [1, 1, 1, 1]} : vector<1x6x6x128xbf16> to vector<1x1x4x128xbf16>
    %51 = vector.shape_cast %50 : vector<1x1x4x128xbf16> to vector<4x128xbf16>
    %c8 = arith.constant 8 : index
    %c0_28 = arith.constant 0 : index
    %c0_29 = arith.constant 0 : index
    %52 = vector.load %arg2[%c8, %c0_28, %c0_29] : memref<9x128x128xbf16, #tpu.memory_space<vmem>>, vector<1x128x128xbf16>
    %53 = vector.shape_cast %52 : vector<1x128x128xbf16> to vector<128x128xbf16>
    %cst_30 = arith.constant dense<0.000000e+00> : vector<4x128xf32>
    %54 = tpu.matmul %51, %53, %cst_30 {dimension_numbers = #tpu.dot_dimension_numbers<[1], [0], [0], [1], [0, 0, 1, 1], [], []>} : vector<4x128xbf16>, vector<128x128xbf16>, vector<4x128xf32> -> vector<4x128xf32>
    %55 = arith.addf %49, %54 : vector<4x128xf32>
    %cst_31 = arith.constant dense<0.000000e+00> : vector<4xf32>
    %56 = vector.multi_reduction <add>, %55, %cst_31 [1] : vector<4x128xf32> to vector<4xf32>
    %57 = vector.shape_cast %56 : vector<4xf32> to vector<4x1xf32>
    %cst_32 = arith.constant 1.280000e+02 : f32
    %58 = vector.broadcast %cst_32 : f32 to vector<4x1xf32>
    %59 = arith.divf %57, %58 : vector<4x1xf32>
    %60 = vector.broadcast %59 : vector<4x1xf32> to vector<4x128xf32>
    %61 = arith.subf %55, %60 : vector<4x128xf32>
    %62 = arith.mulf %61, %61 : vector<4x128xf32>
    %cst_33 = arith.constant dense<0.000000e+00> : vector<4xf32>
    %63 = vector.multi_reduction <add>, %62, %cst_33 [1] : vector<4x128xf32> to vector<4xf32>
    %64 = vector.shape_cast %63 : vector<4xf32> to vector<4x1xf32>
    %cst_34 = arith.constant 1.280000e+02 : f32
    %65 = vector.broadcast %cst_34 : f32 to vector<4x1xf32>
    %66 = arith.divf %64, %65 : vector<4x1xf32>
    %67 = vector.broadcast %59 : vector<4x1xf32> to vector<4x128xf32>
    %68 = arith.subf %55, %67 : vector<4x128xf32>
    %cst_35 = arith.constant 9.99999997E-7 : f32
    %69 = vector.broadcast %cst_35 : f32 to vector<4x1xf32>
    %70 = arith.addf %66, %69 : vector<4x1xf32>
    %71 = math.rsqrt %70 : vector<4x1xf32>
    %72 = vector.broadcast %71 : vector<4x1xf32> to vector<4x128xf32>
    %73 = arith.mulf %68, %72 : vector<4x128xf32>
    %c0_36 = arith.constant 0 : index
    %c0_37 = arith.constant 0 : index
    %74 = vector.load %arg3[%c0_36, %c0_37] : memref<1x128xf32, #tpu.memory_space<vmem>>, vector<1x128xf32>
    %75 = vector.broadcast %74 : vector<1x128xf32> to vector<4x128xf32>
    %76 = arith.mulf %73, %75 : vector<4x128xf32>
    %c0_38 = arith.constant 0 : index
    %c0_39 = arith.constant 0 : index
    %77 = vector.load %arg4[%c0_38, %c0_39] : memref<1x128xf32, #tpu.memory_space<vmem>>, vector<1x128xf32>
    %78 = vector.broadcast %77 : vector<1x128xf32> to vector<4x128xf32>
    %79 = arith.addf %76, %78 : vector<4x128xf32>
    %c0_40 = arith.constant 0 : index
    %c0_41 = arith.constant 0 : index
    %80 = vector.load %arg5[%c0_40, %c0_41] : memref<16x128xf32, #tpu.memory_space<vmem>>, vector<4x128xf32>
    tpu.vector_store %arg5[%c0_40, %c0_41], %79 {strides = array<i32>} : memref<16x128xf32, #tpu.memory_space<vmem>>, vector<4x128xf32>,
    %cst_42 = arith.constant 0.000000e+00 : f32
    %81 = vector.broadcast %cst_42 : f32 to vector<4x128xf32>
    %82 = vector.extract_strided_slice %0 {offsets = [0, 1, 0, 0], sizes = [1, 1, 4, 128], strides = [1, 1, 1, 1]} : vector<1x6x6x128xbf16> to vector<1x1x4x128xbf16>
    %83 = vector.shape_cast %82 : vector<1x1x4x128xbf16> to vector<4x128xbf16>
    %c0_43 = arith.constant 0 : index
    %c0_44 = arith.constant 0 : index
    %c0_45 = arith.constant 0 : index
    %84 = vector.load %arg2[%c0_43, %c0_44, %c0_45] : memref<9x128x128xbf16, #tpu.memory_space<vmem>>, vector<1x128x128xbf16>
    %85 = vector.shape_cast %84 : vector<1x128x128xbf16> to vector<128x128xbf16>
    %cst_46 = arith.constant dense<0.000000e+00> : vector<4x128xf32>
    %86 = tpu.matmul %83, %85, %cst_46 {dimension_numbers = #tpu.dot_dimension_numbers<[1], [0], [0], [1], [0, 0, 1, 1], [], []>} : vector<4x128xbf16>, vector<128x128xbf16>, vector<4x128xf32> -> vector<4x128xf32>
    %87 = arith.addf %81, %86 : vector<4x128xf32>
    %88 = vector.extract_strided_slice %0 {offsets = [0, 1, 1, 0], sizes = [1, 1, 4, 128], strides = [1, 1, 1, 1]} : vector<1x6x6x128xbf16> to vector<1x1x4x128xbf16>
    %89 = vector.shape_cast %88 : vector<1x1x4x128xbf16> to vector<4x128xbf16>
    %c1_47 = arith.constant 1 : index
    %c0_48 = arith.constant 0 : index
    %c0_49 = arith.constant 0 : index
    %90 = vector.load %arg2[%c1_47, %c0_48, %c0_49] : memref<9x128x128xbf16, #tpu.memory_space<vmem>>, vector<1x128x128xbf16>
    %91 = vector.shape_cast %90 : vector<1x128x128xbf16> to vector<128x128xbf16>
    %cst_50 = arith.constant dense<0.000000e+00> : vector<4x128xf32>
    %92 = tpu.matmul %89, %91, %cst_50 {dimension_numbers = #tpu.dot_dimension_numbers<[1], [0], [0], [1], [0, 0, 1, 1], [], []>} : vector<4x128xbf16>, vector<128x128xbf16>, vector<4x128xf32> -> vector<4x128xf32>
    %93 = arith.addf %87, %92 : vector<4x128xf32>
    %94 = vector.extract_strided_slice %0 {offsets = [0, 1, 2, 0], sizes = [1, 1, 4, 128], strides = [1, 1, 1, 1]} : vector<1x6x6x128xbf16> to vector<1x1x4x128xbf16>
    %95 = vector.shape_cast %94 : vector<1x1x4x128xbf16> to vector<4x128xbf16>
    %c2_51 = arith.constant 2 : index
    %c0_52 = arith.constant 0 : index
    %c0_53 = arith.constant 0 : index
    %96 = vector.load %arg2[%c2_51, %c0_52, %c0_53] : memref<9x128x128xbf16, #tpu.memory_space<vmem>>, vector<1x128x128xbf16>
    %97 = vector.shape_cast %96 : vector<1x128x128xbf16> to vector<128x128xbf16>
    %cst_54 = arith.constant dense<0.000000e+00> : vector<4x128xf32>
    %98 = tpu.matmul %95, %97, %cst_54 {dimension_numbers = #tpu.dot_dimension_numbers<[1], [0], [0], [1], [0, 0, 1, 1], [], []>} : vector<4x128xbf16>, vector<128x128xbf16>, vector<4x128xf32> -> vector<4x128xf32>
    %99 = arith.addf %93, %98 : vector<4x128xf32>
    %100 = vector.extract_strided_slice %0 {offsets = [0, 2, 0, 0], sizes = [1, 1, 4, 128], strides = [1, 1, 1, 1]} : vector<1x6x6x128xbf16> to vector<1x1x4x128xbf16>
    %101 = vector.shape_cast %100 : vector<1x1x4x128xbf16> to vector<4x128xbf16>
    %c3_55 = arith.constant 3 : index
    %c0_56 = arith.constant 0 : index
    %c0_57 = arith.constant 0 : index
    %102 = vector.load %arg2[%c3_55, %c0_56, %c0_57] : memref<9x128x128xbf16, #tpu.memory_space<vmem>>, vector<1x128x128xbf16>
    %103 = vector.shape_cast %102 : vector<1x128x128xbf16> to vector<128x128xbf16>
    %cst_58 = arith.constant dense<0.000000e+00> : vector<4x128xf32>
    %104 = tpu.matmul %101, %103, %cst_58 {dimension_numbers = #tpu.dot_dimension_numbers<[1], [0], [0], [1], [0, 0, 1, 1], [], []>} : vector<4x128xbf16>, vector<128x128xbf16>, vector<4x128xf32> -> vector<4x128xf32>
    %105 = arith.addf %99, %104 : vector<4x128xf32>
    %106 = vector.extract_strided_slice %0 {offsets = [0, 2, 1, 0], sizes = [1, 1, 4, 128], strides = [1, 1, 1, 1]} : vector<1x6x6x128xbf16> to vector<1x1x4x128xbf16>
    %107 = vector.shape_cast %106 : vector<1x1x4x128xbf16> to vector<4x128xbf16>
    %c4_59 = arith.constant 4 : index
    %c0_60 = arith.constant 0 : index
    %c0_61 = arith.constant 0 : index
    %108 = vector.load %arg2[%c4_59, %c0_60, %c0_61] : memref<9x128x128xbf16, #tpu.memory_space<vmem>>, vector<1x128x128xbf16>
    %109 = vector.shape_cast %108 : vector<1x128x128xbf16> to vector<128x128xbf16>
    %cst_62 = arith.constant dense<0.000000e+00> : vector<4x128xf32>
    %110 = tpu.matmul %107, %109, %cst_62 {dimension_numbers = #tpu.dot_dimension_numbers<[1], [0], [0], [1], [0, 0, 1, 1], [], []>} : vector<4x128xbf16>, vector<128x128xbf16>, vector<4x128xf32> -> vector<4x128xf32>
    %111 = arith.addf %105, %110 : vector<4x128xf32>
    %112 = vector.extract_strided_slice %0 {offsets = [0, 2, 2, 0], sizes = [1, 1, 4, 128], strides = [1, 1, 1, 1]} : vector<1x6x6x128xbf16> to vector<1x1x4x128xbf16>
    %113 = vector.shape_cast %112 : vector<1x1x4x128xbf16> to vector<4x128xbf16>
    %c5_63 = arith.constant 5 : index
    %c0_64 = arith.constant 0 : index
    %c0_65 = arith.constant 0 : index
    %114 = vector.load %arg2[%c5_63, %c0_64, %c0_65] : memref<9x128x128xbf16, #tpu.memory_space<vmem>>, vector<1x128x128xbf16>
    %115 = vector.shape_cast %114 : vector<1x128x128xbf16> to vector<128x128xbf16>
    %cst_66 = arith.constant dense<0.000000e+00> : vector<4x128xf32>
    %116 = tpu.matmul %113, %115, %cst_66 {dimension_numbers = #tpu.dot_dimension_numbers<[1], [0], [0], [1], [0, 0, 1, 1], [], []>} : vector<4x128xbf16>, vector<128x128xbf16>, vector<4x128xf32> -> vector<4x128xf32>
    %117 = arith.addf %111, %116 : vector<4x128xf32>
    %118 = vector.extract_strided_slice %0 {offsets = [0, 3, 0, 0], sizes = [1, 1, 4, 128], strides = [1, 1, 1, 1]} : vector<1x6x6x128xbf16> to vector<1x1x4x128xbf16>
    %119 = vector.shape_cast %118 : vector<1x1x4x128xbf16> to vector<4x128xbf16>
    %c6_67 = arith.constant 6 : index
    %c0_68 = arith.constant 0 : index
    %c0_69 = arith.constant 0 : index
    %120 = vector.load %arg2[%c6_67, %c0_68, %c0_69] : memref<9x128x128xbf16, #tpu.memory_space<vmem>>, vector<1x128x128xbf16>
    %121 = vector.shape_cast %120 : vector<1x128x128xbf16> to vector<128x128xbf16>
    %cst_70 = arith.constant dense<0.000000e+00> : vector<4x128xf32>
    %122 = tpu.matmul %119, %121, %cst_70 {dimension_numbers = #tpu.dot_dimension_numbers<[1], [0], [0], [1], [0, 0, 1, 1], [], []>} : vector<4x128xbf16>, vector<128x128xbf16>, vector<4x128xf32> -> vector<4x128xf32>
    %123 = arith.addf %117, %122 : vector<4x128xf32>
    %124 = vector.extract_strided_slice %0 {offsets = [0, 3, 1, 0], sizes = [1, 1, 4, 128], strides = [1, 1, 1, 1]} : vector<1x6x6x128xbf16> to vector<1x1x4x128xbf16>
    %125 = vector.shape_cast %124 : vector<1x1x4x128xbf16> to vector<4x128xbf16>
    %c7_71 = arith.constant 7 : index
    %c0_72 = arith.constant 0 : index
    %c0_73 = arith.constant 0 : index
    %126 = vector.load %arg2[%c7_71, %c0_72, %c0_73] : memref<9x128x128xbf16, #tpu.memory_space<vmem>>, vector<1x128x128xbf16>
    %127 = vector.shape_cast %126 : vector<1x128x128xbf16> to vector<128x128xbf16>
    %cst_74 = arith.constant dense<0.000000e+00> : vector<4x128xf32>
    %128 = tpu.matmul %125, %127, %cst_74 {dimension_numbers = #tpu.dot_dimension_numbers<[1], [0], [0], [1], [0, 0, 1, 1], [], []>} : vector<4x128xbf16>, vector<128x128xbf16>, vector<4x128xf32> -> vector<4x128xf32>
    %129 = arith.addf %123, %128 : vector<4x128xf32>
    %130 = vector.extract_strided_slice %0 {offsets = [0, 3, 2, 0], sizes = [1, 1, 4, 128], strides = [1, 1, 1, 1]} : vector<1x6x6x128xbf16> to vector<1x1x4x128xbf16>
    %131 = vector.shape_cast %130 : vector<1x1x4x128xbf16> to vector<4x128xbf16>
    %c8_75 = arith.constant 8 : index
    %c0_76 = arith.constant 0 : index
    %c0_77 = arith.constant 0 : index
    %132 = vector.load %arg2[%c8_75, %c0_76, %c0_77] : memref<9x128x128xbf16, #tpu.memory_space<vmem>>, vector<1x128x128xbf16>
    %133 = vector.shape_cast %132 : vector<1x128x128xbf16> to vector<128x128xbf16>
    %cst_78 = arith.constant dense<0.000000e+00> : vector<4x128xf32>
    %134 = tpu.matmul %131, %133, %cst_78 {dimension_numbers = #tpu.dot_dimension_numbers<[1], [0], [0], [1], [0, 0, 1, 1], [], []>} : vector<4x128xbf16>, vector<128x128xbf16>, vector<4x128xf32> -> vector<4x128xf32>
    %135 = arith.addf %129, %134 : vector<4x128xf32>
    %cst_79 = arith.constant dense<0.000000e+00> : vector<4xf32>
    %136 = vector.multi_reduction <add>, %135, %cst_79 [1] : vector<4x128xf32> to vector<4xf32>
    %137 = vector.shape_cast %136 : vector<4xf32> to vector<4x1xf32>
    %cst_80 = arith.constant 1.280000e+02 : f32
    %138 = vector.broadcast %cst_80 : f32 to vector<4x1xf32>
    %139 = arith.divf %137, %138 : vector<4x1xf32>
    %140 = vector.broadcast %139 : vector<4x1xf32> to vector<4x128xf32>
    %141 = arith.subf %135, %140 : vector<4x128xf32>
    %142 = arith.mulf %141, %141 : vector<4x128xf32>
    %cst_81 = arith.constant dense<0.000000e+00> : vector<4xf32>
    %143 = vector.multi_reduction <add>, %142, %cst_81 [1] : vector<4x128xf32> to vector<4xf32>
    %144 = vector.shape_cast %143 : vector<4xf32> to vector<4x1xf32>
    %cst_82 = arith.constant 1.280000e+02 : f32
    %145 = vector.broadcast %cst_82 : f32 to vector<4x1xf32>
    %146 = arith.divf %144, %145 : vector<4x1xf32>
    %147 = vector.broadcast %139 : vector<4x1xf32> to vector<4x128xf32>
    %148 = arith.subf %135, %147 : vector<4x128xf32>
    %cst_83 = arith.constant 9.99999997E-7 : f32
    %149 = vector.broadcast %cst_83 : f32 to vector<4x1xf32>
    %150 = arith.addf %146, %149 : vector<4x1xf32>
    %151 = math.rsqrt %150 : vector<4x1xf32>
    %152 = vector.broadcast %151 : vector<4x1xf32> to vector<4x128xf32>
    %153 = arith.mulf %148, %152 : vector<4x128xf32>
    %c0_84 = arith.constant 0 : index
    %c0_85 = arith.constant 0 : index
    %154 = vector.load %arg3[%c0_84, %c0_85] : memref<1x128xf32, #tpu.memory_space<vmem>>, vector<1x128xf32>
    %155 = vector.broadcast %154 : vector<1x128xf32> to vector<4x128xf32>
    %156 = arith.mulf %153, %155 : vector<4x128xf32>
    %c0_86 = arith.constant 0 : index
    %c0_87 = arith.constant 0 : index
    %157 = vector.load %arg4[%c0_86, %c0_87] : memref<1x128xf32, #tpu.memory_space<vmem>>, vector<1x128xf32>
    %158 = vector.broadcast %157 : vector<1x128xf32> to vector<4x128xf32>
    %159 = arith.addf %156, %158 : vector<4x128xf32>
    %c4_88 = arith.constant 4 : index
    %c0_89 = arith.constant 0 : index
    %160 = vector.load %arg5[%c4_88, %c0_89] : memref<16x128xf32, #tpu.memory_space<vmem>>, vector<4x128xf32>
    tpu.vector_store %arg5[%c4_88, %c0_89], %159 {strides = array<i32>} : memref<16x128xf32, #tpu.memory_space<vmem>>, vector<4x128xf32>,
    %cst_90 = arith.constant 0.000000e+00 : f32
    %161 = vector.broadcast %cst_90 : f32 to vector<4x128xf32>
    %162 = vector.extract_strided_slice %0 {offsets = [0, 2, 0, 0], sizes = [1, 1, 4, 128], strides = [1, 1, 1, 1]} : vector<1x6x6x128xbf16> to vector<1x1x4x128xbf16>
    %163 = vector.shape_cast %162 : vector<1x1x4x128xbf16> to vector<4x128xbf16>
    %c0_91 = arith.constant 0 : index
    %c0_92 = arith.constant 0 : index
    %c0_93 = arith.constant 0 : index
    %164 = vector.load %arg2[%c0_91, %c0_92, %c0_93] : memref<9x128x128xbf16, #tpu.memory_space<vmem>>, vector<1x128x128xbf16>
    %165 = vector.shape_cast %164 : vector<1x128x128xbf16> to vector<128x128xbf16>
    %cst_94 = arith.constant dense<0.000000e+00> : vector<4x128xf32>
    %166 = tpu.matmul %163, %165, %cst_94 {dimension_numbers = #tpu.dot_dimension_numbers<[1], [0], [0], [1], [0, 0, 1, 1], [], []>} : vector<4x128xbf16>, vector<128x128xbf16>, vector<4x128xf32> -> vector<4x128xf32>
    %167 = arith.addf %161, %166 : vector<4x128xf32>
    %168 = vector.extract_strided_slice %0 {offsets = [0, 2, 1, 0], sizes = [1, 1, 4, 128], strides = [1, 1, 1, 1]} : vector<1x6x6x128xbf16> to vector<1x1x4x128xbf16>
    %169 = vector.shape_cast %168 : vector<1x1x4x128xbf16> to vector<4x128xbf16>
    %c1_95 = arith.constant 1 : index
    %c0_96 = arith.constant 0 : index
    %c0_97 = arith.constant 0 : index
    %170 = vector.load %arg2[%c1_95, %c0_96, %c0_97] : memref<9x128x128xbf16, #tpu.memory_space<vmem>>, vector<1x128x128xbf16>
    %171 = vector.shape_cast %170 : vector<1x128x128xbf16> to vector<128x128xbf16>
    %cst_98 = arith.constant dense<0.000000e+00> : vector<4x128xf32>
    %172 = tpu.matmul %169, %171, %cst_98 {dimension_numbers = #tpu.dot_dimension_numbers<[1], [0], [0], [1], [0, 0, 1, 1], [], []>} : vector<4x128xbf16>, vector<128x128xbf16>, vector<4x128xf32> -> vector<4x128xf32>
    %173 = arith.addf %167, %172 : vector<4x128xf32>
    %174 = vector.extract_strided_slice %0 {offsets = [0, 2, 2, 0], sizes = [1, 1, 4, 128], strides = [1, 1, 1, 1]} : vector<1x6x6x128xbf16> to vector<1x1x4x128xbf16>
    %175 = vector.shape_cast %174 : vector<1x1x4x128xbf16> to vector<4x128xbf16>
    %c2_99 = arith.constant 2 : index
    %c0_100 = arith.constant 0 : index
    %c0_101 = arith.constant 0 : index
    %176 = vector.load %arg2[%c2_99, %c0_100, %c0_101] : memref<9x128x128xbf16, #tpu.memory_space<vmem>>, vector<1x128x128xbf16>
    %177 = vector.shape_cast %176 : vector<1x128x128xbf16> to vector<128x128xbf16>
    %cst_102 = arith.constant dense<0.000000e+00> : vector<4x128xf32>
    %178 = tpu.matmul %175, %177, %cst_102 {dimension_numbers = #tpu.dot_dimension_numbers<[1], [0], [0], [1], [0, 0, 1, 1], [], []>} : vector<4x128xbf16>, vector<128x128xbf16>, vector<4x128xf32> -> vector<4x128xf32>
    %179 = arith.addf %173, %178 : vector<4x128xf32>
    %180 = vector.extract_strided_slice %0 {offsets = [0, 3, 0, 0], sizes = [1, 1, 4, 128], strides = [1, 1, 1, 1]} : vector<1x6x6x128xbf16> to vector<1x1x4x128xbf16>
    %181 = vector.shape_cast %180 : vector<1x1x4x128xbf16> to vector<4x128xbf16>
    %c3_103 = arith.constant 3 : index
    %c0_104 = arith.constant 0 : index
    %c0_105 = arith.constant 0 : index
    %182 = vector.load %arg2[%c3_103, %c0_104, %c0_105] : memref<9x128x128xbf16, #tpu.memory_space<vmem>>, vector<1x128x128xbf16>
    %183 = vector.shape_cast %182 : vector<1x128x128xbf16> to vector<128x128xbf16>
    %cst_106 = arith.constant dense<0.000000e+00> : vector<4x128xf32>
    %184 = tpu.matmul %181, %183, %cst_106 {dimension_numbers = #tpu.dot_dimension_numbers<[1], [0], [0], [1], [0, 0, 1, 1], [], []>} : vector<4x128xbf16>, vector<128x128xbf16>, vector<4x128xf32> -> vector<4x128xf32>
    %185 = arith.addf %179, %184 : vector<4x128xf32>
    %186 = vector.extract_strided_slice %0 {offsets = [0, 3, 1, 0], sizes = [1, 1, 4, 128], strides = [1, 1, 1, 1]} : vector<1x6x6x128xbf16> to vector<1x1x4x128xbf16>
    %187 = vector.shape_cast %186 : vector<1x1x4x128xbf16> to vector<4x128xbf16>
    %c4_107 = arith.constant 4 : index
    %c0_108 = arith.constant 0 : index
    %c0_109 = arith.constant 0 : index
    %188 = vector.load %arg2[%c4_107, %c0_108, %c0_109] : memref<9x128x128xbf16, #tpu.memory_space<vmem>>, vector<1x128x128xbf16>
    %189 = vector.shape_cast %188 : vector<1x128x128xbf16> to vector<128x128xbf16>
    %cst_110 = arith.constant dense<0.000000e+00> : vector<4x128xf32>
    %190 = tpu.matmul %187, %189, %cst_110 {dimension_numbers = #tpu.dot_dimension_numbers<[1], [0], [0], [1], [0, 0, 1, 1], [], []>} : vector<4x128xbf16>, vector<128x128xbf16>, vector<4x128xf32> -> vector<4x128xf32>
    %191 = arith.addf %185, %190 : vector<4x128xf32>
    %192 = vector.extract_strided_slice %0 {offsets = [0, 3, 2, 0], sizes = [1, 1, 4, 128], strides = [1, 1, 1, 1]} : vector<1x6x6x128xbf16> to vector<1x1x4x128xbf16>
    %193 = vector.shape_cast %192 : vector<1x1x4x128xbf16> to vector<4x128xbf16>
    %c5_111 = arith.constant 5 : index
    %c0_112 = arith.constant 0 : index
    %c0_113 = arith.constant 0 : index
    %194 = vector.load %arg2[%c5_111, %c0_112, %c0_113] : memref<9x128x128xbf16, #tpu.memory_space<vmem>>, vector<1x128x128xbf16>
    %195 = vector.shape_cast %194 : vector<1x128x128xbf16> to vector<128x128xbf16>
    %cst_114 = arith.constant dense<0.000000e+00> : vector<4x128xf32>
    %196 = tpu.matmul %193, %195, %cst_114 {dimension_numbers = #tpu.dot_dimension_numbers<[1], [0], [0], [1], [0, 0, 1, 1], [], []>} : vector<4x128xbf16>, vector<128x128xbf16>, vector<4x128xf32> -> vector<4x128xf32>
    %197 = arith.addf %191, %196 : vector<4x128xf32>
    %198 = vector.extract_strided_slice %0 {offsets = [0, 4, 0, 0], sizes = [1, 1, 4, 128], strides = [1, 1, 1, 1]} : vector<1x6x6x128xbf16> to vector<1x1x4x128xbf16>
    %199 = vector.shape_cast %198 : vector<1x1x4x128xbf16> to vector<4x128xbf16>
    %c6_115 = arith.constant 6 : index
    %c0_116 = arith.constant 0 : index
    %c0_117 = arith.constant 0 : index
    %200 = vector.load %arg2[%c6_115, %c0_116, %c0_117] : memref<9x128x128xbf16, #tpu.memory_space<vmem>>, vector<1x128x128xbf16>
    %201 = vector.shape_cast %200 : vector<1x128x128xbf16> to vector<128x128xbf16>
    %cst_118 = arith.constant dense<0.000000e+00> : vector<4x128xf32>
    %202 = tpu.matmul %199, %201, %cst_118 {dimension_numbers = #tpu.dot_dimension_numbers<[1], [0], [0], [1], [0, 0, 1, 1], [], []>} : vector<4x128xbf16>, vector<128x128xbf16>, vector<4x128xf32> -> vector<4x128xf32>
    %203 = arith.addf %197, %202 : vector<4x128xf32>
    %204 = vector.extract_strided_slice %0 {offsets = [0, 4, 1, 0], sizes = [1, 1, 4, 128], strides = [1, 1, 1, 1]} : vector<1x6x6x128xbf16> to vector<1x1x4x128xbf16>
    %205 = vector.shape_cast %204 : vector<1x1x4x128xbf16> to vector<4x128xbf16>
    %c7_119 = arith.constant 7 : index
    %c0_120 = arith.constant 0 : index
    %c0_121 = arith.constant 0 : index
    %206 = vector.load %arg2[%c7_119, %c0_120, %c0_121] : memref<9x128x128xbf16, #tpu.memory_space<vmem>>, vector<1x128x128xbf16>
    %207 = vector.shape_cast %206 : vector<1x128x128xbf16> to vector<128x128xbf16>
    %cst_122 = arith.constant dense<0.000000e+00> : vector<4x128xf32>
    %208 = tpu.matmul %205, %207, %cst_122 {dimension_numbers = #tpu.dot_dimension_numbers<[1], [0], [0], [1], [0, 0, 1, 1], [], []>} : vector<4x128xbf16>, vector<128x128xbf16>, vector<4x128xf32> -> vector<4x128xf32>
    %209 = arith.addf %203, %208 : vector<4x128xf32>
    %210 = vector.extract_strided_slice %0 {offsets = [0, 4, 2, 0], sizes = [1, 1, 4, 128], strides = [1, 1, 1, 1]} : vector<1x6x6x128xbf16> to vector<1x1x4x128xbf16>
    %211 = vector.shape_cast %210 : vector<1x1x4x128xbf16> to vector<4x128xbf16>
    %c8_123 = arith.constant 8 : index
    %c0_124 = arith.constant 0 : index
    %c0_125 = arith.constant 0 : index
    %212 = vector.load %arg2[%c8_123, %c0_124, %c0_125] : memref<9x128x128xbf16, #tpu.memory_space<vmem>>, vector<1x128x128xbf16>
    %213 = vector.shape_cast %212 : vector<1x128x128xbf16> to vector<128x128xbf16>
    %cst_126 = arith.constant dense<0.000000e+00> : vector<4x128xf32>
    %214 = tpu.matmul %211, %213, %cst_126 {dimension_numbers = #tpu.dot_dimension_numbers<[1], [0], [0], [1], [0, 0, 1, 1], [], []>} : vector<4x128xbf16>, vector<128x128xbf16>, vector<4x128xf32> -> vector<4x128xf32>
    %215 = arith.addf %209, %214 : vector<4x128xf32>
    %cst_127 = arith.constant dense<0.000000e+00> : vector<4xf32>
    %216 = vector.multi_reduction <add>, %215, %cst_127 [1] : vector<4x128xf32> to vector<4xf32>
    %217 = vector.shape_cast %216 : vector<4xf32> to vector<4x1xf32>
    %cst_128 = arith.constant 1.280000e+02 : f32
    %218 = vector.broadcast %cst_128 : f32 to vector<4x1xf32>
    %219 = arith.divf %217, %218 : vector<4x1xf32>
    %220 = vector.broadcast %219 : vector<4x1xf32> to vector<4x128xf32>
    %221 = arith.subf %215, %220 : vector<4x128xf32>
    %222 = arith.mulf %221, %221 : vector<4x128xf32>
    %cst_129 = arith.constant dense<0.000000e+00> : vector<4xf32>
    %223 = vector.multi_reduction <add>, %222, %cst_129 [1] : vector<4x128xf32> to vector<4xf32>
    %224 = vector.shape_cast %223 : vector<4xf32> to vector<4x1xf32>
    %cst_130 = arith.constant 1.280000e+02 : f32
    %225 = vector.broadcast %cst_130 : f32 to vector<4x1xf32>
    %226 = arith.divf %224, %225 : vector<4x1xf32>
    %227 = vector.broadcast %219 : vector<4x1xf32> to vector<4x128xf32>
    %228 = arith.subf %215, %227 : vector<4x128xf32>
    %cst_131 = arith.constant 9.99999997E-7 : f32
    %229 = vector.broadcast %cst_131 : f32 to vector<4x1xf32>
    %230 = arith.addf %226, %229 : vector<4x1xf32>
    %231 = math.rsqrt %230 : vector<4x1xf32>
    %232 = vector.broadcast %231 : vector<4x1xf32> to vector<4x128xf32>
    %233 = arith.mulf %228, %232 : vector<4x128xf32>
    %c0_132 = arith.constant 0 : index
    %c0_133 = arith.constant 0 : index
    %234 = vector.load %arg3[%c0_132, %c0_133] : memref<1x128xf32, #tpu.memory_space<vmem>>, vector<1x128xf32>
    %235 = vector.broadcast %234 : vector<1x128xf32> to vector<4x128xf32>
    %236 = arith.mulf %233, %235 : vector<4x128xf32>
    %c0_134 = arith.constant 0 : index
    %c0_135 = arith.constant 0 : index
    %237 = vector.load %arg4[%c0_134, %c0_135] : memref<1x128xf32, #tpu.memory_space<vmem>>, vector<1x128xf32>
    %238 = vector.broadcast %237 : vector<1x128xf32> to vector<4x128xf32>
    %239 = arith.addf %236, %238 : vector<4x128xf32>
    %c8_136 = arith.constant 8 : index
    %c0_137 = arith.constant 0 : index
    %240 = vector.load %arg5[%c8_136, %c0_137] : memref<16x128xf32, #tpu.memory_space<vmem>>, vector<4x128xf32>
    tpu.vector_store %arg5[%c8_136, %c0_137], %239 {strides = array<i32>} : memref<16x128xf32, #tpu.memory_space<vmem>>, vector<4x128xf32>,
    %cst_138 = arith.constant 0.000000e+00 : f32
    %241 = vector.broadcast %cst_138 : f32 to vector<4x128xf32>
    %242 = vector.extract_strided_slice %0 {offsets = [0, 3, 0, 0], sizes = [1, 1, 4, 128], strides = [1, 1, 1, 1]} : vector<1x6x6x128xbf16> to vector<1x1x4x128xbf16>
    %243 = vector.shape_cast %242 : vector<1x1x4x128xbf16> to vector<4x128xbf16>
    %c0_139 = arith.constant 0 : index
    %c0_140 = arith.constant 0 : index
    %c0_141 = arith.constant 0 : index
    %244 = vector.load %arg2[%c0_139, %c0_140, %c0_141] : memref<9x128x128xbf16, #tpu.memory_space<vmem>>, vector<1x128x128xbf16>
    %245 = vector.shape_cast %244 : vector<1x128x128xbf16> to vector<128x128xbf16>
    %cst_142 = arith.constant dense<0.000000e+00> : vector<4x128xf32>
    %246 = tpu.matmul %243, %245, %cst_142 {dimension_numbers = #tpu.dot_dimension_numbers<[1], [0], [0], [1], [0, 0, 1, 1], [], []>} : vector<4x128xbf16>, vector<128x128xbf16>, vector<4x128xf32> -> vector<4x128xf32>
    %247 = arith.addf %241, %246 : vector<4x128xf32>
    %248 = vector.extract_strided_slice %0 {offsets = [0, 3, 1, 0], sizes = [1, 1, 4, 128], strides = [1, 1, 1, 1]} : vector<1x6x6x128xbf16> to vector<1x1x4x128xbf16>
    %249 = vector.shape_cast %248 : vector<1x1x4x128xbf16> to vector<4x128xbf16>
    %c1_143 = arith.constant 1 : index
    %c0_144 = arith.constant 0 : index
    %c0_145 = arith.constant 0 : index
    %250 = vector.load %arg2[%c1_143, %c0_144, %c0_145] : memref<9x128x128xbf16, #tpu.memory_space<vmem>>, vector<1x128x128xbf16>
    %251 = vector.shape_cast %250 : vector<1x128x128xbf16> to vector<128x128xbf16>
    %cst_146 = arith.constant dense<0.000000e+00> : vector<4x128xf32>
    %252 = tpu.matmul %249, %251, %cst_146 {dimension_numbers = #tpu.dot_dimension_numbers<[1], [0], [0], [1], [0, 0, 1, 1], [], []>} : vector<4x128xbf16>, vector<128x128xbf16>, vector<4x128xf32> -> vector<4x128xf32>
    %253 = arith.addf %247, %252 : vector<4x128xf32>
    %254 = vector.extract_strided_slice %0 {offsets = [0, 3, 2, 0], sizes = [1, 1, 4, 128], strides = [1, 1, 1, 1]} : vector<1x6x6x128xbf16> to vector<1x1x4x128xbf16>
    %255 = vector.shape_cast %254 : vector<1x1x4x128xbf16> to vector<4x128xbf16>
    %c2_147 = arith.constant 2 : index
    %c0_148 = arith.constant 0 : index
    %c0_149 = arith.constant 0 : index
    %256 = vector.load %arg2[%c2_147, %c0_148, %c0_149] : memref<9x128x128xbf16, #tpu.memory_space<vmem>>, vector<1x128x128xbf16>
    %257 = vector.shape_cast %256 : vector<1x128x128xbf16> to vector<128x128xbf16>
    %cst_150 = arith.constant dense<0.000000e+00> : vector<4x128xf32>
    %258 = tpu.matmul %255, %257, %cst_150 {dimension_numbers = #tpu.dot_dimension_numbers<[1], [0], [0], [1], [0, 0, 1, 1], [], []>} : vector<4x128xbf16>, vector<128x128xbf16>, vector<4x128xf32> -> vector<4x128xf32>
    %259 = arith.addf %253, %258 : vector<4x128xf32>
    %260 = vector.extract_strided_slice %0 {offsets = [0, 4, 0, 0], sizes = [1, 1, 4, 128], strides = [1, 1, 1, 1]} : vector<1x6x6x128xbf16> to vector<1x1x4x128xbf16>
    %261 = vector.shape_cast %260 : vector<1x1x4x128xbf16> to vector<4x128xbf16>
    %c3_151 = arith.constant 3 : index
    %c0_152 = arith.constant 0 : index
    %c0_153 = arith.constant 0 : index
    %262 = vector.load %arg2[%c3_151, %c0_152, %c0_153] : memref<9x128x128xbf16, #tpu.memory_space<vmem>>, vector<1x128x128xbf16>
    %263 = vector.shape_cast %262 : vector<1x128x128xbf16> to vector<128x128xbf16>
    %cst_154 = arith.constant dense<0.000000e+00> : vector<4x128xf32>
    %264 = tpu.matmul %261, %263, %cst_154 {dimension_numbers = #tpu.dot_dimension_numbers<[1], [0], [0], [1], [0, 0, 1, 1], [], []>} : vector<4x128xbf16>, vector<128x128xbf16>, vector<4x128xf32> -> vector<4x128xf32>
    %265 = arith.addf %259, %264 : vector<4x128xf32>
    %266 = vector.extract_strided_slice %0 {offsets = [0, 4, 1, 0], sizes = [1, 1, 4, 128], strides = [1, 1, 1, 1]} : vector<1x6x6x128xbf16> to vector<1x1x4x128xbf16>
    %267 = vector.shape_cast %266 : vector<1x1x4x128xbf16> to vector<4x128xbf16>
    %c4_155 = arith.constant 4 : index
    %c0_156 = arith.constant 0 : index
    %c0_157 = arith.constant 0 : index
    %268 = vector.load %arg2[%c4_155, %c0_156, %c0_157] : memref<9x128x128xbf16, #tpu.memory_space<vmem>>, vector<1x128x128xbf16>
    %269 = vector.shape_cast %268 : vector<1x128x128xbf16> to vector<128x128xbf16>
    %cst_158 = arith.constant dense<0.000000e+00> : vector<4x128xf32>
    %270 = tpu.matmul %267, %269, %cst_158 {dimension_numbers = #tpu.dot_dimension_numbers<[1], [0], [0], [1], [0, 0, 1, 1], [], []>} : vector<4x128xbf16>, vector<128x128xbf16>, vector<4x128xf32> -> vector<4x128xf32>
    %271 = arith.addf %265, %270 : vector<4x128xf32>
    %272 = vector.extract_strided_slice %0 {offsets = [0, 4, 2, 0], sizes = [1, 1, 4, 128], strides = [1, 1, 1, 1]} : vector<1x6x6x128xbf16> to vector<1x1x4x128xbf16>
    %273 = vector.shape_cast %272 : vector<1x1x4x128xbf16> to vector<4x128xbf16>
    %c5_159 = arith.constant 5 : index
    %c0_160 = arith.constant 0 : index
    %c0_161 = arith.constant 0 : index
    %274 = vector.load %arg2[%c5_159, %c0_160, %c0_161] : memref<9x128x128xbf16, #tpu.memory_space<vmem>>, vector<1x128x128xbf16>
    %275 = vector.shape_cast %274 : vector<1x128x128xbf16> to vector<128x128xbf16>
    %cst_162 = arith.constant dense<0.000000e+00> : vector<4x128xf32>
    %276 = tpu.matmul %273, %275, %cst_162 {dimension_numbers = #tpu.dot_dimension_numbers<[1], [0], [0], [1], [0, 0, 1, 1], [], []>} : vector<4x128xbf16>, vector<128x128xbf16>, vector<4x128xf32> -> vector<4x128xf32>
    %277 = arith.addf %271, %276 : vector<4x128xf32>
    %278 = vector.extract_strided_slice %0 {offsets = [0, 5, 0, 0], sizes = [1, 1, 4, 128], strides = [1, 1, 1, 1]} : vector<1x6x6x128xbf16> to vector<1x1x4x128xbf16>
    %279 = vector.shape_cast %278 : vector<1x1x4x128xbf16> to vector<4x128xbf16>
    %c6_163 = arith.constant 6 : index
    %c0_164 = arith.constant 0 : index
    %c0_165 = arith.constant 0 : index
    %280 = vector.load %arg2[%c6_163, %c0_164, %c0_165] : memref<9x128x128xbf16, #tpu.memory_space<vmem>>, vector<1x128x128xbf16>
    %281 = vector.shape_cast %280 : vector<1x128x128xbf16> to vector<128x128xbf16>
    %cst_166 = arith.constant dense<0.000000e+00> : vector<4x128xf32>
    %282 = tpu.matmul %279, %281, %cst_166 {dimension_numbers = #tpu.dot_dimension_numbers<[1], [0], [0], [1], [0, 0, 1, 1], [], []>} : vector<4x128xbf16>, vector<128x128xbf16>, vector<4x128xf32> -> vector<4x128xf32>
    %283 = arith.addf %277, %282 : vector<4x128xf32>
    %284 = vector.extract_strided_slice %0 {offsets = [0, 5, 1, 0], sizes = [1, 1, 4, 128], strides = [1, 1, 1, 1]} : vector<1x6x6x128xbf16> to vector<1x1x4x128xbf16>
    %285 = vector.shape_cast %284 : vector<1x1x4x128xbf16> to vector<4x128xbf16>
    %c7_167 = arith.constant 7 : index
    %c0_168 = arith.constant 0 : index
    %c0_169 = arith.constant 0 : index
    %286 = vector.load %arg2[%c7_167, %c0_168, %c0_169] : memref<9x128x128xbf16, #tpu.memory_space<vmem>>, vector<1x128x128xbf16>
    %287 = vector.shape_cast %286 : vector<1x128x128xbf16> to vector<128x128xbf16>
    %cst_170 = arith.constant dense<0.000000e+00> : vector<4x128xf32>
    %288 = tpu.matmul %285, %287, %cst_170 {dimension_numbers = #tpu.dot_dimension_numbers<[1], [0], [0], [1], [0, 0, 1, 1], [], []>} : vector<4x128xbf16>, vector<128x128xbf16>, vector<4x128xf32> -> vector<4x128xf32>
    %289 = arith.addf %283, %288 : vector<4x128xf32>
    %290 = vector.extract_strided_slice %0 {offsets = [0, 5, 2, 0], sizes = [1, 1, 4, 128], strides = [1, 1, 1, 1]} : vector<1x6x6x128xbf16> to vector<1x1x4x128xbf16>
    %291 = vector.shape_cast %290 : vector<1x1x4x128xbf16> to vector<4x128xbf16>
    %c8_171 = arith.constant 8 : index
    %c0_172 = arith.constant 0 : index
    %c0_173 = arith.constant 0 : index
    %292 = vector.load %arg2[%c8_171, %c0_172, %c0_173] : memref<9x128x128xbf16, #tpu.memory_space<vmem>>, vector<1x128x128xbf16>
    %293 = vector.shape_cast %292 : vector<1x128x128xbf16> to vector<128x128xbf16>
    %cst_174 = arith.constant dense<0.000000e+00> : vector<4x128xf32>
    %294 = tpu.matmul %291, %293, %cst_174 {dimension_numbers = #tpu.dot_dimension_numbers<[1], [0], [0], [1], [0, 0, 1, 1], [], []>} : vector<4x128xbf16>, vector<128x128xbf16>, vector<4x128xf32> -> vector<4x128xf32>
    %295 = arith.addf %289, %294 : vector<4x128xf32>
    %cst_175 = arith.constant dense<0.000000e+00> : vector<4xf32>
    %296 = vector.multi_reduction <add>, %295, %cst_175 [1] : vector<4x128xf32> to vector<4xf32>
    %297 = vector.shape_cast %296 : vector<4xf32> to vector<4x1xf32>
    %cst_176 = arith.constant 1.280000e+02 : f32
    %298 = vector.broadcast %cst_176 : f32 to vector<4x1xf32>
    %299 = arith.divf %297, %298 : vector<4x1xf32>
    %300 = vector.broadcast %299 : vector<4x1xf32> to vector<4x128xf32>
    %301 = arith.subf %295, %300 : vector<4x128xf32>
    %302 = arith.mulf %301, %301 : vector<4x128xf32>
    %cst_177 = arith.constant dense<0.000000e+00> : vector<4xf32>
    %303 = vector.multi_reduction <add>, %302, %cst_177 [1] : vector<4x128xf32> to vector<4xf32>
    %304 = vector.shape_cast %303 : vector<4xf32> to vector<4x1xf32>
    %cst_178 = arith.constant 1.280000e+02 : f32
    %305 = vector.broadcast %cst_178 : f32 to vector<4x1xf32>
    %306 = arith.divf %304, %305 : vector<4x1xf32>
    %307 = vector.broadcast %299 : vector<4x1xf32> to vector<4x128xf32>
    %308 = arith.subf %295, %307 : vector<4x128xf32>
    %cst_179 = arith.constant 9.99999997E-7 : f32
    %309 = vector.broadcast %cst_179 : f32 to vector<4x1xf32>
    %310 = arith.addf %306, %309 : vector<4x1xf32>
    %311 = math.rsqrt %310 : vector<4x1xf32>
    %312 = vector.broadcast %311 : vector<4x1xf32> to vector<4x128xf32>
    %313 = arith.mulf %308, %312 : vector<4x128xf32>
    %c0_180 = arith.constant 0 : index
    %c0_181 = arith.constant 0 : index
    %314 = vector.load %arg3[%c0_180, %c0_181] : memref<1x128xf32, #tpu.memory_space<vmem>>, vector<1x128xf32>
    %315 = vector.broadcast %314 : vector<1x128xf32> to vector<4x128xf32>
    %316 = arith.mulf %313, %315 : vector<4x128xf32>
    %c0_182 = arith.constant 0 : index
    %c0_183 = arith.constant 0 : index
    %317 = vector.load %arg4[%c0_182, %c0_183] : memref<1x128xf32, #tpu.memory_space<vmem>>, vector<1x128xf32>
    %318 = vector.broadcast %317 : vector<1x128xf32> to vector<4x128xf32>
    %319 = arith.addf %316, %318 : vector<4x128xf32>
    %c12 = arith.constant 12 : index
    %c0_184 = arith.constant 0 : index
    %320 = vector.load %arg5[%c12, %c0_184] : memref<16x128xf32, #tpu.memory_space<vmem>>, vector<4x128xf32>
    tpu.vector_store %arg5[%c12, %c0_184], %319 {strides = array<i32>} : memref<16x128xf32, #tpu.memory_space<vmem>>, vector<4x128xf32>,
    return
  }
  func.func @transform_0(%arg0: i32) -> (i32, i32, i32, i32) {
    %c0_i32 = arith.constant 0 : i32
    %c0_i32_0 = arith.constant 0 : i32
    %c0_i32_1 = arith.constant 0 : i32
    %c0_i32_2 = arith.constant 0 : i32
    return %arg0, %c0_i32, %c0_i32_0, %c0_i32_1 : i32, i32, i32, i32
  }
  func.func @transform_1(%arg0: i32) -> (i32, i32, i32) {
    %c0_i32 = arith.constant 0 : i32
    %c0_i32_0 = arith.constant 0 : i32
    %c0_i32_1 = arith.constant 0 : i32
    %c0_i32_2 = arith.constant 0 : i32
    return %c0_i32, %c0_i32_0, %c0_i32_1 : i32, i32, i32
  }
  func.func @transform_2(%arg0: i32) -> (i32, i32) {
    %c0_i32 = arith.constant 0 : i32
    %c0_i32_0 = arith.constant 0 : i32
    %c0_i32_1 = arith.constant 0 : i32
    return %c0_i32, %c0_i32_0 : i32, i32
  }
  func.func @transform_3(%arg0: i32) -> (i32, i32) {
    %c0_i32 = arith.constant 0 : i32
    %c0_i32_0 = arith.constant 0 : i32
    %c0_i32_1 = arith.constant 0 : i32
    return %c0_i32, %c0_i32_0 : i32, i32
  }
  func.func @transform_4(%arg0: i32) -> (i32, i32) {
    %c0_i32 = arith.constant 0 : i32
    %c0_i32_0 = arith.constant 0 : i32
    return %arg0, %c0_i32 : i32, i32
  }
}

</mosaic_0001>

<bundles_post_ra>
// kernel: sam_encoder_forward.13
= control target key start
LH: loop header
LB: loop body
LE: loop exit
PB: predicated region body
PF: predicated region fallthrough
CT: control target
= control target key end

     0   :  { %9 = vsyncpa [#allocation3], 0  ;;  %s234_s15 = smov [#allocation2]   ;;  %s345_s0 = inlined_call_operand.vmem [shape: bf16[32,48], index: 0, kind: input, shape index: {}]   ;;  %s346_s1 = inlined_call_operand.vmem [shape: bf16[48,256], index: 1, kind: input, shape index: {}]   ;;  %s347_s2 = inlined_call_operand.hbm [shape: f32[1,256], index: 2, kind: input, shape index: {}]   ;;  %s348_s3 = inlined_call_operand.vmem [shape: f32[32,256], index: 3, kind: input, shape index: {}]   ;;  %s349_s4 = inlined_call_operand.vmem [shape: f32[32,256], index: 4, kind: output, shape index: {}]  }
   0x1   :  { %s20_s16 = sshll.u32 %s234_s15, 4  ;;  %s210_s19 = scalar_lea.hbm %s347_s2, 32  ;;  %s21_s16 = int_to_ptr.vmem [resolvable:$true] %s20_s16 }
   0x2   :  { %p211_p0 = scmp.ne.s32.totalorder %s347_s2, %s210_s19  ;;  %p214_p1 = scmp.lt.u32.totalorder %s210_s19, %s347_s2 }
   0x4   :  { %p216_p2 = pnand %p214_p1, %p211_p0 }
   0x6   :  { %219 = shalt.err (!%p216_p2)
}
   0x7   :  { %s220_s24 = scalar_lea.vmem %s21_s16, 32  ;;  %p225_p4 = scmp.lt.s32.totalorder %s21_s16, %s21_s16 }
   0x8   :  { %p221_p3 = scmp.ne.s32.totalorder %s21_s16, %s220_s24  ;;  %p226_p5 = scmp.lt.s32.totalorder %s220_s24, %s220_s24 }
   0xa   :  { %p227_p6 = por %p226_p5, %p225_p4 }
   0xc   :  { %p228_p7 = pnand %p227_p6, %p221_p3 }
   0xe   :  { %231 = shalt.err (!%p228_p7)
}
   0xf   :  { %23 = dma.hbm_to_vmem [thread:$0]  %s347_s2, 32, %s21_s16, [#allocation3]  }
  0x10   :  { %232 = dma.done.wait [#allocation3], 32  }
  0x11   :  { %233 = vsyncadd [#allocation3], 4294967264  ;;  %v235_v0 = vmov 0   ;;  %v199_v1 = vld [vmem:[%s346_s1 + $0x4] ss:$8 sps:$4 sm:$0xff]   ;;  %vm92_vm0 = vcmask 392192   ;;  %v42_v9 = vlaneseq }
  0x12   :  { %131 = vmatprep.mubr.bf16.mxu0 %v235_v0  ;;  %141 = vmatprep.mubr.bf16.mxu1 %v235_v0  ;;  %v201_v2 = vld [vmem:[%s346_s1] ss:$8 sps:$4 sm:$0xff]   ;;  %v202_v3 = vld [vmem:[%s346_s1 + $0x14] ss:$8 sps:$4 sm:$0xff]   ;;  %v204_v4 = vld [vmem:[%s346_s1 + $0x10] ss:$8 sps:$4 sm:$0xff]  }
  0x13   :  { %99 = vmatprep.subr.bf16.mxu0 %v199_v1  ;;  %191 = vmatprep.subr.bf16.mxu1 %v199_v1  ;;  %v205_v5 = vld [vmem:[%s346_s1 + $0x24] ss:$8 sps:$4 sm:$0xff]   ;;  %v207_v6 = vld [vmem:[%s346_s1 + $0x20] ss:$8 sps:$4 sm:$0xff]   ;;  %v43_v10 = vshrl.u32 %v42_v9, 7  ;;  %v154_v29 = vld [vmem:[%s348_s3 + $0x10] sm:$0xff] }
  0x14   :  { %100 = vmatpush1.bf16.msra.mxu0 %v201_v2  ;;  %194 = vmatpush1.bf16.msra.mxu1 %v201_v2  ;;  %v208_v7 = vld [vmem:[%s345_s0] sm:$0xff]   ;;  %v209_v8 = vld [vmem:[%s345_s0 + $0x8] sm:$0xff]   ;;  %v158_v31 = vld [vmem:[%s348_s3 + $0x30] sm:$0xff] }
  0x15   :  { %101 = vmatprep.subr.bf16.mxu0 %v202_v3  ;;  %192 = vmatprep.subr.bf16.mxu1 %v202_v3  ;;  %v44_v11 = vsub.s32 0, %v43_v10  ;;  %v40_v12 = vld [vmem:[#allocation2] sm:$0x3]  ;;  %v48_v13 = vsub.s32 1, %v43_v10  ;;  %v153_v23 = vld [vmem:[%s348_s3 + $0x8] sm:$0xff]  ;;  %v155_v37 = vld [vmem:[%s348_s3 + $0x18] sm:$0xff] }
  0x16   :  { %v152_v17 = vld [vmem:[%s348_s3] sm:$0xff]  ;;  %v157_v25 = vld [vmem:[%s348_s3 + $0x28] sm:$0xff]  ;;  %v159_v39 = vld [vmem:[%s348_s3 + $0x38] sm:$0xff] }
  0x17   :  { %v45_v14 = vrot.slane %v40_v12, %v44_v11  ;;  %v49_v15 = vrot.slane %v40_v12, %v48_v13  ;;  %v156_v19 = vld [vmem:[%s348_s3 + $0x20] sm:$0xff] }
  0x18   :  { %102 = vmatpush1.bf16.msra.mxu0 %v204_v4  ;;  %195 = vmatpush1.bf16.msra.mxu1 %v204_v4 }
  0x19   :  { %103 = vmatprep.subr.bf16.mxu0 %v205_v5  ;;  %193 = vmatprep.subr.bf16.mxu1 %v205_v5 }
  0x1c   :  { %104 = vmatpush1.bf16.msra.mxu0 %v207_v6  ;;  %196 = vmatpush1.bf16.msra.mxu1 %v207_v6 }
  0x1f   :  { %189 = vmatmul.mubr.msk.bf16.vlgmr.msra.gmra.mrb[0].mxu0 %vm92_vm0, %v208_v7  ;;  %190 = vmatmul.mubr.msk.bf16.vlgmr.msra.gmra.mrb[0].mxu1 %vm92_vm0, %v209_v8 }
  0xf2   :  { %v133_v16 = vpop.f32.mrb[0].mxu0  ;;  %v143_v18 = vpop.f32.mrb[0].mxu1 }
  0xf3   :  { %v134_v20 = vadd.f32 %v133_v16, %v45_v14  ;;  %v144_v21 = vadd.f32 %v143_v18, %v45_v14  ;;  %v135_v22 = vpop.f32.mrb[1].mxu0  ;;  %v145_v24 = vpop.f32.mrb[1].mxu1 }
  0xf4   :  { %v136_v26 = vadd.f32 %v135_v22, %v49_v15  ;;  %v146_v27 = vadd.f32 %v145_v24, %v49_v15  ;;  %v137_v28 = vpop.f32.mrb[2].mxu0  ;;  %v147_v30 = vpop.f32.mrb[2].mxu1 }
  0xf5   :  { %v160_v32 = vadd.f32 %v152_v17, %v134_v20  ;;  %v164_v33 = vadd.f32 %v156_v19, %v144_v21  ;;  %v138_v34 = vadd.f32 %v137_v28, %v45_v14  ;;  %v148_v35 = vadd.f32 %v147_v30, %v45_v14  ;;  %v139_v36 = vpop.f32.mrb[3].mxu0  ;;  %v149_v38 = vpop.f32.mrb[3].mxu1 }
  0xf6   :  { %v161_v40 = vadd.f32 %v153_v23, %v136_v26  ;;  %v165_v41 = vadd.f32 %v157_v25, %v146_v27  ;;  %v140_v42 = vadd.f32 %v139_v36, %v49_v15  ;;  %v150_v43 = vadd.f32 %v149_v38, %v49_v15 }
  0xf7   :  { %168 = vst [vmem:[%s349_s4] sm:$0xff] %v160_v32  ;;  %172 = vst [vmem:[%s349_s4 + $0x20] sm:$0xff] %v164_v33  ;;  %v162_v44 = vadd.f32 %v154_v29, %v138_v34  ;;  %v166_v45 = vadd.f32 %v158_v31, %v148_v35 }
  0xf8   :  { %169 = vst [vmem:[%s349_s4 + $0x8] sm:$0xff] %v161_v40  ;;  %173 = vst [vmem:[%s349_s4 + $0x28] sm:$0xff] %v165_v41  ;;  %v163_v46 = vadd.f32 %v155_v37, %v140_v42  ;;  %v167_v47 = vadd.f32 %v159_v39, %v150_v43 }
  0xf9   :  { %170 = vst [vmem:[%s349_s4 + $0x10] sm:$0xff] %v162_v44  ;;  %174 = vst [vmem:[%s349_s4 + $0x30] sm:$0xff] %v166_v45 }
  0xfa   :  { %171 = vst [vmem:[%s349_s4 + $0x18] sm:$0xff] %v163_v46  ;;  %175 = vst [vmem:[%s349_s4 + $0x38] sm:$0xff] %v167_v47 }
  0xfb   :  { %180 = vsyncpa [#allocation3], 1 }

// kernel: sam_encoder_forward.15
= control target key start
LH: loop header
LB: loop body
LE: loop exit
PB: predicated region body
PF: predicated region fallthrough
CT: control target
= control target key end

     0   :  { %s1299_s0 = inlined_call_operand.vmem [shape: bf16[32,768], index: 0, kind: input, shape index: {}, may-alias: {0,1,2}]   ;;  %s1300_s1 = inlined_call_operand.vmem [shape: bf16[32,768], index: 1, kind: input, shape index: {}, may-alias: {0,1,2}]   ;;  %s1301_s2 = inlined_call_operand.vmem [shape: bf16[32,768], index: 2, kind: input, shape index: {}, may-alias: {0,1,2}]   ;;  %s1302_s3 = inlined_call_operand.vmem [shape: bf16[32,256], index: 3, kind: output, shape index: {}]  }
   0x1   :  { %1305 = sst [smem:[#allocation12_spill]] %s1302_s3 }
   0x2   :  { %s1092_s12 = smov 0   ;;  %s1094_s13 = smov 0  }
   0x3   :  { %s1096_s14 = smov 0   ;;  %s1098_s15 = smov 0  }
   0x4   :  { %s1100_s16 = smov 0   ;;  %s1102_s17 = smov 0  }
   0x5   :  { %s1104_s18 = smov 0   ;;  %s1106_s19 = smov 0  }
   0x6   :  { %s1108_s20 = smov 0   ;;  %s1110_s21 = smov 0  }
   0x7   :  { %s1112_s22 = smov 0  }
   0x8 LB: > { %s35_s24 = sadd.s32 1, %s1058_s20  ;;  %s39_s25 = sadd.s32 1, %s1062_s21  ;;  %s1066_s22 = sphi %s1112_s22, %s13_s22   ;;  %s1062_s21 = sphi %s1110_s21, %s1327_s21   ;;  %s1058_s20 = sphi %s1108_s20, %s1326_s20   ;;  %s1054_s19 = sphi %s1106_s19, %s1325_s19   ;;  %s1050_s18 = sphi %s1104_s18, %s1324_s18   ;;  %s1046_s17 = sphi %s1102_s17, %s1323_s17   ;;  %s1042_s16 = sphi %s1100_s16, %s1322_s16   ;;  %s1038_s15 = sphi %s1098_s15, %s1321_s15   ;;  %s1034_s14 = sphi %s1096_s14, %s1320_s14   ;;  %s1030_s13 = sphi %s1094_s13, %s1319_s13   ;;  %s1026_s12 = sphi %s1092_s12, %s1318_s12  }
   0x9   : > { %p37_p0 = scmp.ge.s32.totalorder %s35_s24, 2  ;;  %s50_s26 = sadd.s32 1, %s1046_s17 }
   0xa   : > { %p57_p1 = scmp.ne.s32.totalorder %s1046_s17, %s1042_s16  ;;  %p58_p2 = scmp.eq.s32.totalorder %s1066_s22, 0 }
   0xb   : > { %s1329_s24 = smov (%p37_p0, %s35_s24), 0  ;;  %s1331_s25 = smov (!%p37_p0, %s39_s25), %s1062_s21 }
   0xc   : > { %1306 = sst [smem:[#allocation9_spill]] %s1329_s24  ;;  %s46_s27 = ssub.s32 %s1058_s20, %s1329_s24 }
   0xd   : > { %p41_p3 = scmp.ge.s32.totalorder %s1331_s25, 2  ;;  %s74_s28 = sadd.s32 2, %s1058_s20 }
   0xe   : > { %p1165_p4 = por %p58_p2, %p57_p1  ;;  %s76_s30 = sadd.s32 2, %s1329_s24 }
   0xf   : > { %s1333_s25 = smov (%p41_p3, %s1331_s25), 0  ;;  %s78_s4 = ssub.s32 %s74_s28, %s76_s30 }
  0x10   : > { %1308 = sst [smem:[#allocation10_spill]] %s1333_s25  ;;  %s82_s5 = sadd.s32 1, %s1038_s15 }
  0x11   : > { %s45_s6 = ssub.s32 %s1062_s21, %s1333_s25  ;;  %p89_p5 = scmp.ne.s32.totalorder %s1038_s15, %s1034_s14 }
  0x12   : > { %s47_s7 = sor.u32 %s46_s27, %s45_s6  ;;  %s79_s8 = sor.u32 %s78_s4, %s45_s6 }
  0x13   : > { %p48_p6 = scmp.eq.s32.totalorder %s47_s7, 0  ;;  %p80_p7 = scmp.eq.s32.totalorder %s79_s8, 0 }
  0x14   : > { %p1179_p8 = por %p89_p5, %p58_p2  ;;  %s106_s10 = sadd.s32 4, %s1058_s20 }
  0x15   : > { %s1185_s11 = scalar_select %p48_p6, %s1046_s17, %s50_s26  }
  0x16   : > { %s1188_s28 = scalar_select %p80_p7, %s1038_s15, %s82_s5  }
  0x17   : > { %1310 = sst [smem:[#allocation11_spill]] %s1185_s11  ;;  %s108_s30 = sadd.s32 4, %s1329_s24 }
  0x18   : > { %s114_s23 = sadd.s32 1, %s1030_s13  ;;  %s110_s25 = ssub.s32 %s106_s10, %s108_s30 }
  0x19   : > { %p121_p9 = scmp.ne.s32.totalorder %s1030_s13, %s1026_s12  ;;  %s111_s27 = sor.u32 %s110_s25, %s45_s6 }
  0x1a   : > { %s1311_s3 = sadd.s32 4294967295, %s1066_s22   ;;  %p112_p11 = scmp.eq.s32.totalorder %s111_s27, 0 }
  0x1b   : > { %p155_p10 = scmp.eq.s32.totalorder %s1311_s3, 3  ;;  %p1198_p12 = por %p121_p9, %p58_p2 }
  0x1c   : > { %s1210_s26 = scalar_select %p112_p11, %s1030_s13, %s114_s23  }
  0x1d   : > { %p1205_p13 = por %p155_p10, %p57_p1  ;;  %p816_p0 = scmp.ge.s32.totalorder %s1066_s22, 4 }
  0x1f   : > { %177 = sbr.rel (%p816_p0) target bundleno = 62 (0x3e), region = 16 }
  0x26   : > { %180 = sbr.rel (!%p1165_p4) target bundleno = 46 (0x2e), region = 20  ;;  %s182_s3 = sand.u32 (%p1165_p4), 1, %s1046_s17  }
  0x27   : > { %s870_s25 = smul.u32 (%p1165_p4), 12, %s1062_s21  ;;  %s817_s5 = sshll.u32 (%p1165_p4), %s182_s3, 3 }
  0x28   : > { %s184_s23 = scalar_lea.vmem (%p1165_p4), [#allocation5], %s817_s5 }
  0x29   : > { %s188_s6 = sadd.s32 (%p1165_p4), %s1058_s20, %s870_s25 }
  0x2a   : > { %s820_s8 = sshll.u32 (%p1165_p4), %s188_s6, 2 }
  0x2b   : > { %s190_s27 = scalar_lea.vmem (%p1165_p4), %s1299_s0, %s820_s8 }
  0x2c   : > { %v206_v0 = vld [vmem:[%s190_s27] sm:$0xf] (%p1165_p4)  ;;  %v208_v1 = vld [vmem:[%s190_s27 + $0x18] sm:$0xf] (%p1165_p4) }
  0x2d   : > { %207 = vst [vmem:[%s184_s23] sm:$0xf] %v206_v0  ;;  %209 = vst [vmem:[%s184_s23 + $0x4] sm:$0xf] %v208_v1 }
  0x2e PF: > { %236 = sbr.rel (!%p1179_p8) target bundleno = 54 (0x36), region = 61  ;;  %s238_s29 = sand.u32 (%p1179_p8), 1, %s1038_s15  }
  0x2f   : > { %s711_s3 = smul.u32 (%p1179_p8), 12, %s1062_s21  ;;  %s821_s25 = sshll.u32 (%p1179_p8), %s238_s29, 3 }
  0x30   : > { %s240_s5 = scalar_lea.vmem (%p1179_p8), [#allocation6], %s821_s25 }
  0x31   : > { %s712_s6 = sadd.s32 (%p1179_p8), %s1058_s20, %s711_s3 }
  0x32   : > { %s822_s24 = sshll.u32 (%p1179_p8), %s712_s6, 2 }
  0x33   : > { %s714_s8 = scalar_lea.vmem (%p1179_p8), %s1300_s1, %s822_s24 }
  0x34   : > { %v823_v2 = vld [vmem:[%s714_s8 + $0x8] sm:$0xf] (%p1179_p8)  ;;  %v824_v3 = vld [vmem:[%s714_s8 + $0x20] sm:$0xf] (%p1179_p8) }
  0x35   : > { %264 = vst [vmem:[%s240_s5] sm:$0xf] %v823_v2  ;;  %266 = vst [vmem:[%s240_s5 + $0x4] sm:$0xf] %v824_v3 }
  0x36 PF: > { %293 = sbr.rel (!%p1198_p12) target bundleno = 62 (0x3e), region = 102  ;;  %s295_s9 = sand.u32 (%p1198_p12), 1, %s1030_s13  }
  0x37   : > { %s719_s30 = smul.u32 (%p1198_p12), 12, %s1062_s21  ;;  %s825_s27 = sshll.u32 (%p1198_p12), %s295_s9, 3 }
  0x38   : > { %s297_s25 = scalar_lea.vmem (%p1198_p12), [#allocation7], %s825_s27 }
  0x39   : > { %s720_s23 = sadd.s32 (%p1198_p12), %s1058_s20, %s719_s30 }
  0x3a   : > { %s826_s29 = sshll.u32 (%p1198_p12), %s720_s23, 2 }
  0x3b   : > { %s722_s24 = scalar_lea.vmem (%p1198_p12), %s1301_s2, %s826_s29 }
  0x3c   : > { %v827_v4 = vld [vmem:[%s722_s24 + $0x10] sm:$0xf] (%p1198_p12)  ;;  %v828_v5 = vld [vmem:[%s722_s24 + $0x28] sm:$0xf] (%p1198_p12) }
  0x3d   : > { %321 = vst [vmem:[%s297_s25] sm:$0xf] %v827_v4  ;;  %323 = vst [vmem:[%s297_s25 + $0x4] sm:$0xf] %v828_v5 }
  0x3e PF: > { %p829_p1 = scmp.ge.s32.totalorder %s1066_s22, 1  ;;  %p349_p2 = scmp.lt.s32.totalorder %s1066_s22, 5 }
  0x40   : > { %p350_p3 = pnand %p829_p1, %p349_p2 }
  0x41   : > { %s363_s4 = sand.u32 (!%p350_p3), 1, %s1034_s14   ;;  %s356_s6 = sand.u32 (!%p350_p3), 1, %s1042_s16   ;;  %v1068_v6 = vmov (!%p350_p3), 0.0   ;;  %vm1069_vm0 = vmmov (!%p350_p3), 0   ;;  %vm415_vm1 = vcmask (!%p350_p3), 7168   ;;  %v1070_v9 = vmov (!%p350_p3), -inf  }
  0x42   : > { %353 = sbr.rel (%p350_p3) target bundleno = 887 (0x377), region = 143  ;;  %858 = vmatprep.subr.bf16.mxu0 (!%p350_p3), %v1068_v6  ;;  %s831_s10 = sshll.u32 (!%p350_p3), %s363_s4, 3  ;;  %860 = vmatprep.mubr.msk.bf16.mxu0 (!%p350_p3), %vm1069_vm0, %v1068_v6  ;;  %416 = vst.msk [vmem:[#allocation2] sm:$0xff] (!%p350_p3), %vm415_vm1, %v1070_v9  ;;  %417 = vst.msk [vmem:[#allocation2 + $0x8] sm:$0xff] (!%p350_p3), %vm415_vm1, %v1070_v9  ;;  %vm485_vm2 = vcmask (!%p350_p3), 130048   ;;  %v1071_v18 = vmov (!%p350_p3), 0  }
  0x43   : > { %s1241_s8 = sshll.u32 (!%p350_p3), %s356_s6, 3  ;;  %864 = vmatprep.subr.bf16.mxu1 (!%p350_p3), %v1068_v6  ;;  %866 = vmatprep.mubr.msk.bf16.mxu1 (!%p350_p3), %vm1069_vm0, %v1068_v6  ;;  %s365_s5 = scalar_lea.vmem (!%p350_p3), [#allocation6], %s831_s10  ;;  %418 = vst.msk [vmem:[#allocation3] sm:$0xff] (!%p350_p3), %vm415_vm1, %v1068_v6  ;;  %419 = vst.msk [vmem:[#allocation3 + $0x8] sm:$0xff] (!%p350_p3), %vm415_vm1, %v1068_v6 }
  0x44   : > { %v965_v7 = vld [vmem:[%s365_s5] sm:$0xff] (!%p350_p3)   ;;  %s358_s9 = scalar_lea.vmem (!%p350_p3), [#allocation5], %s1241_s8  ;;  %963 = vset.pattern.permute.xlu1 (!%p350_p3), %v1071_v18  ;;  %964 = vset.pattern.permute.xlu0 (!%p350_p3), %v1071_v18  ;;  %s370_s14 = sand.u32 (!%p350_p3), 1, %s1026_s12  }
  0x45   : > { %859 = vmatpush3.bf16.xpose.msra.mxu0 (!%p350_p3), %v965_v7  ;;  %v966_v8 = vld [vmem:[%s358_s9] sm:$0xff] (!%p350_p3)   ;;  %s832_s16 = sshll.u32 (!%p350_p3), %s370_s14, 3  ;;  %s399_s12 = scalar_lea.vmem (!%p350_p3), [#allocation8], %s1241_s8 }
  0x46   : > { %s372_s30 = scalar_lea.vmem (!%p350_p3), [#allocation7], %s832_s16 }
  0x47   : > { %v967_v27 = vld [vmem:[%s372_s30] sm:$0xff] (!%p350_p3)  }
  0x48   : > { %865 = vmatpush3.bf16.msra.mxu1 (!%p350_p3), %v967_v27 }
  0x49   : > { %v483_v19 = vld [vmem:[#allocation2] sm:$0xff]  ;;  %v484_v22 = vld [vmem:[#allocation2 + $0x8] sm:$0xff]  ;;  %s848_s27 = sshll.u32 (%p1205_p13), %s1054_s19, 2  ;;  %s1314_s24 = sld [smem:[#allocation12_spill]] (%p1205_p13) }
  0x4a   : > { %v516_v43 = vld [vmem:[#allocation3] sm:$0xff]  ;;  %v517_v46 = vld [vmem:[#allocation3 + $0x8] sm:$0xff]  ;;  %s643_s23 = sadd.s32 (%p1205_p13), %s1050_s18, %s848_s27 }
  0x4b   : > { %s843_s29 = sshll.u32 (%p1205_p13), %s643_s23, 2 }
  0x4c   : > { %861 = vmatmul.mubr.bf16.vlgmr.msra.gmra.mrb[0].mxu0 %v966_v8 }
  0x4f   : > { %s645_s25 = scalar_lea.vmem (%p1205_p13), %s1314_s24, %s843_s29 }
 0x11f   : > { %v474_v10 = vpop.f32.mrb[0].mxu0 }
 0x120   : > { %v481_v11 = vmul.f32 0.088388346, %v474_v10  ;;  %v862_v12 = vpop.f32.mrb[1].mxu0 }
 0x121   : > { %v477_v13 = vpop.f32.mrb[2].mxu0 }
 0x122   : > { %v482_v14 = vmul.f32 0.088388346, %v477_v13  ;;  %v863_v15 = vpop.f32.mrb[3].mxu0  ;;  %v486_v16 = vsel %vm485_vm2, %v481_v11, -inf }
 0x123   : > { %487 = vmax.xlane.f32.xlu0 %v486_v16 }
 0x124   : > { %v489_v17 = vsel %vm485_vm2, %v482_v14, -inf }
 0x127   : > { %490 = vmax.xlane.f32.xlu0 %v489_v17 }
 0x1b0   : > { %v488_v20 = vpop.xlane.xlu0 %487 }
 0x1b1   : > { %v492_v21 = vmax.f32 %v483_v19, %v488_v20 }
 0x1b3   : > { %v494_v23 = vsub.f32 %v483_v19, %v492_v21  ;;  %600 = vst.msk [vmem:[#allocation2] sm:$0xff] %vm415_vm1, %v492_v21  ;;  %502 = vperm.xlu1 %963, %v492_v21  }
 0x1b4   : > { %v491_v24 = vpop.xlane.xlu0 %490 }
 0x1b5   : > { %v493_v25 = vmax.f32 %v484_v22, %v491_v24  ;;  %v496_v40 = vmul.f32 1.442695, %v494_v23 }
 0x1b7   : > { %v495_v26 = vsub.f32 %v484_v22, %v493_v25  ;;  %601 = vst.msk [vmem:[#allocation2 + $0x8] sm:$0xff] %vm415_vm1, %v493_v25  ;;  %507 = vperm.xlu1 %963, %v493_v25  }
 0x1b9   : > { %v498_v39 = vmul.f32 1.442695, %v495_v26 }
 0x232   : > { %v503_v28 = vpop.permute.xlu1 %502 }
 0x233   : > { %v510_v29 = vsub.f32 %v481_v11, %v503_v28 }
 0x235   : > { %v512_v30 = vmul.f32 1.442695, %v510_v29 }
 0x236   : > { %v508_v31 = vpop.permute.xlu1 %507 }
 0x237   : > { %968 = vpow2.f32 %v512_v30  ;;  %v511_v32 = vsub.f32 %v482_v14, %v508_v31 }
 0x239   : > { %v514_v33 = vmul.f32 1.442695, %v511_v32 }
 0x23b   : > { %970 = vpow2.f32 %v514_v33 }
 0x23c   : > { %972 = vpow2.f32 %v498_v39 }
 0x23d   : > { %974 = vpow2.f32 %v496_v40 }
 0x241   : > { %v969_v34 = vpop.eup %968 }
 0x242   : > { %v520_v35 = vsel %vm485_vm2, %v969_v34, 0.0 }
 0x243   : > { %521 = vadd.xlane.f32.xlu0 %v520_v35 }
 0x245   : > { %v971_v36 = vpop.eup %970 }
 0x246   : > { %v523_v37 = vsel %vm485_vm2, %v971_v36, 0.0  ;;  %v545_v38 = vpack.c.bf16 %v971_v36, %v969_v34  ;;  %v973_v41 = vpop.eup %972 }
 0x247   : > { %524 = vadd.xlane.f32.xlu1 %v523_v37  ;;  %v975_v42 = vpop.eup %974  ;;  %v519_v48 = vmul.f32 %v973_v41, %v517_v46 }
 0x248   : > { %867 = vmatmul.mubr.msk.bf16.vlgmr.msra.gmra.mrb[0].mxu1 %vm485_vm2, %v545_v38  ;;  %v518_v44 = vmul.f32 %v975_v42, %v516_v43 }
 0x258   : > { %540 = vperm.xlu1 %963, %v973_v41  }
 0x259   : > { %535 = vperm.xlu0 %964, %v975_v42  }
 0x2d0   : > { %v522_v45 = vpop.xlane.xlu0 %521 }
 0x2d1   : > { %v526_v47 = vadd.f32 %v522_v45, %v518_v44 }
 0x2d3   : > { %529 = vst.msk [vmem:[#allocation3] sm:$0xff] %vm415_vm1, %v526_v47 }
 0x2d4   : > { %v525_v49 = vpop.xlane.xlu1 %524 }
 0x2d5   : > { %v527_v50 = vadd.f32 %v525_v49, %v519_v48 }
 0x2d7   : > { %530 = vst.msk [vmem:[#allocation3 + $0x8] sm:$0xff] %vm415_vm1, %v527_v50 }
 0x2d8   : > { %v536_v59 = vpop.permute.xlu0 %535  ;;  %v541_v60 = vpop.permute.xlu1 %540 }
 0x2d9   : > { %v544_v62 = vmul.f32 0.0, %v541_v60  ;;  %v543_v63 = vmul.f32 0.0, %v536_v59 }
 0x2da   : > { %v607_v51 = vld [vmem:[#allocation3] sm:$0xff] }
 0x2db   : > { %976 = vrcp.f32 %v607_v51 }
 0x2de   : > { %v608_v52 = vld [vmem:[#allocation3 + $0x8] sm:$0xff] }
 0x2df   : > { %978 = vrcp.f32 %v608_v52 }
 0x2e5   : > { %v977_v53 = vpop.eup %976 }
 0x2e6   : > { %613 = vperm.xlu0 %964, %v977_v53  }
 0x2e9   : > { %v979_v54 = vpop.eup %978 }
 0x2ea   : > { %618 = vperm.xlu0 %964, %v979_v54  }
 0x31b   : > { %v589_v55 = vpop.f32.mrb[0].mxu1 }
 0x31c   : > { %v868_v56 = vpop.f32.mrb[1].mxu1  ;;  %v596_v0 = vadd.f32 %v589_v55, %v543_v63 }
 0x31d   : > { %v592_v57 = vpop.f32.mrb[2].mxu1 }
 0x31e   : > { %v869_v58 = vpop.f32.mrb[3].mxu1  ;;  %v597_v1 = vadd.f32 %v592_v57, %v544_v62 }
 0x365   : > { %v614_v61 = vpop.permute.xlu0 %613 }
 0x366   : > { %v621_v3 = vmul.f32 %v614_v61, %v596_v0 }
 0x368   : > { %639 = sbr.rel (!%p1205_p13) target bundleno = 887 (0x377), region = 167 }
 0x369   : > { %v619_v2 = vpop.permute.xlu0 %618 }
 0x36a   : > { %v622_v4 = vmul.f32 %v619_v2, %v597_v1 }
 0x36c   : > { %v852_v5 = vpack.c.bf16 %v622_v4, %v621_v3 }
 0x36e   : > { %853 = vst [vmem:[%s399_s12] sm:$0xff] %v852_v5  }
 0x375   : > { %v661_v6 = vld [vmem:[%s399_s12] sm:$0xf]  ;;  %v663_v7 = vld [vmem:[%s399_s12 + $0x4] sm:$0xf] }
 0x376   : > { %662 = vst [vmem:[%s645_s25] sm:$0xf] %v661_v6  ;;  %664 = vst [vmem:[%s645_s25 + $0x8] sm:$0xf] %v663_v7 }
 0x377 PF: > { %s13_s22 = sadd.s32 1, %s1066_s22   ;;  %s1315_s18 = sld [smem:[#allocation11_spill]] }
 0x378   : > { %p10_p4 = scmp.ge.s32.totalorder %s13_s22, 6   ;;  %s1316_s7 = sld [smem:[#allocation9_spill]] }
 0x379   : > { %s1317_s4 = sld [smem:[#allocation10_spill]]  ;;  %s1318_s12 = smov %s1030_s13 }
 0x37a   : > { %s1319_s13 = smov %s1210_s26  ;;  %s1320_s14 = smov %s1038_s15 }
 0x37b   : > { %s1321_s15 = smov %s1188_s28  ;;  %s1322_s16 = smov %s1046_s17 }
 0x37c   : > { %s1325_s19 = smov %s1062_s21  ;;  %12 = sbr.rel (!%p10_p4) target bundleno = 8 (0x8), region = 255 }
 0x37d   : > { %s1323_s17 = smov %s1315_s18  ;;  %s1324_s18 = smov %s1058_s20 }
 0x37e   : > { %s1326_s20 = smov %s1316_s7 }
 0x37f   : > { %s1327_s21 = smov %s1317_s4 }

// kernel: sam_encoder_forward.16
= control target key start
LH: loop header
LB: loop body
LE: loop exit
PB: predicated region body
PF: predicated region fallthrough
CT: control target
= control target key end

     0   :  { %v55_v36 = vlaneseq  ;;  %s632_s1 = inlined_call_operand.vmem [shape: bf16[256,256], index: 1, kind: input, shape index: {}]   ;;  %s633_s0 = inlined_call_operand.vmem [shape: bf16[32,256], index: 0, kind: input, shape index: {}]   ;;  %s634_s2 = inlined_call_operand.vmem [shape: f32[1,256], index: 2, kind: input, shape index: {}]   ;;  %s635_s3 = inlined_call_operand.vmem [shape: f32[32,256], index: 3, kind: input, shape index: {}]   ;;  %s636_s4 = inlined_call_operand.vmem [shape: f32[32,256], index: 4, kind: output, shape index: {}]  }
   0x1   :  { %v394_v0 = vld [vmem:[%s632_s1 + $0x4] ss:$8 sps:$4 sm:$0xff]   ;;  %v396_v1 = vld [vmem:[%s632_s1] ss:$8 sps:$4 sm:$0xff]   ;;  %v397_v2 = vld [vmem:[%s632_s1 + $0x14] ss:$8 sps:$4 sm:$0xff]  }
   0x2   :  { %245 = vmatprep.subr.bf16.mxu0 %v394_v0  ;;  %362 = vmatprep.subr.bf16.mxu1 %v394_v0  ;;  %v399_v3 = vld [vmem:[%s632_s1 + $0x10] ss:$8 sps:$4 sm:$0xff]   ;;  %v400_v4 = vld [vmem:[%s632_s1 + $0x24] ss:$8 sps:$4 sm:$0xff]   ;;  %v402_v5 = vld [vmem:[%s632_s1 + $0x20] ss:$8 sps:$4 sm:$0xff]  }
   0x3   :  { %246 = vmatpush1.bf16.msra.mxu0 %v396_v1  ;;  %378 = vmatpush1.bf16.msra.mxu1 %v396_v1  ;;  %v403_v6 = vld [vmem:[%s632_s1 + $0x34] ss:$8 sps:$4 sm:$0xff]   ;;  %v405_v7 = vld [vmem:[%s632_s1 + $0x30] ss:$8 sps:$4 sm:$0xff]   ;;  %v406_v8 = vld [vmem:[%s632_s1 + $0x44] ss:$8 sps:$4 sm:$0xff]  }
   0x4   :  { %247 = vmatprep.subr.bf16.mxu0 %v397_v2  ;;  %363 = vmatprep.subr.bf16.mxu1 %v397_v2  ;;  %v408_v9 = vld [vmem:[%s632_s1 + $0x40] ss:$8 sps:$4 sm:$0xff]   ;;  %v409_v10 = vld [vmem:[%s632_s1 + $0x54] ss:$8 sps:$4 sm:$0xff]   ;;  %v411_v11 = vld [vmem:[%s632_s1 + $0x50] ss:$8 sps:$4 sm:$0xff]  }
   0x5   :  { %v412_v12 = vld [vmem:[%s632_s1 + $0x64] ss:$8 sps:$4 sm:$0xff]   ;;  %v414_v14 = vld [vmem:[%s632_s1 + $0x60] ss:$8 sps:$4 sm:$0xff]   ;;  %v447_v15 = vld [vmem:[%s633_s0 + $0x14] ss:$8 sps:$4 sm:$0xff]  }
   0x6   :  { %v444_v13 = vld [vmem:[%s633_s0 + $0x4] ss:$8 sps:$4 sm:$0xff]   ;;  %v415_v16 = vld [vmem:[%s632_s1 + $0x74] ss:$8 sps:$4 sm:$0xff]   ;;  %287 = vmatprep.mubr.bf16.mxu1 %v447_v15  ;;  %v417_v17 = vld [vmem:[%s632_s1 + $0x70] ss:$8 sps:$4 sm:$0xff]  }
   0x7   :  { %248 = vmatpush1.bf16.msra.mxu0 %v399_v3  ;;  %379 = vmatpush1.bf16.msra.mxu1 %v399_v3  ;;  %v418_v18 = vld [vmem:[%s632_s1 + $0x84] ss:$8 sps:$4 sm:$0xff]   ;;  %v420_v19 = vld [vmem:[%s632_s1 + $0x80] ss:$8 sps:$4 sm:$0xff]   ;;  %v421_v20 = vld [vmem:[%s632_s1 + $0x94] ss:$8 sps:$4 sm:$0xff]  }
   0x8   :  { %249 = vmatprep.subr.bf16.mxu0 %v400_v4  ;;  %364 = vmatprep.subr.bf16.mxu1 %v400_v4  ;;  %v423_v21 = vld [vmem:[%s632_s1 + $0x90] ss:$8 sps:$4 sm:$0xff]   ;;  %v424_v22 = vld [vmem:[%s632_s1 + $0xa4] ss:$8 sps:$4 sm:$0xff]   ;;  %v426_v23 = vld [vmem:[%s632_s1 + $0xa0] ss:$8 sps:$4 sm:$0xff]  }
   0x9   :  { %277 = vmatprep.mubr.bf16.mxu0 %v444_v13  ;;  %v427_v24 = vld [vmem:[%s632_s1 + $0xb4] ss:$8 sps:$4 sm:$0xff]   ;;  %v429_v25 = vld [vmem:[%s632_s1 + $0xb0] ss:$8 sps:$4 sm:$0xff]   ;;  %v430_v26 = vld [vmem:[%s632_s1 + $0xc4] ss:$8 sps:$4 sm:$0xff]  }
   0xa   :  { %v432_v27 = vld [vmem:[%s632_s1 + $0xc0] ss:$8 sps:$4 sm:$0xff]   ;;  %v433_v28 = vld [vmem:[%s632_s1 + $0xd4] ss:$8 sps:$4 sm:$0xff]   ;;  %v435_v29 = vld [vmem:[%s632_s1 + $0xd0] ss:$8 sps:$4 sm:$0xff]  }
   0xb   :  { %250 = vmatpush1.bf16.msra.mxu0 %v402_v5  ;;  %380 = vmatpush1.bf16.msra.mxu1 %v402_v5  ;;  %v436_v30 = vld [vmem:[%s632_s1 + $0xe4] ss:$8 sps:$4 sm:$0xff]   ;;  %v438_v31 = vld [vmem:[%s632_s1 + $0xe0] ss:$8 sps:$4 sm:$0xff]   ;;  %v439_v32 = vld [vmem:[%s632_s1 + $0xf4] ss:$8 sps:$4 sm:$0xff]  }
   0xc   :  { %251 = vmatprep.subr.bf16.mxu0 %v403_v6  ;;  %365 = vmatprep.subr.bf16.mxu1 %v403_v6  ;;  %v441_v33 = vld [vmem:[%s632_s1 + $0xf0] ss:$8 sps:$4 sm:$0xff]   ;;  %v442_v34 = vld [vmem:[%s633_s0] ss:$8 sps:$4 sm:$0xff]   ;;  %v56_v37 = vshrl.u32 %v55_v36, 7 }
   0xd   :  { %v445_v35 = vld [vmem:[%s633_s0 + $0x10] ss:$8 sps:$4 sm:$0xff]   ;;  %v53_v39 = vld [vmem:[%s634_s2] sm:$0x3]  ;;  %v299_v50 = vld [vmem:[%s635_s3 + $0x8] sm:$0xff] }
   0xe   :  { %v57_v38 = vsub.s32 0, %v56_v37  ;;  %v61_v40 = vsub.s32 1, %v56_v37  ;;  %v298_v44 = vld [vmem:[%s635_s3] sm:$0xff]  ;;  %v303_v52 = vld [vmem:[%s635_s3 + $0x28] sm:$0xff]  ;;  %v300_v56 = vld [vmem:[%s635_s3 + $0x10] sm:$0xff] }
   0xf   :  { %252 = vmatpush1.bf16.msra.mxu0 %v405_v7  ;;  %381 = vmatpush1.bf16.msra.mxu1 %v405_v7  ;;  %v302_v46 = vld [vmem:[%s635_s3 + $0x20] sm:$0xff]  ;;  %v304_v58 = vld [vmem:[%s635_s3 + $0x30] sm:$0xff]  ;;  %v301_v0 = vld [vmem:[%s635_s3 + $0x18] sm:$0xff] }
  0x10   :  { %253 = vmatprep.subr.bf16.mxu0 %v406_v8  ;;  %366 = vmatprep.subr.bf16.mxu1 %v406_v8  ;;  %v58_v41 = vrot.slane %v53_v39, %v57_v38  ;;  %v62_v42 = vrot.slane %v53_v39, %v61_v40  ;;  %v305_v2 = vld [vmem:[%s635_s3 + $0x38] sm:$0xff] }
  0x13   :  { %254 = vmatpush1.bf16.msra.mxu0 %v408_v9  ;;  %382 = vmatpush1.bf16.msra.mxu1 %v408_v9 }
  0x14   :  { %255 = vmatprep.subr.bf16.mxu0 %v409_v10  ;;  %367 = vmatprep.subr.bf16.mxu1 %v409_v10 }
  0x17   :  { %256 = vmatpush1.bf16.msra.mxu0 %v411_v11  ;;  %383 = vmatpush1.bf16.msra.mxu1 %v411_v11 }
  0x18   :  { %257 = vmatprep.subr.bf16.mxu0 %v412_v12  ;;  %368 = vmatprep.subr.bf16.mxu1 %v412_v12 }
  0x1b   :  { %258 = vmatpush1.bf16.msra.mxu0 %v414_v14  ;;  %384 = vmatpush1.bf16.msra.mxu1 %v414_v14 }
  0x1c   :  { %259 = vmatprep.subr.bf16.mxu0 %v415_v16  ;;  %369 = vmatprep.subr.bf16.mxu1 %v415_v16 }
  0x1f   :  { %260 = vmatpush1.bf16.msra.mxu0 %v417_v17  ;;  %385 = vmatpush1.bf16.msra.mxu1 %v417_v17 }
  0x20   :  { %261 = vmatprep.subr.bf16.mxu0 %v418_v18  ;;  %370 = vmatprep.subr.bf16.mxu1 %v418_v18 }
  0x23   :  { %262 = vmatpush1.bf16.msra.mxu0 %v420_v19  ;;  %386 = vmatpush1.bf16.msra.mxu1 %v420_v19 }
  0x24   :  { %263 = vmatprep.subr.bf16.mxu0 %v421_v20  ;;  %371 = vmatprep.subr.bf16.mxu1 %v421_v20 }
  0x27   :  { %264 = vmatpush1.bf16.msra.mxu0 %v423_v21  ;;  %387 = vmatpush1.bf16.msra.mxu1 %v423_v21 }
  0x28   :  { %265 = vmatprep.subr.bf16.mxu0 %v424_v22  ;;  %372 = vmatprep.subr.bf16.mxu1 %v424_v22 }
  0x2b   :  { %266 = vmatpush1.bf16.msra.mxu0 %v426_v23  ;;  %388 = vmatpush1.bf16.msra.mxu1 %v426_v23 }
  0x2c   :  { %267 = vmatprep.subr.bf16.mxu0 %v427_v24  ;;  %373 = vmatprep.subr.bf16.mxu1 %v427_v24 }
  0x2f   :  { %268 = vmatpush1.bf16.msra.mxu0 %v429_v25  ;;  %389 = vmatpush1.bf16.msra.mxu1 %v429_v25 }
  0x30   :  { %269 = vmatprep.subr.bf16.mxu0 %v430_v26  ;;  %374 = vmatprep.subr.bf16.mxu1 %v430_v26 }
  0x33   :  { %270 = vmatpush1.bf16.msra.mxu0 %v432_v27  ;;  %390 = vmatpush1.bf16.msra.mxu1 %v432_v27 }
  0x34   :  { %271 = vmatprep.subr.bf16.mxu0 %v433_v28  ;;  %375 = vmatprep.subr.bf16.mxu1 %v433_v28 }
  0x37   :  { %272 = vmatpush1.bf16.msra.mxu0 %v435_v29  ;;  %391 = vmatpush1.bf16.msra.mxu1 %v435_v29 }
  0x38   :  { %273 = vmatprep.subr.bf16.mxu0 %v436_v30  ;;  %376 = vmatprep.subr.bf16.mxu1 %v436_v30 }
  0x3b   :  { %274 = vmatpush1.bf16.msra.mxu0 %v438_v31  ;;  %392 = vmatpush1.bf16.msra.mxu1 %v438_v31 }
  0x3c   :  { %275 = vmatprep.subr.bf16.mxu0 %v439_v32  ;;  %377 = vmatprep.subr.bf16.mxu1 %v439_v32 }
  0x3f   :  { %276 = vmatpush1.bf16.msra.mxu0 %v441_v33  ;;  %393 = vmatpush1.bf16.msra.mxu1 %v441_v33 }
  0x42   :  { %278 = vmatmul.mubr.bf16.vlgmr.msra.gmra.mrb[0].mxu0 %v442_v34  ;;  %288 = vmatmul.mubr.bf16.vlgmr.msra.gmra.mrb[0].mxu1 %v445_v35 }
 0x115   :  { %v279_v43 = vpop.f32.mrb[0].mxu0  ;;  %v289_v45 = vpop.f32.mrb[0].mxu1 }
 0x116   :  { %v280_v47 = vadd.f32 %v279_v43, %v58_v41  ;;  %v290_v48 = vadd.f32 %v289_v45, %v58_v41  ;;  %v281_v49 = vpop.f32.mrb[1].mxu0  ;;  %v291_v51 = vpop.f32.mrb[1].mxu1 }
 0x117   :  { %v282_v53 = vadd.f32 %v281_v49, %v62_v42  ;;  %v292_v54 = vadd.f32 %v291_v51, %v62_v42  ;;  %v283_v55 = vpop.f32.mrb[2].mxu0  ;;  %v293_v57 = vpop.f32.mrb[2].mxu1 }
 0x118   :  { %v306_v59 = vadd.f32 %v298_v44, %v280_v47  ;;  %v310_v60 = vadd.f32 %v302_v46, %v290_v48  ;;  %v284_v61 = vadd.f32 %v283_v55, %v58_v41  ;;  %v294_v62 = vadd.f32 %v293_v57, %v58_v41  ;;  %v285_v63 = vpop.f32.mrb[3].mxu0  ;;  %v295_v1 = vpop.f32.mrb[3].mxu1 }
 0x119   :  { %v307_v3 = vadd.f32 %v299_v50, %v282_v53  ;;  %v311_v4 = vadd.f32 %v303_v52, %v292_v54  ;;  %v286_v5 = vadd.f32 %v285_v63, %v62_v42  ;;  %v296_v6 = vadd.f32 %v295_v1, %v62_v42 }
 0x11a   :  { %314 = vst [vmem:[%s636_s4] sm:$0xff] %v306_v59  ;;  %318 = vst [vmem:[%s636_s4 + $0x20] sm:$0xff] %v310_v60  ;;  %v308_v7 = vadd.f32 %v300_v56, %v284_v61  ;;  %v312_v8 = vadd.f32 %v304_v58, %v294_v62 }
 0x11b   :  { %315 = vst [vmem:[%s636_s4 + $0x8] sm:$0xff] %v307_v3  ;;  %319 = vst [vmem:[%s636_s4 + $0x28] sm:$0xff] %v311_v4  ;;  %v309_v9 = vadd.f32 %v301_v0, %v286_v5  ;;  %v313_v10 = vadd.f32 %v305_v2, %v296_v6 }
 0x11c   :  { %316 = vst [vmem:[%s636_s4 + $0x10] sm:$0xff] %v308_v7  ;;  %320 = vst [vmem:[%s636_s4 + $0x30] sm:$0xff] %v312_v8 }
 0x11d   :  { %317 = vst [vmem:[%s636_s4 + $0x18] sm:$0xff] %v309_v9  ;;  %321 = vst [vmem:[%s636_s4 + $0x38] sm:$0xff] %v313_v10 }

// kernel: sam_encoder_forward.14
= control target key start
LH: loop header
LB: loop body
LE: loop exit
PB: predicated region body
PF: predicated region fallthrough
CT: control target
= control target key end

     0   :  { %s1260_s18 = smov 0   ;;  %s1262_s19 = smov 0   ;;  %s1487_s0 = inlined_call_operand.vmem [shape: f32[32,256], index: 0, kind: input, shape index: {}]   ;;  %s1488_s1 = inlined_call_operand.vmem [shape: f32[1,256], index: 1, kind: input, shape index: {}]   ;;  %s1489_s2 = inlined_call_operand.vmem [shape: f32[1,256], index: 2, kind: input, shape index: {}]   ;;  %s1490_s3 = inlined_call_operand.vmem [shape: bf16[256,768], index: 3, kind: input, shape index: {}]   ;;  %s1491_s4 = inlined_call_operand.vmem [shape: f32[1,768], index: 4, kind: input, shape index: {}]   ;;  %s1492_s5 = inlined_call_operand.vmem [shape: bf16[32,768], index: 5, kind: output, shape index: {}]  }
   0x1   :  { %s1264_s20 = smov 0   ;;  %s1266_s21 = smov 0  }
   0x2   :  { %s1268_s22 = smov 0  }
   0x3 LB: > { %s24_s23 = sadd.s32 1, %s1224_s21  ;;  %s1002_s24 = sadd.s32 4294967295, %s1228_s22   ;;  %s1228_s22 = sphi %s1268_s22, %s15_s22   ;;  %s1224_s21 = sphi %s1266_s21, %s1497_s21   ;;  %s1220_s20 = sphi %s1264_s20, %s1496_s20   ;;  %s1216_s19 = sphi %s1262_s19, %s1495_s19   ;;  %s1212_s18 = sphi %s1260_s18, %s1494_s18  }
   0x4   : > { %p25_p0 = scmp.ge.s32.totalorder %s24_s23, 3  ;;  %p109_p1 = scmp.ne.s32.totalorder %s1216_s19, %s1212_s18 }
   0x5   : > { %p110_p2 = scmp.eq.s32.totalorder %s1228_s22, 0  ;;  %p167_p4 = scmp.eq.s32.totalorder %s1002_s24, 2 }
   0x6   : > { %s1499_s23 = smov (%p25_p0, %s24_s23), 0  ;;  %s102_s26 = sadd.s32 1, %s1216_s19 }
   0x7   : > { %p111_p3 = por %p110_p2, %p109_p1  ;;  %s99_s25 = ssub.s32 %s1224_s21, %s1499_s23 }
   0x8   : > { %p100_p5 = scmp.eq.s32.totalorder %s99_s25, 0  ;;  %p1295_p6 = por %p167_p4, %p109_p1 }
   0x9   : > { %p1006_p7 = scmp.ge.s32.totalorder %s1228_s22, 3 }
   0xa   : > { %s1300_s28 = scalar_select %p100_p5, %s1216_s19, %s102_s26  }
   0xb   : > { %205 = sbr.rel (%p1006_p7) target bundleno = 38 (0x26), region = 28 }
  0x12   : > { %208 = sbr.rel (!%p111_p3) target bundleno = 38 (0x26), region = 32  ;;  %s210_s29 = sand.u32 (%p111_p3), 1, %s1216_s19  }
  0x13   : > { %s1056_s30 = sshll.u32 (%p111_p3), %s1224_s21, 3  ;;  %s1007_s6 = sshll.u32 (%p111_p3), %s210_s29, 8 }
  0x14   : > { %s1308_s9 = scalar_lea.vmem (%p111_p3), %s1490_s3, %s1056_s30  ;;  %s1313_s10 = scalar_lea.vmem (%p111_p3), [#allocation3], %s1007_s6 }
  0x15   : > { %v305_v0 = vld [vmem:[%s1308_s9] sm:$0xff] (%p111_p3)  ;;  %v307_v1 = vld [vmem:[%s1308_s9 + $0x18] sm:$0xff] (%p111_p3)  ;;  %v309_v2 = vld [vmem:[%s1308_s9 + $0x30] sm:$0xff] (%p111_p3) }
  0x16   : > { %306 = vst [vmem:[%s1313_s10] sm:$0xff] (%p111_p3), %v305_v0  ;;  %308 = vst [vmem:[%s1313_s10 + $0x8] sm:$0xff] (%p111_p3), %v307_v1  ;;  %v311_v3 = vld [vmem:[%s1308_s9 + $0x48] sm:$0xff] (%p111_p3)  ;;  %v313_v4 = vld [vmem:[%s1308_s9 + $0x60] sm:$0xff] (%p111_p3) }
  0x17   : > { %310 = vst [vmem:[%s1313_s10 + $0x10] sm:$0xff] (%p111_p3), %v309_v2  ;;  %v315_v5 = vld [vmem:[%s1308_s9 + $0x78] sm:$0xff] (%p111_p3)  ;;  %312 = vst [vmem:[%s1313_s10 + $0x18] sm:$0xff] (%p111_p3), %v311_v3  ;;  %v317_v6 = vld [vmem:[%s1308_s9 + $0x90] sm:$0xff] (%p111_p3) }
  0x18   : > { %314 = vst [vmem:[%s1313_s10 + $0x20] sm:$0xff] (%p111_p3), %v313_v4  ;;  %316 = vst [vmem:[%s1313_s10 + $0x28] sm:$0xff] (%p111_p3), %v315_v5  ;;  %v319_v7 = vld [vmem:[%s1308_s9 + $0xa8] sm:$0xff] (%p111_p3)  ;;  %v321_v8 = vld [vmem:[%s1308_s9 + $0xc0] sm:$0xff] (%p111_p3) }
  0x19   : > { %318 = vst [vmem:[%s1313_s10 + $0x30] sm:$0xff] %v317_v6  ;;  %320 = vst [vmem:[%s1313_s10 + $0x38] sm:$0xff] %v319_v7  ;;  %v323_v9 = vld [vmem:[%s1308_s9 + $0xd8] sm:$0xff]  ;;  %v325_v10 = vld [vmem:[%s1308_s9 + $0xf0] sm:$0xff] }
  0x1a   : > { %322 = vst [vmem:[%s1313_s10 + $0x40] sm:$0xff] %v321_v8  ;;  %v327_v11 = vld [vmem:[%s1308_s9 + $0x108] sm:$0xff]  ;;  %324 = vst [vmem:[%s1313_s10 + $0x48] sm:$0xff] %v323_v9  ;;  %v329_v12 = vld [vmem:[%s1308_s9 + $0x120] sm:$0xff] }
  0x1b   : > { %326 = vst [vmem:[%s1313_s10 + $0x50] sm:$0xff] %v325_v10  ;;  %328 = vst [vmem:[%s1313_s10 + $0x58] sm:$0xff] %v327_v11  ;;  %v331_v13 = vld [vmem:[%s1308_s9 + $0x138] sm:$0xff]  ;;  %v333_v14 = vld [vmem:[%s1308_s9 + $0x150] sm:$0xff] }
  0x1c   : > { %330 = vst [vmem:[%s1313_s10 + $0x60] sm:$0xff] %v329_v12  ;;  %332 = vst [vmem:[%s1313_s10 + $0x68] sm:$0xff] %v331_v13  ;;  %v335_v15 = vld [vmem:[%s1308_s9 + $0x168] sm:$0xff]  ;;  %v337_v16 = vld [vmem:[%s1308_s9 + $0x180] sm:$0xff] }
  0x1d   : > { %334 = vst [vmem:[%s1313_s10 + $0x70] sm:$0xff] %v333_v14  ;;  %v339_v17 = vld [vmem:[%s1308_s9 + $0x198] sm:$0xff]  ;;  %336 = vst [vmem:[%s1313_s10 + $0x78] sm:$0xff] %v335_v15  ;;  %v341_v18 = vld [vmem:[%s1308_s9 + $0x1b0] sm:$0xff] }
  0x1e   : > { %338 = vst [vmem:[%s1313_s10 + $0x80] sm:$0xff] %v337_v16  ;;  %340 = vst [vmem:[%s1313_s10 + $0x88] sm:$0xff] %v339_v17  ;;  %v343_v19 = vld [vmem:[%s1308_s9 + $0x1c8] sm:$0xff]  ;;  %v345_v20 = vld [vmem:[%s1308_s9 + $0x1e0] sm:$0xff] }
  0x1f   : > { %342 = vst [vmem:[%s1313_s10 + $0x90] sm:$0xff] %v341_v18  ;;  %344 = vst [vmem:[%s1313_s10 + $0x98] sm:$0xff] %v343_v19  ;;  %v347_v21 = vld [vmem:[%s1308_s9 + $0x1f8] sm:$0xff]  ;;  %v349_v22 = vld [vmem:[%s1308_s9 + $0x210] sm:$0xff] }
  0x20   : > { %346 = vst [vmem:[%s1313_s10 + $0xa0] sm:$0xff] %v345_v20  ;;  %v351_v23 = vld [vmem:[%s1308_s9 + $0x228] sm:$0xff]  ;;  %348 = vst [vmem:[%s1313_s10 + $0xa8] sm:$0xff] %v347_v21  ;;  %v353_v24 = vld [vmem:[%s1308_s9 + $0x240] sm:$0xff] }
  0x21   : > { %350 = vst [vmem:[%s1313_s10 + $0xb0] sm:$0xff] %v349_v22  ;;  %352 = vst [vmem:[%s1313_s10 + $0xb8] sm:$0xff] %v351_v23  ;;  %v355_v25 = vld [vmem:[%s1308_s9 + $0x258] sm:$0xff]  ;;  %v357_v26 = vld [vmem:[%s1308_s9 + $0x270] sm:$0xff] }
  0x22   : > { %354 = vst [vmem:[%s1313_s10 + $0xc0] sm:$0xff] %v353_v24  ;;  %356 = vst [vmem:[%s1313_s10 + $0xc8] sm:$0xff] %v355_v25  ;;  %v359_v27 = vld [vmem:[%s1308_s9 + $0x288] sm:$0xff]  ;;  %v361_v28 = vld [vmem:[%s1308_s9 + $0x2a0] sm:$0xff] }
  0x23   : > { %358 = vst [vmem:[%s1313_s10 + $0xd0] sm:$0xff] %v357_v26  ;;  %v363_v29 = vld [vmem:[%s1308_s9 + $0x2b8] sm:$0xff]  ;;  %360 = vst [vmem:[%s1313_s10 + $0xd8] sm:$0xff] %v359_v27  ;;  %v365_v30 = vld [vmem:[%s1308_s9 + $0x2d0] sm:$0xff] }
  0x24   : > { %362 = vst [vmem:[%s1313_s10 + $0xe0] sm:$0xff] %v361_v28  ;;  %364 = vst [vmem:[%s1313_s10 + $0xe8] sm:$0xff] %v363_v29  ;;  %v367_v31 = vld [vmem:[%s1308_s9 + $0x2e8] sm:$0xff] }
  0x25   : > { %366 = vst [vmem:[%s1313_s10 + $0xf0] sm:$0xff] %v365_v30  ;;  %368 = vst [vmem:[%s1313_s10 + $0xf8] sm:$0xff] %v367_v31 }
  0x26 PF: > { %p1010_p8 = scmp.ge.s32.totalorder %s1228_s22, 1  ;;  %p381_p9 = scmp.lt.s32.totalorder %s1228_s22, 4 }
  0x28   : > { %p382_p10 = pnand %p1010_p8, %p381_p9 }
  0x29   : > { %s388_s11 = sand.u32 (!%p382_p10), 1, %s1212_s18   ;;  %s1013_s12 = sshll.u32 (!%p382_p10), %s1220_s20, 1 }
  0x2a   : > { %385 = sbr.rel (%p382_p10) target bundleno = 670 (0x29e), region = 74  ;;  %s1011_s13 = sshll.u32 (!%p382_p10), %s388_s11, 8 }
  0x2b   : > { %s1012_s14 = sshll.u32 (!%p382_p10), %s388_s11, 5  ;;  %p433_p11 = scmp.lt.s32.totalorder (!%p382_p10), %s1013_s12, 5 }
  0x2c   : > { %s1386_s24 = scalar_lea.vmem (!%p382_p10), [#allocation3], %s1011_s13  ;;  %s1388_s25 = scalar_lea.vmem (!%p382_p10), [#allocation4], %s1012_s14 }
  0x2d   : > { %p1014_p12 = scmp.ne.s32.totalorder (!%p382_p10), %s1220_s20, 0 }
  0x31   : > { %s1501_s12 = smov (!%p433_p11, %s1013_s12), 5  ;;  %442 = sbr.rel (%p1014_p12) target bundleno = 377 (0x179), region = 82 }
  0x32   : > { %s435_s17 = scalar_lea.vmem %s1491_s4, %s1501_s12  ;;  %v443_v32 = vld [vmem:[%s1487_s0] sm:$0xff] (!%p1014_p12)  ;;  %v444_v33 = vld [vmem:[%s1487_s0 + $0x8] sm:$0xff] (!%p1014_p12)  ;;  %v445_v37 = vld [vmem:[%s1487_s0 + $0x10] sm:$0xff] (!%p1014_p12)  ;;  %v518_v10 = vlaneseq (!%p1014_p12) }
  0x33   : > { %v447_v34 = vld [vmem:[%s1487_s0 + $0x20] sm:$0xff] (!%p1014_p12)  ;;  %v451_v35 = vadd.f32 (!%p1014_p12), %v444_v33, %v443_v32  ;;  %v448_v36 = vld [vmem:[%s1487_s0 + $0x28] sm:$0xff] (!%p1014_p12)  ;;  %v446_v38 = vld [vmem:[%s1487_s0 + $0x18] sm:$0xff] (!%p1014_p12) }
  0x34   : > { %v457_v39 = vadd.f32 (!%p1014_p12), %v448_v36, %v447_v34  ;;  %v449_v40 = vld [vmem:[%s1487_s0 + $0x30] sm:$0xff] (!%p1014_p12)  ;;  %v450_v41 = vld [vmem:[%s1487_s0 + $0x38] sm:$0xff] (!%p1014_p12)  ;;  %v454_v42 = vadd.f32 (!%p1014_p12), %v446_v38, %v445_v37  ;;  %v519_v16 = vshrl.u32 (!%p1014_p12), %v518_v10, 7  ;;  %v516_v24 = vld [vmem:[%s1488_s1] sm:$0x3] (!%p1014_p12) }
  0x35   : > { %452 = vadd.xlane.f32.xlu0 (!%p1014_p12), %v451_v35  ;;  %v460_v43 = vadd.f32 (!%p1014_p12), %v450_v41, %v449_v40  ;;  %v536_v28 = vld [vmem:[%s1489_s2] sm:$0x3] (!%p1014_p12) }
  0x36   : > { %458 = vadd.xlane.f32.xlu1 (!%p1014_p12), %v457_v39  ;;  %v520_v21 = vsub.s32 (!%p1014_p12), 0, %v519_v16  ;;  %v524_v22 = vsub.s32 (!%p1014_p12), 1, %v519_v16 }
  0x38   : > { %v521_v26 = vrot.slane %v516_v24, %v520_v21  ;;  %v525_v27 = vrot.slane %v516_v24, %v524_v22 }
  0x39   : > { %455 = vadd.xlane.f32.xlu0 %v454_v42 }
  0x3a   : > { %461 = vadd.xlane.f32.xlu1 %v460_v43 }
  0xc2   : > { %v453_v44 = vpop.xlane.xlu0 %452 }
  0xc3   : > { %v464_v45 = vmul.f32 0.00390625, %v453_v44  ;;  %v459_v46 = vpop.xlane.xlu1 %458 }
  0xc4   : > { %v466_v47 = vmul.f32 0.00390625, %v459_v46 }
  0xc5   : > { %v468_v48 = vsub.f32 %v443_v32, %v464_v45  ;;  %v469_v49 = vsub.f32 %v444_v33, %v464_v45  ;;  %v541_v32 = vrot.slane %v536_v28, %v520_v21  ;;  %v545_v33 = vrot.slane %v536_v28, %v524_v22 }
  0xc6   : > { %v472_v50 = vsub.f32 %v447_v34, %v466_v47  ;;  %v473_v51 = vsub.f32 %v448_v36, %v466_v47  ;;  %v456_v52 = vpop.xlane.xlu0 %455 }
  0xc7   : > { %v465_v53 = vmul.f32 0.00390625, %v456_v52  ;;  %v462_v54 = vpop.xlane.xlu1 %461  ;;  %v476_v55 = vmul.f32 %v468_v48, %v468_v48  ;;  %v477_v56 = vmul.f32 %v469_v49, %v469_v49 }
  0xc8   : > { %v467_v57 = vmul.f32 0.00390625, %v462_v54  ;;  %v480_v58 = vmul.f32 %v472_v50, %v472_v50  ;;  %v481_v59 = vmul.f32 %v473_v51, %v473_v51 }
  0xc9   : > { %v470_v60 = vsub.f32 %v445_v37, %v465_v53  ;;  %v471_v61 = vsub.f32 %v446_v38, %v465_v53  ;;  %v484_v62 = vadd.f32 %v477_v56, %v476_v55 }
  0xca   : > { %v474_v63 = vsub.f32 %v449_v40, %v467_v57  ;;  %v475_v0 = vsub.f32 %v450_v41, %v467_v57  ;;  %v490_v1 = vadd.f32 %v481_v59, %v480_v58 }
  0xcb   : > { %485 = vadd.xlane.f32.xlu0 %v484_v62  ;;  %v478_v2 = vmul.f32 %v470_v60, %v470_v60  ;;  %v479_v3 = vmul.f32 %v471_v61, %v471_v61 }
  0xcc   : > { %v482_v4 = vmul.f32 %v474_v63, %v474_v63  ;;  %v483_v5 = vmul.f32 %v475_v0, %v475_v0 }
  0xcd   : > { %v487_v6 = vadd.f32 %v479_v3, %v478_v2 }
  0xce   : > { %v493_v7 = vadd.f32 %v483_v5, %v482_v4 }
  0xcf   : > { %491 = vadd.xlane.f32.xlu0 %v490_v1  ;;  %488 = vadd.xlane.f32.xlu1 %v487_v6 }
  0xd3   : > { %494 = vadd.xlane.f32.xlu1 %v493_v7 }
 0x158   : > { %v486_v8 = vpop.xlane.xlu0 %485 }
 0x159   : > { %v496_v9 = vmul.f32 0.00390625, %v486_v8 }
 0x15b   : > { %v500_v11 = vadd.f32 1e-06, %v496_v9 }
 0x15c   : > { %v489_v12 = vpop.xlane.xlu1 %488  ;;  %v492_v13 = vpop.xlane.xlu0 %491 }
 0x15d   : > { %1134 = vrsqrt.f32 %v500_v11  ;;  %v497_v14 = vmul.f32 0.00390625, %v489_v12  ;;  %v498_v15 = vmul.f32 0.00390625, %v492_v13 }
 0x15f   : > { %v501_v17 = vadd.f32 1e-06, %v497_v14  ;;  %v502_v18 = vadd.f32 1e-06, %v498_v15 }
 0x160   : > { %v495_v19 = vpop.xlane.xlu1 %494 }
 0x161   : > { %1136 = vrsqrt.f32 %v501_v17  ;;  %v499_v20 = vmul.f32 0.00390625, %v495_v19 }
 0x162   : > { %1138 = vrsqrt.f32 %v502_v18 }
 0x163   : > { %v503_v23 = vadd.f32 1e-06, %v499_v20 }
 0x165   : > { %1140 = vrsqrt.f32 %v503_v23 }
 0x167   : > { %v1135_v25 = vpop.eup %1134 }
 0x168   : > { %v508_v29 = vmul.f32 %v1135_v25, %v468_v48  ;;  %v509_v30 = vmul.f32 %v1135_v25, %v469_v49 }
 0x16a   : > { %v528_v34 = vmul.f32 %v521_v26, %v508_v29  ;;  %v529_v35 = vmul.f32 %v525_v27, %v509_v30 }
 0x16b   : > { %v1137_v31 = vpop.eup %1136 }
 0x16c   : > { %v1139_v36 = vpop.eup %1138  ;;  %v510_v37 = vmul.f32 %v1137_v31, %v470_v60  ;;  %v511_v38 = vmul.f32 %v1137_v31, %v471_v61  ;;  %v548_v44 = vadd.f32 %v541_v32, %v528_v34  ;;  %v549_v45 = vadd.f32 %v545_v33, %v529_v35 }
 0x16d   : > { %v512_v39 = vmul.f32 %v1139_v36, %v472_v50  ;;  %v513_v40 = vmul.f32 %v1139_v36, %v473_v51 }
 0x16e   : > { %v530_v41 = vmul.f32 %v521_v26, %v510_v37  ;;  %v531_v42 = vmul.f32 %v525_v27, %v511_v38 }
 0x16f   : > { %v1141_v43 = vpop.eup %1140  ;;  %v532_v46 = vmul.f32 %v521_v26, %v512_v39  ;;  %v533_v47 = vmul.f32 %v525_v27, %v513_v40 }
 0x170   : > { %v550_v52 = vadd.f32 %v541_v32, %v530_v41  ;;  %v551_v48 = vadd.f32 %v545_v33, %v531_v42  ;;  %v514_v49 = vmul.f32 %v1141_v43, %v474_v63  ;;  %v515_v53 = vmul.f32 %v1141_v43, %v475_v0 }
 0x171   : > { %v552_v58 = vadd.f32 %v541_v32, %v532_v46  ;;  %v553_v50 = vadd.f32 %v545_v33, %v533_v47 }
 0x172   : > { %v556_v54 = vpack.c.bf16 %v550_v52, %v548_v44  ;;  %v557_v55 = vpack.c.bf16 %v551_v48, %v549_v45  ;;  %v534_v56 = vmul.f32 %v521_v26, %v514_v49  ;;  %v535_v57 = vmul.f32 %v525_v27, %v515_v53 }
 0x174   : > { %560 = vst [vmem:[#allocation2] sm:$0xff] %v556_v54  ;;  %561 = vst [vmem:[#allocation2 + $0x8] sm:$0xff] %v557_v55  ;;  %v554_v51 = vadd.f32 %v541_v32, %v534_v56  ;;  %v555_v59 = vadd.f32 %v545_v33, %v535_v57 }
 0x176   : > { %v558_v60 = vpack.c.bf16 %v554_v51, %v552_v58  ;;  %v559_v61 = vpack.c.bf16 %v555_v59, %v553_v50 }
 0x178   : > { %562 = vst [vmem:[#allocation2 + $0x10] sm:$0xff] %v558_v60  ;;  %563 = vst [vmem:[#allocation2 + $0x18] sm:$0xff] %v559_v61 }
 0x179 PF: > { %v1142_v62 = vld [vmem:[%s1386_s24 + $0x4] ss:$8 sps:$4 sm:$0xff]   ;;  %v1144_v63 = vld [vmem:[%s1386_s24] ss:$8 sps:$4 sm:$0xff]   ;;  %v1145_v0 = vld [vmem:[%s1386_s24 + $0x14] ss:$8 sps:$4 sm:$0xff]   ;;  %v602_v34 = vlaneseq }
 0x17a   : > { %772 = vmatprep.subr.bf16.mxu0 %v1142_v62  ;;  %1062 = vmatprep.subr.bf16.mxu1 %v1142_v62  ;;  %v1147_v1 = vld [vmem:[%s1386_s24 + $0x10] ss:$8 sps:$4 sm:$0xff]   ;;  %v1148_v2 = vld [vmem:[%s1386_s24 + $0x24] ss:$8 sps:$4 sm:$0xff]   ;;  %v1150_v3 = vld [vmem:[%s1386_s24 + $0x20] ss:$8 sps:$4 sm:$0xff]  }
 0x17b   : > { %773 = vmatpush1.bf16.msra.mxu0 %v1144_v63  ;;  %1078 = vmatpush1.bf16.msra.mxu1 %v1144_v63  ;;  %v1151_v4 = vld [vmem:[%s1386_s24 + $0x34] ss:$8 sps:$4 sm:$0xff]   ;;  %v1153_v5 = vld [vmem:[%s1386_s24 + $0x30] ss:$8 sps:$4 sm:$0xff]   ;;  %v1154_v6 = vld [vmem:[%s1386_s24 + $0x44] ss:$8 sps:$4 sm:$0xff]  }
 0x17c   : > { %774 = vmatprep.subr.bf16.mxu0 %v1145_v0  ;;  %1063 = vmatprep.subr.bf16.mxu1 %v1145_v0  ;;  %v1156_v7 = vld [vmem:[%s1386_s24 + $0x40] ss:$8 sps:$4 sm:$0xff]   ;;  %v1157_v8 = vld [vmem:[%s1386_s24 + $0x54] ss:$8 sps:$4 sm:$0xff]   ;;  %v1159_v9 = vld [vmem:[%s1386_s24 + $0x50] ss:$8 sps:$4 sm:$0xff]  }
 0x17d   : > { %v1160_v10 = vld [vmem:[%s1386_s24 + $0x64] ss:$8 sps:$4 sm:$0xff]   ;;  %v1162_v13 = vld [vmem:[%s1386_s24 + $0x60] ss:$8 sps:$4 sm:$0xff]   ;;  %v1163_v14 = vld [vmem:[%s1386_s24 + $0x74] ss:$8 sps:$4 sm:$0xff]  }
 0x17e   : > { %v565_v11 = vld [vmem:[#allocation2 + $0x8] sm:$0xff]  ;;  %v1165_v15 = vld [vmem:[%s1386_s24 + $0x70] ss:$8 sps:$4 sm:$0xff]   ;;  %v1169_v18 = vld [vmem:[%s1386_s24 + $0x94] ss:$8 sps:$4 sm:$0xff]   ;;  %v603_v35 = vshrl.u32 %v602_v34, 7 }
 0x17f   : > { %775 = vmatpush1.bf16.msra.mxu0 %v1147_v1  ;;  %1079 = vmatpush1.bf16.msra.mxu1 %v1147_v1  ;;  %v567_v12 = vld [vmem:[#allocation2 + $0x18] sm:$0xff]  ;;  %v1166_v16 = vld [vmem:[%s1386_s24 + $0x84] ss:$8 sps:$4 sm:$0xff]   ;;  %v1168_v17 = vld [vmem:[%s1386_s24 + $0x80] ss:$8 sps:$4 sm:$0xff]   ;;  %s1061_s12 = sshll.u32 (%p1295_p6), %s1220_s20, 3 }
 0x180   : > { %776 = vmatprep.subr.bf16.mxu0 %v1148_v2  ;;  %1064 = vmatprep.subr.bf16.mxu1 %v1148_v2  ;;  %v1171_v19 = vld [vmem:[%s1386_s24 + $0x90] ss:$8 sps:$4 sm:$0xff]   ;;  %v1172_v20 = vld [vmem:[%s1386_s24 + $0xa4] ss:$8 sps:$4 sm:$0xff]   ;;  %v1174_v21 = vld [vmem:[%s1386_s24 + $0xa0] ss:$8 sps:$4 sm:$0xff]   ;;  %s865_s10 = scalar_lea.vmem (%p1295_p6), %s1492_s5, %s1061_s12 }
 0x181   : > { %804 = vmatprep.mubr.bf16.mxu0 %v565_v11  ;;  %814 = vmatprep.mubr.bf16.mxu1 %v567_v12  ;;  %v1175_v22 = vld [vmem:[%s1386_s24 + $0xb4] ss:$8 sps:$4 sm:$0xff]   ;;  %v1177_v23 = vld [vmem:[%s1386_s24 + $0xb0] ss:$8 sps:$4 sm:$0xff]   ;;  %v1178_v24 = vld [vmem:[%s1386_s24 + $0xc4] ss:$8 sps:$4 sm:$0xff]  }
 0x182   : > { %v1180_v25 = vld [vmem:[%s1386_s24 + $0xc0] ss:$8 sps:$4 sm:$0xff]   ;;  %v1181_v26 = vld [vmem:[%s1386_s24 + $0xd4] ss:$8 sps:$4 sm:$0xff]   ;;  %v1183_v27 = vld [vmem:[%s1386_s24 + $0xd0] ss:$8 sps:$4 sm:$0xff]  }
 0x183   : > { %777 = vmatpush1.bf16.msra.mxu0 %v1150_v3  ;;  %1080 = vmatpush1.bf16.msra.mxu1 %v1150_v3  ;;  %v1184_v28 = vld [vmem:[%s1386_s24 + $0xe4] ss:$8 sps:$4 sm:$0xff]   ;;  %v1186_v29 = vld [vmem:[%s1386_s24 + $0xe0] ss:$8 sps:$4 sm:$0xff]   ;;  %v1187_v30 = vld [vmem:[%s1386_s24 + $0xf4] ss:$8 sps:$4 sm:$0xff]  }
 0x184   : > { %778 = vmatprep.subr.bf16.mxu0 %v1151_v4  ;;  %1065 = vmatprep.subr.bf16.mxu1 %v1151_v4  ;;  %v1189_v31 = vld [vmem:[%s1386_s24 + $0xf0] ss:$8 sps:$4 sm:$0xff]   ;;  %v564_v32 = vld [vmem:[#allocation2] sm:$0xff]  ;;  %v604_v36 = vsub.s32 0, %v603_v35  ;;  %v608_v38 = vsub.s32 1, %v603_v35 }
 0x185   : > { %v566_v33 = vld [vmem:[#allocation2 + $0x10] sm:$0xff]  ;;  %v600_v37 = vld [vmem:[%s435_s17] sm:$0x3] }
 0x186   : > { %v605_v39 = vrot.slane %v600_v37, %v604_v36  ;;  %v609_v40 = vrot.slane %v600_v37, %v608_v38 }
 0x187   : > { %779 = vmatpush1.bf16.msra.mxu0 %v1153_v5  ;;  %1081 = vmatpush1.bf16.msra.mxu1 %v1153_v5 }
 0x188   : > { %780 = vmatprep.subr.bf16.mxu0 %v1154_v6  ;;  %1066 = vmatprep.subr.bf16.mxu1 %v1154_v6 }
 0x18b   : > { %781 = vmatpush1.bf16.msra.mxu0 %v1156_v7  ;;  %1082 = vmatpush1.bf16.msra.mxu1 %v1156_v7 }
 0x18c   : > { %782 = vmatprep.subr.bf16.mxu0 %v1157_v8  ;;  %1067 = vmatprep.subr.bf16.mxu1 %v1157_v8 }
 0x18f   : > { %783 = vmatpush1.bf16.msra.mxu0 %v1159_v9  ;;  %1083 = vmatpush1.bf16.msra.mxu1 %v1159_v9 }
 0x190   : > { %784 = vmatprep.subr.bf16.mxu0 %v1160_v10  ;;  %1068 = vmatprep.subr.bf16.mxu1 %v1160_v10 }
 0x193   : > { %785 = vmatpush1.bf16.msra.mxu0 %v1162_v13  ;;  %1084 = vmatpush1.bf16.msra.mxu1 %v1162_v13 }
 0x194   : > { %786 = vmatprep.subr.bf16.mxu0 %v1163_v14  ;;  %1069 = vmatprep.subr.bf16.mxu1 %v1163_v14 }
 0x197   : > { %787 = vmatpush1.bf16.msra.mxu0 %v1165_v15  ;;  %1085 = vmatpush1.bf16.msra.mxu1 %v1165_v15 }
 0x198   : > { %788 = vmatprep.subr.bf16.mxu0 %v1166_v16  ;;  %1070 = vmatprep.subr.bf16.mxu1 %v1166_v16 }
 0x19b   : > { %789 = vmatpush1.bf16.msra.mxu0 %v1168_v17  ;;  %1086 = vmatpush1.bf16.msra.mxu1 %v1168_v17 }
 0x19c   : > { %790 = vmatprep.subr.bf16.mxu0 %v1169_v18  ;;  %1071 = vmatprep.subr.bf16.mxu1 %v1169_v18 }
 0x19f   : > { %791 = vmatpush1.bf16.msra.mxu0 %v1171_v19  ;;  %1087 = vmatpush1.bf16.msra.mxu1 %v1171_v19 }
 0x1a0   : > { %792 = vmatprep.subr.bf16.mxu0 %v1172_v20  ;;  %1072 = vmatprep.subr.bf16.mxu1 %v1172_v20 }
 0x1a3   : > { %793 = vmatpush1.bf16.msra.mxu0 %v1174_v21  ;;  %1088 = vmatpush1.bf16.msra.mxu1 %v1174_v21 }
 0x1a4   : > { %794 = vmatprep.subr.bf16.mxu0 %v1175_v22  ;;  %1073 = vmatprep.subr.bf16.mxu1 %v1175_v22 }
 0x1a7   : > { %795 = vmatpush1.bf16.msra.mxu0 %v1177_v23  ;;  %1089 = vmatpush1.bf16.msra.mxu1 %v1177_v23 }
 0x1a8   : > { %796 = vmatprep.subr.bf16.mxu0 %v1178_v24  ;;  %1074 = vmatprep.subr.bf16.mxu1 %v1178_v24 }
 0x1ab   : > { %797 = vmatpush1.bf16.msra.mxu0 %v1180_v25  ;;  %1090 = vmatpush1.bf16.msra.mxu1 %v1180_v25 }
 0x1ac   : > { %798 = vmatprep.subr.bf16.mxu0 %v1181_v26  ;;  %1075 = vmatprep.subr.bf16.mxu1 %v1181_v26 }
 0x1af   : > { %799 = vmatpush1.bf16.msra.mxu0 %v1183_v27  ;;  %1091 = vmatpush1.bf16.msra.mxu1 %v1183_v27 }
 0x1b0   : > { %800 = vmatprep.subr.bf16.mxu0 %v1184_v28  ;;  %1076 = vmatprep.subr.bf16.mxu1 %v1184_v28 }
 0x1b3   : > { %801 = vmatpush1.bf16.msra.mxu0 %v1186_v29  ;;  %1092 = vmatpush1.bf16.msra.mxu1 %v1186_v29 }
 0x1b4   : > { %802 = vmatprep.subr.bf16.mxu0 %v1187_v30  ;;  %1077 = vmatprep.subr.bf16.mxu1 %v1187_v30 }
 0x1b7   : > { %803 = vmatpush1.bf16.msra.mxu0 %v1189_v31  ;;  %1093 = vmatpush1.bf16.msra.mxu1 %v1189_v31 }
 0x1ba   : > { %805 = vmatmul.mubr.bf16.vlgmr.msra.gmra.mrb[0].mxu0 %v564_v32  ;;  %815 = vmatmul.mubr.bf16.vlgmr.msra.gmra.mrb[0].mxu1 %v566_v33 }
 0x28d   : > { %v806_v41 = vpop.f32.mrb[0].mxu0  ;;  %v816_v42 = vpop.f32.mrb[0].mxu1 }
 0x28e   : > { %v807_v43 = vadd.f32 %v806_v41, %v605_v39  ;;  %v817_v44 = vadd.f32 %v816_v42, %v605_v39  ;;  %v808_v45 = vpop.f32.mrb[1].mxu0  ;;  %v818_v46 = vpop.f32.mrb[1].mxu1 }
 0x28f   : > { %v809_v47 = vadd.f32 %v808_v45, %v609_v40  ;;  %v819_v52 = vadd.f32 %v818_v46, %v609_v40  ;;  %v810_v48 = vpop.f32.mrb[2].mxu0  ;;  %v820_v49 = vpop.f32.mrb[2].mxu1  ;;  %859 = sbr.rel (!%p1295_p6) target bundleno = 670 (0x29e), region = 86 }
 0x290   : > { %v811_v53 = vadd.f32 %v810_v48, %v605_v39  ;;  %v821_v54 = vadd.f32 %v820_v49, %v605_v39  ;;  %v812_v55 = vpop.f32.mrb[3].mxu0  ;;  %v822_v56 = vpop.f32.mrb[3].mxu1 }
 0x291   : > { %v1057_v57 = vpack.c.bf16 %v809_v47, %v807_v43  ;;  %v1059_v58 = vpack.c.bf16 %v819_v52, %v817_v44  ;;  %v813_v50 = vadd.f32 %v812_v55, %v609_v40  ;;  %v823_v51 = vadd.f32 %v822_v56, %v609_v40 }
 0x293   : > { %849 = vst [vmem:[%s1388_s25] sm:$0xff] %v1057_v57  ;;  %851 = vst [vmem:[%s1388_s25 + $0x10] sm:$0xff] %v1059_v58  ;;  %v1058_v59 = vpack.c.bf16 %v813_v50, %v811_v53  ;;  %v1060_v60 = vpack.c.bf16 %v823_v51, %v821_v54 }
 0x295   : > { %850 = vst [vmem:[%s1388_s25 + $0x8] sm:$0xff] %v1058_v59  ;;  %852 = vst [vmem:[%s1388_s25 + $0x18] sm:$0xff] %v1060_v60 }
 0x29a   : > { %v899_v61 = vld [vmem:[%s1388_s25] sm:$0xff]  ;;  %v903_v63 = vld [vmem:[%s1388_s25 + $0x10] sm:$0xff] }
 0x29b   : > { %900 = vst [vmem:[%s865_s10] sm:$0xff] %v899_v61  ;;  %904 = vst [vmem:[%s865_s10 + $0x30] sm:$0xff] %v903_v63 }
 0x29c   : > { %v901_v62 = vld [vmem:[%s1388_s25 + $0x8] sm:$0xff]  ;;  %v905_v0 = vld [vmem:[%s1388_s25 + $0x18] sm:$0xff] }
 0x29d   : > { %902 = vst [vmem:[%s865_s10 + $0x18] sm:$0xff] %v901_v62  ;;  %906 = vst [vmem:[%s865_s10 + $0x48] sm:$0xff] %v905_v0 }
 0x29e PF: > { %s15_s22 = sadd.s32 1, %s1228_s22   ;;  %s1494_s18 = smov %s1216_s19 }
 0x29f   : > { %p12_p13 = scmp.ge.s32.totalorder %s15_s22, 5   ;;  %s1495_s19 = smov %s1300_s28 }
 0x2a0   : > { %s1496_s20 = smov %s1224_s21  ;;  %s1497_s21 = smov %s1499_s23 }
 0x2a1   :  { %14 = sbr.rel (!%p12_p13) target bundleno = 3 (0x3), region = 161 }

// kernel: sam_encoder_forward.17
= control target key start
LH: loop header
LB: loop body
LE: loop exit
PB: predicated region body
PF: predicated region fallthrough
CT: control target
= control target key end

     0   :  { %s1316_s18 = smov 0   ;;  %s1318_s19 = smov 0   ;;  %s1543_s0 = inlined_call_operand.vmem [shape: f32[32,256], index: 0, kind: input, shape index: {}]   ;;  %s1544_s1 = inlined_call_operand.vmem [shape: f32[1,256], index: 1, kind: input, shape index: {}]   ;;  %s1545_s2 = inlined_call_operand.vmem [shape: f32[1,256], index: 2, kind: input, shape index: {}]   ;;  %s1546_s3 = inlined_call_operand.vmem [shape: bf16[256,1024], index: 3, kind: input, shape index: {}]   ;;  %s1547_s4 = inlined_call_operand.vmem [shape: f32[1,1024], index: 4, kind: input, shape index: {}]   ;;  %s1548_s5 = inlined_call_operand.vmem [shape: bf16[32,1024], index: 5, kind: output, shape index: {}]  }
   0x1   :  { %s1320_s20 = smov 0   ;;  %s1322_s21 = smov 0  }
   0x2   :  { %s1324_s22 = smov 0  }
   0x3 LB: > { %s24_s23 = sadd.s32 1, %s1280_s21  ;;  %s1042_s24 = sadd.s32 4294967295, %s1284_s22   ;;  %s1284_s22 = sphi %s1324_s22, %s15_s22   ;;  %s1280_s21 = sphi %s1322_s21, %s1553_s21   ;;  %s1276_s20 = sphi %s1320_s20, %s1552_s20   ;;  %s1272_s19 = sphi %s1318_s19, %s1551_s19   ;;  %s1268_s18 = sphi %s1316_s18, %s1550_s18  }
   0x4   : > { %p25_p0 = scmp.ge.s32.totalorder %s24_s23, 4  ;;  %p109_p1 = scmp.ne.s32.totalorder %s1272_s19, %s1268_s18 }
   0x5   : > { %p110_p2 = scmp.eq.s32.totalorder %s1284_s22, 0  ;;  %p167_p4 = scmp.eq.s32.totalorder %s1042_s24, 3 }
   0x6   : > { %s1555_s23 = smov (%p25_p0, %s24_s23), 0  ;;  %s102_s26 = sadd.s32 1, %s1272_s19 }
   0x7   : > { %p111_p3 = por %p110_p2, %p109_p1  ;;  %s99_s25 = ssub.s32 %s1280_s21, %s1555_s23 }
   0x8   : > { %p100_p5 = scmp.eq.s32.totalorder %s99_s25, 0  ;;  %p1351_p6 = por %p167_p4, %p109_p1 }
   0x9   : > { %p1046_p7 = scmp.ge.s32.totalorder %s1284_s22, 4 }
   0xa   : > { %s1356_s28 = scalar_select %p100_p5, %s1272_s19, %s102_s26  }
   0xb   : > { %205 = sbr.rel (%p1046_p7) target bundleno = 54 (0x36), region = 28 }
  0x12   : > { %208 = sbr.rel (!%p111_p3) target bundleno = 54 (0x36), region = 32  ;;  %s210_s29 = sand.u32 (%p111_p3), 1, %s1272_s19  }
  0x13   : > { %s1096_s30 = sshll.u32 (%p111_p3), %s1280_s21, 3  ;;  %s1047_s6 = sshll.u32 (%p111_p3), %s210_s29, 8 }
  0x14   : > { %s1364_s9 = scalar_lea.vmem (%p111_p3), %s1546_s3, %s1096_s30  ;;  %s1369_s10 = scalar_lea.vmem (%p111_p3), [#allocation3], %s1047_s6 }
  0x15   : > { %v305_v0 = vld [vmem:[%s1364_s9] sm:$0xff] (%p111_p3) }
  0x16   : > { %v307_v1 = vld [vmem:[%s1364_s9 + $0x20] sm:$0xff] (%p111_p3)  ;;  %306 = vst [vmem:[%s1369_s10] sm:$0xff] (%p111_p3), %v305_v0 }
  0x17   : > { %v309_v2 = vld [vmem:[%s1364_s9 + $0x40] sm:$0xff] (%p111_p3)  ;;  %308 = vst [vmem:[%s1369_s10 + $0x8] sm:$0xff] (%p111_p3), %v307_v1 }
  0x18   : > { %310 = vst [vmem:[%s1369_s10 + $0x10] sm:$0xff] (%p111_p3), %v309_v2  ;;  %v311_v3 = vld [vmem:[%s1364_s9 + $0x60] sm:$0xff] (%p111_p3) }
  0x19   : > { %v313_v4 = vld [vmem:[%s1364_s9 + $0x80] sm:$0xff]  ;;  %312 = vst [vmem:[%s1369_s10 + $0x18] sm:$0xff] %v311_v3 }
  0x1a   : > { %v315_v5 = vld [vmem:[%s1364_s9 + $0xa0] sm:$0xff]  ;;  %314 = vst [vmem:[%s1369_s10 + $0x20] sm:$0xff] %v313_v4 }
  0x1b   : > { %316 = vst [vmem:[%s1369_s10 + $0x28] sm:$0xff] %v315_v5  ;;  %v317_v6 = vld [vmem:[%s1364_s9 + $0xc0] sm:$0xff] }
  0x1c   : > { %v319_v7 = vld [vmem:[%s1364_s9 + $0xe0] sm:$0xff]  ;;  %318 = vst [vmem:[%s1369_s10 + $0x30] sm:$0xff] %v317_v6 }
  0x1d   : > { %v321_v8 = vld [vmem:[%s1364_s9 + $0x100] sm:$0xff]  ;;  %320 = vst [vmem:[%s1369_s10 + $0x38] sm:$0xff] %v319_v7 }
  0x1e   : > { %322 = vst [vmem:[%s1369_s10 + $0x40] sm:$0xff] %v321_v8  ;;  %v323_v9 = vld [vmem:[%s1364_s9 + $0x120] sm:$0xff] }
  0x1f   : > { %v325_v10 = vld [vmem:[%s1364_s9 + $0x140] sm:$0xff]  ;;  %324 = vst [vmem:[%s1369_s10 + $0x48] sm:$0xff] %v323_v9 }
  0x20   : > { %v327_v11 = vld [vmem:[%s1364_s9 + $0x160] sm:$0xff]  ;;  %326 = vst [vmem:[%s1369_s10 + $0x50] sm:$0xff] %v325_v10 }
  0x21   : > { %328 = vst [vmem:[%s1369_s10 + $0x58] sm:$0xff] %v327_v11  ;;  %v329_v12 = vld [vmem:[%s1364_s9 + $0x180] sm:$0xff] }
  0x22   : > { %v331_v13 = vld [vmem:[%s1364_s9 + $0x1a0] sm:$0xff]  ;;  %330 = vst [vmem:[%s1369_s10 + $0x60] sm:$0xff] %v329_v12 }
  0x23   : > { %v333_v14 = vld [vmem:[%s1364_s9 + $0x1c0] sm:$0xff]  ;;  %332 = vst [vmem:[%s1369_s10 + $0x68] sm:$0xff] %v331_v13 }
  0x24   : > { %334 = vst [vmem:[%s1369_s10 + $0x70] sm:$0xff] %v333_v14  ;;  %v335_v15 = vld [vmem:[%s1364_s9 + $0x1e0] sm:$0xff] }
  0x25   : > { %v337_v16 = vld [vmem:[%s1364_s9 + $0x200] sm:$0xff]  ;;  %336 = vst [vmem:[%s1369_s10 + $0x78] sm:$0xff] %v335_v15 }
  0x26   : > { %v339_v17 = vld [vmem:[%s1364_s9 + $0x220] sm:$0xff]  ;;  %338 = vst [vmem:[%s1369_s10 + $0x80] sm:$0xff] %v337_v16 }
  0x27   : > { %340 = vst [vmem:[%s1369_s10 + $0x88] sm:$0xff] %v339_v17  ;;  %v341_v18 = vld [vmem:[%s1364_s9 + $0x240] sm:$0xff] }
  0x28   : > { %v343_v19 = vld [vmem:[%s1364_s9 + $0x260] sm:$0xff]  ;;  %342 = vst [vmem:[%s1369_s10 + $0x90] sm:$0xff] %v341_v18 }
  0x29   : > { %v345_v20 = vld [vmem:[%s1364_s9 + $0x280] sm:$0xff]  ;;  %344 = vst [vmem:[%s1369_s10 + $0x98] sm:$0xff] %v343_v19 }
  0x2a   : > { %346 = vst [vmem:[%s1369_s10 + $0xa0] sm:$0xff] %v345_v20  ;;  %v347_v21 = vld [vmem:[%s1364_s9 + $0x2a0] sm:$0xff] }
  0x2b   : > { %v349_v22 = vld [vmem:[%s1364_s9 + $0x2c0] sm:$0xff]  ;;  %348 = vst [vmem:[%s1369_s10 + $0xa8] sm:$0xff] %v347_v21 }
  0x2c   : > { %v351_v23 = vld [vmem:[%s1364_s9 + $0x2e0] sm:$0xff]  ;;  %350 = vst [vmem:[%s1369_s10 + $0xb0] sm:$0xff] %v349_v22 }
  0x2d   : > { %352 = vst [vmem:[%s1369_s10 + $0xb8] sm:$0xff] %v351_v23  ;;  %v353_v24 = vld [vmem:[%s1364_s9 + $0x300] sm:$0xff] }
  0x2e   : > { %v355_v25 = vld [vmem:[%s1364_s9 + $0x320] sm:$0xff]  ;;  %354 = vst [vmem:[%s1369_s10 + $0xc0] sm:$0xff] %v353_v24 }
  0x2f   : > { %v357_v26 = vld [vmem:[%s1364_s9 + $0x340] sm:$0xff]  ;;  %356 = vst [vmem:[%s1369_s10 + $0xc8] sm:$0xff] %v355_v25 }
  0x30   : > { %358 = vst [vmem:[%s1369_s10 + $0xd0] sm:$0xff] %v357_v26  ;;  %v359_v27 = vld [vmem:[%s1364_s9 + $0x360] sm:$0xff] }
  0x31   : > { %v361_v28 = vld [vmem:[%s1364_s9 + $0x380] sm:$0xff]  ;;  %360 = vst [vmem:[%s1369_s10 + $0xd8] sm:$0xff] %v359_v27 }
  0x32   : > { %v363_v29 = vld [vmem:[%s1364_s9 + $0x3a0] sm:$0xff]  ;;  %362 = vst [vmem:[%s1369_s10 + $0xe0] sm:$0xff] %v361_v28 }
  0x33   : > { %364 = vst [vmem:[%s1369_s10 + $0xe8] sm:$0xff] %v363_v29  ;;  %v365_v30 = vld [vmem:[%s1364_s9 + $0x3c0] sm:$0xff] }
  0x34   : > { %v367_v31 = vld [vmem:[%s1364_s9 + $0x3e0] sm:$0xff]  ;;  %366 = vst [vmem:[%s1369_s10 + $0xf0] sm:$0xff] %v365_v30 }
  0x35   : > { %368 = vst [vmem:[%s1369_s10 + $0xf8] sm:$0xff] %v367_v31 }
  0x36 PF: > { %p1050_p8 = scmp.ge.s32.totalorder %s1284_s22, 1  ;;  %p381_p9 = scmp.lt.s32.totalorder %s1284_s22, 5 }
  0x38   : > { %p382_p10 = pnand %p1050_p8, %p381_p9 }
  0x39   : > { %s388_s11 = sand.u32 (!%p382_p10), 1, %s1268_s18   ;;  %s1053_s12 = sshll.u32 (!%p382_p10), %s1276_s20, 1 }
  0x3a   : > { %385 = sbr.rel (%p382_p10) target bundleno = 707 (0x2c3), region = 74  ;;  %s1051_s13 = sshll.u32 (!%p382_p10), %s388_s11, 8 }
  0x3b   : > { %s1052_s14 = sshll.u32 (!%p382_p10), %s388_s11, 5  ;;  %p433_p11 = scmp.lt.s32.totalorder (!%p382_p10), %s1053_s12, 7 }
  0x3c   : > { %s1442_s24 = scalar_lea.vmem (!%p382_p10), [#allocation3], %s1051_s13  ;;  %s1444_s25 = scalar_lea.vmem (!%p382_p10), [#allocation4], %s1052_s14 }
  0x3d   : > { %p1054_p12 = scmp.ne.s32.totalorder (!%p382_p10), %s1276_s20, 0 }
  0x41   : > { %s1557_s12 = smov (!%p433_p11, %s1053_s12), 7  ;;  %442 = sbr.rel (%p1054_p12) target bundleno = 393 (0x189), region = 82 }
  0x42   : > { %s435_s17 = scalar_lea.vmem %s1547_s4, %s1557_s12  ;;  %v443_v32 = vld [vmem:[%s1543_s0] sm:$0xff] (!%p1054_p12)  ;;  %v444_v33 = vld [vmem:[%s1543_s0 + $0x8] sm:$0xff] (!%p1054_p12)  ;;  %v445_v37 = vld [vmem:[%s1543_s0 + $0x10] sm:$0xff] (!%p1054_p12)  ;;  %v518_v10 = vlaneseq (!%p1054_p12) }
  0x43   : > { %v447_v34 = vld [vmem:[%s1543_s0 + $0x20] sm:$0xff] (!%p1054_p12)  ;;  %v451_v35 = vadd.f32 (!%p1054_p12), %v444_v33, %v443_v32  ;;  %v448_v36 = vld [vmem:[%s1543_s0 + $0x28] sm:$0xff] (!%p1054_p12)  ;;  %v446_v38 = vld [vmem:[%s1543_s0 + $0x18] sm:$0xff] (!%p1054_p12) }
  0x44   : > { %v457_v39 = vadd.f32 (!%p1054_p12), %v448_v36, %v447_v34  ;;  %v449_v40 = vld [vmem:[%s1543_s0 + $0x30] sm:$0xff] (!%p1054_p12)  ;;  %v450_v41 = vld [vmem:[%s1543_s0 + $0x38] sm:$0xff] (!%p1054_p12)  ;;  %v454_v42 = vadd.f32 (!%p1054_p12), %v446_v38, %v445_v37  ;;  %v519_v16 = vshrl.u32 (!%p1054_p12), %v518_v10, 7  ;;  %v516_v24 = vld [vmem:[%s1544_s1] sm:$0x3] (!%p1054_p12) }
  0x45   : > { %452 = vadd.xlane.f32.xlu0 (!%p1054_p12), %v451_v35  ;;  %v460_v43 = vadd.f32 (!%p1054_p12), %v450_v41, %v449_v40  ;;  %v536_v28 = vld [vmem:[%s1545_s2] sm:$0x3] (!%p1054_p12) }
  0x46   : > { %458 = vadd.xlane.f32.xlu1 (!%p1054_p12), %v457_v39  ;;  %v520_v21 = vsub.s32 (!%p1054_p12), 0, %v519_v16  ;;  %v524_v22 = vsub.s32 (!%p1054_p12), 1, %v519_v16 }
  0x48   : > { %v521_v26 = vrot.slane %v516_v24, %v520_v21  ;;  %v525_v27 = vrot.slane %v516_v24, %v524_v22 }
  0x49   : > { %455 = vadd.xlane.f32.xlu0 %v454_v42 }
  0x4a   : > { %461 = vadd.xlane.f32.xlu1 %v460_v43 }
  0xd2   : > { %v453_v44 = vpop.xlane.xlu0 %452 }
  0xd3   : > { %v464_v45 = vmul.f32 0.00390625, %v453_v44  ;;  %v459_v46 = vpop.xlane.xlu1 %458 }
  0xd4   : > { %v466_v47 = vmul.f32 0.00390625, %v459_v46 }
  0xd5   : > { %v468_v48 = vsub.f32 %v443_v32, %v464_v45  ;;  %v469_v49 = vsub.f32 %v444_v33, %v464_v45  ;;  %v541_v32 = vrot.slane %v536_v28, %v520_v21  ;;  %v545_v33 = vrot.slane %v536_v28, %v524_v22 }
  0xd6   : > { %v472_v50 = vsub.f32 %v447_v34, %v466_v47  ;;  %v473_v51 = vsub.f32 %v448_v36, %v466_v47  ;;  %v456_v52 = vpop.xlane.xlu0 %455 }
  0xd7   : > { %v465_v53 = vmul.f32 0.00390625, %v456_v52  ;;  %v462_v54 = vpop.xlane.xlu1 %461  ;;  %v476_v55 = vmul.f32 %v468_v48, %v468_v48  ;;  %v477_v56 = vmul.f32 %v469_v49, %v469_v49 }
  0xd8   : > { %v467_v57 = vmul.f32 0.00390625, %v462_v54  ;;  %v480_v58 = vmul.f32 %v472_v50, %v472_v50  ;;  %v481_v59 = vmul.f32 %v473_v51, %v473_v51 }
  0xd9   : > { %v470_v60 = vsub.f32 %v445_v37, %v465_v53  ;;  %v471_v61 = vsub.f32 %v446_v38, %v465_v53  ;;  %v484_v62 = vadd.f32 %v477_v56, %v476_v55 }
  0xda   : > { %v474_v63 = vsub.f32 %v449_v40, %v467_v57  ;;  %v475_v0 = vsub.f32 %v450_v41, %v467_v57  ;;  %v490_v1 = vadd.f32 %v481_v59, %v480_v58 }
  0xdb   : > { %485 = vadd.xlane.f32.xlu0 %v484_v62  ;;  %v478_v2 = vmul.f32 %v470_v60, %v470_v60  ;;  %v479_v3 = vmul.f32 %v471_v61, %v471_v61 }
  0xdc   : > { %v482_v4 = vmul.f32 %v474_v63, %v474_v63  ;;  %v483_v5 = vmul.f32 %v475_v0, %v475_v0 }
  0xdd   : > { %v487_v6 = vadd.f32 %v479_v3, %v478_v2 }
  0xde   : > { %v493_v7 = vadd.f32 %v483_v5, %v482_v4 }
  0xdf   : > { %491 = vadd.xlane.f32.xlu0 %v490_v1  ;;  %488 = vadd.xlane.f32.xlu1 %v487_v6 }
  0xe3   : > { %494 = vadd.xlane.f32.xlu1 %v493_v7 }
 0x168   : > { %v486_v8 = vpop.xlane.xlu0 %485 }
 0x169   : > { %v496_v9 = vmul.f32 0.00390625, %v486_v8 }
 0x16b   : > { %v500_v11 = vadd.f32 1e-06, %v496_v9 }
 0x16c   : > { %v489_v12 = vpop.xlane.xlu1 %488  ;;  %v492_v13 = vpop.xlane.xlu0 %491 }
 0x16d   : > { %1174 = vrsqrt.f32 %v500_v11  ;;  %v497_v14 = vmul.f32 0.00390625, %v489_v12  ;;  %v498_v15 = vmul.f32 0.00390625, %v492_v13 }
 0x16f   : > { %v501_v17 = vadd.f32 1e-06, %v497_v14  ;;  %v502_v18 = vadd.f32 1e-06, %v498_v15 }
 0x170   : > { %v495_v19 = vpop.xlane.xlu1 %494 }
 0x171   : > { %1176 = vrsqrt.f32 %v501_v17  ;;  %v499_v20 = vmul.f32 0.00390625, %v495_v19 }
 0x172   : > { %1178 = vrsqrt.f32 %v502_v18 }
 0x173   : > { %v503_v23 = vadd.f32 1e-06, %v499_v20 }
 0x175   : > { %1180 = vrsqrt.f32 %v503_v23 }
 0x177   : > { %v1175_v25 = vpop.eup %1174 }
 0x178   : > { %v508_v29 = vmul.f32 %v1175_v25, %v468_v48  ;;  %v509_v30 = vmul.f32 %v1175_v25, %v469_v49 }
 0x17a   : > { %v528_v34 = vmul.f32 %v521_v26, %v508_v29  ;;  %v529_v35 = vmul.f32 %v525_v27, %v509_v30 }
 0x17b   : > { %v1177_v31 = vpop.eup %1176 }
 0x17c   : > { %v1179_v36 = vpop.eup %1178  ;;  %v510_v37 = vmul.f32 %v1177_v31, %v470_v60  ;;  %v511_v38 = vmul.f32 %v1177_v31, %v471_v61  ;;  %v548_v44 = vadd.f32 %v541_v32, %v528_v34  ;;  %v549_v45 = vadd.f32 %v545_v33, %v529_v35 }
 0x17d   : > { %v512_v39 = vmul.f32 %v1179_v36, %v472_v50  ;;  %v513_v40 = vmul.f32 %v1179_v36, %v473_v51 }
 0x17e   : > { %v530_v41 = vmul.f32 %v521_v26, %v510_v37  ;;  %v531_v42 = vmul.f32 %v525_v27, %v511_v38 }
 0x17f   : > { %v1181_v43 = vpop.eup %1180  ;;  %v532_v46 = vmul.f32 %v521_v26, %v512_v39  ;;  %v533_v47 = vmul.f32 %v525_v27, %v513_v40 }
 0x180   : > { %v550_v52 = vadd.f32 %v541_v32, %v530_v41  ;;  %v551_v48 = vadd.f32 %v545_v33, %v531_v42  ;;  %v514_v49 = vmul.f32 %v1181_v43, %v474_v63  ;;  %v515_v53 = vmul.f32 %v1181_v43, %v475_v0 }
 0x181   : > { %v552_v58 = vadd.f32 %v541_v32, %v532_v46  ;;  %v553_v50 = vadd.f32 %v545_v33, %v533_v47 }
 0x182   : > { %v556_v54 = vpack.c.bf16 %v550_v52, %v548_v44  ;;  %v557_v55 = vpack.c.bf16 %v551_v48, %v549_v45  ;;  %v534_v56 = vmul.f32 %v521_v26, %v514_v49  ;;  %v535_v57 = vmul.f32 %v525_v27, %v515_v53 }
 0x184   : > { %560 = vst [vmem:[#allocation2] sm:$0xff] %v556_v54  ;;  %561 = vst [vmem:[#allocation2 + $0x8] sm:$0xff] %v557_v55  ;;  %v554_v51 = vadd.f32 %v541_v32, %v534_v56  ;;  %v555_v59 = vadd.f32 %v545_v33, %v535_v57 }
 0x186   : > { %v558_v60 = vpack.c.bf16 %v554_v51, %v552_v58  ;;  %v559_v61 = vpack.c.bf16 %v555_v59, %v553_v50 }
 0x188   : > { %562 = vst [vmem:[#allocation2 + $0x10] sm:$0xff] %v558_v60  ;;  %563 = vst [vmem:[#allocation2 + $0x18] sm:$0xff] %v559_v61 }
 0x189 PF: > { %v1182_v62 = vld [vmem:[%s1442_s24 + $0x4] ss:$8 sps:$4 sm:$0xff]   ;;  %v1184_v63 = vld [vmem:[%s1442_s24] ss:$8 sps:$4 sm:$0xff]   ;;  %v1185_v0 = vld [vmem:[%s1442_s24 + $0x14] ss:$8 sps:$4 sm:$0xff]   ;;  %v602_v34 = vlaneseq }
 0x18a   : > { %772 = vmatprep.subr.bf16.mxu0 %v1182_v62  ;;  %1102 = vmatprep.subr.bf16.mxu1 %v1182_v62  ;;  %v1187_v1 = vld [vmem:[%s1442_s24 + $0x10] ss:$8 sps:$4 sm:$0xff]   ;;  %v1188_v2 = vld [vmem:[%s1442_s24 + $0x24] ss:$8 sps:$4 sm:$0xff]   ;;  %v1190_v3 = vld [vmem:[%s1442_s24 + $0x20] ss:$8 sps:$4 sm:$0xff]  }
 0x18b   : > { %773 = vmatpush1.bf16.msra.mxu0 %v1184_v63  ;;  %1118 = vmatpush1.bf16.msra.mxu1 %v1184_v63  ;;  %v1191_v4 = vld [vmem:[%s1442_s24 + $0x34] ss:$8 sps:$4 sm:$0xff]   ;;  %v1193_v5 = vld [vmem:[%s1442_s24 + $0x30] ss:$8 sps:$4 sm:$0xff]   ;;  %v1194_v6 = vld [vmem:[%s1442_s24 + $0x44] ss:$8 sps:$4 sm:$0xff]  }
 0x18c   : > { %774 = vmatprep.subr.bf16.mxu0 %v1185_v0  ;;  %1103 = vmatprep.subr.bf16.mxu1 %v1185_v0  ;;  %v1196_v7 = vld [vmem:[%s1442_s24 + $0x40] ss:$8 sps:$4 sm:$0xff]   ;;  %v1197_v8 = vld [vmem:[%s1442_s24 + $0x54] ss:$8 sps:$4 sm:$0xff]   ;;  %v1199_v9 = vld [vmem:[%s1442_s24 + $0x50] ss:$8 sps:$4 sm:$0xff]  }
 0x18d   : > { %v1200_v10 = vld [vmem:[%s1442_s24 + $0x64] ss:$8 sps:$4 sm:$0xff]   ;;  %v1202_v13 = vld [vmem:[%s1442_s24 + $0x60] ss:$8 sps:$4 sm:$0xff]   ;;  %v1203_v14 = vld [vmem:[%s1442_s24 + $0x74] ss:$8 sps:$4 sm:$0xff]  }
 0x18e   : > { %v565_v11 = vld [vmem:[#allocation2 + $0x8] sm:$0xff]  ;;  %v1205_v15 = vld [vmem:[%s1442_s24 + $0x70] ss:$8 sps:$4 sm:$0xff]   ;;  %v1209_v18 = vld [vmem:[%s1442_s24 + $0x94] ss:$8 sps:$4 sm:$0xff]   ;;  %v603_v35 = vshrl.u32 %v602_v34, 7 }
 0x18f   : > { %775 = vmatpush1.bf16.msra.mxu0 %v1187_v1  ;;  %1119 = vmatpush1.bf16.msra.mxu1 %v1187_v1  ;;  %v567_v12 = vld [vmem:[#allocation2 + $0x18] sm:$0xff]  ;;  %v1206_v16 = vld [vmem:[%s1442_s24 + $0x84] ss:$8 sps:$4 sm:$0xff]   ;;  %v1208_v17 = vld [vmem:[%s1442_s24 + $0x80] ss:$8 sps:$4 sm:$0xff]   ;;  %s1101_s12 = sshll.u32 (%p1351_p6), %s1276_s20, 3 }
 0x190   : > { %776 = vmatprep.subr.bf16.mxu0 %v1188_v2  ;;  %1104 = vmatprep.subr.bf16.mxu1 %v1188_v2  ;;  %v1211_v19 = vld [vmem:[%s1442_s24 + $0x90] ss:$8 sps:$4 sm:$0xff]   ;;  %v1212_v20 = vld [vmem:[%s1442_s24 + $0xa4] ss:$8 sps:$4 sm:$0xff]   ;;  %v1214_v21 = vld [vmem:[%s1442_s24 + $0xa0] ss:$8 sps:$4 sm:$0xff]   ;;  %s905_s10 = scalar_lea.vmem (%p1351_p6), %s1548_s5, %s1101_s12 }
 0x191   : > { %804 = vmatprep.mubr.bf16.mxu0 %v565_v11  ;;  %814 = vmatprep.mubr.bf16.mxu1 %v567_v12  ;;  %v1215_v22 = vld [vmem:[%s1442_s24 + $0xb4] ss:$8 sps:$4 sm:$0xff]   ;;  %v1217_v23 = vld [vmem:[%s1442_s24 + $0xb0] ss:$8 sps:$4 sm:$0xff]   ;;  %v1218_v24 = vld [vmem:[%s1442_s24 + $0xc4] ss:$8 sps:$4 sm:$0xff]  }
 0x192   : > { %v1220_v25 = vld [vmem:[%s1442_s24 + $0xc0] ss:$8 sps:$4 sm:$0xff]   ;;  %v1221_v26 = vld [vmem:[%s1442_s24 + $0xd4] ss:$8 sps:$4 sm:$0xff]   ;;  %v1223_v27 = vld [vmem:[%s1442_s24 + $0xd0] ss:$8 sps:$4 sm:$0xff]  }
 0x193   : > { %777 = vmatpush1.bf16.msra.mxu0 %v1190_v3  ;;  %1120 = vmatpush1.bf16.msra.mxu1 %v1190_v3  ;;  %v1224_v28 = vld [vmem:[%s1442_s24 + $0xe4] ss:$8 sps:$4 sm:$0xff]   ;;  %v1226_v29 = vld [vmem:[%s1442_s24 + $0xe0] ss:$8 sps:$4 sm:$0xff]   ;;  %v1227_v30 = vld [vmem:[%s1442_s24 + $0xf4] ss:$8 sps:$4 sm:$0xff]  }
 0x194   : > { %778 = vmatprep.subr.bf16.mxu0 %v1191_v4  ;;  %1105 = vmatprep.subr.bf16.mxu1 %v1191_v4  ;;  %v1229_v31 = vld [vmem:[%s1442_s24 + $0xf0] ss:$8 sps:$4 sm:$0xff]   ;;  %v564_v32 = vld [vmem:[#allocation2] sm:$0xff]  ;;  %v604_v36 = vsub.s32 0, %v603_v35  ;;  %v608_v38 = vsub.s32 1, %v603_v35 }
 0x195   : > { %v566_v33 = vld [vmem:[#allocation2 + $0x10] sm:$0xff]  ;;  %v600_v37 = vld [vmem:[%s435_s17] sm:$0x3] }
 0x196   : > { %v605_v39 = vrot.slane %v600_v37, %v604_v36  ;;  %v609_v40 = vrot.slane %v600_v37, %v608_v38 }
 0x197   : > { %779 = vmatpush1.bf16.msra.mxu0 %v1193_v5  ;;  %1121 = vmatpush1.bf16.msra.mxu1 %v1193_v5 }
 0x198   : > { %780 = vmatprep.subr.bf16.mxu0 %v1194_v6  ;;  %1106 = vmatprep.subr.bf16.mxu1 %v1194_v6 }
 0x19b   : > { %781 = vmatpush1.bf16.msra.mxu0 %v1196_v7  ;;  %1122 = vmatpush1.bf16.msra.mxu1 %v1196_v7 }
 0x19c   : > { %782 = vmatprep.subr.bf16.mxu0 %v1197_v8  ;;  %1107 = vmatprep.subr.bf16.mxu1 %v1197_v8 }
 0x19f   : > { %783 = vmatpush1.bf16.msra.mxu0 %v1199_v9  ;;  %1123 = vmatpush1.bf16.msra.mxu1 %v1199_v9 }
 0x1a0   : > { %784 = vmatprep.subr.bf16.mxu0 %v1200_v10  ;;  %1108 = vmatprep.subr.bf16.mxu1 %v1200_v10 }
 0x1a3   : > { %785 = vmatpush1.bf16.msra.mxu0 %v1202_v13  ;;  %1124 = vmatpush1.bf16.msra.mxu1 %v1202_v13 }
 0x1a4   : > { %786 = vmatprep.subr.bf16.mxu0 %v1203_v14  ;;  %1109 = vmatprep.subr.bf16.mxu1 %v1203_v14 }
 0x1a7   : > { %787 = vmatpush1.bf16.msra.mxu0 %v1205_v15  ;;  %1125 = vmatpush1.bf16.msra.mxu1 %v1205_v15 }
 0x1a8   : > { %788 = vmatprep.subr.bf16.mxu0 %v1206_v16  ;;  %1110 = vmatprep.subr.bf16.mxu1 %v1206_v16 }
 0x1ab   : > { %789 = vmatpush1.bf16.msra.mxu0 %v1208_v17  ;;  %1126 = vmatpush1.bf16.msra.mxu1 %v1208_v17 }
 0x1ac   : > { %790 = vmatprep.subr.bf16.mxu0 %v1209_v18  ;;  %1111 = vmatprep.subr.bf16.mxu1 %v1209_v18 }
 0x1af   : > { %791 = vmatpush1.bf16.msra.mxu0 %v1211_v19  ;;  %1127 = vmatpush1.bf16.msra.mxu1 %v1211_v19 }
 0x1b0   : > { %792 = vmatprep.subr.bf16.mxu0 %v1212_v20  ;;  %1112 = vmatprep.subr.bf16.mxu1 %v1212_v20 }
 0x1b3   : > { %793 = vmatpush1.bf16.msra.mxu0 %v1214_v21  ;;  %1128 = vmatpush1.bf16.msra.mxu1 %v1214_v21 }
 0x1b4   : > { %794 = vmatprep.subr.bf16.mxu0 %v1215_v22  ;;  %1113 = vmatprep.subr.bf16.mxu1 %v1215_v22 }
 0x1b7   : > { %795 = vmatpush1.bf16.msra.mxu0 %v1217_v23  ;;  %1129 = vmatpush1.bf16.msra.mxu1 %v1217_v23 }
 0x1b8   : > { %796 = vmatprep.subr.bf16.mxu0 %v1218_v24  ;;  %1114 = vmatprep.subr.bf16.mxu1 %v1218_v24 }
 0x1bb   : > { %797 = vmatpush1.bf16.msra.mxu0 %v1220_v25  ;;  %1130 = vmatpush1.bf16.msra.mxu1 %v1220_v25 }
 0x1bc   : > { %798 = vmatprep.subr.bf16.mxu0 %v1221_v26  ;;  %1115 = vmatprep.subr.bf16.mxu1 %v1221_v26 }
 0x1bf   : > { %799 = vmatpush1.bf16.msra.mxu0 %v1223_v27  ;;  %1131 = vmatpush1.bf16.msra.mxu1 %v1223_v27 }
 0x1c0   : > { %800 = vmatprep.subr.bf16.mxu0 %v1224_v28  ;;  %1116 = vmatprep.subr.bf16.mxu1 %v1224_v28 }
 0x1c3   : > { %801 = vmatpush1.bf16.msra.mxu0 %v1226_v29  ;;  %1132 = vmatpush1.bf16.msra.mxu1 %v1226_v29 }
 0x1c4   : > { %802 = vmatprep.subr.bf16.mxu0 %v1227_v30  ;;  %1117 = vmatprep.subr.bf16.mxu1 %v1227_v30 }
 0x1c7   : > { %803 = vmatpush1.bf16.msra.mxu0 %v1229_v31  ;;  %1133 = vmatpush1.bf16.msra.mxu1 %v1229_v31 }
 0x1ca   : > { %805 = vmatmul.mubr.bf16.vlgmr.msra.gmra.mrb[0].mxu0 %v564_v32  ;;  %815 = vmatmul.mubr.bf16.vlgmr.msra.gmra.mrb[0].mxu1 %v566_v33 }
 0x29d   : > { %v806_v41 = vpop.f32.mrb[0].mxu0  ;;  %v816_v42 = vpop.f32.mrb[0].mxu1 }
 0x29e   : > { %v807_v43 = vadd.f32 %v806_v41, %v605_v39  ;;  %v817_v44 = vadd.f32 %v816_v42, %v605_v39  ;;  %v808_v45 = vpop.f32.mrb[1].mxu0  ;;  %v818_v46 = vpop.f32.mrb[1].mxu1 }
 0x29f   : > { %v809_v47 = vadd.f32 %v808_v45, %v609_v40  ;;  %v819_v52 = vadd.f32 %v818_v46, %v609_v40  ;;  %v810_v48 = vpop.f32.mrb[2].mxu0  ;;  %v820_v49 = vpop.f32.mrb[2].mxu1 }
 0x2a0   : > { %v833_v53 = vmul.f32 0.70710677, %v807_v43  ;;  %v837_v54 = vmul.f32 0.70710677, %v817_v44  ;;  %v811_v57 = vadd.f32 %v810_v48, %v605_v39  ;;  %v821_v58 = vadd.f32 %v820_v49, %v605_v39  ;;  %v812_v50 = vpop.f32.mrb[3].mxu0  ;;  %v822_v51 = vpop.f32.mrb[3].mxu1 }
 0x2a1   : > { %v834_v55 = vmul.f32 0.70710677, %v809_v47  ;;  %v838_v56 = vmul.f32 0.70710677, %v819_v52  ;;  %v813_v59 = vadd.f32 %v812_v50, %v609_v40  ;;  %v823_v60 = vadd.f32 %v822_v51, %v609_v40 }
 0x2a2   : > { %1230 = verf.f32 %v833_v53  ;;  %v835_v61 = vmul.f32 0.70710677, %v811_v57  ;;  %v839_v62 = vmul.f32 0.70710677, %v821_v58  ;;  %v825_v3 = vmul.f32 0.5, %v807_v43 }
 0x2a3   : > { %1232 = verf.f32 %v837_v54  ;;  %v836_v63 = vmul.f32 0.70710677, %v813_v59  ;;  %v840_v0 = vmul.f32 0.70710677, %v823_v60  ;;  %v829_v6 = vmul.f32 0.5, %v817_v44 }
 0x2a4   : > { %1234 = verf.f32 %v834_v55  ;;  %v826_v10 = vmul.f32 0.5, %v809_v47  ;;  %v830_v14 = vmul.f32 0.5, %v819_v52  ;;  %v827_v18 = vmul.f32 0.5, %v811_v57 }
 0x2a5   : > { %1236 = verf.f32 %v838_v56  ;;  %v831_v22 = vmul.f32 0.5, %v821_v58  ;;  %v828_v27 = vmul.f32 0.5, %v813_v59  ;;  %v832_v31 = vmul.f32 0.5, %v823_v60 }
 0x2a6   : > { %1238 = verf.f32 %v835_v61 }
 0x2a7   : > { %1240 = verf.f32 %v839_v62 }
 0x2a8   : > { %1242 = verf.f32 %v836_v63 }
 0x2a9   : > { %1244 = verf.f32 %v840_v0 }
 0x2ac   : > { %v1231_v1 = vpop.eup %1230 }
 0x2ad   : > { %v1233_v2 = vpop.eup %1232  ;;  %v849_v4 = vadd.f32 1.0, %v1231_v1 }
 0x2ae   : > { %v1235_v5 = vpop.eup %1234  ;;  %v853_v7 = vadd.f32 1.0, %v1233_v2 }
 0x2af   : > { %v1237_v8 = vpop.eup %1236  ;;  %v857_v9 = vmul.f32 %v849_v4, %v825_v3  ;;  %v850_v11 = vadd.f32 1.0, %v1235_v5 }
 0x2b0   : > { %v1239_v12 = vpop.eup %1238  ;;  %v861_v13 = vmul.f32 %v853_v7, %v829_v6  ;;  %v854_v15 = vadd.f32 1.0, %v1237_v8 }
 0x2b1   : > { %v1241_v16 = vpop.eup %1240  ;;  %v858_v17 = vmul.f32 %v850_v11, %v826_v10  ;;  %v851_v19 = vadd.f32 1.0, %v1239_v12 }
 0x2b2   : > { %v1243_v20 = vpop.eup %1242  ;;  %v862_v21 = vmul.f32 %v854_v15, %v830_v14  ;;  %v855_v23 = vadd.f32 1.0, %v1241_v16 }
 0x2b3   : > { %v1245_v24 = vpop.eup %1244  ;;  %v1097_v25 = vpack.c.bf16 %v858_v17, %v857_v9  ;;  %v859_v26 = vmul.f32 %v851_v19, %v827_v18  ;;  %v852_v28 = vadd.f32 1.0, %v1243_v20 }
 0x2b4   : > { %v1099_v29 = vpack.c.bf16 %v862_v21, %v861_v13  ;;  %v863_v30 = vmul.f32 %v855_v23, %v831_v22  ;;  %v856_v32 = vadd.f32 1.0, %v1245_v24  ;;  %899 = sbr.rel (!%p1351_p6) target bundleno = 707 (0x2c3), region = 86 }
 0x2b5   : > { %889 = vst [vmem:[%s1444_s25] sm:$0xff] %v1097_v25  ;;  %v860_v33 = vmul.f32 %v852_v28, %v828_v27 }
 0x2b6   : > { %891 = vst [vmem:[%s1444_s25 + $0x10] sm:$0xff] %v1099_v29  ;;  %v864_v34 = vmul.f32 %v856_v32, %v832_v31 }
 0x2b7   : > { %v1098_v35 = vpack.c.bf16 %v860_v33, %v859_v26 }
 0x2b8   : > { %v1100_v36 = vpack.c.bf16 %v864_v34, %v863_v30 }
 0x2b9   : > { %890 = vst [vmem:[%s1444_s25 + $0x8] sm:$0xff] %v1098_v35 }
 0x2ba   : > { %892 = vst [vmem:[%s1444_s25 + $0x18] sm:$0xff] %v1100_v36 }
 0x2bc   : > { %v939_v37 = vld [vmem:[%s1444_s25] sm:$0xff] }
 0x2bd   : > { %v943_v39 = vld [vmem:[%s1444_s25 + $0x10] sm:$0xff]  ;;  %940 = vst [vmem:[%s905_s10] sm:$0xff] %v939_v37 }
 0x2be   : > { %944 = vst [vmem:[%s905_s10 + $0x40] sm:$0xff] %v943_v39 }
 0x2c0   : > { %v941_v38 = vld [vmem:[%s1444_s25 + $0x8] sm:$0xff] }
 0x2c1   : > { %v945_v40 = vld [vmem:[%s1444_s25 + $0x18] sm:$0xff]  ;;  %942 = vst [vmem:[%s905_s10 + $0x20] sm:$0xff] %v941_v38 }
 0x2c2   : > { %946 = vst [vmem:[%s905_s10 + $0x60] sm:$0xff] %v945_v40 }
 0x2c3 PF: > { %s15_s22 = sadd.s32 1, %s1284_s22   ;;  %s1550_s18 = smov %s1272_s19 }
 0x2c4   : > { %p12_p13 = scmp.ge.s32.totalorder %s15_s22, 6   ;;  %s1551_s19 = smov %s1356_s28 }
 0x2c5   : > { %s1552_s20 = smov %s1280_s21  ;;  %s1553_s21 = smov %s1555_s23 }
 0x2c6   :  { %14 = sbr.rel (!%p12_p13) target bundleno = 3 (0x3), region = 161 }

// kernel: sam_encoder_forward.24
= control target key start
LH: loop header
LB: loop body
LE: loop exit
PB: predicated region body
PF: predicated region fallthrough
CT: control target
= control target key end

     0   :  { %s522_s1 = inlined_call_operand.vmem [shape: bf16[256,128], index: 1, kind: input, shape index: {}]   ;;  %s523_s0 = inlined_call_operand.vmem [shape: bf16[32,256], index: 0, kind: input, shape index: {}]   ;;  %s524_s2 = inlined_call_operand.vmem [shape: f32[1,128], index: 2, kind: input, shape index: {}]   ;;  %s525_s3 = inlined_call_operand.vmem [shape: f32[1,128], index: 3, kind: input, shape index: {}]   ;;  %s526_s4 = inlined_call_operand.vmem [shape: bf16[32,128], index: 4, kind: output, shape index: {}]  }
   0x1   :  { %v395_v0 = vld [vmem:[%s522_s1 + $0x40] sm:$0xff]   ;;  %v397_v2 = vld [vmem:[%s522_s1 + $0x48] sm:$0xff]   ;;  %v399_v4 = vld [vmem:[%s522_s1 + $0x50] sm:$0xff]  }
   0x2   :  { %v396_v1 = vld [vmem:[%s522_s1] sm:$0xff]   ;;  %351 = vmatprep.subr.bf16.mxu0 %v395_v0  ;;  %379 = vmatprep.subr.bf16.mxu1 %v395_v0  ;;  %v398_v3 = vld [vmem:[%s522_s1 + $0x8] sm:$0xff]   ;;  %v400_v5 = vld [vmem:[%s522_s1 + $0x10] sm:$0xff]  }
   0x3   :  { %352 = vmatpush3.bf16.msra.mxu0 %v396_v1  ;;  %387 = vmatpush3.bf16.msra.mxu1 %v396_v1  ;;  %v401_v6 = vld [vmem:[%s522_s1 + $0x58] sm:$0xff]   ;;  %v403_v8 = vld [vmem:[%s522_s1 + $0x60] sm:$0xff]   ;;  %v405_v10 = vld [vmem:[%s522_s1 + $0x68] sm:$0xff]  }
   0x4   :  { %353 = vmatprep.subr.bf16.mxu0 %v397_v2  ;;  %380 = vmatprep.subr.bf16.mxu1 %v397_v2  ;;  %v402_v7 = vld [vmem:[%s522_s1 + $0x18] sm:$0xff]   ;;  %v404_v9 = vld [vmem:[%s522_s1 + $0x20] sm:$0xff]   ;;  %v406_v13 = vld [vmem:[%s522_s1 + $0x28] sm:$0xff]  }
   0x5   :  { %v413_v11 = vld [vmem:[%s523_s0 + $0x4] ss:$8 sps:$4 sm:$0xff]   ;;  %v416_v12 = vld [vmem:[%s523_s0 + $0x14] ss:$8 sps:$4 sm:$0xff]   ;;  %v411_v18 = vld [vmem:[%s523_s0] ss:$8 sps:$4 sm:$0xff]  }
   0x6   :  { %v407_v14 = vld [vmem:[%s522_s1 + $0x70] sm:$0xff]   ;;  %202 = vmatprep.mubr.bf16.mxu0 %v413_v11  ;;  %210 = vmatprep.mubr.bf16.mxu1 %v416_v12  ;;  %v409_v16 = vld [vmem:[%s522_s1 + $0x78] sm:$0xff]   ;;  %v330_v62 = vld [vmem:[%s524_s2] ss:$0 sm:$0xff] }
   0x7   :  { %354 = vmatpush3.bf16.msra.mxu0 %v398_v3  ;;  %388 = vmatpush3.bf16.msra.mxu1 %v398_v3  ;;  %v408_v15 = vld [vmem:[%s522_s1 + $0x30] sm:$0xff]   ;;  %v410_v17 = vld [vmem:[%s522_s1 + $0x38] sm:$0xff]   ;;  %v331_v3 = vld [vmem:[%s525_s3] ss:$0 sm:$0xff] }
   0x8   :  { %355 = vmatprep.subr.bf16.mxu0 %v399_v4  ;;  %381 = vmatprep.subr.bf16.mxu1 %v399_v4  ;;  %v414_v19 = vld [vmem:[%s523_s0 + $0x10] ss:$8 sps:$4 sm:$0xff]  }
   0xb   :  { %356 = vmatpush3.bf16.msra.mxu0 %v400_v5  ;;  %389 = vmatpush3.bf16.msra.mxu1 %v400_v5 }
   0xc   :  { %357 = vmatprep.subr.bf16.mxu0 %v401_v6  ;;  %382 = vmatprep.subr.bf16.mxu1 %v401_v6 }
   0xf   :  { %358 = vmatpush3.bf16.msra.mxu0 %v402_v7  ;;  %390 = vmatpush3.bf16.msra.mxu1 %v402_v7 }
  0x10   :  { %359 = vmatprep.subr.bf16.mxu0 %v403_v8  ;;  %383 = vmatprep.subr.bf16.mxu1 %v403_v8 }
  0x13   :  { %360 = vmatpush3.bf16.msra.mxu0 %v404_v9  ;;  %391 = vmatpush3.bf16.msra.mxu1 %v404_v9 }
  0x14   :  { %361 = vmatprep.subr.bf16.mxu0 %v405_v10  ;;  %384 = vmatprep.subr.bf16.mxu1 %v405_v10 }
  0x17   :  { %362 = vmatpush3.bf16.msra.mxu0 %v406_v13  ;;  %392 = vmatpush3.bf16.msra.mxu1 %v406_v13 }
  0x18   :  { %363 = vmatprep.subr.bf16.mxu0 %v407_v14  ;;  %385 = vmatprep.subr.bf16.mxu1 %v407_v14 }
  0x1b   :  { %364 = vmatpush3.bf16.msra.mxu0 %v408_v15  ;;  %393 = vmatpush3.bf16.msra.mxu1 %v408_v15 }
  0x1c   :  { %365 = vmatprep.subr.bf16.mxu0 %v409_v16  ;;  %386 = vmatprep.subr.bf16.mxu1 %v409_v16 }
  0x1f   :  { %366 = vmatpush3.bf16.msra.mxu0 %v410_v17  ;;  %394 = vmatpush3.bf16.msra.mxu1 %v410_v17 }
  0x22   :  { %203 = vmatmul.mubr.bf16.vlgmr.msra.gmra.mrb[0].mxu0 %v411_v18  ;;  %211 = vmatmul.mubr.bf16.vlgmr.msra.gmra.mrb[0].mxu1 %v414_v19 }
  0xf5   :  { %v367_v20 = vpop.f32.mrb[0].mxu0  ;;  %v373_v21 = vpop.f32.mrb[0].mxu1 }
  0xf6   :  { %v368_v22 = vpop.f32.mrb[1].mxu0  ;;  %v374_v23 = vpop.f32.mrb[1].mxu1 }
  0xf7   :  { %v369_v24 = vadd.f32 %v368_v22, %v367_v20  ;;  %v375_v25 = vadd.f32 %v374_v23, %v373_v21  ;;  %v370_v26 = vpop.f32.mrb[2].mxu0  ;;  %v376_v27 = vpop.f32.mrb[2].mxu1 }
  0xf8   :  { %v371_v28 = vpop.f32.mrb[3].mxu0  ;;  %v377_v29 = vpop.f32.mrb[3].mxu1 }
  0xf9   :  { %v372_v30 = vadd.f32 %v371_v28, %v370_v26  ;;  %v378_v31 = vadd.f32 %v377_v29, %v376_v27  ;;  %223 = vadd.xlane.f32.xlu1 %v375_v25  ;;  %219 = vadd.xlane.f32.xlu0 %v369_v24 }
  0xfd   :  { %225 = vadd.xlane.f32.xlu1 %v378_v31  ;;  %221 = vadd.xlane.f32.xlu0 %v372_v30 }
 0x186   :  { %v224_v32 = vpop.xlane.xlu1 %223  ;;  %v220_v33 = vpop.xlane.xlu0 %219 }
 0x187   :  { %v230_v34 = vmul.f32 0.0078125, %v224_v32  ;;  %v228_v35 = vmul.f32 0.0078125, %v220_v33 }
 0x189   :  { %v232_v36 = vsub.f32 %v369_v24, %v228_v35  ;;  %v234_v39 = vsub.f32 %v375_v25, %v230_v34 }
 0x18a   :  { %v226_v37 = vpop.xlane.xlu1 %225  ;;  %v222_v38 = vpop.xlane.xlu0 %221 }
 0x18b   :  { %v231_v40 = vmul.f32 0.0078125, %v226_v37  ;;  %v229_v41 = vmul.f32 0.0078125, %v222_v38  ;;  %v236_v42 = vmul.f32 %v232_v36, %v232_v36  ;;  %v238_v45 = vmul.f32 %v234_v39, %v234_v39 }
 0x18d   :  { %v233_v43 = vsub.f32 %v372_v30, %v229_v41  ;;  %240 = vadd.xlane.f32.xlu0 %v236_v42  ;;  %v235_v44 = vsub.f32 %v378_v31, %v231_v40 }
 0x18f   :  { %v237_v46 = vmul.f32 %v233_v43, %v233_v43  ;;  %v239_v47 = vmul.f32 %v235_v44, %v235_v44 }
 0x191   :  { %244 = vadd.xlane.f32.xlu0 %v238_v45  ;;  %242 = vadd.xlane.f32.xlu1 %v237_v46 }
 0x195   :  { %246 = vadd.xlane.f32.xlu1 %v239_v47 }
 0x21a   :  { %v241_v48 = vpop.xlane.xlu0 %240 }
 0x21b   :  { %v248_v49 = vmul.f32 0.0078125, %v241_v48 }
 0x21d   :  { %v252_v50 = vadd.f32 1e-06, %v248_v49 }
 0x21e   :  { %v243_v51 = vpop.xlane.xlu1 %242  ;;  %v245_v52 = vpop.xlane.xlu0 %244 }
 0x21f   :  { %417 = vrsqrt.f32 %v252_v50  ;;  %v249_v53 = vmul.f32 0.0078125, %v243_v51  ;;  %v250_v54 = vmul.f32 0.0078125, %v245_v52 }
 0x221   :  { %v253_v55 = vadd.f32 1e-06, %v249_v53  ;;  %v254_v56 = vadd.f32 1e-06, %v250_v54 }
 0x222   :  { %v247_v57 = vpop.xlane.xlu1 %246 }
 0x223   :  { %419 = vrsqrt.f32 %v253_v55  ;;  %v251_v58 = vmul.f32 0.0078125, %v247_v57 }
 0x224   :  { %421 = vrsqrt.f32 %v254_v56 }
 0x225   :  { %v255_v59 = vadd.f32 1e-06, %v251_v58 }
 0x227   :  { %423 = vrsqrt.f32 %v255_v59 }
 0x229   :  { %v418_v60 = vpop.eup %417 }
 0x22a   :  { %v260_v61 = vmul.f32 %v418_v60, %v232_v36 }
 0x22c   :  { %v271_v1 = vmul.f32 %v330_v62, %v260_v61 }
 0x22d   :  { %v420_v63 = vpop.eup %419 }
 0x22e   :  { %v422_v0 = vpop.eup %421  ;;  %v261_v2 = vmul.f32 %v420_v63, %v233_v43  ;;  %v282_v7 = vadd.f32 %v331_v3, %v271_v1 }
 0x22f   :  { %v262_v4 = vmul.f32 %v422_v0, %v234_v39 }
 0x230   :  { %v272_v5 = vmul.f32 %v330_v62, %v261_v2 }
 0x231   :  { %v424_v6 = vpop.eup %423  ;;  %v273_v9 = vmul.f32 %v330_v62, %v262_v4 }
 0x232   :  { %v283_v8 = vadd.f32 %v331_v3, %v272_v5  ;;  %v263_v10 = vmul.f32 %v424_v6, %v235_v44 }
 0x233   :  { %v284_v13 = vadd.f32 %v331_v3, %v273_v9 }
 0x234   :  { %v343_v11 = vpack.c.bf16 %v283_v8, %v282_v7  ;;  %v274_v12 = vmul.f32 %v330_v62, %v263_v10 }
 0x236   :  { %344 = vst [vmem:[%s526_s4] sm:$0xff] %v343_v11   ;;  %v285_v14 = vadd.f32 %v331_v3, %v274_v12 }
 0x238   :  { %v348_v15 = vpack.c.bf16 %v285_v14, %v284_v13 }
 0x23a   :  { %350 = vst [vmem:[%s526_s4 + $0x8] sm:$0xff] %v348_v15  }

// kernel: sam_encoder_forward.18
= control target key start
LH: loop header
LB: loop body
LE: loop exit
PB: predicated region body
PF: predicated region fallthrough
CT: control target
= control target key end

     0   :  { %s1463_s15 = smov 0   ;;  %s1465_s16 = smov 0   ;;  %s1657_s0 = inlined_call_operand.vmem [shape: bf16[32,1024], index: 0, kind: input, shape index: {}]   ;;  %s1658_s1 = inlined_call_operand.vmem [shape: bf16[1024,256], index: 1, kind: input, shape index: {}]   ;;  %s1659_s2 = inlined_call_operand.vmem [shape: f32[1,256], index: 2, kind: input, shape index: {}]   ;;  %s1660_s3 = inlined_call_operand.vmem [shape: f32[32,256], index: 3, kind: input, shape index: {}]   ;;  %s1661_s4 = inlined_call_operand.vmem [shape: f32[32,256], index: 4, kind: output, shape index: {}]  }
   0x1   :  { %s1467_s17 = smov 0   ;;  %s1469_s18 = smov 0  }
   0x2   :  { %s1471_s19 = smov 0  }
   0x3 LB: > { %s26_s20 = sadd.s32 1, %s1431_s18  ;;  %p49_p1 = scmp.ne.s32.totalorder %s1423_s16, %s1419_s15  ;;  %s1435_s19 = sphi %s1471_s19, %s14_s19   ;;  %s1431_s18 = sphi %s1469_s18, %s1665_s18   ;;  %s1427_s17 = sphi %s1467_s17, %s1664_s17   ;;  %s1423_s16 = sphi %s1465_s16, %s1663_s16   ;;  %s1419_s15 = sphi %s1463_s15, %s1662_s15  }
   0x4   : > { %p27_p0 = scmp.ge.s32.totalorder %s26_s20, 2  ;;  %p50_p2 = scmp.eq.s32.totalorder %s1435_s19, 0 }
   0x5   : > { %s42_s22 = sadd.s32 1, %s1423_s16  ;;  %p1151_p5 = scmp.ge.s32.totalorder %s1435_s19, 2 }
   0x6   : > { %s1667_s20 = smov (%p27_p0, %s26_s20), 0  ;;  %p51_p3 = por %p50_p2, %p49_p1 }
   0x7   : > { %s38_s21 = ssub.s32 %s1431_s18, %s1667_s20  ;;  %208 = sbr.rel (%p1151_p5) target bundleno = 22 (0x16), region = 24 }
   0x8   : > { %p40_p4 = scmp.eq.s32.totalorder %s38_s21, 0 }
   0xa   : > { %s1498_s23 = scalar_select %p40_p4, %s1423_s16, %s42_s22  }
   0xe   : > { %211 = sbr.rel (!%p51_p3) target bundleno = 22 (0x16), region = 28  ;;  %s213_s24 = sand.u32 (%p51_p3), 1, %s1423_s16  }
   0xf   : > { %s1238_s25 = sshll.u32 (%p51_p3), %s1431_s18, 4  ;;  %s1152_s26 = sshll.u32 (%p51_p3), %s213_s24, 6 }
  0x10   : > { %s221_s29 = scalar_lea.vmem (%p51_p3), %s1657_s0, %s1238_s25  ;;  %s215_s30 = scalar_lea.vmem (%p51_p3), [#allocation3], %s1152_s26 }
  0x11   : > { %v234_v0 = vld [vmem:[%s221_s29] sm:$0xff] (%p51_p3)  ;;  %v236_v1 = vld [vmem:[%s221_s29 + $0x8] sm:$0xff] (%p51_p3) }
  0x12   : > { %v238_v2 = vld [vmem:[%s221_s29 + $0x20] sm:$0xff] (%p51_p3)  ;;  %235 = vst [vmem:[%s215_s30] sm:$0xff] (%p51_p3), %v234_v0  ;;  %237 = vst [vmem:[%s215_s30 + $0x8] sm:$0xff] (%p51_p3), %v236_v1  ;;  %v240_v3 = vld [vmem:[%s221_s29 + $0x28] sm:$0xff] (%p51_p3) }
  0x13   : > { %239 = vst [vmem:[%s215_s30 + $0x10] sm:$0xff] (%p51_p3), %v238_v2  ;;  %v242_v4 = vld [vmem:[%s221_s29 + $0x40] sm:$0xff] (%p51_p3)  ;;  %v244_v5 = vld [vmem:[%s221_s29 + $0x48] sm:$0xff] (%p51_p3)  ;;  %241 = vst [vmem:[%s215_s30 + $0x18] sm:$0xff] (%p51_p3), %v240_v3 }
  0x14   : > { %243 = vst [vmem:[%s215_s30 + $0x20] sm:$0xff] (%p51_p3), %v242_v4  ;;  %245 = vst [vmem:[%s215_s30 + $0x28] sm:$0xff] (%p51_p3), %v244_v5  ;;  %v246_v6 = vld [vmem:[%s221_s29 + $0x60] sm:$0xff] (%p51_p3)  ;;  %v248_v7 = vld [vmem:[%s221_s29 + $0x68] sm:$0xff] (%p51_p3) }
  0x15   : > { %247 = vst [vmem:[%s215_s30 + $0x30] sm:$0xff] %v246_v6  ;;  %249 = vst [vmem:[%s215_s30 + $0x38] sm:$0xff] %v248_v7 }
  0x16 PF: > { %p1155_p6 = scmp.ge.s32.totalorder %s1435_s19, 1  ;;  %p269_p7 = scmp.lt.s32.totalorder %s1435_s19, 3 }
  0x18   : > { %p270_p8 = pnand %p1155_p6, %p269_p7 }
  0x19   : > { %s276_s5 = sand.u32 (!%p270_p8), 1, %s1419_s15   ;;  %s1157_s6 = sshll.u32 (!%p270_p8), %s1427_s17, 6 }
  0x1a   : > { %273 = sbr.rel (%p270_p8) target bundleno = 346 (0x15a), region = 55  ;;  %s1156_s7 = sshll.u32 (!%p270_p8), %s276_s5, 6 }
  0x1b   : > { %p334_p9 = scmp.lt.s32.totalorder (!%p270_p8), %s1157_s6, 127  ;;  %s1515_s12 = scalar_lea.vmem (!%p270_p8), [#allocation3], %s1156_s7 }
  0x1c   : > { %p1160_p10 = scmp.ne.s32.totalorder (!%p270_p8), %s1427_s17, 0 }
  0x21   : > { %s1669_s6 = smov (!%p334_p9, %s1157_s6), 127  ;;  %376 = sbr.rel (%p1160_p10) target bundleno = 40 (0x28), region = 63 }
  0x22   : > { %s1239_s8 = sshll.u32 %s1669_s6, 3  ;;  %v1437_v8 = vmov (!%p1160_p10), 0.0  }
  0x23   : > { %s1513_s11 = scalar_lea.vmem %s1658_s1, %s1239_s8  ;;  %377 = vst [vmem:[#allocation2] sm:$0xff] (!%p1160_p10), %v1437_v8  ;;  %378 = vst [vmem:[#allocation2 + $0x8] sm:$0xff] (!%p1160_p10), %v1437_v8 }
  0x24   : > { %379 = vst [vmem:[#allocation2 + $0x10] sm:$0xff] (!%p1160_p10), %v1437_v8  ;;  %380 = vst [vmem:[#allocation2 + $0x18] sm:$0xff] (!%p1160_p10), %v1437_v8 }
  0x25   : > { %381 = vst [vmem:[#allocation2 + $0x20] sm:$0xff] (!%p1160_p10), %v1437_v8  ;;  %382 = vst [vmem:[#allocation2 + $0x28] sm:$0xff] (!%p1160_p10), %v1437_v8 }
  0x26   : > { %383 = vst [vmem:[#allocation2 + $0x30] sm:$0xff] (!%p1160_p10), %v1437_v8  ;;  %384 = vst [vmem:[#allocation2 + $0x38] sm:$0xff] (!%p1160_p10), %v1437_v8 }
  0x28 PF: > { %v1289_v9 = vld [vmem:[%s1513_s11 + $0x4] ss:$8 sps:$4 sm:$0xff]   ;;  %v1293_v11 = vld [vmem:[%s1513_s11] ss:$8 sps:$4 sm:$0xff]   ;;  %v1295_v13 = vld [vmem:[%s1513_s11 + $0x14] ss:$8 sps:$4 sm:$0xff]  }
  0x29   : > { %v1291_v10 = vld [vmem:[%s1513_s11 + $0x104] ss:$8 sps:$4 sm:$0xff]   ;;  %825 = vmatprep.subr.bf16.mxu1 %v1289_v9  ;;  %v1294_v12 = vld [vmem:[%s1513_s11 + $0x100] ss:$8 sps:$4 sm:$0xff]   ;;  %v1297_v14 = vld [vmem:[%s1513_s11 + $0x114] ss:$8 sps:$4 sm:$0xff]  }
  0x2a   : > { %878 = vmatprep.subr.bf16.mxu0 %v1291_v10  ;;  %826 = vmatpush1.bf16.msra.mxu1 %v1293_v11  ;;  %v1299_v15 = vld [vmem:[%s1513_s11 + $0x10] ss:$8 sps:$4 sm:$0xff]   ;;  %v1301_v17 = vld [vmem:[%s1513_s11 + $0x24] ss:$8 sps:$4 sm:$0xff]   ;;  %v1305_v19 = vld [vmem:[%s1513_s11 + $0x20] ss:$8 sps:$4 sm:$0xff]  }
  0x2b   : > { %879 = vmatpush1.bf16.msra.mxu0 %v1294_v12  ;;  %827 = vmatprep.subr.bf16.mxu1 %v1295_v13  ;;  %v1300_v16 = vld [vmem:[%s1513_s11 + $0x110] ss:$8 sps:$4 sm:$0xff]   ;;  %v1303_v18 = vld [vmem:[%s1513_s11 + $0x124] ss:$8 sps:$4 sm:$0xff]   ;;  %v1306_v20 = vld [vmem:[%s1513_s11 + $0x120] ss:$8 sps:$4 sm:$0xff]  }
  0x2c   : > { %880 = vmatprep.subr.bf16.mxu0 %v1297_v14  ;;  %v1307_v21 = vld [vmem:[%s1513_s11 + $0x34] ss:$8 sps:$4 sm:$0xff]   ;;  %v1311_v23 = vld [vmem:[%s1513_s11 + $0x30] ss:$8 sps:$4 sm:$0xff]   ;;  %v1313_v25 = vld [vmem:[%s1513_s11 + $0x44] ss:$8 sps:$4 sm:$0xff]  }
  0x2d   : > { %v1309_v22 = vld [vmem:[%s1513_s11 + $0x134] ss:$8 sps:$4 sm:$0xff]   ;;  %v1312_v24 = vld [vmem:[%s1513_s11 + $0x130] ss:$8 sps:$4 sm:$0xff]   ;;  %v1315_v26 = vld [vmem:[%s1513_s11 + $0x144] ss:$8 sps:$4 sm:$0xff]  }
  0x2e   : > { %828 = vmatpush1.bf16.msra.mxu1 %v1299_v15  ;;  %v1317_v27 = vld [vmem:[%s1513_s11 + $0x40] ss:$8 sps:$4 sm:$0xff]   ;;  %v1319_v29 = vld [vmem:[%s1513_s11 + $0x54] ss:$8 sps:$4 sm:$0xff]   ;;  %v1323_v31 = vld [vmem:[%s1513_s11 + $0x50] ss:$8 sps:$4 sm:$0xff]  }
  0x2f   : > { %881 = vmatpush1.bf16.msra.mxu0 %v1300_v16  ;;  %829 = vmatprep.subr.bf16.mxu1 %v1301_v17  ;;  %v1318_v28 = vld [vmem:[%s1513_s11 + $0x140] ss:$8 sps:$4 sm:$0xff]   ;;  %v1321_v30 = vld [vmem:[%s1513_s11 + $0x154] ss:$8 sps:$4 sm:$0xff]   ;;  %v1324_v32 = vld [vmem:[%s1513_s11 + $0x150] ss:$8 sps:$4 sm:$0xff]  }
  0x30   : > { %882 = vmatprep.subr.bf16.mxu0 %v1303_v18  ;;  %v1325_v33 = vld [vmem:[%s1513_s11 + $0x64] ss:$8 sps:$4 sm:$0xff]   ;;  %v1329_v35 = vld [vmem:[%s1513_s11 + $0x60] ss:$8 sps:$4 sm:$0xff]   ;;  %v1331_v37 = vld [vmem:[%s1513_s11 + $0x74] ss:$8 sps:$4 sm:$0xff]  }
  0x31   : > { %v1327_v34 = vld [vmem:[%s1513_s11 + $0x164] ss:$8 sps:$4 sm:$0xff]   ;;  %v1330_v36 = vld [vmem:[%s1513_s11 + $0x160] ss:$8 sps:$4 sm:$0xff]   ;;  %v1333_v38 = vld [vmem:[%s1513_s11 + $0x174] ss:$8 sps:$4 sm:$0xff]  }
  0x32   : > { %830 = vmatpush1.bf16.msra.mxu1 %v1305_v19  ;;  %v1335_v39 = vld [vmem:[%s1513_s11 + $0x70] ss:$8 sps:$4 sm:$0xff]   ;;  %v1337_v41 = vld [vmem:[%s1513_s11 + $0x84] ss:$8 sps:$4 sm:$0xff]   ;;  %v1341_v43 = vld [vmem:[%s1513_s11 + $0x80] ss:$8 sps:$4 sm:$0xff]  }
  0x33   : > { %883 = vmatpush1.bf16.msra.mxu0 %v1306_v20  ;;  %831 = vmatprep.subr.bf16.mxu1 %v1307_v21  ;;  %v1336_v40 = vld [vmem:[%s1513_s11 + $0x170] ss:$8 sps:$4 sm:$0xff]   ;;  %v1339_v42 = vld [vmem:[%s1513_s11 + $0x184] ss:$8 sps:$4 sm:$0xff]   ;;  %v1342_v44 = vld [vmem:[%s1513_s11 + $0x180] ss:$8 sps:$4 sm:$0xff]  }
  0x34   : > { %884 = vmatprep.subr.bf16.mxu0 %v1309_v22  ;;  %v1343_v45 = vld [vmem:[%s1513_s11 + $0x94] ss:$8 sps:$4 sm:$0xff]   ;;  %v1347_v47 = vld [vmem:[%s1513_s11 + $0x90] ss:$8 sps:$4 sm:$0xff]   ;;  %v1349_v49 = vld [vmem:[%s1513_s11 + $0xa4] ss:$8 sps:$4 sm:$0xff]  }
  0x35   : > { %v1345_v46 = vld [vmem:[%s1513_s11 + $0x194] ss:$8 sps:$4 sm:$0xff]   ;;  %v1348_v48 = vld [vmem:[%s1513_s11 + $0x190] ss:$8 sps:$4 sm:$0xff]   ;;  %v1351_v50 = vld [vmem:[%s1513_s11 + $0x1a4] ss:$8 sps:$4 sm:$0xff]  }
  0x36   : > { %832 = vmatpush1.bf16.msra.mxu1 %v1311_v23  ;;  %v1353_v51 = vld [vmem:[%s1513_s11 + $0xa0] ss:$8 sps:$4 sm:$0xff]   ;;  %v1355_v53 = vld [vmem:[%s1513_s11 + $0xb4] ss:$8 sps:$4 sm:$0xff]   ;;  %v1359_v55 = vld [vmem:[%s1513_s11 + $0xb0] ss:$8 sps:$4 sm:$0xff]  }
  0x37   : > { %885 = vmatpush1.bf16.msra.mxu0 %v1312_v24  ;;  %833 = vmatprep.subr.bf16.mxu1 %v1313_v25  ;;  %v1354_v52 = vld [vmem:[%s1513_s11 + $0x1a0] ss:$8 sps:$4 sm:$0xff]   ;;  %v1357_v54 = vld [vmem:[%s1513_s11 + $0x1b4] ss:$8 sps:$4 sm:$0xff]   ;;  %v1360_v56 = vld [vmem:[%s1513_s11 + $0x1b0] ss:$8 sps:$4 sm:$0xff]  }
  0x38   : > { %886 = vmatprep.subr.bf16.mxu0 %v1315_v26  ;;  %v1361_v57 = vld [vmem:[%s1513_s11 + $0xc4] ss:$8 sps:$4 sm:$0xff]   ;;  %v1365_v61 = vld [vmem:[%s1513_s11 + $0xc0] ss:$8 sps:$4 sm:$0xff]   ;;  %v1367_v63 = vld [vmem:[%s1513_s11 + $0xd4] ss:$8 sps:$4 sm:$0xff]  }
  0x39   : > { %v1387_v58 = vld [vmem:[%s1515_s12 + $0x4] ss:$16 sps:$4 sm:$0xff]   ;;  %v1390_v60 = vld [vmem:[%s1515_s12 + $0xc] ss:$16 sps:$4 sm:$0xff]   ;;  %v1366_v62 = vld [vmem:[%s1513_s11 + $0x1c0] ss:$8 sps:$4 sm:$0xff]  }
  0x3a   : > { %834 = vmatpush1.bf16.msra.mxu1 %v1317_v27  ;;  %v1363_v59 = vld [vmem:[%s1513_s11 + $0x1c4] ss:$8 sps:$4 sm:$0xff]   ;;  %857 = vmatprep.mubr.bf16.mxu1 %v1387_v58  ;;  %v1369_v0 = vld [vmem:[%s1513_s11 + $0x1d4] ss:$8 sps:$4 sm:$0xff]   ;;  %v1371_v1 = vld [vmem:[%s1513_s11 + $0xd0] ss:$8 sps:$4 sm:$0xff]  }
  0x3b   : > { %887 = vmatpush1.bf16.msra.mxu0 %v1318_v28  ;;  %835 = vmatprep.subr.bf16.mxu1 %v1319_v29  ;;  %v1372_v2 = vld [vmem:[%s1513_s11 + $0x1d0] ss:$8 sps:$4 sm:$0xff]   ;;  %v1373_v3 = vld [vmem:[%s1513_s11 + $0xe4] ss:$8 sps:$4 sm:$0xff]   ;;  %v1377_v5 = vld [vmem:[%s1513_s11 + $0xe0] ss:$8 sps:$4 sm:$0xff]  }
  0x3c   : > { %888 = vmatprep.subr.bf16.mxu0 %v1321_v30  ;;  %910 = vmatprep.mubr.bf16.mxu0 %v1390_v60  ;;  %v1375_v4 = vld [vmem:[%s1513_s11 + $0x1e4] ss:$8 sps:$4 sm:$0xff]   ;;  %v1378_v6 = vld [vmem:[%s1513_s11 + $0x1e0] ss:$8 sps:$4 sm:$0xff]   ;;  %v1379_v7 = vld [vmem:[%s1513_s11 + $0xf4] ss:$8 sps:$4 sm:$0xff]  }
  0x3d   : > { %v1381_v8 = vld [vmem:[%s1513_s11 + $0x1f4] ss:$8 sps:$4 sm:$0xff]   ;;  %v1383_v9 = vld [vmem:[%s1513_s11 + $0xf0] ss:$8 sps:$4 sm:$0xff]   ;;  %v385_v18 = vld [vmem:[#allocation2] sm:$0xff]  ;;  %p1233_p11 = scmp.ne.s32.totalorder %s1427_s17, 1 }
  0x3e   : > { %836 = vmatpush1.bf16.msra.mxu1 %v1323_v31  ;;  %v1384_v10 = vld [vmem:[%s1513_s11 + $0x1f0] ss:$8 sps:$4 sm:$0xff]   ;;  %v1391_v13 = vld [vmem:[%s1515_s12 + $0x24] ss:$16 sps:$4 sm:$0xff]   ;;  %v1393_v14 = vld [vmem:[%s1515_s12 + $0x2c] ss:$16 sps:$4 sm:$0xff]  }
  0x3f   : > { %889 = vmatpush1.bf16.msra.mxu0 %v1324_v32  ;;  %837 = vmatprep.subr.bf16.mxu1 %v1325_v33  ;;  %v1385_v11 = vld [vmem:[%s1515_s12] ss:$16 sps:$4 sm:$0xff]   ;;  %v1388_v12 = vld [vmem:[%s1515_s12 + $0x8] ss:$16 sps:$4 sm:$0xff]  }
  0x40   : > { %890 = vmatprep.subr.bf16.mxu0 %v1327_v34  ;;  %v1395_v15 = vld [vmem:[%s1515_s12 + $0x20] ss:$16 sps:$4 sm:$0xff]   ;;  %v1396_v16 = vld [vmem:[%s1515_s12 + $0x28] ss:$16 sps:$4 sm:$0xff]  }
  0x41   : > { %v386_v22 = vld [vmem:[#allocation2 + $0x8] sm:$0xff]  ;;  %v387_v26 = vld [vmem:[#allocation2 + $0x10] sm:$0xff]  ;;  %v388_v31 = vld [vmem:[#allocation2 + $0x18] sm:$0xff] }
  0x42   : > { %838 = vmatpush1.bf16.msra.mxu1 %v1329_v35 }
  0x43   : > { %891 = vmatpush1.bf16.msra.mxu0 %v1330_v36  ;;  %839 = vmatprep.subr.bf16.mxu1 %v1331_v37 }
  0x44   : > { %892 = vmatprep.subr.bf16.mxu0 %v1333_v38  ;;  %v389_v38 = vld [vmem:[#allocation2 + $0x20] sm:$0xff] }
  0x46   : > { %840 = vmatpush1.bf16.msra.mxu1 %v1335_v39 }
  0x47   : > { %893 = vmatpush1.bf16.msra.mxu0 %v1336_v40  ;;  %841 = vmatprep.subr.bf16.mxu1 %v1337_v41 }
  0x48   : > { %894 = vmatprep.subr.bf16.mxu0 %v1339_v42  ;;  %v390_v42 = vld [vmem:[#allocation2 + $0x28] sm:$0xff] }
  0x4a   : > { %842 = vmatpush1.bf16.msra.mxu1 %v1341_v43 }
  0x4b   : > { %895 = vmatpush1.bf16.msra.mxu0 %v1342_v44  ;;  %843 = vmatprep.subr.bf16.mxu1 %v1343_v45 }
  0x4c   : > { %896 = vmatprep.subr.bf16.mxu0 %v1345_v46  ;;  %v391_v46 = vld [vmem:[#allocation2 + $0x30] sm:$0xff] }
  0x4e   : > { %844 = vmatpush1.bf16.msra.mxu1 %v1347_v47 }
  0x4f   : > { %897 = vmatpush1.bf16.msra.mxu0 %v1348_v48  ;;  %845 = vmatprep.subr.bf16.mxu1 %v1349_v49 }
  0x50   : > { %898 = vmatprep.subr.bf16.mxu0 %v1351_v50 }
  0x52   : > { %846 = vmatpush1.bf16.msra.mxu1 %v1353_v51  ;;  %v392_v51 = vld [vmem:[#allocation2 + $0x38] sm:$0xff] }
  0x53   : > { %899 = vmatpush1.bf16.msra.mxu0 %v1354_v52  ;;  %847 = vmatprep.subr.bf16.mxu1 %v1355_v53 }
  0x54   : > { %900 = vmatprep.subr.bf16.mxu0 %v1357_v54 }
  0x56   : > { %848 = vmatpush1.bf16.msra.mxu1 %v1359_v55 }
  0x57   : > { %901 = vmatpush1.bf16.msra.mxu0 %v1360_v56  ;;  %849 = vmatprep.subr.bf16.mxu1 %v1361_v57  ;;  %v961_v57 = vlaneseq (!%p1233_p11) }
  0x58   : > { %902 = vmatprep.subr.bf16.mxu0 %v1363_v59  ;;  %v959_v59 = vld [vmem:[%s1659_s2] sm:$0x3] (!%p1233_p11) }
  0x59   : > { %v962_v58 = vshrl.u32 (!%p1233_p11), %v961_v57, 7 }
  0x5a   : > { %850 = vmatpush1.bf16.msra.mxu1 %v1365_v61 }
  0x5b   : > { %903 = vmatpush1.bf16.msra.mxu0 %v1366_v62  ;;  %851 = vmatprep.subr.bf16.mxu1 %v1367_v63  ;;  %v963_v61 = vsub.s32 (!%p1233_p11), 0, %v962_v58  ;;  %v967_v63 = vsub.s32 (!%p1233_p11), 1, %v962_v58 }
  0x5c   : > { %904 = vmatprep.subr.bf16.mxu0 %v1369_v0  ;;  %v979_v0 = vld [vmem:[%s1660_s3] sm:$0xff] (!%p1233_p11) }
  0x5e   : > { %852 = vmatpush1.bf16.msra.mxu1 %v1371_v1  ;;  %v980_v1 = vld [vmem:[%s1660_s3 + $0x8] sm:$0xff] (!%p1233_p11) }
  0x5f   : > { %905 = vmatpush1.bf16.msra.mxu0 %v1372_v2  ;;  %853 = vmatprep.subr.bf16.mxu1 %v1373_v3 }
  0x60   : > { %906 = vmatprep.subr.bf16.mxu0 %v1375_v4 }
  0x62   : > { %854 = vmatpush1.bf16.msra.mxu1 %v1377_v5  ;;  %v964_v5 = vrot.slane (!%p1233_p11), %v959_v59, %v963_v61 }
  0x63   : > { %907 = vmatpush1.bf16.msra.mxu0 %v1378_v6  ;;  %855 = vmatprep.subr.bf16.mxu1 %v1379_v7  ;;  %v968_v6 = vrot.slane (!%p1233_p11), %v959_v59, %v967_v63 }
  0x64   : > { %908 = vmatprep.subr.bf16.mxu0 %v1381_v8 }
  0x66   : > { %856 = vmatpush1.bf16.msra.mxu1 %v1383_v9 }
  0x67   : > { %909 = vmatpush1.bf16.msra.mxu0 %v1384_v10  ;;  %v981_v10 = vld [vmem:[%s1660_s3 + $0x10] sm:$0xff] (!%p1233_p11) }
  0x69   : > { %858 = vmatmul.mubr.bf16.vlgmr.msra.gmra.mrb[0].mxu1 %v1385_v11  ;;  %v982_v11 = vld [vmem:[%s1660_s3 + $0x18] sm:$0xff] (!%p1233_p11) }
  0x6a   : > { %911 = vmatmul.mubr.bf16.vlgmr.msra.gmra.mrb[0].mxu0 %v1388_v12  ;;  %867 = vmatprep.mubr.bf16.mxu1 %v1391_v13  ;;  %v983_v12 = vld [vmem:[%s1660_s3 + $0x20] sm:$0xff] (!%p1233_p11) }
  0x6b   : > { %920 = vmatprep.mubr.bf16.mxu0 %v1393_v14 }
  0x71   : > { %868 = vmatmul.mubr.bf16.gmra.mrb[4].mxu1 %v1395_v15 }
  0x72   : > { %921 = vmatmul.mubr.bf16.gmra.mrb[4].mxu0 %v1396_v16 }
 0x13c   : > { %v859_v17 = vpop.f32.mrb[0].mxu1 }
 0x13d   : > { %v912_v19 = vpop.f32.mrb[0].mxu0  ;;  %v861_v21 = vpop.f32.mrb[1].mxu1 }
 0x13e   : > { %v913_v20 = vadd.f32 %v912_v19, %v859_v17  ;;  %v914_v23 = vpop.f32.mrb[1].mxu0  ;;  %v863_v25 = vpop.f32.mrb[2].mxu1  ;;  %v984_v17 = vld [vmem:[%s1660_s3 + $0x28] sm:$0xff] (!%p1233_p11)  ;;  %v986_v19 = vld [vmem:[%s1660_s3 + $0x38] sm:$0xff] (!%p1233_p11) }
 0x13f   : > { %v915_v24 = vadd.f32 %v914_v23, %v861_v21  ;;  %v916_v27 = vpop.f32.mrb[2].mxu0  ;;  %v865_v30 = vpop.f32.mrb[3].mxu1 }
 0x140   : > { %v931_v28 = vadd.f32 %v913_v20, %v385_v18  ;;  %v917_v29 = vadd.f32 %v916_v27, %v863_v25  ;;  %v918_v32 = vpop.f32.mrb[3].mxu0  ;;  %v985_v18 = vld [vmem:[%s1660_s3 + $0x30] sm:$0xff] (!%p1233_p11) }
 0x141   : > { %v932_v33 = vadd.f32 %v915_v24, %v386_v22  ;;  %v919_v34 = vadd.f32 %v918_v32, %v865_v30 }
 0x142   : > { %939 = vst [vmem:[#allocation2] sm:$0xff] %v931_v28  ;;  %v933_v35 = vadd.f32 %v917_v29, %v387_v26 }
 0x143   : > { %940 = vst [vmem:[#allocation2 + $0x8] sm:$0xff] %v932_v33  ;;  %v934_v36 = vadd.f32 %v919_v34, %v388_v31 }
 0x144   : > { %941 = vst [vmem:[#allocation2 + $0x10] sm:$0xff] %v933_v35  ;;  %v869_v37 = vpop.f32.mrb[4].mxu1 }
 0x145   : > { %942 = vst [vmem:[#allocation2 + $0x18] sm:$0xff] %v934_v36  ;;  %v922_v39 = vpop.f32.mrb[4].mxu0  ;;  %v871_v41 = vpop.f32.mrb[5].mxu1 }
 0x146   : > { %v923_v40 = vadd.f32 %v922_v39, %v869_v37  ;;  %v924_v43 = vpop.f32.mrb[5].mxu0  ;;  %v873_v45 = vpop.f32.mrb[6].mxu1 }
 0x147   : > { %v925_v44 = vadd.f32 %v924_v43, %v871_v41  ;;  %v926_v47 = vpop.f32.mrb[6].mxu0  ;;  %v875_v50 = vpop.f32.mrb[7].mxu1  ;;  %950 = sbr.rel (%p1233_p11) target bundleno = 346 (0x15a), region = 67 }
 0x148   : > { %v935_v48 = vadd.f32 %v923_v40, %v389_v38  ;;  %v927_v49 = vadd.f32 %v926_v47, %v873_v45  ;;  %v928_v52 = vpop.f32.mrb[7].mxu0 }
 0x149   : > { %v936_v53 = vadd.f32 %v925_v44, %v390_v42  ;;  %v929_v54 = vadd.f32 %v928_v52, %v875_v50  ;;  %v951_v60 = vld [vmem:[#allocation2] sm:$0xff] (!%p1233_p11) }
 0x14a   : > { %943 = vst [vmem:[#allocation2 + $0x20] sm:$0xff] %v935_v48  ;;  %v937_v55 = vadd.f32 %v927_v49, %v391_v46  ;;  %v952_v62 = vld [vmem:[#allocation2 + $0x8] sm:$0xff] (!%p1233_p11)  ;;  %v971_v13 = vadd.f32 (!%p1233_p11), %v964_v5, %v951_v60 }
 0x14b   : > { %944 = vst [vmem:[#allocation2 + $0x28] sm:$0xff] %v936_v53  ;;  %v938_v56 = vadd.f32 %v929_v54, %v392_v51  ;;  %v953_v2 = vld [vmem:[#allocation2 + $0x10] sm:$0xff] (!%p1233_p11)  ;;  %v972_v14 = vadd.f32 (!%p1233_p11), %v968_v6, %v952_v62 }
 0x14c   : > { %945 = vst [vmem:[#allocation2 + $0x30] sm:$0xff] %v937_v55  ;;  %v954_v3 = vld [vmem:[#allocation2 + $0x18] sm:$0xff] (!%p1233_p11)  ;;  %v973_v15 = vadd.f32 (!%p1233_p11), %v964_v5, %v953_v2  ;;  %v987_v24 = vadd.f32 (!%p1233_p11), %v979_v0, %v971_v13 }
 0x14d   : > { %946 = vst [vmem:[#allocation2 + $0x38] sm:$0xff] %v938_v56  ;;  %v974_v16 = vadd.f32 (!%p1233_p11), %v968_v6, %v954_v3  ;;  %v988_v25 = vadd.f32 (!%p1233_p11), %v980_v1, %v972_v14 }
 0x14e   : > { %v989_v26 = vadd.f32 %v981_v10, %v973_v15  ;;  %995 = vst [vmem:[%s1661_s4] sm:$0xff] %v987_v24 }
 0x14f   : > { %v990_v27 = vadd.f32 %v982_v11, %v974_v16  ;;  %996 = vst [vmem:[%s1661_s4 + $0x8] sm:$0xff] %v988_v25 }
 0x150   : > { %997 = vst [vmem:[%s1661_s4 + $0x10] sm:$0xff] %v989_v26 }
 0x151   : > { %v955_v4 = vld [vmem:[#allocation2 + $0x20] sm:$0xff]  ;;  %998 = vst [vmem:[%s1661_s4 + $0x18] sm:$0xff] %v990_v27 }
 0x152   : > { %v956_v7 = vld [vmem:[#allocation2 + $0x28] sm:$0xff]  ;;  %v975_v20 = vadd.f32 %v964_v5, %v955_v4 }
 0x153   : > { %v957_v8 = vld [vmem:[#allocation2 + $0x30] sm:$0xff]  ;;  %v976_v21 = vadd.f32 %v968_v6, %v956_v7 }
 0x154   : > { %v958_v9 = vld [vmem:[#allocation2 + $0x38] sm:$0xff]  ;;  %v977_v22 = vadd.f32 %v964_v5, %v957_v8  ;;  %v991_v28 = vadd.f32 %v983_v12, %v975_v20 }
 0x155   : > { %v978_v23 = vadd.f32 %v968_v6, %v958_v9  ;;  %v992_v29 = vadd.f32 %v984_v17, %v976_v21 }
 0x156   : > { %v993_v30 = vadd.f32 %v985_v18, %v977_v22  ;;  %999 = vst [vmem:[%s1661_s4 + $0x20] sm:$0xff] %v991_v28 }
 0x157   : > { %v994_v31 = vadd.f32 %v986_v19, %v978_v23  ;;  %1000 = vst [vmem:[%s1661_s4 + $0x28] sm:$0xff] %v992_v29 }
 0x158   : > { %1001 = vst [vmem:[%s1661_s4 + $0x30] sm:$0xff] %v993_v30 }
 0x159   : > { %1002 = vst [vmem:[%s1661_s4 + $0x38] sm:$0xff] %v994_v31 }
 0x15a PF: > { %s14_s19 = sadd.s32 1, %s1435_s19   ;;  %s1662_s15 = smov %s1423_s16 }
 0x15b   : > { %p11_p12 = scmp.ge.s32.totalorder %s14_s19, 4   ;;  %s1663_s16 = smov %s1498_s23 }
 0x15c   : > { %s1664_s17 = smov %s1431_s18  ;;  %s1665_s18 = smov %s1667_s20 }
 0x15d   :  { %13 = sbr.rel (!%p11_p12) target bundleno = 3 (0x3), region = 111 }

// kernel: sam_encoder_forward.25
= control target key start
LH: loop header
LB: loop body
LE: loop exit
PB: predicated region body
PF: predicated region fallthrough
CT: control target
= control target key end

     0   :  { %9 = vsyncpa [#allocation3], 0  ;;  %s8164_s0 = inlined_call_operand.vmem [shape: bf16[2,6,6,128], index: 0, kind: input, shape index: {}]   ;;  %s8165_s1 = inlined_call_operand.vmem [shape: bf16[9,128,128], index: 1, kind: input, shape index: {}]   ;;  %s8166_s2 = inlined_call_operand.vmem [shape: f32[1,128], index: 2, kind: input, shape index: {}]   ;;  %s8167_s3 = inlined_call_operand.vmem [shape: f32[1,128], index: 3, kind: input, shape index: {}]   ;;  %s8168_s4 = inlined_call_operand.hbm [shape: f32[32,128], index: 4, kind: output, shape index: {}]  }
   0x1   :  { %11 = vsyncpa [#allocation3 + $0x1], 0  ;;  %s6699_s15 = smov 0   ;;  %s6701_s16 = smov 0  }
   0x2   :  { %s6703_s17 = smov 0   ;;  %s6705_s18 = smov 0  }
   0x3 LB: > { %s6720_s19 = sadd.s32 4294967295, %s6667_s18   ;;  %s4260_s20 = sadd.s32 4294967294, %s6667_s18   ;;  %s6667_s18 = sphi %s6705_s18, %s8174_s18   ;;  %s6663_s17 = sphi %s6703_s17, %s8173_s17   ;;  %s6659_s16 = sphi %s6701_s16, %s8172_s16   ;;  %s6655_s15 = sphi %s6699_s15, %s8171_s15  }
   0x4   : > { %s6724_s21 = sadd.s32 1, %s6667_s18   ;;  %s113_s22 = sadd.s32 1, %s6663_s17 }
   0x5   : > { %s110_s23 = ssub.s32 %s6667_s18, %s6724_s21  ;;  %p123_p0 = scmp.ne.s32.totalorder %s6663_s17, %s6659_s16 }
   0x6   : > { %p111_p1 = scmp.eq.s32.totalorder %s110_s23, 0  ;;  %p124_p2 = scmp.eq.s32.totalorder %s6720_s19, 1 }
   0x7   : > { %p129_p3 = scmp.ne.s32.totalorder %s6659_s16, %s6655_s15  ;;  %p130_p4 = scmp.eq.s32.totalorder %s4260_s20, 1 }
   0x8   : > { %s6735_s24 = scalar_select %p111_p1, %s6663_s17, %s113_s22  }
   0x9   : > { %p6737_p5 = por %p124_p2, %p123_p0  ;;  %p6741_p6 = por %p130_p4, %p129_p3 }
   0xa   : > { %p4263_p7 = scmp.ge.s32.totalorder %s6667_s18, 1  ;;  %p165_p8 = scmp.lt.s32.totalorder %s6667_s18, 3 }
   0xc   : > { %p166_p9 = pnand %p4263_p7, %p165_p8 }
   0xd   : > { %v6302_v0 = vld [vmem:[%s8165_s1 + $0x40] sm:$0xff] (!%p166_p9)   ;;  %v6669_v1 = vmov (!%p166_p9), 0.0   ;;  %v6304_v3 = vld [vmem:[%s8165_s1 + $0x48] sm:$0xff] (!%p166_p9)   ;;  %vm6670_vm0 = vmmov (!%p166_p9), 0   ;;  %p191_p10 = scmp.lt.s32.totalorder (!%p166_p9), %s6720_s19, 1  ;;  %v6306_v5 = vld [vmem:[%s8165_s1 + $0x50] sm:$0xff] (!%p166_p9)  }
   0xe   : > { %169 = sbr.rel (%p166_p9) target bundleno = 1134 (0x46e), region = 36  ;;  %5410 = vmatprep.subr.bf16.mxu0 (!%p166_p9), %v6669_v1  ;;  %5590 = vmatprep.subr.bf16.mxu1 (!%p166_p9), %v6669_v1  ;;  %v6303_v2 = vld [vmem:[%s8165_s1 + $0x40] sm:$0xff] (!%p166_p9)   ;;  %v6305_v4 = vld [vmem:[%s8165_s1 + $0x48] sm:$0xff] (!%p166_p9)   ;;  %v6307_v6 = vld [vmem:[%s8165_s1 + $0x50] sm:$0xff] (!%p166_p9)   ;;  %vm1194_vm1 = vcmask (!%p166_p9), 1043456   ;;  %s188_s23 = sand.u32 (!%p166_p9), 1, %s6659_s16  }
   0xf   : > { %5411 = vmatpush3.bf16.msra.mxu0 (!%p166_p9), %v6302_v0  ;;  %5426 = vmatprep.mubr.msk.bf16.mxu0 (!%p166_p9), %vm6670_vm0, %v6669_v1  ;;  %v6308_v7 = vld [vmem:[%s8165_s1 + $0x58] sm:$0xff] (!%p166_p9)   ;;  %v6310_v9 = vld [vmem:[%s8165_s1 + $0x60] sm:$0xff] (!%p166_p9)   ;;  %v6312_v14 = vld [vmem:[%s8165_s1 + $0x68] sm:$0xff] (!%p166_p9)   ;;  %s4264_s29 = sshll.u32 (!%p166_p9), %s188_s23, 4  ;;  %s5085_s8 = sshll.u32 (!%p166_p9), %s6720_s19, 8 }
  0x10   : > { %5591 = vmatpush3.bf16.msra.mxu1 (!%p166_p9), %v6303_v2  ;;  %5412 = vmatprep.subr.bf16.mxu0 (!%p166_p9), %v6669_v1  ;;  %v6309_v8 = vld [vmem:[%s8165_s1 + $0x58] sm:$0xff] (!%p166_p9)   ;;  %v6311_v10 = vld [vmem:[%s8165_s1 + $0x60] sm:$0xff] (!%p166_p9)   ;;  %v6313_v16 = vld [vmem:[%s8165_s1 + $0x68] sm:$0xff] (!%p166_p9)   ;;  %s8104_s7 = scalar_lea.vmem (!%p166_p9), [#allocation2], %s4264_s29  ;;  %s8116_s12 = scalar_lea.hbm (!%p166_p9), %s8168_s4, %s5085_s8 }
  0x11   : > { %5592 = vmatprep.subr.bf16.mxu1 (!%p166_p9), %v6669_v1  ;;  %5606 = vmatprep.mubr.msk.bf16.mxu1 (!%p166_p9), %vm6670_vm0, %v6669_v1  ;;  %v6314_v18 = vld [vmem:[%s8165_s1 + $0x70] sm:$0xff] (!%p166_p9)   ;;  %v6316_v21 = vld [vmem:[%s8165_s1 + $0x78] sm:$0xff] (!%p166_p9)   ;;  %v6319_v28 = vld [vmem:[%s8165_s1] sm:$0xff] (!%p166_p9)  }
  0x12   : > { %v6315_v20 = vld [vmem:[%s8165_s1 + $0x70] sm:$0xff] (!%p166_p9)   ;;  %v6317_v26 = vld [vmem:[%s8165_s1 + $0x78] sm:$0xff] (!%p166_p9)   ;;  %v6321_v30 = vld [vmem:[%s8165_s1] sm:$0xff] (!%p166_p9)  }
  0x13   : > { %5413 = vmatpush3.bf16.msra.mxu0 (!%p166_p9), %v6304_v3  ;;  %v6322_v31 = vld [vmem:[%s8165_s1 + $0x8] sm:$0xff] (!%p166_p9)   ;;  %v6324_v33 = vld [vmem:[%s8165_s1 + $0x10] sm:$0xff] (!%p166_p9)   ;;  %v6326_v35 = vld [vmem:[%s8165_s1 + $0x18] sm:$0xff] (!%p166_p9)  }
  0x14   : > { %5593 = vmatpush3.bf16.msra.mxu1 (!%p166_p9), %v6305_v4  ;;  %5414 = vmatprep.subr.bf16.mxu0 (!%p166_p9), %v6669_v1  ;;  %v6323_v32 = vld [vmem:[%s8165_s1 + $0x8] sm:$0xff] (!%p166_p9)   ;;  %v6325_v34 = vld [vmem:[%s8165_s1 + $0x10] sm:$0xff] (!%p166_p9)   ;;  %v6327_v36 = vld [vmem:[%s8165_s1 + $0x18] sm:$0xff] (!%p166_p9)  }
  0x15   : > { %s192_s9 = scalar_select %p191_p10, %s6720_s19, 1  ;;  %5594 = vmatprep.subr.bf16.mxu1 %v6669_v1  ;;  %v6328_v37 = vld [vmem:[%s8165_s1 + $0x20] sm:$0xff]   ;;  %v6330_v39 = vld [vmem:[%s8165_s1 + $0x28] sm:$0xff]   ;;  %v6332_v41 = vld [vmem:[%s8165_s1 + $0x30] sm:$0xff]  }
  0x16   : > { %v6329_v38 = vld [vmem:[%s8165_s1 + $0x20] sm:$0xff]   ;;  %v6331_v40 = vld [vmem:[%s8165_s1 + $0x28] sm:$0xff]   ;;  %v6333_v42 = vld [vmem:[%s8165_s1 + $0x30] sm:$0xff]   ;;  %s6671_s19 = smov [#allocation2]  }
  0x17   : > { %s6258_s14 = smul.u32 24, %s192_s9  ;;  %5415 = vmatpush3.bf16.msra.mxu0 %v6306_v5  ;;  %v6334_v43 = vld [vmem:[%s8165_s1 + $0x38] sm:$0xff]   ;;  %v6336_v45 = vld [vmem:[%s8165_s1 + $0x80] sm:$0xff]   ;;  %v6338_v47 = vld [vmem:[%s8165_s1 + $0x88] sm:$0xff]   ;;  %s4198_s9 = sshll.u32 %s8104_s7, 4  ;;  %s8118_s9 = int_to_ptr.vmem [resolvable:$true] %s4198_s9 }
  0x18   : > { %5595 = vmatpush3.bf16.msra.mxu1 %v6307_v6  ;;  %5416 = vmatprep.subr.bf16.mxu0 %v6669_v1  ;;  %v6335_v44 = vld [vmem:[%s8165_s1 + $0x38] sm:$0xff]   ;;  %v6337_v46 = vld [vmem:[%s8165_s1 + $0x80] sm:$0xff]   ;;  %v6339_v48 = vld [vmem:[%s8165_s1 + $0x88] sm:$0xff]   ;;  %s6605_s13 = scalar_lea.vmem %s8118_s9, 256 }
  0x19   : > { %5596 = vmatprep.subr.bf16.mxu1 %v6669_v1  ;;  %s6788_s30 = scalar_lea.vmem %s8164_s0, %s6258_s14  ;;  %v6340_v49 = vld [vmem:[%s8165_s1 + $0x90] sm:$0xff]   ;;  %v6342_v51 = vld [vmem:[%s8165_s1 + $0x98] sm:$0xff]   ;;  %v6344_v53 = vld [vmem:[%s8165_s1 + $0xa0] sm:$0xff]   ;;  %p6606_p11 = scmp.ne.s32.totalorder %s8118_s9, %s6605_s13 }
  0x1a   : > { %v6799_v11 = vld [vmem:[%s6788_s30] sm:$0x7]  ;;  %v6806_v13 = vld [vmem:[%s6788_s30 + $0x4] sm:$0x7]  ;;  %v6341_v50 = vld [vmem:[%s8165_s1 + $0x90] sm:$0xff]   ;;  %s6609_s14 = sshll.u32 %s6671_s19, 4  ;;  %s6610_s14 = int_to_ptr.vmem [resolvable:$false] %s6609_s14 }
  0x1b   : > { %5417 = vmatpush3.bf16.msra.mxu0 %v6308_v7  ;;  %v6803_v12 = vcombine.low %v6799_v11, %v6799_v11  ;;  %v6813_v15 = vcombine.low %v6806_v13, %v6806_v13  ;;  %v6343_v52 = vld [vmem:[%s8165_s1 + $0x98] sm:$0xff]   ;;  %v6345_v54 = vld [vmem:[%s8165_s1 + $0xa0] sm:$0xff]   ;;  %v6346_v55 = vld [vmem:[%s8165_s1 + $0xa8] sm:$0xff]   ;;  %p6607_p12 = pnand %p6606_p11, %p6737_p5  ;;  %s6611_s20 = scalar_lea.vmem %s6610_s14, 512 }
  0x1c   : > { %5597 = vmatpush3.bf16.msra.mxu1 %v6309_v8  ;;  %5418 = vmatprep.subr.bf16.mxu0 %v6669_v1  ;;  %v6347_v56 = vld [vmem:[%s8165_s1 + $0xa8] sm:$0xff]   ;;  %v6348_v57 = vld [vmem:[%s8165_s1 + $0xb0] sm:$0xff]   ;;  %v6350_v59 = vld [vmem:[%s8165_s1 + $0xb8] sm:$0xff]   ;;  %p6612_p0 = scmp.lt.s32.totalorder %s8118_s9, %s6610_s14  ;;  %p6613_p1 = scmp.lt.s32.totalorder %s6611_s20, %s6605_s13 }
  0x1d   : > { %5598 = vmatprep.subr.bf16.mxu1 %v6669_v1  ;;  %v243_v17 = vshll.u32 %v6803_v12, 16  ;;  %v661_v19 = vshll.u32 %v6813_v15, 16  ;;  %v241_v22 = vshrl.u32 %v6803_v12, 16  ;;  %v659_v24 = vshrl.u32 %v6813_v15, 16  ;;  %v6349_v58 = vld [vmem:[%s8165_s1 + $0xb0] sm:$0xff]   ;;  %v6351_v60 = vld [vmem:[%s8165_s1 + $0xb8] sm:$0xff]   ;;  %p6608_p13 = pneg %p6607_p12 }
  0x1e   : > { %v441_v61 = vrot.slane %v6803_v12, 1  ;;  %v6352_v62 = vld [vmem:[%s8165_s1 + $0xc0] sm:$0xff]   ;;  %v772_v63 = vrot.slane %v6813_v15, 1  ;;  %v6354_v2 = vld [vmem:[%s8165_s1 + $0xc8] sm:$0xff]   ;;  %v6356_v4 = vld [vmem:[%s8165_s1 + $0xd0] sm:$0xff]   ;;  %p6614_p2 = por %p6613_p1, %p6612_p0 }
  0x1f   : > { %5419 = vmatpush3.bf16.msra.mxu0 %v6310_v9  ;;  %v245_v23 = vrot.slane %v243_v17, 1  ;;  %v663_v25 = vrot.slane %v661_v19, 1  ;;  %v6353_v0 = vld [vmem:[%s8165_s1 + $0xc0] sm:$0xff]   ;;  %v6355_v3 = vld [vmem:[%s8165_s1 + $0xc8] sm:$0xff]   ;;  %v6357_v5 = vld [vmem:[%s8165_s1 + $0xd0] sm:$0xff]  }
  0x20   : > { %5599 = vmatpush3.bf16.msra.mxu1 %v6311_v10  ;;  %5420 = vmatprep.subr.bf16.mxu0 %v6669_v1  ;;  %v6358_v6 = vld [vmem:[%s8165_s1 + $0xd8] sm:$0xff]   ;;  %v6360_v8 = vld [vmem:[%s8165_s1 + $0xe0] sm:$0xff]   ;;  %v6362_v10 = vld [vmem:[%s8165_s1 + $0xe8] sm:$0xff]   ;;  %p6615_p3 = pnand %p6614_p2, %p6608_p13 }
  0x21   : > { %5600 = vmatprep.subr.bf16.mxu1 %v6669_v1  ;;  %v246_v27 = vor.u32 %v245_v23, %v241_v22  ;;  %v6843_v29 = vor.u32 %v663_v25, %v659_v24  ;;  %v6359_v7 = vld [vmem:[%s8165_s1 + $0xd8] sm:$0xff]   ;;  %v6361_v9 = vld [vmem:[%s8165_s1 + $0xe0] sm:$0xff]   ;;  %v6364_v12 = vld [vmem:[%s8165_s1 + $0xf0] sm:$0xff]  }
  0x22   : > { %v6367_v17 = vld [vmem:[%s8165_s1 + $0xf8] sm:$0xff]   ;;  %v7057_v19 = vld [vmem:[%s6788_s30 + $0x8] sm:$0x7]  ;;  %v6374_v23 = vld [vmem:[%s8165_s1 + $0x110] sm:$0xff]  }
  0x23   : > { %5421 = vmatpush3.bf16.msra.mxu0 %v6312_v14  ;;  %v6365_v14 = vld [vmem:[%s8165_s1 + $0xf0] sm:$0xff]   ;;  %v6372_v22 = vld [vmem:[%s8165_s1 + $0x108] sm:$0xff]   ;;  %v6375_v24 = vld [vmem:[%s8165_s1 + $0x118] sm:$0xff]  }
  0x24   : > { %5601 = vmatpush3.bf16.msra.mxu1 %v6313_v16  ;;  %5422 = vmatprep.subr.bf16.mxu0 %v6669_v1  ;;  %v6366_v16 = vld [vmem:[%s8165_s1 + $0xf8] sm:$0xff]   ;;  %v6405_v15 = vld [vmem:[%s8165_s1 + $0x190] sm:$0xff]  }
  0x25   : > { %5602 = vmatprep.subr.bf16.mxu1 %v6669_v1  ;;  %v6376_v25 = vld [vmem:[%s8165_s1 + $0x118] sm:$0xff]  }
  0x27   : > { %5423 = vmatpush3.bf16.msra.mxu0 %v6314_v18  ;;  %v6368_v18 = vld [vmem:[%s8165_s1 + $0x100] sm:$0xff]  }
  0x28   : > { %5603 = vmatpush3.bf16.msra.mxu1 %v6315_v20  ;;  %5424 = vmatprep.subr.bf16.mxu0 %v6669_v1  ;;  %v6370_v20 = vld [vmem:[%s8165_s1 + $0x100] sm:$0xff]  }
  0x29   : > { %5604 = vmatprep.subr.bf16.mxu1 %v6669_v1 }
  0x2b   : > { %5425 = vmatpush3.bf16.msra.mxu0 %v6316_v21  ;;  %v6371_v21 = vld [vmem:[%s8165_s1 + $0x108] sm:$0xff]  }
  0x2c   : > { %5605 = vmatpush3.bf16.msra.mxu1 %v6317_v26  ;;  %5430 = vmatprep.subr.bf16.mxu0 %v6669_v1  ;;  %v6377_v26 = vld [vmem:[%s8165_s1 + $0x120] sm:$0xff]  }
  0x2d   : > { %5610 = vmatprep.subr.bf16.mxu1 %v6669_v1 }
  0x2e   : > { %5427 = vmatmul.mubr.bf16.vlgmr.msra.gmra.mrb[0].mxu0 %v246_v27  ;;  %v6378_v27 = vld [vmem:[%s8165_s1 + $0x120] sm:$0xff]  }
  0x2f   : > { %5431 = vmatpush3.bf16.msra.mxu0 %v6319_v28  ;;  %5607 = vmatmul.mubr.bf16.vlgmr.msra.gmra.mrb[0].mxu1 %v6843_v29  ;;  %v6379_v28 = vld [vmem:[%s8165_s1 + $0x128] sm:$0xff]  }
  0x30   : > { %5611 = vmatpush3.bf16.msra.mxu1 %v6321_v30  ;;  %5432 = vmatprep.subr.bf16.mxu0 %v6669_v1  ;;  %v7107_v30 = vcombine.low %v7057_v19, %v7057_v19 }
  0x31   : > { %5612 = vmatprep.subr.bf16.mxu1 %v6669_v1  ;;  %5446 = vmatprep.mubr.msk.bf16.mxu0 %vm6670_vm0, %v6669_v1 }
  0x32   : > { %5626 = vmatprep.mubr.msk.bf16.mxu1 %vm6670_vm0, %v6669_v1 }
  0x33   : > { %5433 = vmatpush3.bf16.msra.mxu0 %v6322_v31  ;;  %v6380_v31 = vld [vmem:[%s8165_s1 + $0x128] sm:$0xff]  }
  0x34   : > { %5613 = vmatpush3.bf16.msra.mxu1 %v6323_v32  ;;  %5434 = vmatprep.subr.bf16.mxu0 %v6669_v1  ;;  %v6381_v32 = vld [vmem:[%s8165_s1 + $0x130] sm:$0xff]  }
  0x35   : > { %5614 = vmatprep.subr.bf16.mxu1 %v6669_v1 }
  0x37   : > { %5435 = vmatpush3.bf16.msra.mxu0 %v6324_v33  ;;  %v6382_v33 = vld [vmem:[%s8165_s1 + $0x130] sm:$0xff]  }
  0x38   : > { %5615 = vmatpush3.bf16.msra.mxu1 %v6325_v34  ;;  %5436 = vmatprep.subr.bf16.mxu0 %v6669_v1  ;;  %v992_v34 = vshll.u32 %v7107_v30, 16 }
  0x39   : > { %5616 = vmatprep.subr.bf16.mxu1 %v6669_v1 }
  0x3b   : > { %5437 = vmatpush3.bf16.msra.mxu0 %v6326_v35  ;;  %v6383_v35 = vld [vmem:[%s8165_s1 + $0x138] sm:$0xff]  }
  0x3c   : > { %5617 = vmatpush3.bf16.msra.mxu1 %v6327_v36  ;;  %5438 = vmatprep.subr.bf16.mxu0 %v6669_v1  ;;  %v990_v36 = vshrl.u32 %v7107_v30, 16 }
  0x3d   : > { %5618 = vmatprep.subr.bf16.mxu1 %v6669_v1 }
  0x3f   : > { %5439 = vmatpush3.bf16.msra.mxu0 %v6328_v37  ;;  %v6384_v37 = vld [vmem:[%s8165_s1 + $0x138] sm:$0xff]  }
  0x40   : > { %5619 = vmatpush3.bf16.msra.mxu1 %v6329_v38  ;;  %5440 = vmatprep.subr.bf16.mxu0 %v6669_v1  ;;  %v994_v38 = vrot.slane %v992_v34, 1  ;;  %v6436_v34 = vld [vmem:[%s8165_s1 + $0x208] sm:$0xff]  }
  0x41   : > { %5620 = vmatprep.subr.bf16.mxu1 %v6669_v1 }
  0x43   : > { %5441 = vmatpush3.bf16.msra.mxu0 %v6330_v39  ;;  %v6385_v39 = vld [vmem:[%s8165_s1 + $0x140] sm:$0xff]  }
  0x44   : > { %5621 = vmatpush3.bf16.msra.mxu1 %v6331_v40  ;;  %5442 = vmatprep.subr.bf16.mxu0 %v6669_v1  ;;  %v6386_v40 = vld [vmem:[%s8165_s1 + $0x140] sm:$0xff]  }
  0x45   : > { %5622 = vmatprep.subr.bf16.mxu1 %v6669_v1 }
  0x47   : > { %5443 = vmatpush3.bf16.msra.mxu0 %v6332_v41  ;;  %v7138_v41 = vor.u32 %v994_v38, %v990_v36  ;;  %v6438_v36 = vld [vmem:[%s8165_s1 + $0x210] sm:$0xff]   ;;  %v6440_v38 = vld [vmem:[%s8165_s1 + $0x218] sm:$0xff]  }
  0x48   : > { %5623 = vmatpush3.bf16.msra.mxu1 %v6333_v42  ;;  %5444 = vmatprep.subr.bf16.mxu0 %v6669_v1  ;;  %v6387_v42 = vld [vmem:[%s8165_s1 + $0x148] sm:$0xff]  }
  0x49   : > { %5624 = vmatprep.subr.bf16.mxu1 %v6669_v1 }
  0x4b   : > { %5445 = vmatpush3.bf16.msra.mxu0 %v6334_v43  ;;  %v6388_v43 = vld [vmem:[%s8165_s1 + $0x148] sm:$0xff]  }
  0x4c   : > { %5625 = vmatpush3.bf16.msra.mxu1 %v6335_v44  ;;  %5450 = vmatprep.subr.bf16.mxu0 %v6669_v1  ;;  %v6390_v44 = vld [vmem:[%s8165_s1 + $0x150] sm:$0xff]  }
  0x4d   : > { %5630 = vmatprep.subr.bf16.mxu1 %v6669_v1 }
  0x4e   : > { %5447 = vmatmul.mubr.bf16.vlgmr.msra.gmra.mrb[0].mxu0 %v6799_v11  ;;  %v6363_v11 = vld [vmem:[%s8165_s1 + $0xe8] sm:$0xff]  }
  0x4f   : > { %5451 = vmatpush3.bf16.msra.mxu0 %v6336_v45  ;;  %5627 = vmatmul.mubr.bf16.vlgmr.msra.gmra.mrb[0].mxu1 %v6806_v13  ;;  %v6391_v45 = vld [vmem:[%s8165_s1 + $0x158] sm:$0xff]  }
  0x50   : > { %5631 = vmatpush3.bf16.msra.mxu1 %v6337_v46  ;;  %5452 = vmatprep.subr.bf16.mxu0 %v6669_v1  ;;  %v6392_v46 = vld [vmem:[%s8165_s1 + $0x158] sm:$0xff]  }
  0x51   : > { %5632 = vmatprep.subr.bf16.mxu1 %v6669_v1  ;;  %5466 = vmatprep.mubr.msk.bf16.mxu0 %vm6670_vm0, %v6669_v1 }
  0x52   : > { %5646 = vmatprep.mubr.msk.bf16.mxu1 %vm6670_vm0, %v6669_v1 }
  0x53   : > { %5453 = vmatpush3.bf16.msra.mxu0 %v6338_v47  ;;  %v6393_v47 = vld [vmem:[%s8165_s1 + $0x160] sm:$0xff]  }
  0x54   : > { %5633 = vmatpush3.bf16.msra.mxu1 %v6339_v48  ;;  %5454 = vmatprep.subr.bf16.mxu0 %v6669_v1  ;;  %v6394_v48 = vld [vmem:[%s8165_s1 + $0x160] sm:$0xff]  }
  0x55   : > { %5634 = vmatprep.subr.bf16.mxu1 %v6669_v1 }
  0x57   : > { %5455 = vmatpush3.bf16.msra.mxu0 %v6340_v49  ;;  %v6395_v49 = vld [vmem:[%s8165_s1 + $0x168] sm:$0xff]  }
  0x58   : > { %5635 = vmatpush3.bf16.msra.mxu1 %v6341_v50  ;;  %5456 = vmatprep.subr.bf16.mxu0 %v6669_v1  ;;  %v6396_v50 = vld [vmem:[%s8165_s1 + $0x168] sm:$0xff]  }
  0x59   : > { %5636 = vmatprep.subr.bf16.mxu1 %v6669_v1 }
  0x5b   : > { %5457 = vmatpush3.bf16.msra.mxu0 %v6342_v51  ;;  %v6397_v51 = vld [vmem:[%s8165_s1 + $0x170] sm:$0xff]  }
  0x5c   : > { %5637 = vmatpush3.bf16.msra.mxu1 %v6343_v52  ;;  %5458 = vmatprep.subr.bf16.mxu0 %v6669_v1  ;;  %v6398_v52 = vld [vmem:[%s8165_s1 + $0x170] sm:$0xff]  }
  0x5d   : > { %5638 = vmatprep.subr.bf16.mxu1 %v6669_v1 }
  0x5f   : > { %5459 = vmatpush3.bf16.msra.mxu0 %v6344_v53  ;;  %v6399_v53 = vld [vmem:[%s8165_s1 + $0x178] sm:$0xff]  }
  0x60   : > { %5639 = vmatpush3.bf16.msra.mxu1 %v6345_v54  ;;  %5460 = vmatprep.subr.bf16.mxu0 %v6669_v1  ;;  %v6400_v54 = vld [vmem:[%s8165_s1 + $0x178] sm:$0xff]  }
  0x61   : > { %5640 = vmatprep.subr.bf16.mxu1 %v6669_v1 }
  0x63   : > { %5461 = vmatpush3.bf16.msra.mxu0 %v6346_v55  ;;  %v6401_v55 = vld [vmem:[%s8165_s1 + $0x180] sm:$0xff]  }
  0x64   : > { %5641 = vmatpush3.bf16.msra.mxu1 %v6347_v56  ;;  %5462 = vmatprep.subr.bf16.mxu0 %v6669_v1  ;;  %v7208_v56 = vrot.slane %v7107_v30, 1 }
  0x65   : > { %5642 = vmatprep.subr.bf16.mxu1 %v6669_v1 }
  0x67   : > { %5463 = vmatpush3.bf16.msra.mxu0 %v6348_v57  ;;  %v6402_v57 = vld [vmem:[%s8165_s1 + $0x180] sm:$0xff]  }
  0x68   : > { %5643 = vmatpush3.bf16.msra.mxu1 %v6349_v58  ;;  %5464 = vmatprep.subr.bf16.mxu0 %v6669_v1  ;;  %v6403_v58 = vld [vmem:[%s8165_s1 + $0x188] sm:$0xff]  }
  0x69   : > { %5644 = vmatprep.subr.bf16.mxu1 %v6669_v1 }
  0x6b   : > { %5465 = vmatpush3.bf16.msra.mxu0 %v6350_v59  ;;  %v6404_v59 = vld [vmem:[%s8165_s1 + $0x188] sm:$0xff]  }
  0x6c   : > { %5645 = vmatpush3.bf16.msra.mxu1 %v6351_v60  ;;  %5470 = vmatprep.subr.bf16.mxu0 %v6669_v1  ;;  %v6406_v60 = vld [vmem:[%s8165_s1 + $0x190] sm:$0xff]  }
  0x6d   : > { %5650 = vmatprep.subr.bf16.mxu1 %v6669_v1 }
  0x6e   : > { %5467 = vmatmul.mubr.bf16.vlgmr.msra.gmra.mrb[0].mxu0 %v441_v61  ;;  %v6407_v61 = vld [vmem:[%s8165_s1 + $0x198] sm:$0xff]  }
  0x6f   : > { %5471 = vmatpush3.bf16.msra.mxu0 %v6352_v62  ;;  %5647 = vmatmul.mubr.bf16.vlgmr.msra.gmra.mrb[0].mxu1 %v772_v63  ;;  %v6408_v62 = vld [vmem:[%s8165_s1 + $0x198] sm:$0xff]  }
  0x70   : > { %5651 = vmatpush3.bf16.msra.mxu1 %v6353_v0  ;;  %5472 = vmatprep.subr.bf16.mxu0 %v6669_v1  ;;  %v6410_v0 = vld [vmem:[%s8165_s1 + $0x1a0] sm:$0xff]  }
  0x71   : > { %5652 = vmatprep.subr.bf16.mxu1 %v6669_v1  ;;  %5486 = vmatprep.mubr.msk.bf16.mxu0 %vm6670_vm0, %v6669_v1 }
  0x72   : > { %5666 = vmatprep.mubr.msk.bf16.mxu1 %vm6670_vm0, %v6669_v1 }
  0x73   : > { %5473 = vmatpush3.bf16.msra.mxu0 %v6354_v2  ;;  %v6411_v2 = vld [vmem:[%s8165_s1 + $0x1a8] sm:$0xff]  }
  0x74   : > { %5653 = vmatpush3.bf16.msra.mxu1 %v6355_v3  ;;  %5474 = vmatprep.subr.bf16.mxu0 %v6669_v1  ;;  %v6412_v3 = vld [vmem:[%s8165_s1 + $0x1a8] sm:$0xff]  }
  0x75   : > { %5654 = vmatprep.subr.bf16.mxu1 %v6669_v1 }
  0x77   : > { %5475 = vmatpush3.bf16.msra.mxu0 %v6356_v4  ;;  %v6413_v4 = vld [vmem:[%s8165_s1 + $0x1b0] sm:$0xff]  }
  0x78   : > { %5655 = vmatpush3.bf16.msra.mxu1 %v6357_v5  ;;  %5476 = vmatprep.subr.bf16.mxu0 %v6669_v1  ;;  %v6414_v5 = vld [vmem:[%s8165_s1 + $0x1b0] sm:$0xff]  }
  0x79   : > { %5656 = vmatprep.subr.bf16.mxu1 %v6669_v1 }
  0x7b   : > { %5477 = vmatpush3.bf16.msra.mxu0 %v6358_v6  ;;  %v6415_v6 = vld [vmem:[%s8165_s1 + $0x1b8] sm:$0xff]  }
  0x7c   : > { %5657 = vmatpush3.bf16.msra.mxu1 %v6359_v7  ;;  %5478 = vmatprep.subr.bf16.mxu0 %v6669_v1  ;;  %v6416_v7 = vld [vmem:[%s8165_s1 + $0x1b8] sm:$0xff]  }
  0x7d   : > { %5658 = vmatprep.subr.bf16.mxu1 %v6669_v1 }
  0x7f   : > { %5479 = vmatpush3.bf16.msra.mxu0 %v6360_v8  ;;  %v6417_v8 = vld [vmem:[%s8165_s1 + $0x1c0] sm:$0xff]  }
  0x80   : > { %5659 = vmatpush3.bf16.msra.mxu1 %v6361_v9  ;;  %5480 = vmatprep.subr.bf16.mxu0 %v6669_v1  ;;  %v7282_v9 = vld [vmem:[%s6788_s30 + $0xc] sm:$0x7] }
  0x81   : > { %5660 = vmatprep.subr.bf16.mxu1 %v6669_v1 }
  0x83   : > { %5481 = vmatpush3.bf16.msra.mxu0 %v6362_v10  ;;  %v6419_v10 = vld [vmem:[%s8165_s1 + $0x1c0] sm:$0xff]  }
  0x84   : > { %5661 = vmatpush3.bf16.msra.mxu1 %v6363_v11  ;;  %5482 = vmatprep.subr.bf16.mxu0 %v6669_v1  ;;  %v6420_v11 = vld [vmem:[%s8165_s1 + $0x1c8] sm:$0xff]  }
  0x85   : > { %5662 = vmatprep.subr.bf16.mxu1 %v6669_v1 }
  0x87   : > { %5483 = vmatpush3.bf16.msra.mxu0 %v6364_v12  ;;  %v6421_v12 = vld [vmem:[%s8165_s1 + $0x1c8] sm:$0xff]  }
  0x88   : > { %5663 = vmatpush3.bf16.msra.mxu1 %v6365_v14  ;;  %5484 = vmatprep.subr.bf16.mxu0 %v6669_v1  ;;  %v6422_v14 = vld [vmem:[%s8165_s1 + $0x1d0] sm:$0xff]  }
  0x89   : > { %5664 = vmatprep.subr.bf16.mxu1 %v6669_v1 }
  0x8b   : > { %5485 = vmatpush3.bf16.msra.mxu0 %v6366_v16  ;;  %v6423_v16 = vld [vmem:[%s8165_s1 + $0x1d0] sm:$0xff]  }
  0x8c   : > { %5665 = vmatpush3.bf16.msra.mxu1 %v6367_v17  ;;  %5490 = vmatprep.subr.bf16.mxu0 %v6669_v1  ;;  %v6424_v17 = vld [vmem:[%s8165_s1 + $0x1d8] sm:$0xff]  }
  0x8d   : > { %5670 = vmatprep.subr.bf16.mxu1 %v6669_v1 }
  0x8e   : > { %5487 = vmatmul.mubr.bf16.vlgmr.msra.gmra.mrb[0].mxu0 %v6806_v13  ;;  %v6373_v13 = vld [vmem:[%s8165_s1 + $0x110] sm:$0xff]  }
  0x8f   : > { %5491 = vmatpush3.bf16.msra.mxu0 %v6368_v18  ;;  %5667 = vmatmul.mubr.bf16.vlgmr.msra.gmra.mrb[0].mxu1 %v7057_v19  ;;  %v6425_v18 = vld [vmem:[%s8165_s1 + $0x1d8] sm:$0xff]  }
  0x90   : > { %5671 = vmatpush3.bf16.msra.mxu1 %v6370_v20  ;;  %5492 = vmatprep.subr.bf16.mxu0 %v6669_v1  ;;  %v6427_v20 = vld [vmem:[%s8165_s1 + $0x1e0] sm:$0xff]  }
  0x91   : > { %5672 = vmatprep.subr.bf16.mxu1 %v6669_v1  ;;  %5506 = vmatprep.mubr.msk.bf16.mxu0 %vm6670_vm0, %v6669_v1 }
  0x92   : > { %5686 = vmatprep.mubr.msk.bf16.mxu1 %vm6670_vm0, %v6669_v1 }
  0x93   : > { %5493 = vmatpush3.bf16.msra.mxu0 %v6371_v21  ;;  %v6428_v21 = vld [vmem:[%s8165_s1 + $0x1e8] sm:$0xff]  }
  0x94   : > { %5673 = vmatpush3.bf16.msra.mxu1 %v6372_v22  ;;  %5494 = vmatprep.subr.bf16.mxu0 %v6669_v1  ;;  %v7332_v22 = vcombine.low %v7282_v9, %v7282_v9 }
  0x95   : > { %5674 = vmatprep.subr.bf16.mxu1 %v6669_v1 }
  0x97   : > { %5495 = vmatpush3.bf16.msra.mxu0 %v6373_v13  ;;  %v6429_v13 = vld [vmem:[%s8165_s1 + $0x1e8] sm:$0xff]  }
  0x98   : > { %5675 = vmatpush3.bf16.msra.mxu1 %v6374_v23  ;;  %5496 = vmatprep.subr.bf16.mxu0 %v6669_v1  ;;  %v6430_v23 = vld [vmem:[%s8165_s1 + $0x1f0] sm:$0xff]  }
  0x99   : > { %5676 = vmatprep.subr.bf16.mxu1 %v6669_v1 }
  0x9b   : > { %5497 = vmatpush3.bf16.msra.mxu0 %v6375_v24  ;;  %v6431_v24 = vld [vmem:[%s8165_s1 + $0x1f0] sm:$0xff]  }
  0x9c   : > { %5677 = vmatpush3.bf16.msra.mxu1 %v6376_v25  ;;  %5498 = vmatprep.subr.bf16.mxu0 %v6669_v1  ;;  %v1981_v25 = vshll.u32 %v7332_v22, 16 }
  0x9d   : > { %5678 = vmatprep.subr.bf16.mxu1 %v6669_v1 }
  0x9e   : > { %v1983_v30 = vrot.slane %v1981_v25, 1  ;;  %v6487_v25 = vld [vmem:[%s8165_s1 + $0x90] sm:$0xff]  }
  0x9f   : > { %5499 = vmatpush3.bf16.msra.mxu0 %v6377_v26  ;;  %v6432_v26 = vld [vmem:[%s8165_s1 + $0x1f8] sm:$0xff]  }
  0xa0   : > { %5679 = vmatpush3.bf16.msra.mxu1 %v6378_v27  ;;  %5500 = vmatprep.subr.bf16.mxu0 %v6669_v1  ;;  %v1979_v27 = vshrl.u32 %v7332_v22, 16 }
  0xa1   : > { %5680 = vmatprep.subr.bf16.mxu1 %v6669_v1 }
  0xa3   : > { %5501 = vmatpush3.bf16.msra.mxu0 %v6379_v28  ;;  %v6433_v28 = vld [vmem:[%s8165_s1 + $0x1f8] sm:$0xff]  }
  0xa4   : > { %5681 = vmatpush3.bf16.msra.mxu1 %v6380_v31  ;;  %5502 = vmatprep.subr.bf16.mxu0 %v6669_v1  ;;  %v6434_v31 = vld [vmem:[%s8165_s1 + $0x200] sm:$0xff]  }
  0xa5   : > { %5682 = vmatprep.subr.bf16.mxu1 %v6669_v1 }
  0xa7   : > { %5503 = vmatpush3.bf16.msra.mxu0 %v6381_v32  ;;  %v6435_v32 = vld [vmem:[%s8165_s1 + $0x200] sm:$0xff]  }
  0xa8   : > { %5683 = vmatpush3.bf16.msra.mxu1 %v6382_v33  ;;  %5504 = vmatprep.subr.bf16.mxu0 %v6669_v1  ;;  %v7363_v33 = vor.u32 %v1983_v30, %v1979_v27  ;;  %v6489_v27 = vld [vmem:[%s8165_s1 + $0x98] sm:$0xff]   ;;  %v6491_v30 = vld [vmem:[%s8165_s1 + $0xa0] sm:$0xff]  }
  0xa9   : > { %5684 = vmatprep.subr.bf16.mxu1 %v6669_v1 }
  0xab   : > { %5505 = vmatpush3.bf16.msra.mxu0 %v6383_v35  ;;  %v6437_v35 = vld [vmem:[%s8165_s1 + $0x208] sm:$0xff]  }
  0xac   : > { %5685 = vmatpush3.bf16.msra.mxu1 %v6384_v37  ;;  %5510 = vmatprep.subr.bf16.mxu0 %v6669_v1  ;;  %v6439_v37 = vld [vmem:[%s8165_s1 + $0x210] sm:$0xff]  }
  0xad   : > { %5690 = vmatprep.subr.bf16.mxu1 %v6669_v1 }
  0xae   : > { %5507 = vmatmul.mubr.bf16.vlgmr.msra.gmra.mrb[0].mxu0 %v6843_v29  ;;  %v6389_v29 = vld [vmem:[%s8165_s1 + $0x150] sm:$0xff]  }
  0xaf   : > { %5511 = vmatpush3.bf16.msra.mxu0 %v6385_v39  ;;  %5687 = vmatmul.mubr.bf16.vlgmr.msra.gmra.mrb[0].mxu1 %v7138_v41  ;;  %v6441_v39 = vld [vmem:[%s8165_s1 + $0x218] sm:$0xff]  }
  0xb0   : > { %5691 = vmatpush3.bf16.msra.mxu1 %v6386_v40  ;;  %5512 = vmatprep.subr.bf16.mxu0 %v6669_v1  ;;  %v6442_v40 = vld [vmem:[%s8165_s1 + $0x220] sm:$0xff]  }
  0xb1   : > { %5692 = vmatprep.subr.bf16.mxu1 %v6669_v1  ;;  %5526 = vmatprep.mubr.msk.bf16.mxu0 %vm6670_vm0, %v6669_v1 }
  0xb2   : > { %5706 = vmatprep.mubr.msk.bf16.mxu1 %vm6670_vm0, %v6669_v1 }
  0xb3   : > { %5513 = vmatpush3.bf16.msra.mxu0 %v6387_v42  ;;  %v6443_v42 = vld [vmem:[%s8165_s1 + $0x220] sm:$0xff]  }
  0xb4   : > { %5693 = vmatpush3.bf16.msra.mxu1 %v6388_v43  ;;  %5514 = vmatprep.subr.bf16.mxu0 %v6669_v1  ;;  %v6444_v43 = vld [vmem:[%s8165_s1 + $0x228] sm:$0xff]  }
  0xb5   : > { %5694 = vmatprep.subr.bf16.mxu1 %v6669_v1 }
  0xb7   : > { %5515 = vmatpush3.bf16.msra.mxu0 %v6389_v29  ;;  %v6445_v29 = vld [vmem:[%s8165_s1 + $0x228] sm:$0xff]  }
  0xb8   : > { %5695 = vmatpush3.bf16.msra.mxu1 %v6390_v44  ;;  %5516 = vmatprep.subr.bf16.mxu0 %v6669_v1  ;;  %v6446_v44 = vld [vmem:[%s8165_s1 + $0x230] sm:$0xff]  }
  0xb9   : > { %5696 = vmatprep.subr.bf16.mxu1 %v6669_v1 }
  0xbb   : > { %5517 = vmatpush3.bf16.msra.mxu0 %v6391_v45  ;;  %v6447_v45 = vld [vmem:[%s8165_s1 + $0x230] sm:$0xff]  }
  0xbc   : > { %5697 = vmatpush3.bf16.msra.mxu1 %v6392_v46  ;;  %5518 = vmatprep.subr.bf16.mxu0 %v6669_v1  ;;  %v6448_v46 = vld [vmem:[%s8165_s1 + $0x238] sm:$0xff]  }
  0xbd   : > { %5698 = vmatprep.subr.bf16.mxu1 %v6669_v1 }
  0xbf   : > { %5519 = vmatpush3.bf16.msra.mxu0 %v6393_v47  ;;  %v6449_v47 = vld [vmem:[%s8165_s1 + $0x238] sm:$0xff]  }
  0xc0   : > { %5699 = vmatpush3.bf16.msra.mxu1 %v6394_v48  ;;  %5520 = vmatprep.subr.bf16.mxu0 %v6669_v1  ;;  %v7430_v48 = vrot.slane %v7332_v22, 1  ;;  %v6604_v22 = vld [vmem:[%s6788_s30 + $0x8] sm:$0x7] }
  0xc1   : > { %5700 = vmatprep.subr.bf16.mxu1 %v6669_v1 }
  0xc3   : > { %5521 = vmatpush3.bf16.msra.mxu0 %v6395_v49  ;;  %v6450_v49 = vld [vmem:[%s8165_s1 + $0x40] sm:$0xff]  }
  0xc4   : > { %5701 = vmatpush3.bf16.msra.mxu1 %v6396_v50  ;;  %5522 = vmatprep.subr.bf16.mxu0 %v6669_v1  ;;  %v6451_v50 = vld [vmem:[%s8165_s1 + $0x40] sm:$0xff]  }
  0xc5   : > { %5702 = vmatprep.subr.bf16.mxu1 %v6669_v1 }
  0xc7   : > { %5523 = vmatpush3.bf16.msra.mxu0 %v6397_v51  ;;  %v6452_v51 = vld [vmem:[%s8165_s1 + $0x48] sm:$0xff]  }
  0xc8   : > { %5703 = vmatpush3.bf16.msra.mxu1 %v6398_v52  ;;  %5524 = vmatprep.subr.bf16.mxu0 %v6669_v1  ;;  %v6453_v52 = vld [vmem:[%s8165_s1 + $0x48] sm:$0xff]  }
  0xc9   : > { %5704 = vmatprep.subr.bf16.mxu1 %v6669_v1 }
  0xcb   : > { %5525 = vmatpush3.bf16.msra.mxu0 %v6399_v53  ;;  %v6454_v53 = vld [vmem:[%s8165_s1 + $0x50] sm:$0xff]  }
  0xcc   : > { %5705 = vmatpush3.bf16.msra.mxu1 %v6400_v54  ;;  %5530 = vmatprep.subr.bf16.mxu0 %v6669_v1  ;;  %v6455_v54 = vld [vmem:[%s8165_s1 + $0x50] sm:$0xff]  }
  0xcd   : > { %5710 = vmatprep.subr.bf16.mxu1 %v6669_v1 }
  0xce   : > { %5527 = vmatmul.mubr.bf16.vlgmr.msra.gmra.mrb[0].mxu0 %v772_v63  ;;  %v6409_v63 = vld [vmem:[%s8165_s1 + $0x1a0] sm:$0xff]  }
  0xcf   : > { %5531 = vmatpush3.bf16.msra.mxu0 %v6401_v55  ;;  %5707 = vmatmul.mubr.bf16.vlgmr.msra.gmra.mrb[0].mxu1 %v7208_v56  ;;  %v6456_v55 = vld [vmem:[%s8165_s1 + $0x58] sm:$0xff]  }
  0xd0   : > { %5711 = vmatpush3.bf16.msra.mxu1 %v6402_v57  ;;  %5532 = vmatprep.subr.bf16.mxu0 %v6669_v1  ;;  %v6457_v57 = vld [vmem:[%s8165_s1 + $0x58] sm:$0xff]  }
  0xd1   : > { %5712 = vmatprep.subr.bf16.mxu1 %v6669_v1  ;;  %5546 = vmatprep.mubr.msk.bf16.mxu0 %vm6670_vm0, %v6669_v1 }
  0xd2   : > { %5726 = vmatprep.mubr.msk.bf16.mxu1 %vm6670_vm0, %v6669_v1 }
  0xd3   : > { %5533 = vmatpush3.bf16.msra.mxu0 %v6403_v58  ;;  %v6458_v58 = vld [vmem:[%s8165_s1 + $0x60] sm:$0xff]  }
  0xd4   : > { %5713 = vmatpush3.bf16.msra.mxu1 %v6404_v59  ;;  %5534 = vmatprep.subr.bf16.mxu0 %v6669_v1  ;;  %v6459_v59 = vld [vmem:[%s8165_s1 + $0x60] sm:$0xff]  }
  0xd5   : > { %5714 = vmatprep.subr.bf16.mxu1 %v6669_v1 }
  0xd7   : > { %5535 = vmatpush3.bf16.msra.mxu0 %v6405_v15  ;;  %v6460_v15 = vld [vmem:[%s8165_s1 + $0x68] sm:$0xff]  }
  0xd8   : > { %5715 = vmatpush3.bf16.msra.mxu1 %v6406_v60  ;;  %5536 = vmatprep.subr.bf16.mxu0 %v6669_v1  ;;  %v6461_v60 = vld [vmem:[%s8165_s1 + $0x68] sm:$0xff]  }
  0xd9   : > { %5716 = vmatprep.subr.bf16.mxu1 %v6669_v1 }
  0xdb   : > { %5537 = vmatpush3.bf16.msra.mxu0 %v6407_v61  ;;  %v6462_v61 = vld [vmem:[%s8165_s1 + $0x70] sm:$0xff]  }
  0xdc   : > { %5717 = vmatpush3.bf16.msra.mxu1 %v6408_v62  ;;  %5538 = vmatprep.subr.bf16.mxu0 %v6669_v1  ;;  %v6463_v62 = vld [vmem:[%s8165_s1 + $0x70] sm:$0xff]  }
  0xdd   : > { %5718 = vmatprep.subr.bf16.mxu1 %v6669_v1 }
  0xdf   : > { %5539 = vmatpush3.bf16.msra.mxu0 %v6409_v63  ;;  %v6464_v63 = vld [vmem:[%s8165_s1 + $0x78] sm:$0xff]  }
  0xe0   : > { %5719 = vmatpush3.bf16.msra.mxu1 %v6410_v0  ;;  %5540 = vmatprep.subr.bf16.mxu0 %v6669_v1  ;;  %v6465_v0 = vld [vmem:[%s8165_s1 + $0x78] sm:$0xff]  }
  0xe1   : > { %5720 = vmatprep.subr.bf16.mxu1 %v6669_v1 }
  0xe3   : > { %5541 = vmatpush3.bf16.msra.mxu0 %v6411_v2  ;;  %v6466_v2 = vld [vmem:[%s8165_s1] sm:$0xff]  }
  0xe4   : > { %5721 = vmatpush3.bf16.msra.mxu1 %v6412_v3  ;;  %5542 = vmatprep.subr.bf16.mxu0 %v6669_v1  ;;  %v6467_v3 = vld [vmem:[%s8165_s1] sm:$0xff]  }
  0xe5   : > { %5722 = vmatprep.subr.bf16.mxu1 %v6669_v1 }
  0xe7   : > { %5543 = vmatpush3.bf16.msra.mxu0 %v6413_v4  ;;  %v6468_v4 = vld [vmem:[%s8165_s1 + $0x8] sm:$0xff]  }
  0xe8   : > { %5723 = vmatpush3.bf16.msra.mxu1 %v6414_v5  ;;  %5544 = vmatprep.subr.bf16.mxu0 %v6669_v1  ;;  %v6469_v5 = vld [vmem:[%s8165_s1 + $0x8] sm:$0xff]  }
  0xe9   : > { %5724 = vmatprep.subr.bf16.mxu1 %v6669_v1 }
  0xeb   : > { %5545 = vmatpush3.bf16.msra.mxu0 %v6415_v6  ;;  %v6471_v6 = vld [vmem:[%s8165_s1 + $0x10] sm:$0xff]  }
  0xec   : > { %5725 = vmatpush3.bf16.msra.mxu1 %v6416_v7  ;;  %5550 = vmatprep.subr.bf16.mxu0 %v6669_v1  ;;  %v6472_v7 = vld [vmem:[%s8165_s1 + $0x18] sm:$0xff]  }
  0xed   : > { %5730 = vmatprep.subr.bf16.mxu1 %v6669_v1 }
  0xee   : > { %5547 = vmatmul.mubr.bf16.vlgmr.msra.gmra.mrb[0].mxu0 %v7057_v19  ;;  %v6426_v19 = vld [vmem:[%s8165_s1 + $0x1e0] sm:$0xff]  }
  0xef   : > { %5551 = vmatpush3.bf16.msra.mxu0 %v6417_v8  ;;  %5727 = vmatmul.mubr.bf16.vlgmr.msra.gmra.mrb[0].mxu1 %v7282_v9  ;;  %v6473_v8 = vld [vmem:[%s8165_s1 + $0x18] sm:$0xff]  }
  0xf0   : > { %5731 = vmatpush3.bf16.msra.mxu1 %v6419_v10  ;;  %5552 = vmatprep.subr.bf16.mxu0 %v6669_v1  ;;  %v6474_v10 = vld [vmem:[%s8165_s1 + $0x20] sm:$0xff]  }
  0xf1   : > { %5732 = vmatprep.subr.bf16.mxu1 %v6669_v1  ;;  %5566 = vmatprep.mubr.msk.bf16.mxu0 %vm6670_vm0, %v6669_v1 }
  0xf2   : > { %5746 = vmatprep.mubr.msk.bf16.mxu1 %vm6670_vm0, %v6669_v1 }
  0xf3   : > { %5553 = vmatpush3.bf16.msra.mxu0 %v6420_v11  ;;  %v6475_v11 = vld [vmem:[%s8165_s1 + $0x20] sm:$0xff]  }
  0xf4   : > { %5733 = vmatpush3.bf16.msra.mxu1 %v6421_v12  ;;  %5554 = vmatprep.subr.bf16.mxu0 %v6669_v1  ;;  %v6476_v12 = vld [vmem:[%s8165_s1 + $0x28] sm:$0xff]  }
  0xf5   : > { %5734 = vmatprep.subr.bf16.mxu1 %v6669_v1 }
  0xf7   : > { %5555 = vmatpush3.bf16.msra.mxu0 %v6422_v14  ;;  %v6477_v14 = vld [vmem:[%s8165_s1 + $0x28] sm:$0xff]  }
  0xf8   : > { %5735 = vmatpush3.bf16.msra.mxu1 %v6423_v16  ;;  %5556 = vmatprep.subr.bf16.mxu0 %v6669_v1  ;;  %v6478_v16 = vld [vmem:[%s8165_s1 + $0x30] sm:$0xff]  }
  0xf9   : > { %5736 = vmatprep.subr.bf16.mxu1 %v6669_v1 }
  0xfb   : > { %5557 = vmatpush3.bf16.msra.mxu0 %v6424_v17  ;;  %v6479_v17 = vld [vmem:[%s8165_s1 + $0x30] sm:$0xff]  }
  0xfc   : > { %5737 = vmatpush3.bf16.msra.mxu1 %v6425_v18  ;;  %5558 = vmatprep.subr.bf16.mxu0 %v6669_v1  ;;  %v6480_v18 = vld [vmem:[%s8165_s1 + $0x38] sm:$0xff]  }
  0xfd   : > { %5738 = vmatprep.subr.bf16.mxu1 %v6669_v1 }
  0xff   : > { %5559 = vmatpush3.bf16.msra.mxu0 %v6426_v19  ;;  %v6481_v19 = vld [vmem:[%s8165_s1 + $0x38] sm:$0xff]  }
 0x100   : > { %5739 = vmatpush3.bf16.msra.mxu1 %v6427_v20  ;;  %5560 = vmatprep.subr.bf16.mxu0 %v6669_v1  ;;  %v6482_v20 = vld [vmem:[%s8165_s1 + $0x80] sm:$0xff]  }
 0x101   : > { %5740 = vmatprep.subr.bf16.mxu1 %v6669_v1 }
 0x103   : > { %5561 = vmatpush3.bf16.msra.mxu0 %v6428_v21  ;;  %v6483_v21 = vld [vmem:[%s8165_s1 + $0x80] sm:$0xff]  }
 0x104   : > { %5741 = vmatpush3.bf16.msra.mxu1 %v6429_v13  ;;  %5562 = vmatprep.subr.bf16.mxu0 %v6669_v1  ;;  %v6484_v13 = vld [vmem:[%s8165_s1 + $0x88] sm:$0xff]  }
 0x105   : > { %5742 = vmatprep.subr.bf16.mxu1 %v6669_v1 }
 0x107   : > { %5563 = vmatpush3.bf16.msra.mxu0 %v6430_v23  ;;  %v6485_v23 = vld [vmem:[%s8165_s1 + $0x88] sm:$0xff]  }
 0x108   : > { %5743 = vmatpush3.bf16.msra.mxu1 %v6431_v24  ;;  %5564 = vmatprep.subr.bf16.mxu0 %v6669_v1  ;;  %v6486_v24 = vld [vmem:[%s8165_s1 + $0x90] sm:$0xff]  }
 0x109   : > { %5744 = vmatprep.subr.bf16.mxu1 %v6669_v1 }
 0x10b   : > { %5565 = vmatpush3.bf16.msra.mxu0 %v6432_v26  ;;  %v6488_v26 = vld [vmem:[%s8165_s1 + $0x98] sm:$0xff]  }
 0x10c   : > { %5745 = vmatpush3.bf16.msra.mxu1 %v6433_v28  ;;  %5570 = vmatprep.subr.bf16.mxu0 %v6669_v1  ;;  %v6490_v28 = vld [vmem:[%s8165_s1 + $0xa0] sm:$0xff]  }
 0x10d   : > { %5750 = vmatprep.subr.bf16.mxu1 %v6669_v1 }
 0x10e   : > { %5567 = vmatmul.mubr.bf16.vlgmr.msra.gmra.mrb[0].mxu0 %v7138_v41 }
 0x10f   : > { %5571 = vmatpush3.bf16.msra.mxu0 %v6434_v31  ;;  %5747 = vmatmul.mubr.bf16.vlgmr.msra.gmra.mrb[0].mxu1 %v7363_v33  ;;  %v6492_v31 = vld [vmem:[%s8165_s1 + $0xa8] sm:$0xff]  }
 0x110   : > { %5751 = vmatpush3.bf16.msra.mxu1 %v6435_v32  ;;  %5572 = vmatprep.subr.bf16.mxu0 %v6669_v1  ;;  %v6493_v32 = vld [vmem:[%s8165_s1 + $0xa8] sm:$0xff]  }
 0x111   : > { %5752 = vmatprep.subr.bf16.mxu1 %v6669_v1  ;;  %5586 = vmatprep.mubr.msk.bf16.mxu0 %vm6670_vm0, %v6669_v1 }
 0x112   : > { %5766 = vmatprep.mubr.msk.bf16.mxu1 %vm6670_vm0, %v6669_v1 }
 0x113   : > { %5573 = vmatpush3.bf16.msra.mxu0 %v6436_v34  ;;  %v6494_v34 = vld [vmem:[%s8165_s1 + $0xb0] sm:$0xff]  }
 0x114   : > { %5753 = vmatpush3.bf16.msra.mxu1 %v6437_v35  ;;  %5574 = vmatprep.subr.bf16.mxu0 %v6669_v1  ;;  %v6495_v35 = vld [vmem:[%s8165_s1 + $0xb0] sm:$0xff]  }
 0x115   : > { %5754 = vmatprep.subr.bf16.mxu1 %v6669_v1 }
 0x117   : > { %5575 = vmatpush3.bf16.msra.mxu0 %v6438_v36  ;;  %v6496_v36 = vld [vmem:[%s8165_s1 + $0xb8] sm:$0xff]  }
 0x118   : > { %5755 = vmatpush3.bf16.msra.mxu1 %v6439_v37  ;;  %5576 = vmatprep.subr.bf16.mxu0 %v6669_v1  ;;  %v6497_v37 = vld [vmem:[%s8165_s1 + $0xb8] sm:$0xff]  }
 0x119   : > { %5756 = vmatprep.subr.bf16.mxu1 %v6669_v1 }
 0x11b   : > { %5577 = vmatpush3.bf16.msra.mxu0 %v6440_v38  ;;  %v6498_v38 = vld [vmem:[%s8165_s1 + $0xc0] sm:$0xff]  }
 0x11c   : > { %5757 = vmatpush3.bf16.msra.mxu1 %v6441_v39  ;;  %5578 = vmatprep.subr.bf16.mxu0 %v6669_v1  ;;  %v6499_v39 = vld [vmem:[%s8165_s1 + $0xc0] sm:$0xff]  }
 0x11d   : > { %5758 = vmatprep.subr.bf16.mxu1 %v6669_v1 }
 0x11f   : > { %5579 = vmatpush3.bf16.msra.mxu0 %v6442_v40  ;;  %v6500_v40 = vld [vmem:[%s8165_s1 + $0xc8] sm:$0xff]  }
 0x120   : > { %5759 = vmatpush3.bf16.msra.mxu1 %v6443_v42  ;;  %5580 = vmatprep.subr.bf16.mxu0 %v6669_v1  ;;  %v6501_v42 = vld [vmem:[%s8165_s1 + $0xc8] sm:$0xff]  }
 0x121   : > { %5760 = vmatprep.subr.bf16.mxu1 %v6669_v1 }
 0x123   : > { %5581 = vmatpush3.bf16.msra.mxu0 %v6444_v43  ;;  %v6503_v43 = vld [vmem:[%s8165_s1 + $0xd0] sm:$0xff]  }
 0x124   : > { %5761 = vmatpush3.bf16.msra.mxu1 %v6445_v29  ;;  %5582 = vmatprep.subr.bf16.mxu0 %v6669_v1  ;;  %v6504_v29 = vld [vmem:[%s8165_s1 + $0xd8] sm:$0xff]  }
 0x125   : > { %5762 = vmatprep.subr.bf16.mxu1 %v6669_v1 }
 0x127   : > { %5583 = vmatpush3.bf16.msra.mxu0 %v6446_v44  ;;  %v6505_v44 = vld [vmem:[%s8165_s1 + $0xd8] sm:$0xff]  }
 0x128   : > { %5763 = vmatpush3.bf16.msra.mxu1 %v6447_v45  ;;  %5584 = vmatprep.subr.bf16.mxu0 %v6669_v1  ;;  %v6506_v45 = vld [vmem:[%s8165_s1 + $0xe0] sm:$0xff]  }
 0x129   : > { %5764 = vmatprep.subr.bf16.mxu1 %v6669_v1 }
 0x12b   : > { %5585 = vmatpush3.bf16.msra.mxu0 %v6448_v46  ;;  %v6507_v46 = vld [vmem:[%s8165_s1 + $0xe0] sm:$0xff]  }
 0x12c   : > { %5765 = vmatpush3.bf16.msra.mxu1 %v6449_v47  ;;  %5770 = vmatprep.subr.bf16.mxu0 %v6669_v1  ;;  %v6508_v47 = vld [vmem:[%s8165_s1 + $0xe8] sm:$0xff]  }
 0x12d   : > { %5950 = vmatprep.subr.bf16.mxu1 %v6669_v1 }
 0x12e   : > { %5587 = vmatmul.mubr.bf16.vlgmr.msra.gmra.mrb[0].mxu0 %v7208_v56 }
 0x12f   : > { %5767 = vmatmul.mubr.bf16.vlgmr.msra.gmra.mrb[0].mxu1 %v7430_v48  ;;  %5771 = vmatpush3.bf16.msra.mxu0 %v6450_v49  ;;  %v6509_v49 = vld [vmem:[%s8165_s1 + $0xe8] sm:$0xff]  }
 0x130   : > { %5951 = vmatpush3.bf16.msra.mxu1 %v6451_v50  ;;  %5772 = vmatprep.subr.bf16.mxu0 %v6669_v1  ;;  %v6510_v50 = vld [vmem:[%s8165_s1 + $0xf0] sm:$0xff]  }
 0x131   : > { %5952 = vmatprep.subr.bf16.mxu1 %v6669_v1  ;;  %5786 = vmatprep.mubr.msk.bf16.mxu0 %vm6670_vm0, %v6669_v1 }
 0x132   : > { %5966 = vmatprep.mubr.msk.bf16.mxu1 %vm6670_vm0, %v6669_v1 }
 0x133   : > { %5773 = vmatpush3.bf16.msra.mxu0 %v6452_v51  ;;  %v6511_v51 = vld [vmem:[%s8165_s1 + $0xf0] sm:$0xff]  }
 0x134   : > { %5953 = vmatpush3.bf16.msra.mxu1 %v6453_v52  ;;  %5774 = vmatprep.subr.bf16.mxu0 %v6669_v1  ;;  %v6512_v52 = vld [vmem:[%s8165_s1 + $0xf8] sm:$0xff]  }
 0x135   : > { %5954 = vmatprep.subr.bf16.mxu1 %v6669_v1 }
 0x137   : > { %5775 = vmatpush3.bf16.msra.mxu0 %v6454_v53  ;;  %v6513_v53 = vld [vmem:[%s8165_s1 + $0xf8] sm:$0xff]  }
 0x138   : > { %5955 = vmatpush3.bf16.msra.mxu1 %v6455_v54  ;;  %5776 = vmatprep.subr.bf16.mxu0 %v6669_v1  ;;  %v6514_v54 = vld [vmem:[%s8165_s1 + $0x100] sm:$0xff]  }
 0x139   : > { %5956 = vmatprep.subr.bf16.mxu1 %v6669_v1 }
 0x13b   : > { %5777 = vmatpush3.bf16.msra.mxu0 %v6456_v55  ;;  %v7717_v55 = vld [vmem:[%s6788_s30 + $0x10] sm:$0x7] }
 0x13c   : > { %5957 = vmatpush3.bf16.msra.mxu1 %v6457_v57  ;;  %5778 = vmatprep.subr.bf16.mxu0 %v6669_v1  ;;  %v6516_v57 = vld [vmem:[%s8165_s1 + $0x100] sm:$0xff]  }
 0x13d   : > { %5958 = vmatprep.subr.bf16.mxu1 %v6669_v1 }
 0x13f   : > { %5779 = vmatpush3.bf16.msra.mxu0 %v6458_v58  ;;  %v6517_v58 = vld [vmem:[%s8165_s1 + $0x108] sm:$0xff]  }
 0x140   : > { %5959 = vmatpush3.bf16.msra.mxu1 %v6459_v59  ;;  %5780 = vmatprep.subr.bf16.mxu0 %v6669_v1  ;;  %v6518_v59 = vld [vmem:[%s8165_s1 + $0x108] sm:$0xff]  }
 0x141   : > { %5960 = vmatprep.subr.bf16.mxu1 %v6669_v1 }
 0x143   : > { %5781 = vmatpush3.bf16.msra.mxu0 %v6460_v15  ;;  %v6520_v15 = vld [vmem:[%s8165_s1 + $0x110] sm:$0xff]  }
 0x144   : > { %5961 = vmatpush3.bf16.msra.mxu1 %v6461_v60  ;;  %5782 = vmatprep.subr.bf16.mxu0 %v6669_v1  ;;  %v6521_v60 = vld [vmem:[%s8165_s1 + $0x118] sm:$0xff]  }
 0x145   : > { %5962 = vmatprep.subr.bf16.mxu1 %v6669_v1 }
 0x147   : > { %5783 = vmatpush3.bf16.msra.mxu0 %v6462_v61  ;;  %v6522_v61 = vld [vmem:[%s8165_s1 + $0x118] sm:$0xff]  }
 0x148   : > { %5963 = vmatpush3.bf16.msra.mxu1 %v6463_v62  ;;  %5784 = vmatprep.subr.bf16.mxu0 %v6669_v1  ;;  %v6523_v62 = vld [vmem:[%s8165_s1 + $0x120] sm:$0xff]  }
 0x149   : > { %5964 = vmatprep.subr.bf16.mxu1 %v6669_v1 }
 0x14b   : > { %5785 = vmatpush3.bf16.msra.mxu0 %v6464_v63  ;;  %v6524_v63 = vld [vmem:[%s8165_s1 + $0x120] sm:$0xff]  }
 0x14c   : > { %5965 = vmatpush3.bf16.msra.mxu1 %v6465_v0  ;;  %5790 = vmatprep.subr.bf16.mxu0 %v6669_v1  ;;  %v7763_v0 = vcombine.low %v7717_v55, %v7717_v55 }
 0x14d   : > { %5970 = vmatprep.subr.bf16.mxu1 %v6669_v1 }
 0x14e   : > { %5787 = vmatmul.mubr.bf16.vlgmr.msra.gmra.mrb[4].mxu0 %v7138_v41  ;;  %v6470_v41 = vld [vmem:[%s8165_s1 + $0x10] sm:$0xff]  }
 0x14f   : > { %5791 = vmatpush3.bf16.msra.mxu0 %v6466_v2  ;;  %5967 = vmatmul.mubr.bf16.vlgmr.msra.gmra.mrb[4].mxu1 %v7363_v33  ;;  %v6525_v2 = vld [vmem:[%s8165_s1 + $0x128] sm:$0xff]  }
 0x150   : > { %5971 = vmatpush3.bf16.msra.mxu1 %v6467_v3  ;;  %5792 = vmatprep.subr.bf16.mxu0 %v6669_v1  ;;  %v6526_v3 = vld [vmem:[%s8165_s1 + $0x128] sm:$0xff]  }
 0x151   : > { %5972 = vmatprep.subr.bf16.mxu1 %v6669_v1  ;;  %5806 = vmatprep.mubr.msk.bf16.mxu0 %vm6670_vm0, %v6669_v1 }
 0x152   : > { %5986 = vmatprep.mubr.msk.bf16.mxu1 %vm6670_vm0, %v6669_v1 }
 0x153   : > { %5793 = vmatpush3.bf16.msra.mxu0 %v6468_v4  ;;  %v6527_v4 = vld [vmem:[%s8165_s1 + $0x130] sm:$0xff]  }
 0x154   : > { %5973 = vmatpush3.bf16.msra.mxu1 %v6469_v5  ;;  %5794 = vmatprep.subr.bf16.mxu0 %v6669_v1  ;;  %v2967_v5 = vshll.u32 %v7763_v0, 16 }
 0x155   : > { %5974 = vmatprep.subr.bf16.mxu1 %v6669_v1 }
 0x157   : > { %5795 = vmatpush3.bf16.msra.mxu0 %v6470_v41  ;;  %v6528_v41 = vld [vmem:[%s8165_s1 + $0x130] sm:$0xff]  }
 0x158   : > { %5975 = vmatpush3.bf16.msra.mxu1 %v6471_v6  ;;  %5796 = vmatprep.subr.bf16.mxu0 %v6669_v1  ;;  %v6529_v6 = vld [vmem:[%s8165_s1 + $0x138] sm:$0xff]  }
 0x159   : > { %5976 = vmatprep.subr.bf16.mxu1 %v6669_v1 }
 0x15b   : > { %5797 = vmatpush3.bf16.msra.mxu0 %v6472_v7  ;;  %v2965_v7 = vshrl.u32 %v7763_v0, 16 }
 0x15c   : > { %5977 = vmatpush3.bf16.msra.mxu1 %v6473_v8  ;;  %5798 = vmatprep.subr.bf16.mxu0 %v6669_v1  ;;  %v2969_v8 = vrot.slane %v2967_v5, 1  ;;  %v6574_v5 = vld [vmem:[%s8165_s1 + $0x1e8] sm:$0xff]  }
 0x15d   : > { %5978 = vmatprep.subr.bf16.mxu1 %v6669_v1 }
 0x15f   : > { %5799 = vmatpush3.bf16.msra.mxu0 %v6474_v10  ;;  %v6530_v10 = vld [vmem:[%s8165_s1 + $0x138] sm:$0xff]  }
 0x160   : > { %5979 = vmatpush3.bf16.msra.mxu1 %v6475_v11  ;;  %5800 = vmatprep.subr.bf16.mxu0 %v6669_v1  ;;  %v6531_v11 = vld [vmem:[%s8165_s1 + $0x140] sm:$0xff]  }
 0x161   : > { %5980 = vmatprep.subr.bf16.mxu1 %v6669_v1 }
 0x163   : > { %5801 = vmatpush3.bf16.msra.mxu0 %v6476_v12  ;;  %v7794_v12 = vor.u32 %v2969_v8, %v2965_v7  ;;  %v6576_v7 = vld [vmem:[%s8165_s1 + $0x1f0] sm:$0xff]  }
 0x164   : > { %5981 = vmatpush3.bf16.msra.mxu1 %v6477_v14  ;;  %5802 = vmatprep.subr.bf16.mxu0 %v6669_v1  ;;  %v6532_v14 = vld [vmem:[%s8165_s1 + $0x140] sm:$0xff]   ;;  %v6577_v8 = vld [vmem:[%s8165_s1 + $0x1f0] sm:$0xff]  }
 0x165   : > { %5982 = vmatprep.subr.bf16.mxu1 %v6669_v1 }
 0x167   : > { %5803 = vmatpush3.bf16.msra.mxu0 %v6478_v16  ;;  %v6533_v16 = vld [vmem:[%s8165_s1 + $0x148] sm:$0xff]  }
 0x168   : > { %5983 = vmatpush3.bf16.msra.mxu1 %v6479_v17  ;;  %5804 = vmatprep.subr.bf16.mxu0 %v6669_v1  ;;  %v6534_v17 = vld [vmem:[%s8165_s1 + $0x148] sm:$0xff]  }
 0x169   : > { %5984 = vmatprep.subr.bf16.mxu1 %v6669_v1 }
 0x16b   : > { %5805 = vmatpush3.bf16.msra.mxu0 %v6480_v18  ;;  %v6536_v18 = vld [vmem:[%s8165_s1 + $0x150] sm:$0xff]  }
 0x16c   : > { %5985 = vmatpush3.bf16.msra.mxu1 %v6481_v19  ;;  %5810 = vmatprep.subr.bf16.mxu0 %v6669_v1  ;;  %v6537_v19 = vld [vmem:[%s8165_s1 + $0x158] sm:$0xff]  }
 0x16d   : > { %5990 = vmatprep.subr.bf16.mxu1 %v6669_v1 }
 0x16e   : > { %5807 = vmatmul.mubr.bf16.vlgmr.msra.gmra.mrb[4].mxu0 %v6604_v22  ;;  %v6540_v22 = vld [vmem:[%s8165_s1 + $0x160] sm:$0xff]  }
 0x16f   : > { %5811 = vmatpush3.bf16.msra.mxu0 %v6482_v20  ;;  %5987 = vmatmul.mubr.bf16.vlgmr.msra.gmra.mrb[4].mxu1 %v7282_v9  ;;  %v6538_v20 = vld [vmem:[%s8165_s1 + $0x158] sm:$0xff]  }
 0x170   : > { %5991 = vmatpush3.bf16.msra.mxu1 %v6483_v21  ;;  %5812 = vmatprep.subr.bf16.mxu0 %v6669_v1  ;;  %v6539_v21 = vld [vmem:[%s8165_s1 + $0x160] sm:$0xff]  }
 0x171   : > { %5992 = vmatprep.subr.bf16.mxu1 %v6669_v1  ;;  %5826 = vmatprep.mubr.msk.bf16.mxu0 %vm6670_vm0, %v6669_v1 }
 0x172   : > { %6006 = vmatprep.mubr.msk.bf16.mxu1 %vm6670_vm0, %v6669_v1 }
 0x173   : > { %5813 = vmatpush3.bf16.msra.mxu0 %v6484_v13  ;;  %v6541_v13 = vld [vmem:[%s8165_s1 + $0x168] sm:$0xff]  }
 0x174   : > { %5993 = vmatpush3.bf16.msra.mxu1 %v6485_v23  ;;  %5814 = vmatprep.subr.bf16.mxu0 %v6669_v1  ;;  %v6542_v23 = vld [vmem:[%s8165_s1 + $0x168] sm:$0xff]  }
 0x175   : > { %5994 = vmatprep.subr.bf16.mxu1 %v6669_v1 }
 0x177   : > { %5815 = vmatpush3.bf16.msra.mxu0 %v6486_v24  ;;  %v6543_v24 = vld [vmem:[%s8165_s1 + $0x170] sm:$0xff]  }
 0x178   : > { %5995 = vmatpush3.bf16.msra.mxu1 %v6487_v25  ;;  %5816 = vmatprep.subr.bf16.mxu0 %v6669_v1  ;;  %v6544_v25 = vld [vmem:[%s8165_s1 + $0x170] sm:$0xff]  }
 0x179   : > { %5996 = vmatprep.subr.bf16.mxu1 %v6669_v1 }
 0x17b   : > { %5817 = vmatpush3.bf16.msra.mxu0 %v6488_v26  ;;  %v6545_v26 = vld [vmem:[%s8165_s1 + $0x178] sm:$0xff]  }
 0x17c   : > { %5997 = vmatpush3.bf16.msra.mxu1 %v6489_v27  ;;  %5818 = vmatprep.subr.bf16.mxu0 %v6669_v1  ;;  %v6546_v27 = vld [vmem:[%s8165_s1 + $0x178] sm:$0xff]  }
 0x17d   : > { %5998 = vmatprep.subr.bf16.mxu1 %v6669_v1 }
 0x17f   : > { %5819 = vmatpush3.bf16.msra.mxu0 %v6490_v28  ;;  %v6547_v28 = vld [vmem:[%s8165_s1 + $0x180] sm:$0xff]  }
 0x180   : > { %5999 = vmatpush3.bf16.msra.mxu1 %v6491_v30  ;;  %5820 = vmatprep.subr.bf16.mxu0 %v6669_v1  ;;  %v3077_v30 = vrot.slane %v7763_v0, 1 }
 0x181   : > { %6000 = vmatprep.subr.bf16.mxu1 %v6669_v1 }
 0x183   : > { %5821 = vmatpush3.bf16.msra.mxu0 %v6492_v31  ;;  %v6548_v31 = vld [vmem:[%s8165_s1 + $0x180] sm:$0xff]  }
 0x184   : > { %6001 = vmatpush3.bf16.msra.mxu1 %v6493_v32  ;;  %5822 = vmatprep.subr.bf16.mxu0 %v6669_v1  ;;  %v6549_v32 = vld [vmem:[%s8165_s1 + $0x188] sm:$0xff]  }
 0x185   : > { %6002 = vmatprep.subr.bf16.mxu1 %v6669_v1 }
 0x187   : > { %5823 = vmatpush3.bf16.msra.mxu0 %v6494_v34  ;;  %v6550_v34 = vld [vmem:[%s8165_s1 + $0x188] sm:$0xff]  }
 0x188   : > { %6003 = vmatpush3.bf16.msra.mxu1 %v6495_v35  ;;  %5824 = vmatprep.subr.bf16.mxu0 %v6669_v1  ;;  %v6552_v35 = vld [vmem:[%s8165_s1 + $0x190] sm:$0xff]  }
 0x189   : > { %6004 = vmatprep.subr.bf16.mxu1 %v6669_v1 }
 0x18b   : > { %5825 = vmatpush3.bf16.msra.mxu0 %v6496_v36  ;;  %v6553_v36 = vld [vmem:[%s8165_s1 + $0x198] sm:$0xff]  }
 0x18c   : > { %6005 = vmatpush3.bf16.msra.mxu1 %v6497_v37  ;;  %5830 = vmatprep.subr.bf16.mxu0 %v6669_v1  ;;  %v6554_v37 = vld [vmem:[%s8165_s1 + $0x198] sm:$0xff]  }
 0x18d   : > { %6010 = vmatprep.subr.bf16.mxu1 %v6669_v1 }
 0x18e   : > { %5827 = vmatmul.mubr.bf16.vlgmr.msra.gmra.mrb[4].mxu0 %v7208_v56  ;;  %v6502_v56 = vld [vmem:[%s8165_s1 + $0xd0] sm:$0xff]  }
 0x18f   : > { %5831 = vmatpush3.bf16.msra.mxu0 %v6498_v38  ;;  %6007 = vmatmul.mubr.bf16.vlgmr.msra.gmra.mrb[4].mxu1 %v7430_v48  ;;  %v6555_v38 = vld [vmem:[%s8165_s1 + $0x1a0] sm:$0xff]  }
 0x190   : > { %6011 = vmatpush3.bf16.msra.mxu1 %v6499_v39  ;;  %5832 = vmatprep.subr.bf16.mxu0 %v6669_v1  ;;  %v6556_v39 = vld [vmem:[%s8165_s1 + $0x1a0] sm:$0xff]  }
 0x191   : > { %6012 = vmatprep.subr.bf16.mxu1 %v6669_v1  ;;  %5846 = vmatprep.mubr.msk.bf16.mxu0 %vm6670_vm0, %v6669_v1 }
 0x192   : > { %6026 = vmatprep.mubr.msk.bf16.mxu1 %vm6670_vm0, %v6669_v1 }
 0x193   : > { %5833 = vmatpush3.bf16.msra.mxu0 %v6500_v40  ;;  %v6557_v40 = vld [vmem:[%s8165_s1 + $0x1a8] sm:$0xff]  }
 0x194   : > { %6013 = vmatpush3.bf16.msra.mxu1 %v6501_v42  ;;  %5834 = vmatprep.subr.bf16.mxu0 %v6669_v1  ;;  %v6558_v42 = vld [vmem:[%s8165_s1 + $0x1a8] sm:$0xff]  }
 0x195   : > { %6014 = vmatprep.subr.bf16.mxu1 %v6669_v1 }
 0x197   : > { %5835 = vmatpush3.bf16.msra.mxu0 %v6502_v56 }
 0x198   : > { %6015 = vmatpush3.bf16.msra.mxu1 %v6503_v43  ;;  %5836 = vmatprep.subr.bf16.mxu0 %v6669_v1 }
 0x199   : > { %6016 = vmatprep.subr.bf16.mxu1 %v6669_v1 }
 0x19b   : > { %5837 = vmatpush3.bf16.msra.mxu0 %v6504_v29 }
 0x19c   : > { %6017 = vmatpush3.bf16.msra.mxu1 %v6505_v44  ;;  %5838 = vmatprep.subr.bf16.mxu0 %v6669_v1 }
 0x19d   : > { %6018 = vmatprep.subr.bf16.mxu1 %v6669_v1 }
 0x19f   : > { %5839 = vmatpush3.bf16.msra.mxu0 %v6506_v45 }
 0x1a0   : > { %6019 = vmatpush3.bf16.msra.mxu1 %v6507_v46  ;;  %5840 = vmatprep.subr.bf16.mxu0 %v6669_v1 }
 0x1a1   : > { %6020 = vmatprep.subr.bf16.mxu1 %v6669_v1 }
 0x1a3   : > { %5841 = vmatpush3.bf16.msra.mxu0 %v6508_v47  ;;  %v6559_v47 = vld [vmem:[%s8165_s1 + $0x1b0] sm:$0xff]  }
 0x1a4   : > { %6021 = vmatpush3.bf16.msra.mxu1 %v6509_v49  ;;  %5842 = vmatprep.subr.bf16.mxu0 %v6669_v1 }
 0x1a5   : > { %6022 = vmatprep.subr.bf16.mxu1 %v6669_v1 }
 0x1a7   : > { %5843 = vmatpush3.bf16.msra.mxu0 %v6510_v50 }
 0x1a8   : > { %6023 = vmatpush3.bf16.msra.mxu1 %v6511_v51  ;;  %5844 = vmatprep.subr.bf16.mxu0 %v6669_v1  ;;  %v6560_v51 = vld [vmem:[%s8165_s1 + $0x1b0] sm:$0xff]  }
 0x1a9   : > { %6024 = vmatprep.subr.bf16.mxu1 %v6669_v1 }
 0x1ab   : > { %5845 = vmatpush3.bf16.msra.mxu0 %v6512_v52 }
 0x1ac   : > { %6025 = vmatpush3.bf16.msra.mxu1 %v6513_v53  ;;  %5850 = vmatprep.subr.bf16.mxu0 %v6669_v1 }
 0x1ad   : > { %6030 = vmatprep.subr.bf16.mxu1 %v6669_v1 }
 0x1ae   : > { %5847 = vmatmul.mubr.bf16.vlgmr.msra.gmra.mrb[4].mxu0 %v7282_v9  ;;  %v6519_v9 = vld [vmem:[%s8165_s1 + $0x110] sm:$0xff]  }
 0x1af   : > { %5851 = vmatpush3.bf16.msra.mxu0 %v6514_v54  ;;  %6027 = vmatmul.mubr.bf16.vlgmr.msra.gmra.mrb[4].mxu1 %v7717_v55  ;;  %v6561_v54 = vld [vmem:[%s8165_s1 + $0x1b8] sm:$0xff]  }
 0x1b0   : > { %6031 = vmatpush3.bf16.msra.mxu1 %v6516_v57  ;;  %5852 = vmatprep.subr.bf16.mxu0 %v6669_v1  ;;  %v6562_v57 = vld [vmem:[%s8165_s1 + $0x1b8] sm:$0xff]  }
 0x1b1   : > { %6032 = vmatprep.subr.bf16.mxu1 %v6669_v1  ;;  %5866 = vmatprep.mubr.msk.bf16.mxu0 %vm6670_vm0, %v6669_v1 }
 0x1b2   : > { %6046 = vmatprep.mubr.msk.bf16.mxu1 %vm6670_vm0, %v6669_v1 }
 0x1b3   : > { %5853 = vmatpush3.bf16.msra.mxu0 %v6517_v58  ;;  %v6563_v58 = vld [vmem:[%s8165_s1 + $0x1c0] sm:$0xff]  }
 0x1b4   : > { %6033 = vmatpush3.bf16.msra.mxu1 %v6518_v59  ;;  %5854 = vmatprep.subr.bf16.mxu0 %v6669_v1  ;;  %v203_v59 = vld [vmem:[%s6788_s30 + $0x14] sm:$0x7]  ;;  %s8123_s30 = scalar_lea.sflag [#allocation3], %s188_s23 }
 0x1b5   : > { %6034 = vmatprep.subr.bf16.mxu1 %v6669_v1 }
 0x1b7   : > { %5855 = vmatpush3.bf16.msra.mxu0 %v6519_v9  ;;  %v6565_v9 = vld [vmem:[%s8165_s1 + $0x1c0] sm:$0xff]  }
 0x1b8   : > { %6035 = vmatpush3.bf16.msra.mxu1 %v6520_v15  ;;  %5856 = vmatprep.subr.bf16.mxu0 %v6669_v1  ;;  %v6566_v15 = vld [vmem:[%s8165_s1 + $0x1c8] sm:$0xff]  }
 0x1b9   : > { %6036 = vmatprep.subr.bf16.mxu1 %v6669_v1 }
 0x1bb   : > { %5857 = vmatpush3.bf16.msra.mxu0 %v6521_v60  ;;  %v6567_v60 = vld [vmem:[%s8165_s1 + $0x1c8] sm:$0xff]  }
 0x1bc   : > { %6037 = vmatpush3.bf16.msra.mxu1 %v6522_v61  ;;  %5858 = vmatprep.subr.bf16.mxu0 %v6669_v1  ;;  %v6569_v61 = vld [vmem:[%s8165_s1 + $0x1d0] sm:$0xff]  }
 0x1bd   : > { %6038 = vmatprep.subr.bf16.mxu1 %v6669_v1 }
 0x1bf   : > { %5859 = vmatpush3.bf16.msra.mxu0 %v6523_v62  ;;  %v6570_v62 = vld [vmem:[%s8165_s1 + $0x1d8] sm:$0xff]  }
 0x1c0   : > { %6039 = vmatpush3.bf16.msra.mxu1 %v6524_v63  ;;  %5860 = vmatprep.subr.bf16.mxu0 %v6669_v1  ;;  %v6571_v63 = vld [vmem:[%s8165_s1 + $0x1d8] sm:$0xff]  }
 0x1c1   : > { %6040 = vmatprep.subr.bf16.mxu1 %v6669_v1 }
 0x1c3   : > { %5861 = vmatpush3.bf16.msra.mxu0 %v6525_v2  ;;  %v6572_v2 = vld [vmem:[%s8165_s1 + $0x1e0] sm:$0xff]  }
 0x1c4   : > { %6041 = vmatpush3.bf16.msra.mxu1 %v6526_v3  ;;  %5862 = vmatprep.subr.bf16.mxu0 %v6669_v1  ;;  %v6573_v3 = vld [vmem:[%s8165_s1 + $0x1e0] sm:$0xff]  }
 0x1c5   : > { %6042 = vmatprep.subr.bf16.mxu1 %v6669_v1 }
 0x1c7   : > { %5863 = vmatpush3.bf16.msra.mxu0 %v6527_v4  ;;  %v7989_v4 = vcombine.low %v203_v59, %v203_v59 }
 0x1c8   : > { %6043 = vmatpush3.bf16.msra.mxu1 %v6528_v41  ;;  %5864 = vmatprep.subr.bf16.mxu0 %v6669_v1  ;;  %v6575_v41 = vld [vmem:[%s8165_s1 + $0x1e8] sm:$0xff]  }
 0x1c9   : > { %6044 = vmatprep.subr.bf16.mxu1 %v6669_v1 }
 0x1cb   : > { %5865 = vmatpush3.bf16.msra.mxu0 %v6529_v6  ;;  %v3953_v6 = vshll.u32 %v7989_v4, 16 }
 0x1cc   : > { %6045 = vmatpush3.bf16.msra.mxu1 %v6530_v10  ;;  %5870 = vmatprep.subr.bf16.mxu0 %v6669_v1  ;;  %v3951_v10 = vshrl.u32 %v7989_v4, 16 }
 0x1cd   : > { %6050 = vmatprep.subr.bf16.mxu1 %v6669_v1 }
 0x1ce   : > { %5867 = vmatmul.mubr.bf16.vlgmr.msra.gmra.mrb[4].mxu0 %v7363_v33  ;;  %v6535_v33 = vld [vmem:[%s8165_s1 + $0x150] sm:$0xff]  }
 0x1cf   : > { %5871 = vmatpush3.bf16.msra.mxu0 %v6531_v11  ;;  %6047 = vmatmul.mubr.bf16.vlgmr.msra.gmra.mrb[4].mxu1 %v7794_v12  ;;  %v6578_v11 = vld [vmem:[%s8165_s1 + $0x1f8] sm:$0xff]  }
 0x1d0   : > { %6051 = vmatpush3.bf16.msra.mxu1 %v6532_v14  ;;  %5872 = vmatprep.subr.bf16.mxu0 %v6669_v1  ;;  %v3955_v14 = vrot.slane %v3953_v6, 1 }
 0x1d1   : > { %6052 = vmatprep.subr.bf16.mxu1 %v6669_v1  ;;  %5886 = vmatprep.mubr.msk.bf16.mxu0 %vm6670_vm0, %v6669_v1 }
 0x1d2   : > { %6066 = vmatprep.mubr.msk.bf16.mxu1 %vm6670_vm0, %v6669_v1 }
 0x1d3   : > { %5873 = vmatpush3.bf16.msra.mxu0 %v6533_v16  ;;  %v6579_v16 = vld [vmem:[%s8165_s1 + $0x1f8] sm:$0xff]  }
 0x1d4   : > { %6053 = vmatpush3.bf16.msra.mxu1 %v6534_v17  ;;  %5874 = vmatprep.subr.bf16.mxu0 %v6669_v1  ;;  %v6580_v17 = vld [vmem:[%s8165_s1 + $0x200] sm:$0xff]  }
 0x1d5   : > { %6054 = vmatprep.subr.bf16.mxu1 %v6669_v1 }
 0x1d7   : > { %5875 = vmatpush3.bf16.msra.mxu0 %v6535_v33  ;;  %v3956_v33 = vor.u32 %v3955_v14, %v3951_v10 }
 0x1d8   : > { %6055 = vmatpush3.bf16.msra.mxu1 %v6536_v18  ;;  %5876 = vmatprep.subr.bf16.mxu0 %v6669_v1  ;;  %v6581_v18 = vld [vmem:[%s8165_s1 + $0x200] sm:$0xff]  }
 0x1d9   : > { %6056 = vmatprep.subr.bf16.mxu1 %v6669_v1 }
 0x1db   : > { %5877 = vmatpush3.bf16.msra.mxu0 %v6537_v19  ;;  %v6582_v19 = vld [vmem:[%s8165_s1 + $0x208] sm:$0xff]  }
 0x1dc   : > { %6057 = vmatpush3.bf16.msra.mxu1 %v6538_v20  ;;  %5878 = vmatprep.subr.bf16.mxu0 %v6669_v1  ;;  %v6583_v20 = vld [vmem:[%s8165_s1 + $0x208] sm:$0xff]  }
 0x1dd   : > { %6058 = vmatprep.subr.bf16.mxu1 %v6669_v1 }
 0x1df   : > { %5879 = vmatpush3.bf16.msra.mxu0 %v6539_v21  ;;  %v6585_v21 = vld [vmem:[%s8165_s1 + $0x210] sm:$0xff]  }
 0x1e0   : > { %6059 = vmatpush3.bf16.msra.mxu1 %v6540_v22  ;;  %5880 = vmatprep.subr.bf16.mxu0 %v6669_v1  ;;  %v6586_v22 = vld [vmem:[%s8165_s1 + $0x218] sm:$0xff]  }
 0x1e1   : > { %6060 = vmatprep.subr.bf16.mxu1 %v6669_v1 }
 0x1e3   : > { %5881 = vmatpush3.bf16.msra.mxu0 %v6541_v13  ;;  %v6587_v13 = vld [vmem:[%s8165_s1 + $0x218] sm:$0xff]  }
 0x1e4   : > { %6061 = vmatpush3.bf16.msra.mxu1 %v6542_v23  ;;  %5882 = vmatprep.subr.bf16.mxu0 %v6669_v1  ;;  %v6588_v23 = vld [vmem:[%s8165_s1 + $0x220] sm:$0xff]  }
 0x1e5   : > { %6062 = vmatprep.subr.bf16.mxu1 %v6669_v1 }
 0x1e7   : > { %5883 = vmatpush3.bf16.msra.mxu0 %v6543_v24  ;;  %v6589_v24 = vld [vmem:[%s8165_s1 + $0x220] sm:$0xff]  }
 0x1e8   : > { %6063 = vmatpush3.bf16.msra.mxu1 %v6544_v25  ;;  %5884 = vmatprep.subr.bf16.mxu0 %v6669_v1  ;;  %v6590_v25 = vld [vmem:[%s8165_s1 + $0x228] sm:$0xff]  }
 0x1e9   : > { %6064 = vmatprep.subr.bf16.mxu1 %v6669_v1 }
 0x1eb   : > { %5885 = vmatpush3.bf16.msra.mxu0 %v6545_v26  ;;  %v6591_v26 = vld [vmem:[%s8165_s1 + $0x228] sm:$0xff]  }
 0x1ec   : > { %6065 = vmatpush3.bf16.msra.mxu1 %v6546_v27  ;;  %5890 = vmatprep.subr.bf16.mxu0 %v6669_v1  ;;  %v6592_v27 = vld [vmem:[%s8165_s1 + $0x230] sm:$0xff]  }
 0x1ed   : > { %6070 = vmatprep.subr.bf16.mxu1 %v6669_v1 }
 0x1ee   : > { %5887 = vmatmul.mubr.bf16.vlgmr.msra.gmra.mrb[4].mxu0 %v7430_v48  ;;  %v6551_v48 = vld [vmem:[%s8165_s1 + $0x190] sm:$0xff]  }
 0x1ef   : > { %5891 = vmatpush3.bf16.msra.mxu0 %v6547_v28  ;;  %6067 = vmatmul.mubr.bf16.vlgmr.msra.gmra.mrb[4].mxu1 %v3077_v30  ;;  %v6593_v28 = vld [vmem:[%s8165_s1 + $0x230] sm:$0xff]  }
 0x1f0   : > { %6071 = vmatpush3.bf16.msra.mxu1 %v6548_v31  ;;  %5892 = vmatprep.subr.bf16.mxu0 %v6669_v1  ;;  %v6594_v31 = vld [vmem:[%s8165_s1 + $0x238] sm:$0xff]  }
 0x1f1   : > { %6072 = vmatprep.subr.bf16.mxu1 %v6669_v1  ;;  %5906 = vmatprep.mubr.msk.bf16.mxu0 %vm6670_vm0, %v6669_v1 }
 0x1f2   : > { %6086 = vmatprep.mubr.msk.bf16.mxu1 %vm6670_vm0, %v6669_v1 }
 0x1f3   : > { %5893 = vmatpush3.bf16.msra.mxu0 %v6549_v32  ;;  %v6595_v32 = vld [vmem:[%s8165_s1 + $0x238] sm:$0xff]  }
 0x1f4   : > { %6073 = vmatpush3.bf16.msra.mxu1 %v6550_v34  ;;  %5894 = vmatprep.subr.bf16.mxu0 %v6669_v1  ;;  %v4063_v34 = vrot.slane %v7989_v4, 1 }
 0x1f5   : > { %6074 = vmatprep.subr.bf16.mxu1 %v6669_v1 }
 0x1f7   : > { %5895 = vmatpush3.bf16.msra.mxu0 %v6551_v48 }
 0x1f8   : > { %6075 = vmatpush3.bf16.msra.mxu1 %v6552_v35  ;;  %5896 = vmatprep.subr.bf16.mxu0 %v6669_v1 }
 0x1f9   : > { %6076 = vmatprep.subr.bf16.mxu1 %v6669_v1 }
 0x1fb   : > { %5897 = vmatpush3.bf16.msra.mxu0 %v6553_v36 }
 0x1fc   : > { %6077 = vmatpush3.bf16.msra.mxu1 %v6554_v37  ;;  %5898 = vmatprep.subr.bf16.mxu0 %v6669_v1 }
 0x1fd   : > { %6078 = vmatprep.subr.bf16.mxu1 %v6669_v1 }
 0x1ff   : > { %5899 = vmatpush3.bf16.msra.mxu0 %v6555_v38 }
 0x200   : > { %6079 = vmatpush3.bf16.msra.mxu1 %v6556_v39  ;;  %5900 = vmatprep.subr.bf16.mxu0 %v6669_v1 }
 0x201   : > { %v7918_v56 = vpop.f32.mrb[0].mxu0  ;;  %6080 = vmatprep.subr.bf16.mxu1 %v6669_v1 }
 0x202   : > { %v7921_v43 = vpop.f32.mrb[0].mxu1  ;;  %v5588_v29 = vpop.f32.mrb[1].mxu0  ;;  %v1195_v44 = vsel %vm1194_vm1, %v7918_v56, 0.0 }
 0x203   : > { %v5768_v45 = vpop.f32.mrb[1].mxu1  ;;  %5901 = vmatpush3.bf16.msra.mxu0 %v6557_v40  ;;  %1196 = vadd.xlane.f32.xlu0 %v1195_v44  ;;  %v1190_v46 = vpop.f32.mrb[2].mxu0  ;;  %v2182_v53 = vsel %vm1194_vm1, %v7921_v43, 0.0 }
 0x204   : > { %v2178_v49 = vpop.f32.mrb[2].mxu1  ;;  %6081 = vmatpush3.bf16.msra.mxu1 %v6558_v42  ;;  %v5589_v50 = vpop.f32.mrb[3].mxu0  ;;  %5902 = vmatprep.subr.bf16.mxu0 %v6669_v1 }
 0x205   : > { %v5769_v52 = vpop.f32.mrb[3].mxu1  ;;  %6082 = vmatprep.subr.bf16.mxu1 %v6669_v1 }
 0x207   : > { %5903 = vmatpush3.bf16.msra.mxu0 %v6559_v47  ;;  %2183 = vadd.xlane.f32.xlu0 %v2182_v53 }
 0x208   : > { %6083 = vmatpush3.bf16.msra.mxu1 %v6560_v51  ;;  %5904 = vmatprep.subr.bf16.mxu0 %v6669_v1 }
 0x209   : > { %6084 = vmatprep.subr.bf16.mxu1 %v6669_v1 }
 0x20b   : > { %5905 = vmatpush3.bf16.msra.mxu0 %v6561_v54 }
 0x20c   : > { %6085 = vmatpush3.bf16.msra.mxu1 %v6562_v57  ;;  %5910 = vmatprep.subr.bf16.mxu0 %v6669_v1  ;;  %v4469_v57 = vld [vmem:[%s8166_s2] ss:$0 sm:$0xff] }
 0x20d   : > { %6090 = vmatprep.subr.bf16.mxu1 %v6669_v1 }
 0x20e   : > { %5907 = vmatmul.mubr.bf16.vlgmr.msra.gmra.mrb[4].mxu0 %v7717_v55  ;;  %v6568_v55 = vld [vmem:[%s8165_s1 + $0x1d0] sm:$0xff]  }
 0x20f   : > { %5911 = vmatpush3.bf16.msra.mxu0 %v6563_v58  ;;  %6087 = vmatmul.mubr.bf16.vlgmr.msra.gmra.mrb[4].mxu1 %v203_v59  ;;  %v4470_v59 = vld [vmem:[%s8167_s3] ss:$0 sm:$0xff] }
 0x210   : > { %6091 = vmatpush3.bf16.msra.mxu1 %v6565_v9  ;;  %5912 = vmatprep.subr.bf16.mxu0 %v6669_v1 }
 0x211   : > { %6092 = vmatprep.subr.bf16.mxu1 %v6669_v1  ;;  %5926 = vmatprep.mubr.msk.bf16.mxu0 %vm6670_vm0, %v6669_v1 }
 0x212   : > { %6106 = vmatprep.mubr.msk.bf16.mxu1 %vm6670_vm0, %v6669_v1 }
 0x213   : > { %5913 = vmatpush3.bf16.msra.mxu0 %v6566_v15 }
 0x214   : > { %6093 = vmatpush3.bf16.msra.mxu1 %v6567_v60  ;;  %5914 = vmatprep.subr.bf16.mxu0 %v6669_v1 }
 0x215   : > { %6094 = vmatprep.subr.bf16.mxu1 %v6669_v1 }
 0x217   : > { %5915 = vmatpush3.bf16.msra.mxu0 %v6568_v55 }
 0x218   : > { %6095 = vmatpush3.bf16.msra.mxu1 %v6569_v61  ;;  %5916 = vmatprep.subr.bf16.mxu0 %v6669_v1 }
 0x219   : > { %6096 = vmatprep.subr.bf16.mxu1 %v6669_v1 }
 0x21b   : > { %5917 = vmatpush3.bf16.msra.mxu0 %v6570_v62 }
 0x21c   : > { %6097 = vmatpush3.bf16.msra.mxu1 %v6571_v63  ;;  %5918 = vmatprep.subr.bf16.mxu0 %v6669_v1 }
 0x21d   : > { %6098 = vmatprep.subr.bf16.mxu1 %v6669_v1 }
 0x21f   : > { %5919 = vmatpush3.bf16.msra.mxu0 %v6572_v2 }
 0x220   : > { %6099 = vmatpush3.bf16.msra.mxu1 %v6573_v3  ;;  %5920 = vmatprep.subr.bf16.mxu0 %v6669_v1 }
 0x221   : > { %6100 = vmatprep.subr.bf16.mxu1 %v6669_v1 }
 0x223   : > { %5921 = vmatpush3.bf16.msra.mxu0 %v6574_v5 }
 0x224   : > { %6101 = vmatpush3.bf16.msra.mxu1 %v6575_v41  ;;  %5922 = vmatprep.subr.bf16.mxu0 %v6669_v1 }
 0x225   : > { %6102 = vmatprep.subr.bf16.mxu1 %v6669_v1 }
 0x227   : > { %5923 = vmatpush3.bf16.msra.mxu0 %v6576_v7 }
 0x228   : > { %6103 = vmatpush3.bf16.msra.mxu1 %v6577_v8  ;;  %5924 = vmatprep.subr.bf16.mxu0 %v6669_v1 }
 0x229   : > { %6104 = vmatprep.subr.bf16.mxu1 %v6669_v1 }
 0x22b   : > { %5925 = vmatpush3.bf16.msra.mxu0 %v6578_v11 }
 0x22c   : > { %6105 = vmatpush3.bf16.msra.mxu1 %v6579_v16  ;;  %5930 = vmatprep.subr.bf16.mxu0 %v6669_v1 }
 0x22d   : > { %6110 = vmatprep.subr.bf16.mxu1 %v6669_v1 }
 0x22e   : > { %5927 = vmatmul.mubr.bf16.vlgmr.msra.gmra.mrb[4].mxu0 %v7794_v12  ;;  %v6584_v12 = vld [vmem:[%s8165_s1 + $0x210] sm:$0xff]  }
 0x22f   : > { %5931 = vmatpush3.bf16.msra.mxu0 %v6580_v17  ;;  %6107 = vmatmul.mubr.bf16.vlgmr.msra.gmra.mrb[4].mxu1 %v3956_v33 }
 0x230   : > { %6111 = vmatpush3.bf16.msra.mxu1 %v6581_v18  ;;  %5932 = vmatprep.subr.bf16.mxu0 %v6669_v1 }
 0x231   : > { %6112 = vmatprep.subr.bf16.mxu1 %v6669_v1  ;;  %5946 = vmatprep.mubr.msk.bf16.mxu0 %vm6670_vm0, %v6669_v1 }
 0x232   : > { %6126 = vmatprep.mubr.msk.bf16.mxu1 %vm6670_vm0, %v6669_v1 }
 0x233   : > { %5933 = vmatpush3.bf16.msra.mxu0 %v6582_v19 }
 0x234   : > { %6113 = vmatpush3.bf16.msra.mxu1 %v6583_v20  ;;  %5934 = vmatprep.subr.bf16.mxu0 %v6669_v1 }
 0x235   : > { %6114 = vmatprep.subr.bf16.mxu1 %v6669_v1 }
 0x237   : > { %5935 = vmatpush3.bf16.msra.mxu0 %v6584_v12 }
 0x238   : > { %6115 = vmatpush3.bf16.msra.mxu1 %v6585_v21  ;;  %5936 = vmatprep.subr.bf16.mxu0 %v6669_v1 }
 0x239   : > { %6116 = vmatprep.subr.bf16.mxu1 %v6669_v1 }
 0x23b   : > { %5937 = vmatpush3.bf16.msra.mxu0 %v6586_v22 }
 0x23c   : > { %6117 = vmatpush3.bf16.msra.mxu1 %v6587_v13  ;;  %5938 = vmatprep.subr.bf16.mxu0 %v6669_v1 }
 0x23d   : > { %6118 = vmatprep.subr.bf16.mxu1 %v6669_v1 }
 0x23f   : > { %5939 = vmatpush3.bf16.msra.mxu0 %v6588_v23 }
 0x240   : > { %6119 = vmatpush3.bf16.msra.mxu1 %v6589_v24  ;;  %5940 = vmatprep.subr.bf16.mxu0 %v6669_v1 }
 0x241   : > { %6120 = vmatprep.subr.bf16.mxu1 %v6669_v1 }
 0x243   : > { %5941 = vmatpush3.bf16.msra.mxu0 %v6590_v25 }
 0x244   : > { %6121 = vmatpush3.bf16.msra.mxu1 %v6591_v26  ;;  %5942 = vmatprep.subr.bf16.mxu0 %v6669_v1 }
 0x245   : > { %6122 = vmatprep.subr.bf16.mxu1 %v6669_v1 }
 0x247   : > { %5943 = vmatpush3.bf16.msra.mxu0 %v6592_v27 }
 0x248   : > { %6123 = vmatpush3.bf16.msra.mxu1 %v6593_v28  ;;  %5944 = vmatprep.subr.bf16.mxu0 %v6669_v1 }
 0x249   : > { %6124 = vmatprep.subr.bf16.mxu1 %v6669_v1 }
 0x24b   : > { %5945 = vmatpush3.bf16.msra.mxu0 %v6594_v31 }
 0x24c   : > { %6125 = vmatpush3.bf16.msra.mxu1 %v6595_v32 }
 0x24e   : > { %5947 = vmatmul.mubr.bf16.vlgmr.msra.gmra.mrb[4].mxu0 %v3077_v30 }
 0x24f   : > { %6127 = vmatmul.mubr.bf16.vlgmr.msra.gmra.mrb[4].mxu1 %v4063_v34 }
 0x290   : > { %v1197_v48 = vpop.xlane.xlu0 %1196 }
 0x291   : > { %v1199_v35 = vmul.f32 0.0078125, %v1197_v48 }
 0x293   : > { %v1200_v36 = vsub.f32 %v7918_v56, %v1199_v35 }
 0x294   : > { %v2184_v39 = vpop.xlane.xlu0 %2183 }
 0x295   : > { %v1201_v37 = vmul.f32 %v1200_v36, %v1200_v36  ;;  %v2185_v40 = vmul.f32 0.0078125, %v2184_v39 }
 0x297   : > { %v1202_v38 = vsel %vm1194_vm1, %v1201_v37, 0.0  ;;  %v2186_v1 = vsub.f32 %v7921_v43, %v2185_v40 }
 0x298   : > { %1203 = vadd.xlane.f32.xlu0 %v1202_v38 }
 0x299   : > { %v2187_v52 = vmul.f32 %v2186_v1, %v2186_v1 }
 0x29b   : > { %v2188_v43 = vsel %vm1194_vm1, %v2187_v52, 0.0 }
 0x321   : > { %v3161_v42 = vpop.f32.mrb[4].mxu0 }
 0x322   : > { %v4147_v29 = vpop.f32.mrb[4].mxu1  ;;  %v5948_v44 = vpop.f32.mrb[5].mxu0  ;;  %v3168_v45 = vsel %vm1194_vm1, %v3161_v42, 0.0 }
 0x323   : > { %v6128_v0 = vpop.f32.mrb[5].mxu1  ;;  %3169 = vadd.xlane.f32.xlu1 %v3168_v45  ;;  %v3164_v30 = vpop.f32.mrb[6].mxu0  ;;  %v4154_v51 = vsel %vm1194_vm1, %v4147_v29, 0.0 }
 0x324   : > { %v4150_v46 = vpop.f32.mrb[6].mxu1  ;;  %v5949_v56 = vpop.f32.mrb[7].mxu0 }
 0x325   : > { %v6129_v47 = vpop.f32.mrb[7].mxu1  ;;  %v1204_v49 = vpop.xlane.xlu0 %1203 }
 0x326   : > { %v1205_v50 = vmul.f32 0.0078125, %v1204_v49 }
 0x327   : > { %4155 = vadd.xlane.f32.xlu1 %v4154_v51 }
 0x328   : > { %v1206_v53 = vadd.f32 1e-06, %v1205_v50 }
 0x32a   : > { %6596 = vrsqrt.f32 %v1206_v53 }
 0x32b   : > { %2189 = vadd.xlane.f32.xlu1 %v2188_v43 }
 0x334   : > { %v6597_v54 = vpop.eup %6596 }
 0x335   : > { %v1208_v58 = vmul.f32 %v6597_v54, %v1200_v36 }
 0x337   : > { %v1216_v9 = vmul.f32 %v4469_v57, %v1208_v58 }
 0x339   : > { %v1224_v15 = vadd.f32 %v4470_v59, %v1216_v9 }
 0x33b   : > { %1225 = vst [vmem:[%s8104_s7] sm:$0xf] %v1224_v15 }
 0x3b0   : > { %v3170_v60 = vpop.xlane.xlu1 %3169 }
 0x3b1   : > { %v3171_v55 = vmul.f32 0.0078125, %v3170_v60 }
 0x3b3   : > { %v3172_v61 = vsub.f32 %v3161_v42, %v3171_v55 }
 0x3b4   : > { %v4156_v62 = vpop.xlane.xlu1 %4155 }
 0x3b5   : > { %v4157_v63 = vmul.f32 0.0078125, %v4156_v62  ;;  %v3173_v2 = vmul.f32 %v3172_v61, %v3172_v61 }
 0x3b7   : > { %v4158_v3 = vsub.f32 %v4147_v29, %v4157_v63  ;;  %v3174_v4 = vsel %vm1194_vm1, %v3173_v2, 0.0 }
 0x3b8   : > { %3175 = vadd.xlane.f32.xlu0 %v3174_v4  ;;  %v2190_v5 = vpop.xlane.xlu1 %2189 }
 0x3b9   : > { %v2191_v41 = vmul.f32 0.0078125, %v2190_v5  ;;  %v4159_v6 = vmul.f32 %v4158_v3, %v4158_v3 }
 0x3bb   : > { %v2192_v7 = vadd.f32 1e-06, %v2191_v41  ;;  %v4160_v8 = vsel %vm1194_vm1, %v4159_v6, 0.0 }
 0x3bc   : > { %4161 = vadd.xlane.f32.xlu1 %v4160_v8 }
 0x3bd   : > { %6598 = vrsqrt.f32 %v2192_v7 }
 0x3c7   : > { %v6599_v10 = vpop.eup %6598 }
 0x3c8   : > { %v2194_v11 = vmul.f32 %v6599_v10, %v2186_v1 }
 0x3ca   : > { %v2202_v14 = vmul.f32 %v4469_v57, %v2194_v11 }
 0x3cc   : > { %v2210_v16 = vadd.f32 %v4470_v59, %v2202_v14 }
 0x3ce   : > { %2211 = vst [vmem:[%s8104_s7 + $0x4] sm:$0xf] %v2210_v16 }
 0x445   : > { %v3176_v17 = vpop.xlane.xlu0 %3175 }
 0x446   : > { %v3177_v33 = vmul.f32 0.0078125, %v3176_v17 }
 0x448   : > { %v3178_v18 = vadd.f32 1e-06, %v3177_v33 }
 0x449   : > { %v4162_v19 = vpop.xlane.xlu1 %4161 }
 0x44a   : > { %6600 = vrsqrt.f32 %v3178_v18  ;;  %v4163_v20 = vmul.f32 0.0078125, %v4162_v19 }
 0x44c   : > { %v4164_v12 = vadd.f32 1e-06, %v4163_v20 }
 0x44e   : > { %6602 = vrsqrt.f32 %v4164_v12 }
 0x454   : > { %v6601_v21 = vpop.eup %6600 }
 0x455   : > { %v3180_v22 = vmul.f32 %v6601_v21, %v3172_v61 }
 0x457   : > { %v3188_v13 = vmul.f32 %v4469_v57, %v3180_v22 }
 0x458   : > { %v6603_v23 = vpop.eup %6602 }
 0x459   : > { %v3196_v24 = vadd.f32 %v4470_v59, %v3188_v13  ;;  %v4166_v25 = vmul.f32 %v6603_v23, %v4158_v3 }
 0x45b   : > { %3197 = vst [vmem:[%s8104_s7 + $0x8] sm:$0xf] %v3196_v24  ;;  %v4174_v26 = vmul.f32 %v4469_v57, %v4166_v25 }
 0x45d   : > { %v4182_v27 = vadd.f32 %v4470_v59, %v4174_v26 }
 0x45f   : > { %4183 = vst [vmem:[%s8104_s7 + $0xc] sm:$0xf] %v4182_v27 }
 0x460   : > { %6618 = shalt.err (!%p6615_p3)
}
 0x461   : > { %s6619_s22 = scalar_lea.hbm %s8116_s12, 256  ;;  %s6623_s28 = scalar_lea.hbm %s8168_s4, 512 }
 0x462   : > { %p6620_p4 = scmp.ne.s32.totalorder %s8116_s12, %s6619_s22  ;;  %p6624_p9 = scmp.lt.u32.totalorder %s8116_s12, %s8168_s4 }
 0x463   : > { %p6625_p10 = scmp.lt.u32.totalorder %s6623_s28, %s6619_s22  ;;  %p6627_p12 = scmp.lt.u32.totalorder %s6619_s22, %s8116_s12 }
 0x464   : > { %p6621_p7 = pnand %p6620_p4, %p6737_p5 }
 0x465   : > { %p6626_p11 = por %p6625_p10, %p6624_p9 }
 0x466   : > { %p6622_p8 = pneg %p6621_p7 }
 0x467   : > { %p6628_p13 = por %p6627_p12, %p6626_p11 }
 0x469   : > { %p6629_p0 = pnand %p6628_p13, %p6622_p8 }
 0x46b   : > { %6632 = shalt.err (!%p6629_p0)
}
 0x46c   : > { %s6672_s6 = smov 128   ;;  %s6673_s7 = smov 8  }
 0x46d   : > { %6259 = dma.vmem_to_hbm [thread:$0]  (%p6737_p5), %s8118_s9, 256, %s8116_s12, %s8123_s30, %s6672_s6, %s6672_s6, %s6673_s7  }
 0x46e PF: > { %p6265_p1 = scmp.ge.s32.totalorder %s6667_s18, 2  ;;  %s4213_s8 = sand.u32 1, %s6655_s15  }
 0x46f   : > { %s4214_s10 = scalar_lea.sflag [#allocation3], %s4213_s8 }
 0x470   : > { %p6262_p2 = pnand %p6265_p1, %p6741_p6 }
 0x472   : > { %6650 = dma.done.wait (!%p6262_p2), %s4214_s10, 256  }
 0x473   : > { %6652 = vsyncadd (!%p6262_p2), %s4214_s10, 4294967040  ;;  %p14_p3 = scmp.ge.s32.totalorder %s6724_s21, 4   ;;  %s8171_s15 = smov %s6659_s16 }
 0x474   : > { %s8172_s16 = smov %s6663_s17  ;;  %s8173_s17 = smov %s6735_s24 }
 0x475   : > { %s8174_s18 = smov %s6724_s21  ;;  %16 = sbr.rel (!%p14_p3) target bundleno = 3 (0x3), region = 79 }
 0x47c   :  { %4219 = vsyncpa [#allocation3], 1 }
 0x47d   :  { %4221 = vsyncpa [#allocation3 + $0x1], 1 }

</bundles_post_ra>
